<compile_context>
chip_gen: v5e
topology: v5e:2x2
jax: 0.10.0
libtpu: 0.0.40
codegen_flags: <defaults>
</compile_context>

<pallas_src>
import functools

import numpy as np
import jax
import jax.numpy as jnp
from jax import lax
from jax.experimental import pallas as pl
from jax.experimental.pallas import tpu as pltpu

# ----------------------------- model dimensions ----------------------------
H1, W1, C0 = 32, 32, 3                # conv1 input: 3 x 32 x 32
C1 = 16                               # conv1 output channels
H2, W2, C2 = 16, 16, 32               # conv2: 16 -> 32 on 16x16 (after pool1)
H3, W3 = 8, 8                         # spatial after pool2
F1, F2, F2P = 128, 10, 128            # fc1 width, fc2 width, fc2 padded width
KPAD1 = 128                           # conv1 per-tap K (W1*C0 = 96, padded)


# ------------------------------ fused kernel -------------------------------

def _fused_cnn_kernel(x_ref, wb1_ref, b1_ref, sc1_ref, sr1_ref,
                      wb2_ref, b2_ref, sc2_ref, sr2_ref,
                      wf1_ref, bf1_ref, wf2_ref, bf2_ref, o_ref):
    dot = functools.partial(jnp.dot, preferred_element_type=jnp.float32)
    bf16 = jnp.bfloat16
    B = o_ref.shape[1]                                   # images per grid step

    def conv_relu(a, h_img, wb_ref, b_ref):
        """3x3 'same' conv + ReLU on B stacked images of height h_img.
        a: (B*h_img, lanes) f32, columns = x*Cin + ci (zero lane padding OK).
        Row taps = sublane rolls + per-image edge mask; kw taps, the x zero
        padding and the Cin->Cout contraction live in the host-built banded
        weight; the 3 kh taps are concatenated along K -> one MXU matmul."""
        rows, lanes = a.shape
        y_in_img = lax.broadcasted_iota(jnp.int32, (rows, lanes), 0) % h_img
        zero = jnp.zeros_like(a)
        up = jnp.where(y_in_img == 0, zero, pltpu.roll(a, 1, 0))            # a[r-1]
        dn = jnp.where(y_in_img == h_img - 1, zero, pltpu.roll(a, rows - 1, 0))  # a[r+1]
        a_cat = jnp.concatenate([up, a, dn], axis=-1).astype(bf16)          # (rows, 3*lanes)
        y = dot(a_cat, wb_ref[...]) + b_ref[...]                            # f32
        return jnp.maximum(y, 0.0)

    def pool2x2(y, cch, sr_ref, sc_ref):
        """2x2 max-pool: pair maxima via rolls (XLU/VPU), then one 0/1
        even-row selection matmul and one even-x-group selection matmul."""
        rows, lanes = y.shape
        m = jnp.maximum(y, pltpu.roll(y, lanes - cch, 1))    # pair-max over x
        m = jnp.maximum(m, pltpu.roll(m, rows - 1, 0))       # pair-max over y
        t = dot(sr_ref[...], m.astype(bf16))                 # keep even rows
        return dot(t.astype(bf16), sc_ref[...])              # keep even x groups

    a0 = x_ref[...]                                          # (B*32, 128) f32

    y1 = conv_relu(a0, H1, wb1_ref, b1_ref)                  # (B*32, 512)
    p1 = pool2x2(y1, C1, sr1_ref, sc1_ref)                   # (B*16, 256)
    y2 = conv_relu(p1, H2, wb2_ref, b2_ref)                  # (B*16, 512)
    p2 = pool2x2(y2, C2, sr2_ref, sc2_ref)                   # (B*8, 256), rows y*B + b

    # ---- fc1 + ReLU : sum over the 8 output rows, M = B per dot ----
    acc = jnp.zeros((B, F1), jnp.float32)
    for yo in range(H3):
        blk = p2[yo * B:(yo + 1) * B, :].astype(bf16)        # (B, 256)
        acc = acc + dot(blk, wf1_ref[yo])                    # wf1_ref[yo]: (256, 128)
    h = jnp.maximum(acc + bf1_ref[...], 0.0).astype(bf16)    # (B, 128)

    # ---- fc2 (output padded to 128 lanes; cols >= 10 are zero) ----
    o_ref[0] = dot(h, wf2_ref[...]) + bf2_ref[...]           # (B, 128) f32


# ------------------------------ wrapper -------------------------------------

def _const_spec(shape):
    nd = len(shape)
    return pl.BlockSpec(shape, lambda i, _nd=nd: (0,) * _nd)


@jax.jit
def simple_cnn_forward(x_nchw, params):
    b_tile = params["sr1"].shape[0] // H2                    # B_TILE baked into sr1
    n = x_nchw.shape[0]
    n_pad = ((n + b_tile - 1) // b_tile) * b_tile
    n_grid = n_pad // b_tile

    x = x_nchw.astype(jnp.float32)
    if n_pad != n:
        x = jnp.concatenate(
            [x, jnp.zeros((n_pad - n,) + x.shape[1:], jnp.float32)], axis=0)
    # NCHW -> stacked lane-dense rows: (n_pad*32, 128), cols = x*3 + c (pad to 128).
    x2d = jnp.transpose(x, (0, 2, 3, 1)).reshape(n_pad * H1, W1 * C0)
    x2d = jnp.pad(x2d, ((0, 0), (0, KPAD1 - W1 * C0)))

    operands = (
        x2d,
        params["wb1"], params["b1"], params["sc1"], params["sr1"],
        params["wb2"], params["b2"], params["sc2"], params["sr2"],
        params["wf1"], params["bf1"], params["wf2"], params["bf2"],
    )
    in_specs = [pl.BlockSpec((b_tile * H1, KPAD1), lambda i: (i, 0))]
    in_specs += [_const_spec(op.shape) for op in operands[1:]]

    out = pl.pallas_call(
        _fused_cnn_kernel,
        out_shape=jax.ShapeDtypeStruct((n_grid, b_tile, F2P), jnp.float32),
        grid_spec=pltpu.PrefetchScalarGridSpec(
            num_scalar_prefetch=0,
            grid=(n_grid,),
            in_specs=in_specs,
            out_specs=pl.BlockSpec((1, b_tile, F2P), lambda i: (i, 0, 0)),
        ),
        compiler_params=pltpu.CompilerParams(
            dimension_semantics=("parallel",),
            vmem_limit_bytes=32 * 1024 * 1024),
    )(*operands)
    return out.reshape(n_pad, F2P)[:n, :F2]


# -------------------- host-side parameter preparation ----------------------

def _banded_conv_weight_cat(w_oihw, width, k_pad=None):
    """(Co,Ci,3,3) torch conv weight -> (3*K, width*Co) banded matrix with the
    three kh taps stacked along rows (K = width*Ci, optionally zero-padded).
    WB[kh*K + xi*Ci + ci, xo*Co + co] = w[co, ci, kh, xi-xo+1] for |xi-xo|<=1."""
    co_n, ci_n, kh_n, kw_n = w_oihw.shape
    k = width * ci_n
    k_pad = k if k_pad is None else k_pad
    wt = np.transpose(np.asarray(w_oihw, np.float32), (2, 3, 1, 0))  # (kh,kw,ci,co)
    wb = np.zeros((kh_n, k_pad, width * co_n), np.float32)
    for kh in range(kh_n):
        for kw in range(kw_n):
            for xo in range(width):
                xi = xo + kw - 1
                if 0 <= xi < width:
                    wb[kh, xi * ci_n:(xi + 1) * ci_n,
                       xo * co_n:(xo + 1) * co_n] = wt[kh, kw]
    return wb.reshape(kh_n * k_pad, width * co_n)


def _col_pool_even(width, ch):
    """Even-x-group 0/1 selection matrix: (width*ch, (width//2)*ch)."""
    wo = width // 2
    s = np.zeros((width * ch, wo * ch), np.float32)
    for xo in range(wo):
        for c in range(ch):
            s[(2 * xo) * ch + c, xo * ch + c] = 1.0
    return s


def _row_pool_even(height, b_tile, y_major):
    """Even-row 0/1 selection matrix over B stacked images:
    (b_tile*height//2, b_tile*height); output rows b-major or y-major."""
    ho = height // 2
    s = np.zeros((b_tile * ho, b_tile * height), np.float32)
    for b in range(b_tile):
        for y in range(ho):
            r_out = (y * b_tile + b) if y_major else (b * ho + y)
            s[r_out, b * height + 2 * y] = 1.0
    return s


def make_params(w1, b1, w2, b2, wf1, bf1, wf2, bf2, b_tile=8):
    """PyTorch-layout parameters -> fused-kernel operands (all host-side).
    Matmul operands are bf16 (0/1 selection matrices are exact); biases f32."""
    w1 = np.asarray(w1, np.float32); b1 = np.asarray(b1, np.float32)
    w2 = np.asarray(w2, np.float32); b2 = np.asarray(b2, np.float32)
    wf1 = np.asarray(wf1, np.float32); bf1 = np.asarray(bf1, np.float32)
    wf2 = np.asarray(wf2, np.float32); bf2 = np.asarray(bf2, np.float32)

    # fc1: reorder K from torch's (c, h, w) flatten to per-yo blocks with
    # columns (xo*C2 + c) -- matching the kernel's pooled activation layout.
    wf1_blocks = np.transpose(wf1.reshape(F1, C2, H3, W3),
                              (2, 3, 1, 0)).reshape(H3, W3 * C2, F1)

    wf2p = np.zeros((F1, F2P), np.float32); wf2p[:, :F2] = wf2.T
    bf2p = np.zeros((1, F2P), np.float32);  bf2p[0, :F2] = bf2

    bf16 = jnp.bfloat16
    return {
        "wb1": jnp.asarray(_banded_conv_weight_cat(w1, W1, KPAD1), bf16),
        "b1":  jnp.asarray(np.tile(b1, W1)[None, :], jnp.float32),
        "sc1": jnp.asarray(_col_pool_even(W1, C1), bf16),
        "sr1": jnp.asarray(_row_pool_even(H1, b_tile, y_major=False), bf16),
        "wb2": jnp.asarray(_banded_conv_weight_cat(w2, W2), bf16),
        "b2":  jnp.asarray(np.tile(b2, W2)[None, :], jnp.float32),
        "sc2": jnp.asarray(_col_pool_even(W2, C2), bf16),
        "sr2": jnp.asarray(_row_pool_even(H2, b_tile, y_major=True), bf16),
        "wf1": jnp.asarray(wf1_blocks, bf16),
        "bf1": jnp.asarray(bf1[None, :], jnp.float32),
        "wf2": jnp.asarray(wf2p, bf16),
        "bf2": jnp.asarray(bf2p, jnp.float32),
    }


# ---------------------- pure-JAX reference (for check) ---------------------

def reference_forward(x_nchw, params_torch_layout):
    w1, b1, w2, b2, wf1, bf1, wf2, bf2 = params_torch_layout
    dn = lax.conv_dimension_numbers(x_nchw.shape, w1.shape, ("NCHW", "OIHW", "NCHW"))
    x = lax.conv_general_dilated(x_nchw, w1, (1, 1), ((1, 1), (1, 1)),
                                 dimension_numbers=dn)
    x = jnp.maximum(x + b1[None, :, None, None], 0.0)
    x = lax.reduce_window(x, -jnp.inf, lax.max, (1, 1, 2, 2), (1, 1, 2, 2), "VALID")
    dn2 = lax.conv_dimension_numbers(x.shape, w2.shape, ("NCHW", "OIHW", "NCHW"))
    x = lax.conv_general_dilated(x, w2, (1, 1), ((1, 1), (1, 1)),
                                 dimension_numbers=dn2)
    x = jnp.maximum(x + b2[None, :, None, None], 0.0)
    x = lax.reduce_window(x, -jnp.inf, lax.max, (1, 1, 2, 2), (1, 1, 2, 2), "VALID")
    x = x.reshape(x.shape[0], -1)
    x = jnp.maximum(x @ wf1.T + bf1, 0.0)
    return x @ wf2.T + bf2


# --------------------------------- main -------------------------------------

if __name__ == "__main__":
    key = jax.random.PRNGKey(0)
    k_in, k1, k2, k3, k4, k5, k6, k7, k8 = jax.random.split(key, 9)

    # Input spatial must be 32x32 (fc1 expects 32*8*8 features).  batch=8 with
    # B_TILE=4 -> grid of 2 "parallel" steps, conv1 M = 128 rows on the MXU.
    n, b_tile = 8, 4
    x = jax.random.normal(k_in, (n, 3, 32, 32), dtype=jnp.float32)

    # Deterministic synthetic parameters in PyTorch layouts.
    w1 = 0.05 * jax.random.normal(k1, (16, 3, 3, 3), dtype=jnp.float32)
    b1 = 0.05 * jax.random.normal(k2, (16,), dtype=jnp.float32)
    w2 = 0.05 * jax.random.normal(k3, (32, 16, 3, 3), dtype=jnp.float32)
    b2 = 0.05 * jax.random.normal(k4, (32,), dtype=jnp.float32)
    wf1 = 0.02 * jax.random.normal(k5, (128, 32 * 8 * 8), dtype=jnp.float32)
    bf1 = 0.02 * jax.random.normal(k6, (128,), dtype=jnp.float32)
    wf2 = 0.02 * jax.random.normal(k7, (10, 128), dtype=jnp.float32)
    bf2 = 0.02 * jax.random.normal(k8, (10,), dtype=jnp.float32)

    params = make_params(w1, b1, w2, b2, wf1, bf1, wf2, bf2, b_tile=b_tile)

    out = simple_cnn_forward(x, params)
    out = jax.block_until_ready(out)
    assert out.shape == (n, 10) and out.dtype == jnp.float32

    ref = reference_forward(x, (w1, b1, w2, b2, wf1, bf1, wf2, bf2))
    max_err = float(jnp.max(jnp.abs(out - ref)))
    # bf16 matmul operands (f32 accumulation) -> loosened tolerance vs f32 ref.
    assert jnp.allclose(out, ref, rtol=2e-2, atol=2e-2), f"mismatch: {max_err}"

    print("KERNEL_OK")
</pallas_src>

<mosaic_0001>
module attributes {stable_mosaic.version = 11 : i64} {
  func.func @_fused_cnn_kernel(%arg0: i32, %arg1: memref<128x128xf32, #tpu.memory_space<vmem>>, %arg2: memref<384x512xbf16, #tpu.memory_space<vmem>>, %arg3: memref<1x512xf32, #tpu.memory_space<vmem>>, %arg4: memref<512x256xbf16, #tpu.memory_space<vmem>>, %arg5: memref<64x128xbf16, #tpu.memory_space<vmem>>, %arg6: memref<768x512xbf16, #tpu.memory_space<vmem>>, %arg7: memref<1x512xf32, #tpu.memory_space<vmem>>, %arg8: memref<512x256xbf16, #tpu.memory_space<vmem>>, %arg9: memref<32x64xbf16, #tpu.memory_space<vmem>>, %arg10: memref<8x256x128xbf16, #tpu.memory_space<vmem>>, %arg11: memref<1x128xf32, #tpu.memory_space<vmem>>, %arg12: memref<128x128xbf16, #tpu.memory_space<vmem>>, %arg13: memref<1x128xf32, #tpu.memory_space<vmem>>, %arg14: memref<1x4x128xf32, #tpu.memory_space<vmem>>) attributes {dimension_semantics = [#tpu.dimension_semantics<parallel>], iteration_bounds = array<i64: 2>, scalar_prefetch = 0 : i64, scratch_operands = 0 : i64, tpu.core_type = #tpu.core_type<tc>, window_params = [{transform_indices = @transform_0, window_bounds = array<i64: 128, 128>}, {pipeline_mode = #tpu.pipeline_mode<synchronous>, transform_indices = @transform_1, window_bounds = array<i64: 384, 512>}, {pipeline_mode = #tpu.pipeline_mode<synchronous>, transform_indices = @transform_2, window_bounds = array<i64: 1, 512>}, {pipeline_mode = #tpu.pipeline_mode<synchronous>, transform_indices = @transform_3, window_bounds = array<i64: 512, 256>}, {pipeline_mode = #tpu.pipeline_mode<synchronous>, transform_indices = @transform_4, window_bounds = array<i64: 64, 128>}, {pipeline_mode = #tpu.pipeline_mode<synchronous>, transform_indices = @transform_5, window_bounds = array<i64: 768, 512>}, {pipeline_mode = #tpu.pipeline_mode<synchronous>, transform_indices = @transform_6, window_bounds = array<i64: 1, 512>}, {pipeline_mode = #tpu.pipeline_mode<synchronous>, transform_indices = @transform_7, window_bounds = array<i64: 512, 256>}, {pipeline_mode = #tpu.pipeline_mode<synchronous>, transform_indices = @transform_8, window_bounds = array<i64: 32, 64>}, {pipeline_mode = #tpu.pipeline_mode<synchronous>, transform_indices = @transform_9, window_bounds = array<i64: 8, 256, 128>}, {pipeline_mode = #tpu.pipeline_mode<synchronous>, transform_indices = @transform_10, window_bounds = array<i64: 1, 128>}, {pipeline_mode = #tpu.pipeline_mode<synchronous>, transform_indices = @transform_11, window_bounds = array<i64: 128, 128>}, {pipeline_mode = #tpu.pipeline_mode<synchronous>, transform_indices = @transform_12, window_bounds = array<i64: 1, 128>}, {transform_indices = @transform_13, window_bounds = array<i64: 1, 4, 128>}]} {
    %c0 = arith.constant 0 : index
    %c0_0 = arith.constant 0 : index
    %0 = vector.load %arg1[%c0, %c0_0] : memref<128x128xf32, #tpu.memory_space<vmem>>, vector<128x128xf32>
    %1 = tpu.iota {dimensions = array<i32: 0>} : vector<128x128xi32>
    %c32_i32 = arith.constant 32 : i32
    %c0_i32 = arith.constant 0 : i32
    %2 = arith.cmpi eq, %c32_i32, %c0_i32 : i32
    %c1_i32 = arith.constant 1 : i32
    %3 = arith.select %2, %c1_i32, %c32_i32 : i32
    %4 = vector.broadcast %3 : i32 to vector<128x128xi32>
    %5 = arith.remsi %1, %4 : vector<128x128xi32>
    %c0_i32_1 = arith.constant 0 : i32
    %6 = vector.broadcast %c0_i32_1 : i32 to vector<128x128xi32>
    %7 = arith.cmpi ne, %5, %6 : vector<128x128xi32>
    %c0_i32_2 = arith.constant 0 : i32
    %8 = vector.broadcast %c0_i32_2 : i32 to vector<128x128xi32>
    %9 = arith.cmpi slt, %5, %8 : vector<128x128xi32>
    %c0_i32_3 = arith.constant 0 : i32
    %10 = arith.cmpi slt, %3, %c0_i32_3 : i32
    %11 = vector.broadcast %10 : i1 to vector<128x128xi1>
    %12 = vector.broadcast %11 : vector<128x128xi1> to vector<128x128xi1>
    %13 = arith.xori %9, %12 : vector<128x128xi1>
    %14 = arith.andi %13, %7 : vector<128x128xi1>
    %15 = vector.broadcast %3 : i32 to vector<128x128xi32>
    %16 = arith.addi %5, %15 : vector<128x128xi32>
    %17 = arith.select %14, %16, %5 : vector<128x128xi1>, vector<128x128xi32>
    %cst = arith.constant 0.000000e+00 : f32
    %18 = vector.broadcast %cst : f32 to vector<128x128xf32>
    %c0_i32_4 = arith.constant 0 : i32
    %19 = vector.broadcast %c0_i32_4 : i32 to vector<128x128xi32>
    %20 = arith.cmpi eq, %17, %19 : vector<128x128xi32>
    %c1_i32_5 = arith.constant 1 : i32
    %21 = tpu.dynamic_rotate %0 by %c1_i32_5 dim 0 : vector<128x128xf32>, i32 -> vector<128x128xf32>
    %22 = arith.select %20, %18, %21 : vector<128x128xi1>, vector<128x128xf32>
    %c31_i32 = arith.constant 31 : i32
    %23 = vector.broadcast %c31_i32 : i32 to vector<128x128xi32>
    %24 = arith.cmpi eq, %17, %23 : vector<128x128xi32>
    %c127_i32 = arith.constant 127 : i32
    %25 = tpu.dynamic_rotate %0 by %c127_i32 dim 0 : vector<128x128xf32>, i32 -> vector<128x128xf32>
    %26 = arith.select %24, %18, %25 : vector<128x128xi1>, vector<128x128xf32>
    %27 = tpu.concatenate %22, %0, %26 in 1 : vector<128x128xf32>, vector<128x128xf32>, vector<128x128xf32> -> vector<128x384xf32>
    %28 = arith.truncf %27 : vector<128x384xf32> to vector<128x384xbf16>
    %c0_6 = arith.constant 0 : index
    %c0_7 = arith.constant 0 : index
    %29 = vector.load %arg2[%c0_6, %c0_7] : memref<384x512xbf16, #tpu.memory_space<vmem>>, vector<384x512xbf16>
    %cst_8 = arith.constant dense<0.000000e+00> : vector<128x512xf32>
    %30 = tpu.matmul %28, %29, %cst_8 {dimension_numbers = #tpu.dot_dimension_numbers<[1], [0], [0], [1], [0, 0, 1, 1], [], []>} : vector<128x384xbf16>, vector<384x512xbf16>, vector<128x512xf32> -> vector<128x512xf32>
    %c0_9 = arith.constant 0 : index
    %c0_10 = arith.constant 0 : index
    %31 = vector.load %arg3[%c0_9, %c0_10] : memref<1x512xf32, #tpu.memory_space<vmem>>, vector<1x512xf32>
    %32 = vector.broadcast %31 : vector<1x512xf32> to vector<128x512xf32>
    %33 = arith.addf %30, %32 : vector<128x512xf32>
    %cst_11 = arith.constant 0.000000e+00 : f32
    %34 = vector.broadcast %cst_11 : f32 to vector<128x512xf32>
    %35 = arith.maximumf %33, %34 : vector<128x512xf32>
    %c496_i32 = arith.constant 496 : i32
    %36 = tpu.dynamic_rotate %35 by %c496_i32 dim 1 : vector<128x512xf32>, i32 -> vector<128x512xf32>
    %37 = arith.maximumf %35, %36 : vector<128x512xf32>
    %c127_i32_12 = arith.constant 127 : i32
    %38 = tpu.dynamic_rotate %37 by %c127_i32_12 dim 0 : vector<128x512xf32>, i32 -> vector<128x512xf32>
    %39 = arith.maximumf %37, %38 : vector<128x512xf32>
    %c0_13 = arith.constant 0 : index
    %c0_14 = arith.constant 0 : index
    %40 = vector.load %arg5[%c0_13, %c0_14] : memref<64x128xbf16, #tpu.memory_space<vmem>>, vector<64x128xbf16>
    %41 = arith.truncf %39 : vector<128x512xf32> to vector<128x512xbf16>
    %cst_15 = arith.constant dense<0.000000e+00> : vector<64x512xf32>
    %42 = tpu.matmul %40, %41, %cst_15 {dimension_numbers = #tpu.dot_dimension_numbers<[1], [0], [0], [1], [0, 0, 1, 1], [], []>} : vector<64x128xbf16>, vector<128x512xbf16>, vector<64x512xf32> -> vector<64x512xf32>
    %43 = arith.truncf %42 : vector<64x512xf32> to vector<64x512xbf16>
    %c0_16 = arith.constant 0 : index
    %c0_17 = arith.constant 0 : index
    %44 = vector.load %arg4[%c0_16, %c0_17] : memref<512x256xbf16, #tpu.memory_space<vmem>>, vector<512x256xbf16>
    %cst_18 = arith.constant dense<0.000000e+00> : vector<64x256xf32>
    %45 = tpu.matmul %43, %44, %cst_18 {dimension_numbers = #tpu.dot_dimension_numbers<[1], [0], [0], [1], [0, 0, 1, 1], [], []>} : vector<64x512xbf16>, vector<512x256xbf16>, vector<64x256xf32> -> vector<64x256xf32>
    %46 = tpu.iota {dimensions = array<i32: 0>} : vector<64x256xi32>
    %c16_i32 = arith.constant 16 : i32
    %c0_i32_19 = arith.constant 0 : i32
    %47 = arith.cmpi eq, %c16_i32, %c0_i32_19 : i32
    %c1_i32_20 = arith.constant 1 : i32
    %48 = arith.select %47, %c1_i32_20, %c16_i32 : i32
    %49 = vector.broadcast %48 : i32 to vector<64x256xi32>
    %50 = arith.remsi %46, %49 : vector<64x256xi32>
    %c0_i32_21 = arith.constant 0 : i32
    %51 = vector.broadcast %c0_i32_21 : i32 to vector<64x256xi32>
    %52 = arith.cmpi ne, %50, %51 : vector<64x256xi32>
    %c0_i32_22 = arith.constant 0 : i32
    %53 = vector.broadcast %c0_i32_22 : i32 to vector<64x256xi32>
    %54 = arith.cmpi slt, %50, %53 : vector<64x256xi32>
    %c0_i32_23 = arith.constant 0 : i32
    %55 = arith.cmpi slt, %48, %c0_i32_23 : i32
    %56 = vector.broadcast %55 : i1 to vector<64x256xi1>
    %57 = vector.broadcast %56 : vector<64x256xi1> to vector<64x256xi1>
    %58 = arith.xori %54, %57 : vector<64x256xi1>
    %59 = arith.andi %58, %52 : vector<64x256xi1>
    %60 = vector.broadcast %48 : i32 to vector<64x256xi32>
    %61 = arith.addi %50, %60 : vector<64x256xi32>
    %62 = arith.select %59, %61, %50 : vector<64x256xi1>, vector<64x256xi32>
    %cst_24 = arith.constant 0.000000e+00 : f32
    %63 = vector.broadcast %cst_24 : f32 to vector<64x256xf32>
    %c0_i32_25 = arith.constant 0 : i32
    %64 = vector.broadcast %c0_i32_25 : i32 to vector<64x256xi32>
    %65 = arith.cmpi eq, %62, %64 : vector<64x256xi32>
    %c1_i32_26 = arith.constant 1 : i32
    %66 = tpu.dynamic_rotate %45 by %c1_i32_26 dim 0 : vector<64x256xf32>, i32 -> vector<64x256xf32>
    %67 = arith.select %65, %63, %66 : vector<64x256xi1>, vector<64x256xf32>
    %c15_i32 = arith.constant 15 : i32
    %68 = vector.broadcast %c15_i32 : i32 to vector<64x256xi32>
    %69 = arith.cmpi eq, %62, %68 : vector<64x256xi32>
    %c63_i32 = arith.constant 63 : i32
    %70 = tpu.dynamic_rotate %45 by %c63_i32 dim 0 : vector<64x256xf32>, i32 -> vector<64x256xf32>
    %71 = arith.select %69, %63, %70 : vector<64x256xi1>, vector<64x256xf32>
    %72 = tpu.concatenate %67, %45, %71 in 1 : vector<64x256xf32>, vector<64x256xf32>, vector<64x256xf32> -> vector<64x768xf32>
    %73 = arith.truncf %72 : vector<64x768xf32> to vector<64x768xbf16>
    %c0_27 = arith.constant 0 : index
    %c0_28 = arith.constant 0 : index
    %74 = vector.load %arg6[%c0_27, %c0_28] : memref<768x512xbf16, #tpu.memory_space<vmem>>, vector<768x512xbf16>
    %cst_29 = arith.constant dense<0.000000e+00> : vector<64x512xf32>
    %75 = tpu.matmul %73, %74, %cst_29 {dimension_numbers = #tpu.dot_dimension_numbers<[1], [0], [0], [1], [0, 0, 1, 1], [], []>} : vector<64x768xbf16>, vector<768x512xbf16>, vector<64x512xf32> -> vector<64x512xf32>
    %c0_30 = arith.constant 0 : index
    %c0_31 = arith.constant 0 : index
    %76 = vector.load %arg7[%c0_30, %c0_31] : memref<1x512xf32, #tpu.memory_space<vmem>>, vector<1x512xf32>
    %77 = vector.broadcast %76 : vector<1x512xf32> to vector<64x512xf32>
    %78 = arith.addf %75, %77 : vector<64x512xf32>
    %cst_32 = arith.constant 0.000000e+00 : f32
    %79 = vector.broadcast %cst_32 : f32 to vector<64x512xf32>
    %80 = arith.maximumf %78, %79 : vector<64x512xf32>
    %c480_i32 = arith.constant 480 : i32
    %81 = tpu.dynamic_rotate %80 by %c480_i32 dim 1 : vector<64x512xf32>, i32 -> vector<64x512xf32>
    %82 = arith.maximumf %80, %81 : vector<64x512xf32>
    %c63_i32_33 = arith.constant 63 : i32
    %83 = tpu.dynamic_rotate %82 by %c63_i32_33 dim 0 : vector<64x512xf32>, i32 -> vector<64x512xf32>
    %84 = arith.maximumf %82, %83 : vector<64x512xf32>
    %c0_34 = arith.constant 0 : index
    %c0_35 = arith.constant 0 : index
    %85 = vector.load %arg9[%c0_34, %c0_35] : memref<32x64xbf16, #tpu.memory_space<vmem>>, vector<32x64xbf16>
    %86 = arith.truncf %84 : vector<64x512xf32> to vector<64x512xbf16>
    %cst_36 = arith.constant dense<0.000000e+00> : vector<32x512xf32>
    %87 = tpu.matmul %85, %86, %cst_36 {dimension_numbers = #tpu.dot_dimension_numbers<[1], [0], [0], [1], [0, 0, 1, 1], [], []>} : vector<32x64xbf16>, vector<64x512xbf16>, vector<32x512xf32> -> vector<32x512xf32>
    %88 = arith.truncf %87 : vector<32x512xf32> to vector<32x512xbf16>
    %c0_37 = arith.constant 0 : index
    %c0_38 = arith.constant 0 : index
    %89 = vector.load %arg8[%c0_37, %c0_38] : memref<512x256xbf16, #tpu.memory_space<vmem>>, vector<512x256xbf16>
    %cst_39 = arith.constant dense<0.000000e+00> : vector<32x256xf32>
    %90 = tpu.matmul %88, %89, %cst_39 {dimension_numbers = #tpu.dot_dimension_numbers<[1], [0], [0], [1], [0, 0, 1, 1], [], []>} : vector<32x512xbf16>, vector<512x256xbf16>, vector<32x256xf32> -> vector<32x256xf32>
    %cst_40 = arith.constant 0.000000e+00 : f32
    %91 = vector.broadcast %cst_40 : f32 to vector<4x128xf32>
    %92 = vector.extract_strided_slice %90 {offsets = [0, 0], sizes = [4, 256], strides = [1, 1]} : vector<32x256xf32> to vector<4x256xf32>
    %93 = arith.truncf %92 : vector<4x256xf32> to vector<4x256xbf16>
    %c0_41 = arith.constant 0 : index
    %c0_42 = arith.constant 0 : index
    %c0_43 = arith.constant 0 : index
    %94 = vector.load %arg10[%c0_41, %c0_42, %c0_43] : memref<8x256x128xbf16, #tpu.memory_space<vmem>>, vector<1x256x128xbf16>
    %95 = vector.shape_cast %94 : vector<1x256x128xbf16> to vector<256x128xbf16>
    %cst_44 = arith.constant dense<0.000000e+00> : vector<4x128xf32>
    %96 = tpu.matmul %93, %95, %cst_44 {dimension_numbers = #tpu.dot_dimension_numbers<[1], [0], [0], [1], [0, 0, 1, 1], [], []>} : vector<4x256xbf16>, vector<256x128xbf16>, vector<4x128xf32> -> vector<4x128xf32>
    %97 = arith.addf %91, %96 : vector<4x128xf32>
    %98 = vector.extract_strided_slice %90 {offsets = [4, 0], sizes = [4, 256], strides = [1, 1]} : vector<32x256xf32> to vector<4x256xf32>
    %99 = arith.truncf %98 : vector<4x256xf32> to vector<4x256xbf16>
    %c1 = arith.constant 1 : index
    %c0_45 = arith.constant 0 : index
    %c0_46 = arith.constant 0 : index
    %100 = vector.load %arg10[%c1, %c0_45, %c0_46] : memref<8x256x128xbf16, #tpu.memory_space<vmem>>, vector<1x256x128xbf16>
    %101 = vector.shape_cast %100 : vector<1x256x128xbf16> to vector<256x128xbf16>
    %cst_47 = arith.constant dense<0.000000e+00> : vector<4x128xf32>
    %102 = tpu.matmul %99, %101, %cst_47 {dimension_numbers = #tpu.dot_dimension_numbers<[1], [0], [0], [1], [0, 0, 1, 1], [], []>} : vector<4x256xbf16>, vector<256x128xbf16>, vector<4x128xf32> -> vector<4x128xf32>
    %103 = arith.addf %97, %102 : vector<4x128xf32>
    %104 = vector.extract_strided_slice %90 {offsets = [8, 0], sizes = [4, 256], strides = [1, 1]} : vector<32x256xf32> to vector<4x256xf32>
    %105 = arith.truncf %104 : vector<4x256xf32> to vector<4x256xbf16>
    %c2 = arith.constant 2 : index
    %c0_48 = arith.constant 0 : index
    %c0_49 = arith.constant 0 : index
    %106 = vector.load %arg10[%c2, %c0_48, %c0_49] : memref<8x256x128xbf16, #tpu.memory_space<vmem>>, vector<1x256x128xbf16>
    %107 = vector.shape_cast %106 : vector<1x256x128xbf16> to vector<256x128xbf16>
    %cst_50 = arith.constant dense<0.000000e+00> : vector<4x128xf32>
    %108 = tpu.matmul %105, %107, %cst_50 {dimension_numbers = #tpu.dot_dimension_numbers<[1], [0], [0], [1], [0, 0, 1, 1], [], []>} : vector<4x256xbf16>, vector<256x128xbf16>, vector<4x128xf32> -> vector<4x128xf32>
    %109 = arith.addf %103, %108 : vector<4x128xf32>
    %110 = vector.extract_strided_slice %90 {offsets = [12, 0], sizes = [4, 256], strides = [1, 1]} : vector<32x256xf32> to vector<4x256xf32>
    %111 = arith.truncf %110 : vector<4x256xf32> to vector<4x256xbf16>
    %c3 = arith.constant 3 : index
    %c0_51 = arith.constant 0 : index
    %c0_52 = arith.constant 0 : index
    %112 = vector.load %arg10[%c3, %c0_51, %c0_52] : memref<8x256x128xbf16, #tpu.memory_space<vmem>>, vector<1x256x128xbf16>
    %113 = vector.shape_cast %112 : vector<1x256x128xbf16> to vector<256x128xbf16>
    %cst_53 = arith.constant dense<0.000000e+00> : vector<4x128xf32>
    %114 = tpu.matmul %111, %113, %cst_53 {dimension_numbers = #tpu.dot_dimension_numbers<[1], [0], [0], [1], [0, 0, 1, 1], [], []>} : vector<4x256xbf16>, vector<256x128xbf16>, vector<4x128xf32> -> vector<4x128xf32>
    %115 = arith.addf %109, %114 : vector<4x128xf32>
    %116 = vector.extract_strided_slice %90 {offsets = [16, 0], sizes = [4, 256], strides = [1, 1]} : vector<32x256xf32> to vector<4x256xf32>
    %117 = arith.truncf %116 : vector<4x256xf32> to vector<4x256xbf16>
    %c4 = arith.constant 4 : index
    %c0_54 = arith.constant 0 : index
    %c0_55 = arith.constant 0 : index
    %118 = vector.load %arg10[%c4, %c0_54, %c0_55] : memref<8x256x128xbf16, #tpu.memory_space<vmem>>, vector<1x256x128xbf16>
    %119 = vector.shape_cast %118 : vector<1x256x128xbf16> to vector<256x128xbf16>
    %cst_56 = arith.constant dense<0.000000e+00> : vector<4x128xf32>
    %120 = tpu.matmul %117, %119, %cst_56 {dimension_numbers = #tpu.dot_dimension_numbers<[1], [0], [0], [1], [0, 0, 1, 1], [], []>} : vector<4x256xbf16>, vector<256x128xbf16>, vector<4x128xf32> -> vector<4x128xf32>
    %121 = arith.addf %115, %120 : vector<4x128xf32>
    %122 = vector.extract_strided_slice %90 {offsets = [20, 0], sizes = [4, 256], strides = [1, 1]} : vector<32x256xf32> to vector<4x256xf32>
    %123 = arith.truncf %122 : vector<4x256xf32> to vector<4x256xbf16>
    %c5 = arith.constant 5 : index
    %c0_57 = arith.constant 0 : index
    %c0_58 = arith.constant 0 : index
    %124 = vector.load %arg10[%c5, %c0_57, %c0_58] : memref<8x256x128xbf16, #tpu.memory_space<vmem>>, vector<1x256x128xbf16>
    %125 = vector.shape_cast %124 : vector<1x256x128xbf16> to vector<256x128xbf16>
    %cst_59 = arith.constant dense<0.000000e+00> : vector<4x128xf32>
    %126 = tpu.matmul %123, %125, %cst_59 {dimension_numbers = #tpu.dot_dimension_numbers<[1], [0], [0], [1], [0, 0, 1, 1], [], []>} : vector<4x256xbf16>, vector<256x128xbf16>, vector<4x128xf32> -> vector<4x128xf32>
    %127 = arith.addf %121, %126 : vector<4x128xf32>
    %128 = vector.extract_strided_slice %90 {offsets = [24, 0], sizes = [4, 256], strides = [1, 1]} : vector<32x256xf32> to vector<4x256xf32>
    %129 = arith.truncf %128 : vector<4x256xf32> to vector<4x256xbf16>
    %c6 = arith.constant 6 : index
    %c0_60 = arith.constant 0 : index
    %c0_61 = arith.constant 0 : index
    %130 = vector.load %arg10[%c6, %c0_60, %c0_61] : memref<8x256x128xbf16, #tpu.memory_space<vmem>>, vector<1x256x128xbf16>
    %131 = vector.shape_cast %130 : vector<1x256x128xbf16> to vector<256x128xbf16>
    %cst_62 = arith.constant dense<0.000000e+00> : vector<4x128xf32>
    %132 = tpu.matmul %129, %131, %cst_62 {dimension_numbers = #tpu.dot_dimension_numbers<[1], [0], [0], [1], [0, 0, 1, 1], [], []>} : vector<4x256xbf16>, vector<256x128xbf16>, vector<4x128xf32> -> vector<4x128xf32>
    %133 = arith.addf %127, %132 : vector<4x128xf32>
    %134 = vector.extract_strided_slice %90 {offsets = [28, 0], sizes = [4, 256], strides = [1, 1]} : vector<32x256xf32> to vector<4x256xf32>
    %135 = arith.truncf %134 : vector<4x256xf32> to vector<4x256xbf16>
    %c7 = arith.constant 7 : index
    %c0_63 = arith.constant 0 : index
    %c0_64 = arith.constant 0 : index
    %136 = vector.load %arg10[%c7, %c0_63, %c0_64] : memref<8x256x128xbf16, #tpu.memory_space<vmem>>, vector<1x256x128xbf16>
    %137 = vector.shape_cast %136 : vector<1x256x128xbf16> to vector<256x128xbf16>
    %cst_65 = arith.constant dense<0.000000e+00> : vector<4x128xf32>
    %138 = tpu.matmul %135, %137, %cst_65 {dimension_numbers = #tpu.dot_dimension_numbers<[1], [0], [0], [1], [0, 0, 1, 1], [], []>} : vector<4x256xbf16>, vector<256x128xbf16>, vector<4x128xf32> -> vector<4x128xf32>
    %139 = arith.addf %133, %138 : vector<4x128xf32>
    %c0_66 = arith.constant 0 : index
    %c0_67 = arith.constant 0 : index
    %140 = vector.load %arg11[%c0_66, %c0_67] : memref<1x128xf32, #tpu.memory_space<vmem>>, vector<1x128xf32>
    %141 = vector.broadcast %140 : vector<1x128xf32> to vector<4x128xf32>
    %142 = arith.addf %139, %141 : vector<4x128xf32>
    %cst_68 = arith.constant 0.000000e+00 : f32
    %143 = vector.broadcast %cst_68 : f32 to vector<4x128xf32>
    %144 = arith.maximumf %142, %143 : vector<4x128xf32>
    %145 = arith.truncf %144 : vector<4x128xf32> to vector<4x128xbf16>
    %c0_69 = arith.constant 0 : index
    %c0_70 = arith.constant 0 : index
    %146 = vector.load %arg12[%c0_69, %c0_70] : memref<128x128xbf16, #tpu.memory_space<vmem>>, vector<128x128xbf16>
    %cst_71 = arith.constant dense<0.000000e+00> : vector<4x128xf32>
    %147 = tpu.matmul %145, %146, %cst_71 {dimension_numbers = #tpu.dot_dimension_numbers<[1], [0], [0], [1], [0, 0, 1, 1], [], []>} : vector<4x128xbf16>, vector<128x128xbf16>, vector<4x128xf32> -> vector<4x128xf32>
    %c0_72 = arith.constant 0 : index
    %c0_73 = arith.constant 0 : index
    %148 = vector.load %arg13[%c0_72, %c0_73] : memref<1x128xf32, #tpu.memory_space<vmem>>, vector<1x128xf32>
    %149 = vector.broadcast %148 : vector<1x128xf32> to vector<4x128xf32>
    %150 = arith.addf %147, %149 : vector<4x128xf32>
    %c0_74 = arith.constant 0 : index
    %c0_75 = arith.constant 0 : index
    %c0_76 = arith.constant 0 : index
    %151 = vector.load %arg14[%c0_74, %c0_75, %c0_76] : memref<1x4x128xf32, #tpu.memory_space<vmem>>, vector<1x4x128xf32>
    %152 = vector.shape_cast %151 : vector<1x4x128xf32> to vector<4x128xf32>
    %153 = vector.shape_cast %150 : vector<4x128xf32> to vector<1x4x128xf32>
    tpu.vector_store %arg14[%c0_74, %c0_75, %c0_76], %153 {strides = array<i32>} : memref<1x4x128xf32, #tpu.memory_space<vmem>>, vector<1x4x128xf32>,
    return
  }
  func.func @transform_0(%arg0: i32) -> (i32, i32) {
    %c0_i32 = arith.constant 0 : i32
    %c0_i32_0 = arith.constant 0 : i32
    return %arg0, %c0_i32 : i32, i32
  }
  func.func @transform_1(%arg0: i32) -> (i32, i32) {
    %c0_i32 = arith.constant 0 : i32
    %c0_i32_0 = arith.constant 0 : i32
    %c0_i32_1 = arith.constant 0 : i32
    return %c0_i32, %c0_i32_0 : i32, i32
  }
  func.func @transform_2(%arg0: i32) -> (i32, i32) {
    %c0_i32 = arith.constant 0 : i32
    %c0_i32_0 = arith.constant 0 : i32
    %c0_i32_1 = arith.constant 0 : i32
    return %c0_i32, %c0_i32_0 : i32, i32
  }
  func.func @transform_3(%arg0: i32) -> (i32, i32) {
    %c0_i32 = arith.constant 0 : i32
    %c0_i32_0 = arith.constant 0 : i32
    %c0_i32_1 = arith.constant 0 : i32
    return %c0_i32, %c0_i32_0 : i32, i32
  }
  func.func @transform_4(%arg0: i32) -> (i32, i32) {
    %c0_i32 = arith.constant 0 : i32
    %c0_i32_0 = arith.constant 0 : i32
    %c0_i32_1 = arith.constant 0 : i32
    return %c0_i32, %c0_i32_0 : i32, i32
  }
  func.func @transform_5(%arg0: i32) -> (i32, i32) {
    %c0_i32 = arith.constant 0 : i32
    %c0_i32_0 = arith.constant 0 : i32
    %c0_i32_1 = arith.constant 0 : i32
    return %c0_i32, %c0_i32_0 : i32, i32
  }
  func.func @transform_6(%arg0: i32) -> (i32, i32) {
    %c0_i32 = arith.constant 0 : i32
    %c0_i32_0 = arith.constant 0 : i32
    %c0_i32_1 = arith.constant 0 : i32
    return %c0_i32, %c0_i32_0 : i32, i32
  }
  func.func @transform_7(%arg0: i32) -> (i32, i32) {
    %c0_i32 = arith.constant 0 : i32
    %c0_i32_0 = arith.constant 0 : i32
    %c0_i32_1 = arith.constant 0 : i32
    return %c0_i32, %c0_i32_0 : i32, i32
  }
  func.func @transform_8(%arg0: i32) -> (i32, i32) {
    %c0_i32 = arith.constant 0 : i32
    %c0_i32_0 = arith.constant 0 : i32
    %c0_i32_1 = arith.constant 0 : i32
    return %c0_i32, %c0_i32_0 : i32, i32
  }
  func.func @transform_9(%arg0: i32) -> (i32, i32, i32) {
    %c0_i32 = arith.constant 0 : i32
    %c0_i32_0 = arith.constant 0 : i32
    %c0_i32_1 = arith.constant 0 : i32
    %c0_i32_2 = arith.constant 0 : i32
    return %c0_i32, %c0_i32_0, %c0_i32_1 : i32, i32, i32
  }
  func.func @transform_10(%arg0: i32) -> (i32, i32) {
    %c0_i32 = arith.constant 0 : i32
    %c0_i32_0 = arith.constant 0 : i32
    %c0_i32_1 = arith.constant 0 : i32
    return %c0_i32, %c0_i32_0 : i32, i32
  }
  func.func @transform_11(%arg0: i32) -> (i32, i32) {
    %c0_i32 = arith.constant 0 : i32
    %c0_i32_0 = arith.constant 0 : i32
    %c0_i32_1 = arith.constant 0 : i32
    return %c0_i32, %c0_i32_0 : i32, i32
  }
  func.func @transform_12(%arg0: i32) -> (i32, i32) {
    %c0_i32 = arith.constant 0 : i32
    %c0_i32_0 = arith.constant 0 : i32
    %c0_i32_1 = arith.constant 0 : i32
    return %c0_i32, %c0_i32_0 : i32, i32
  }
  func.func @transform_13(%arg0: i32) -> (i32, i32, i32) {
    %c0_i32 = arith.constant 0 : i32
    %c0_i32_0 = arith.constant 0 : i32
    %c0_i32_1 = arith.constant 0 : i32
    return %arg0, %c0_i32, %c0_i32_0 : i32, i32, i32
  }
}

</mosaic_0001>

<bundles_post_ra>
// kernel: simple_cnn_forward.1
= control target key start
LH: loop header
LB: loop body
LE: loop exit
PB: predicated region body
PF: predicated region fallthrough
CT: control target
= control target key end

     0   :  { %s17759_s0 = inlined_call_operand.vmem [shape: f32[256,128], index: 0, kind: input, shape index: {}]   ;;  %s17760_s1 = inlined_call_operand.vmem [shape: bf16[384,512], index: 1, kind: input, shape index: {}]   ;;  %s17761_s2 = inlined_call_operand.vmem [shape: f32[1,512], index: 2, kind: input, shape index: {}]   ;;  %s17762_s3 = inlined_call_operand.hbm [shape: bf16[512,256], index: 3, kind: input, shape index: {}]   ;;  %s17763_s4 = inlined_call_operand.vmem [shape: bf16[64,128], index: 4, kind: input, shape index: {}]   ;;  %s17764_s5 = inlined_call_operand.vmem [shape: bf16[768,512], index: 5, kind: input, shape index: {}]   ;;  %s17765_s6 = inlined_call_operand.vmem [shape: f32[1,512], index: 6, kind: input, shape index: {}]   ;;  %s17766_s7 = inlined_call_operand.hbm [shape: bf16[512,256], index: 7, kind: input, shape index: {}]   ;;  %s17767_s8 = inlined_call_operand.vmem [shape: bf16[32,64], index: 8, kind: input, shape index: {}]   ;;  %s17768_s9 = inlined_call_operand.vmem [shape: bf16[8,256,128], index: 9, kind: input, shape index: {}]   ;;  %s17769_s10 = inlined_call_operand.vmem [shape: f32[1,128], index: 10, kind: input, shape index: {}]   ;;  %s17770_s11 = inlined_call_operand.vmem [shape: bf16[128,128], index: 11, kind: input, shape index: {}]   ;;  %s17771_s12 = inlined_call_operand.vmem [shape: f32[1,128], index: 12, kind: input, shape index: {}]   ;;  %s17772_s13 = inlined_call_operand.hbm [shape: f32[2,4,128], index: 13, kind: output, shape index: {}]  }
   0x1   :  { %18027 = sst [smem:[#allocation68_spill]] %s17762_s3 }
   0x2   :  { %18 = vsyncpa [#allocation3], 0 }
   0x3   :  { %19 = vsyncpa [#allocation6], 0 }
   0x4   :  { %20 = vsyncpa [#allocation4], 0 }
   0x5   :  { %22 = vsyncpa [#allocation4 + $0x1], 0  ;;  %s11767_s25 = smov 0   ;;  %s11769_s26 = smov 0  }
   0x6   :  { %s11771_s27 = smov 0   ;;  %s11773_s28 = smov 0  }
   0x7 LB: > { %18028 = sst [smem:[#allocation11_spill]] %s11684_s27  ;;  %s11788_s29 = sadd.s32 4294967295, %s11688_s28   ;;  %s11688_s28 = sphi %s11773_s28, %s18486_s28   ;;  %s11684_s27 = sphi %s11771_s27, %s18488_s27   ;;  %s11680_s26 = sphi %s11769_s26, %s18490_s26   ;;  %s11676_s25 = sphi %s11767_s25, %s18489_s25  }
   0x8   : > { %s7823_s30 = sadd.s32 4294967294, %s11688_s28   ;;  %s11792_s14 = sadd.s32 1, %s11688_s28  }
   0x9   : > { %18029 = sst [smem:[#allocation12_spill]] %s11792_s14  ;;  %s313_s15 = sadd.s32 1, %s11684_s27 }
   0xa   : > { %s310_s16 = ssub.s32 %s11688_s28, %s11792_s14  ;;  %p323_p0 = scmp.ne.s32.totalorder %s11684_s27, %s11680_s26 }
   0xb   : > { %p311_p1 = scmp.eq.s32.totalorder %s310_s16, 0  ;;  %p324_p2 = scmp.eq.s32.totalorder %s11788_s29, 1 }
   0xc   : > { %p329_p3 = scmp.ne.s32.totalorder %s11680_s26, %s11676_s25  ;;  %p330_p4 = scmp.eq.s32.totalorder %s7823_s30, 1 }
   0xd   : > { %s11803_s17 = scalar_select %p311_p1, %s11684_s27, %s313_s15  }
   0xe   : > { %p11805_p5 = por %p324_p2, %p323_p0  ;;  %p11809_p6 = por %p330_p4, %p329_p3 }
   0xf   : > { %18030 = sst [smem:[#allocation13_spill]] %s11803_s17  ;;  %p7824_p7 = scmp.ge.s32.totalorder %s11688_s28, 1 }
  0x10   : > { %s18032_s19 = scalar_select %p11809_p6, 1, 0 }
  0x11   : > { %p337_p8 = scmp.lt.s32.totalorder %s11688_s28, 3  ;;  %p11281_p9 = scmp.eq.s32.totalorder %s11788_s29, 0 }
  0x12   : > { %18033 = sst [smem:[#allocation14_spill]] %s18032_s19  ;;  %s11690_s24 = smov [#allocation2]  }
  0x13   : > { %p11816_p10 = pnand %p7824_p7, %p337_p8  ;;  %s18035_s3 = sld [smem:[#allocation68_spill]] }
  0x14   : > { %s356_s30 = sshll.u32 %s11690_s24, 4  ;;  %s377_s17 = sshll.u32 %s17766_s7, 4  ;;  %s357_s30 = int_to_ptr.vmem [resolvable:$true] %s356_s30  ;;  %s378_s17 = int_to_ptr.hbm [resolvable:$true] %s377_s17 }
  0x15   : > { %p11270_p11 = pneg %p11816_p10  ;;  %s11691_s27 = smov 128  }
  0x16   : > { %s11692_s14 = smov 8   ;;  %s11693_s19 = smov [#allocation5]  }
  0x17   : > { %p11271_p12 = pnand %p11281_p9, %p11270_p11  ;;  %s379_s21 = sshll.u32 %s11693_s19, 4  ;;  %s380_s21 = int_to_ptr.vmem [resolvable:$true] %s379_s21 }
  0x18   : > { %419 = sbr.rel (%p11816_p10) target bundleno = 2490 (0x9ba), region = 72 }
  0x19   : > { %s354_s23 = sshll.u32 %s18035_s3, 4  ;;  %s355_s23 = int_to_ptr.hbm [resolvable:$true] %s354_s23 }
  0x1a   : > { %11273 = dma.hbm_to_vmem [thread:$0]  (!%p11271_p12), %s355_s23, 8192, %s357_s30, [#allocation3], %s11691_s27, %s11691_s27, %s11692_s14  }
  0x1b   : > { %11276 = dma.hbm_to_vmem [thread:$0]  (!%p11271_p12), %s378_s17, 8192, %s380_s21, [#allocation6], %s11691_s27, %s11691_s27, %s11692_s14  }
  0x1d   : > { %11663 = dma.done.wait (%p11281_p9), [#allocation3], 8192  }
  0x1e   : > { %11665 = vsyncadd (%p11281_p9), [#allocation3], 4294959104 }
  0x1f   : > { %11667 = dma.done.wait (%p11281_p9), [#allocation6], 8192  }
  0x20   : > { %11669 = vsyncadd (%p11281_p9), [#allocation6], 4294959104  ;;  %s17777_s19 = sshll.u32 %s11788_s29, 4  ;;  %v7948_v0 = vld [vmem:[%s17760_s1 + $0xe0] sm:$0xf]  ;;  %v17778_v45 = vlaneseq  ;;  %vm11694_vm3 = vmmov 1  }
  0x21   : > { %p11843_p13 = scmp.lt.s32.totalorder %s17777_s19, 31  ;;  %v10716_v1 = vld [vmem:[%s17760_s1 + $0xec] sm:$0xf0]  ;;  %v8076_v2 = vld [vmem:[%s17760_s1 + $0x1e0] sm:$0xf]  ;;  %s18037_s19 = sshll.u32 %s11788_s29, 4 }
  0x22   : > { %v7949_v3 = vor.u32 %v10716_v1, %v7948_v0  ;;  %v10748_v4 = vld [vmem:[%s17760_s1 + $0x1ec] sm:$0xf0]  ;;  %v8204_v5 = vld [vmem:[%s17760_s1 + $0x2e0] sm:$0xf]  ;;  %v10714_v9 = vld [vmem:[%s17760_s1 + $0xe4] sm:$0xf] }
  0x23   : > { %v10780_v6 = vld [vmem:[%s17760_s1 + $0x2ec] sm:$0xf0]  ;;  %v8077_v7 = vor.u32 %v10748_v4, %v8076_v2  ;;  %v7950_v10 = vld [vmem:[%s17760_s1 + $0xf0] sm:$0xf0]  ;;  %v7932_v11 = vld [vmem:[%s17760_s1 + $0xc0] sm:$0xf] }
  0x24   : > { %v8205_v8 = vor.u32 %v10780_v6, %v8204_v5  ;;  %1441 = vmatpush.bf16.msra.mxu0 %v7949_v3  ;;  %v7953_v12 = vor.u32 %v10714_v9, %v7950_v10  ;;  %v10712_v13 = vld [vmem:[%s17760_s1 + $0xcc] sm:$0xf0]  ;;  %v8060_v14 = vld [vmem:[%s17760_s1 + $0x1c0] sm:$0xf]  ;;  %v10710_v20 = vld [vmem:[%s17760_s1 + $0xc4] sm:$0xf] }
  0x25   : > { %v10744_v15 = vld [vmem:[%s17760_s1 + $0x1cc] sm:$0xf0]  ;;  %1490 = vmatpush.bf16.msra.mxu1 %v8077_v7  ;;  %v7933_v16 = vor.u32 %v10712_v13, %v7932_v11  ;;  %v8188_v18 = vld [vmem:[%s17760_s1 + $0x2c0] sm:$0xf]  ;;  %v7934_v22 = vld [vmem:[%s17760_s1 + $0xd0] sm:$0xf0] }
  0x26   : > { %1539 = vmatpush.bf16.msra.mxu2 %v8205_v8  ;;  %v8061_v17 = vor.u32 %v10744_v15, %v8060_v14  ;;  %v10776_v19 = vld [vmem:[%s17760_s1 + $0x2cc] sm:$0xf0]  ;;  %1588 = vmatpush.bf16.msra.mxu3 %v7953_v12  ;;  %v7916_v23 = vld [vmem:[%s17760_s1 + $0xa0] sm:$0xf]  ;;  %v7937_v25 = vor.u32 %v10710_v20, %v7934_v22  ;;  %v10706_v31 = vld [vmem:[%s17760_s1 + $0xa4] sm:$0xf] }
  0x27   : > { %v8189_v21 = vor.u32 %v10776_v19, %v8188_v18  ;;  %v10708_v24 = vld [vmem:[%s17760_s1 + $0xac] sm:$0xf0]  ;;  %v8044_v26 = vld [vmem:[%s17760_s1 + $0x1a0] sm:$0xf]  ;;  %v7918_v32 = vld [vmem:[%s17760_s1 + $0xb0] sm:$0xf0] }
  0x28   : > { %v10740_v27 = vld [vmem:[%s17760_s1 + $0x1ac] sm:$0xf0]  ;;  %v8172_v28 = vld [vmem:[%s17760_s1 + $0x2a0] sm:$0xf]  ;;  %1442 = vmatpush.bf16.msra.mxu0 %v7933_v16  ;;  %v7917_v29 = vor.u32 %v10708_v24, %v7916_v23  ;;  %v7921_v38 = vor.u32 %v10706_v31, %v7918_v32  ;;  %v10702_v42 = vld [vmem:[%s17760_s1 + $0x84] sm:$0xf] }
  0x29   : > { %v10772_v30 = vld [vmem:[%s17760_s1 + $0x2ac] sm:$0xf0]  ;;  %1491 = vmatpush.bf16.msra.mxu1 %v8061_v17  ;;  %v8045_v33 = vor.u32 %v10740_v27, %v8044_v26  ;;  %v7900_v35 = vld [vmem:[%s17760_s1 + $0x80] sm:$0xf]  ;;  %v7902_v43 = vld [vmem:[%s17760_s1 + $0x90] sm:$0xf0] }
  0x2a   : > { %1540 = vmatpush.bf16.msra.mxu2 %v8189_v21  ;;  %v8173_v34 = vor.u32 %v10772_v30, %v8172_v28  ;;  %v10704_v36 = vld [vmem:[%s17760_s1 + $0x8c] sm:$0xf0]  ;;  %v8028_v37 = vld [vmem:[%s17760_s1 + $0x180] sm:$0xf]  ;;  %1589 = vmatpush.bf16.msra.mxu3 %v7937_v25  ;;  %s18492_s19 = smov (!%p11843_p13, %s18037_s19), 31  ;;  %v7905_v51 = vor.u32 %v10702_v42, %v7902_v43  ;;  %v11978_v59 = vshrl.u32 %v17778_v45, 7 }
  0x2b   : > { %v10736_v39 = vld [vmem:[%s17760_s1 + $0x18c] sm:$0xf0]  ;;  %v8156_v40 = vld [vmem:[%s17760_s1 + $0x280] sm:$0xf]  ;;  %v7901_v44 = vor.u32 %v10704_v36, %v7900_v35  ;;  %v10698_v55 = vld [vmem:[%s17760_s1 + $0x64] sm:$0xf] }
  0x2c   : > { %v10768_v41 = vld [vmem:[%s17760_s1 + $0x28c] sm:$0xf0]  ;;  %1443 = vmatpush.bf16.msra.mxu0 %v7917_v29  ;;  %v8029_v46 = vor.u32 %v10736_v39, %v8028_v37  ;;  %v7884_v48 = vld [vmem:[%s17760_s1 + $0x60] sm:$0xf]  ;;  %v7886_v56 = vld [vmem:[%s17760_s1 + $0x70] sm:$0xf0] }
  0x2d   : > { %1492 = vmatpush.bf16.msra.mxu1 %v8045_v33  ;;  %v8157_v47 = vor.u32 %v10768_v41, %v8156_v40  ;;  %v10700_v49 = vld [vmem:[%s17760_s1 + $0x6c] sm:$0xf0]  ;;  %v8012_v50 = vld [vmem:[%s17760_s1 + $0x160] sm:$0xf]  ;;  %s7833_s24 = sshll.u32 %s18492_s19, 3  ;;  %18038 = vst [vmem:[#allocation15_spill] sm:$0xff] %v11978_v59  ;;  %v7889_v1 = vor.u32 %v10698_v55, %v7886_v56 }
  0x2e   : > { %1541 = vmatpush.bf16.msra.mxu2 %v8173_v34  ;;  %1590 = vmatpush.bf16.msra.mxu3 %v7921_v38  ;;  %v10732_v52 = vld [vmem:[%s17760_s1 + $0x16c] sm:$0xf0]  ;;  %v8140_v53 = vld [vmem:[%s17760_s1 + $0x260] sm:$0xf]  ;;  %v7885_v57 = vor.u32 %v10700_v49, %v7884_v48  ;;  %v10694_v4 = vld [vmem:[%s17760_s1 + $0x44] sm:$0xf]  ;;  %s12010_s22 = scalar_lea.vmem %s17759_s0, %s7833_s24 }
  0x2f   : > { %v10764_v54 = vld [vmem:[%s17760_s1 + $0x26c] sm:$0xf0]  ;;  %v7868_v58 = vld [vmem:[%s17760_s1 + $0x40] sm:$0xf]  ;;  %v8013_v60 = vor.u32 %v10732_v52, %v8012_v50  ;;  %v7870_v5 = vld [vmem:[%s17760_s1 + $0x50] sm:$0xf0] }
  0x30   : > { %1444 = vmatpush.bf16.msra.mxu0 %v7901_v44  ;;  %v8141_v61 = vor.u32 %v10764_v54, %v8140_v53  ;;  %v10696_v62 = vld [vmem:[%s17760_s1 + $0x4c] sm:$0xf0]  ;;  %v7996_v63 = vld [vmem:[%s17760_s1 + $0x140] sm:$0xf]  ;;  %v10690_v15 = vld [vmem:[%s17760_s1 + $0x24] sm:$0xf]  ;;  %v7873_v17 = vor.u32 %v10694_v4, %v7870_v5 }
  0x31   : > { %1493 = vmatpush.bf16.msra.mxu1 %v8029_v46  ;;  %v10728_v0 = vld [vmem:[%s17760_s1 + $0x14c] sm:$0xf0]  ;;  %v8124_v2 = vld [vmem:[%s17760_s1 + $0x240] sm:$0xf]  ;;  %v7869_v8 = vor.u32 %v10696_v62, %v7868_v58  ;;  %v7854_v16 = vld [vmem:[%s17760_s1 + $0x30] sm:$0xf0] }
  0x32   : > { %1542 = vmatpush.bf16.msra.mxu2 %v8157_v47  ;;  %1591 = vmatpush.bf16.msra.mxu3 %v7905_v51  ;;  %v10760_v3 = vld [vmem:[%s17760_s1 + $0x24c] sm:$0xf0]  ;;  %v7852_v6 = vld [vmem:[%s17760_s1 + $0x20] sm:$0xf]  ;;  %v7997_v12 = vor.u32 %v10728_v0, %v7996_v63  ;;  %v12040_v21 = vld [vmem:[%s12010_s22 + $0x8] sm:$0xff]  ;;  %v513_v27 = vand.u32 31, %v11978_v59  ;;  %v7857_v37 = vor.u32 %v10690_v15, %v7854_v16 }
  0x33   : > { %v10692_v7 = vld [vmem:[%s17760_s1 + $0x2c] sm:$0xf0]  ;;  %v7980_v9 = vld [vmem:[%s17760_s1 + $0x120] sm:$0xf]  ;;  %v8125_v13 = vor.u32 %v10760_v3, %v8124_v2  ;;  %v12052_v26 = vld [vmem:[%s12010_s22 + $0x78] sm:$0xff]  ;;  %v718_v31 = vrot.slane %v12040_v21, 7 }
  0x34   : > { %1445 = vmatpush.bf16.msra.mxu0 %v7885_v57  ;;  %v10724_v10 = vld [vmem:[%s17760_s1 + $0x12c] sm:$0xf0]  ;;  %v8108_v11 = vld [vmem:[%s17760_s1 + $0x220] sm:$0xf]  ;;  %v7853_v22 = vor.u32 %v10692_v7, %v7852_v6  ;;  %v732_v32 = vrot.slane %v12052_v26, 7  ;;  %vm733_vm0 = vcmp.lt.s32.totalorder %v11978_v59, 1 }
  0x35   : > { %1494 = vmatpush.bf16.msra.mxu1 %v8013_v60  ;;  %v10756_v14 = vld [vmem:[%s17760_s1 + $0x22c] sm:$0xf0]  ;;  %v7836_v18 = vld [vmem:[%s17760_s1] sm:$0xf]  ;;  %v7981_v33 = vor.u32 %v10724_v10, %v7980_v9  ;;  %v783_v36 = vrot.slane %v12040_v21, 1  ;;  %vm798_vm1 = vcmp.lt.s32.totalorder %v11978_v59, 7 }
  0x36   : > { %1543 = vmatpush.bf16.msra.mxu2 %v8141_v61  ;;  %1592 = vmatpush.bf16.msra.mxu3 %v7889_v1  ;;  %v10688_v19 = vld [vmem:[%s17760_s1 + $0xc] sm:$0xf0]  ;;  %v12037_v20 = vld [vmem:[%s12010_s22] sm:$0xff]  ;;  %v8109_v34 = vor.u32 %v10756_v14, %v8108_v11  ;;  %v7838_v41 = vld [vmem:[%s17760_s1 + $0x10] sm:$0xf0]  ;;  %vm11244_vm2 = vcmp.ne.s32.totalorder %v513_v27, 0 }
  0x37   : > { %v7964_v23 = vld [vmem:[%s17760_s1 + $0x100] sm:$0xf]  ;;  %v10720_v24 = vld [vmem:[%s17760_s1 + $0x10c] sm:$0xf0]  ;;  %v717_v30 = vrot.slane %v12037_v20, 7  ;;  %v782_v35 = vrot.slane %v12037_v20, 1  ;;  %v7837_v39 = vor.u32 %v10688_v19, %v7836_v18  ;;  %vm12087_vm4 = vmpackc.low %vm11694_vm3, %vm11244_vm2  ;;  %v12093_v52 = vpack.c.bf16 %v12040_v21, %v12037_v20 }
  0x38   : > { %v8092_v25 = vld [vmem:[%s17760_s1 + $0x200] sm:$0xf]  ;;  %v478_v28 = vld [vmem:[%s12010_s22 + $0x10] sm:$0xff]  ;;  %1446 = vmatpush.bf16.msra.mxu0 %v7869_v8  ;;  %v10686_v40 = vld [vmem:[%s17760_s1 + $0x4] sm:$0xf]  ;;  %v7965_v42 = vor.u32 %v10720_v24, %v7964_v23  ;;  %v12108_v56 = vadd.s32 24, %v11978_v59 }
  0x39   : > { %v10752_v29 = vld [vmem:[%s17760_s1 + $0x20c] sm:$0xf0]  ;;  %1495 = vmatpush.bf16.msra.mxu1 %v7997_v12  ;;  %v784_v38 = vrot.slane %v478_v28, 1  ;;  %v748_v44 = vsel %vm733_vm0, %v717_v30, %v718_v31  ;;  %v749_v46 = vsel %vm733_vm0, %v732_v32, %v717_v30  ;;  %v813_v48 = vsel %vm798_vm1, %v782_v35, %v783_v36  ;;  %v479_v54 = vld [vmem:[%s12010_s22 + $0x18] sm:$0xff]  ;;  %v480_v55 = vld [vmem:[%s12010_s22 + $0x20] sm:$0xff]  ;;  %s11696_s14 = smov 96  }
  0x3a   : > { %1544 = vmatpush.bf16.msra.mxu2 %v8125_v13  ;;  %1593 = vmatpush.bf16.msra.mxu3 %v7873_v17  ;;  %v8093_v43 = vor.u32 %v10752_v29, %v8092_v25  ;;  %v7841_v49 = vor.u32 %v10686_v40, %v7838_v41  ;;  %v12084_v50 = vpack.c.bf16 %v748_v44, %v749_v46  ;;  %v719_v57 = vrot.slane %v478_v28, 7  ;;  %v481_v7 = vld [vmem:[%s12010_s22 + $0x28] sm:$0xff]  ;;  %v482_v9 = vld [vmem:[%s12010_s22 + $0x30] sm:$0xff]  ;;  %v483_v24 = vld [vmem:[%s12010_s22 + $0x38] sm:$0xff]  ;;  %s466_s20 = sand.u32 1, %s11680_s26   ;;  %s10683_s23 = sshll.u32 %s11788_s29, 2 }
  0x3b   : > { %v812_v47 = vsel %vm798_vm1, %v783_v36, %v784_v38  ;;  %18041 = vst [vmem:[#allocation16_spill] sm:$0xff] %v12108_v56  ;;  %v720_v58 = vrot.slane %v479_v54, 7  ;;  %v785_v60 = vrot.slane %v479_v54, 1  ;;  %v786_v61 = vrot.slane %v480_v55, 1  ;;  %v484_v25 = vld [vmem:[%s12010_s22 + $0x40] sm:$0xff]  ;;  %v12204_v46 = vld [vmem:[%s12010_s22 + $0x50] sm:$0xff] }
  0x3c   : > { %1447 = vmatpush.bf16.msra.mxu0 %v7853_v22  ;;  %v12095_v53 = vpack.c.bf16 %v812_v47, %v813_v48  ;;  %v534_v62 = vand.u32 31, %v12108_v56  ;;  %v747_v0 = vsel %vm733_vm0, %v718_v31, %v719_v57  ;;  %v12121_v4 = vpack.c.bf16 %v479_v54, %v478_v28  ;;  %v7956_v47 = vld [vmem:[%s17760_s1 + $0xe8] sm:$0xf]  ;;  %v10717_v48 = vld [vmem:[%s17760_s1 + $0xf4] sm:$0xf0]  ;;  %s7831_s27 = sshll.u32 %s466_s20, 2 }
  0x3d   : > { %1496 = vmatpush.bf16.msra.mxu1 %v7981_v33  ;;  %v746_v63 = vsel %vm733_vm0, %v719_v57, %v720_v58  ;;  %v810_v1 = vsel %vm798_vm1, %v785_v60, %v786_v61  ;;  %v811_v2 = vsel %vm798_vm1, %v784_v38, %v785_v60  ;;  %v12138_v8 = vadd.s32 32, %v11978_v59  ;;  %v8084_v57 = vld [vmem:[%s17760_s1 + $0x1e8] sm:$0xf]  ;;  %v12569_v20 = vld [vmem:[%s17761_s2] sm:$0xf]  ;;  %s7727_s17 = scalar_lea.sflag [#allocation4], %s466_s20 }
  0x3e   : > { %1545 = vmatpush.bf16.msra.mxu2 %v8109_v34  ;;  %1594 = vmatpush.bf16.msra.mxu3 %v7857_v37  ;;  %vm11248_vm5 = vcmp.ne.s32.totalorder %v534_v62, 31  ;;  %v12119_v3 = vpack.c.bf16 %v746_v63, %v747_v0  ;;  %v12123_v5 = vpack.c.bf16 %v810_v1, %v811_v2  ;;  %v721_v10 = vrot.slane %v480_v55, 7  ;;  %s11638_s15 = scalar_lea.hbm %s17772_s13, 8 }
  0x3f   : > { %vm12126_vm6 = vmpackc.low %vm11248_vm5, %vm11694_vm3  ;;  %18044 = vst [vmem:[#allocation17_spill] sm:$0xff] %v12138_v8  ;;  %v722_v11 = vrot.slane %v481_v7, 7  ;;  %v541_v12 = vand.u32 31, %v12138_v8  ;;  %v787_v13 = vrot.slane %v481_v7, 1  ;;  %v788_v14 = vrot.slane %v482_v9, 1 }
  0x40   : > { %1448 = vmatpush.bf16.msra.mxu0 %v7837_v39  ;;  %v745_v16 = vsel %vm733_vm0, %v720_v58, %v721_v10  ;;  %v12157_v22 = vpack.c.bf16 %v481_v7, %v480_v55  ;;  %v12172_v27 = vadd.s32 56, %v11978_v59  ;;  %v723_v28 = vrot.slane %v482_v9, 7  ;;  %v8078_v55 = vld [vmem:[%s17760_s1 + $0x1f0] sm:$0xf0]  ;;  %v10749_v58 = vld [vmem:[%s17760_s1 + $0x1f4] sm:$0xf0] }
  0x41   : > { %1497 = vmatpush.bf16.msra.mxu1 %v7965_v42  ;;  %v744_v15 = vsel %vm733_vm0, %v721_v10, %v722_v11  ;;  %vm11245_vm7 = vcmp.ne.s32.totalorder %v541_v12, 0  ;;  %v808_v17 = vsel %vm798_vm1, %v787_v13, %v788_v14  ;;  %v809_v18 = vsel %vm798_vm1, %v786_v61, %v787_v13 }
  0x42   : > { %1546 = vmatpush.bf16.msra.mxu2 %v8093_v43  ;;  %1595 = vmatpush.bf16.msra.mxu3 %v7841_v49  ;;  %v12150_v19 = vpack.c.bf16 %v744_v15, %v745_v16  ;;  %vm12153_vm8 = vmpackc.low %vm11694_vm3, %vm11245_vm7  ;;  %v12159_v23 = vpack.c.bf16 %v808_v17, %v809_v18  ;;  %18047 = vst [vmem:[#allocation18_spill] sm:$0xff] %v12172_v27  ;;  %v724_v29 = vrot.slane %v483_v24, 7  ;;  %v789_v30 = vrot.slane %v483_v24, 1  ;;  %v12200_v43 = vld [vmem:[%s12010_s22 + $0x48] sm:$0xff]  ;;  %v10746_v49 = vld [vmem:[%s17760_s1 + $0x1e4] sm:$0xf] }
  0x43   : > { %8221 = vmatmul.msk.bf16.vlgmr.msra.gmra.mxu0 %vm12087_vm4, %v12084_v50  ;;  %v790_v31 = vrot.slane %v484_v25, 1  ;;  %v562_v33 = vand.u32 31, %v12172_v27  ;;  %v743_v36 = vsel %vm733_vm0, %v722_v11, %v723_v28  ;;  %v12185_v40 = vpack.c.bf16 %v483_v24, %v482_v9  ;;  %v12253_v16 = vld [vmem:[%s12010_s22 + $0x58] sm:$0xff]  ;;  %v12257_v18 = vld [vmem:[%s12010_s22 + $0x60] sm:$0xff] }
  0x44   : > { %1498 = vmatmul.bf16.vlgmr.msra.gmra.mxu1 %v12093_v52  ;;  %v742_v34 = vsel %vm733_vm0, %v723_v28, %v724_v29  ;;  %v807_v38 = vsel %vm798_vm1, %v788_v14, %v789_v30  ;;  %v501_v44 = vadd.s32 64, %v11978_v59  ;;  %v7957_v54 = vor.u32 %v10717_v48, %v7956_v47  ;;  %v8190_v47 = vld [vmem:[%s17760_s1 + $0x2d0] sm:$0xf0]  ;;  %v7940_v48 = vld [vmem:[%s17760_s1 + $0xc8] sm:$0xf] }
  0x45   : > { %1547 = vmatmul.bf16.vlgmr.msra.gmra.mxu2 %v12095_v53  ;;  %8253 = vmatmul.msk.bf16.vlgmr.msra.gmra.mxu3 %vm12087_vm4, %v12084_v50  ;;  %v806_v37 = vsel %vm798_vm1, %v789_v30, %v790_v31  ;;  %vm11249_vm9 = vcmp.ne.s32.totalorder %v562_v33, 31  ;;  %v12183_v39 = vpack.c.bf16 %v742_v34, %v743_v36  ;;  %v8081_v60 = vor.u32 %v10746_v49, %v8078_v55  ;;  %v10742_v36 = vld [vmem:[%s17760_s1 + $0x1c4] sm:$0xf]  ;;  %v10713_v49 = vld [vmem:[%s17760_s1 + $0xd4] sm:$0xf0] }
  0x46   : > { %v12187_v41 = vpack.c.bf16 %v806_v37, %v807_v38  ;;  %vm12190_vm10 = vmpackc.low %vm11249_vm9, %vm11694_vm3  ;;  %v8085_v61 = vor.u32 %v10749_v58, %v8084_v57  ;;  %v725_v62 = vrot.slane %v484_v25, 7  ;;  %v726_v63 = vrot.slane %v12200_v43, 7  ;;  %1735 = vmatpush.bf16.msrb.mxu2 %v7957_v54  ;;  %v8062_v37 = vld [vmem:[%s17760_s1 + $0x1d0] sm:$0xf0]  ;;  %v10774_v38 = vld [vmem:[%s17760_s1 + $0x2c4] sm:$0xf] }
  0x47   : > { %v569_v0 = vand.u32 31, %v501_v44  ;;  %v791_v1 = vrot.slane %v12200_v43, 1  ;;  %v792_v2 = vrot.slane %v12204_v46, 1  ;;  %1637 = vmatpush.bf16.msrb.mxu0 %v8081_v60  ;;  %v12248_v14 = vpack.c.bf16 %v12200_v43, %v484_v25  ;;  %v10778_v25 = vld [vmem:[%s17760_s1 + $0x2e4] sm:$0xf] }
  0x48   : > { %1784 = vmatpush.bf16.msrb.mxu3 %v8085_v61  ;;  %v740_v7 = vsel %vm733_vm0, %v725_v62, %v726_v63  ;;  %v741_v9 = vsel %vm733_vm0, %v724_v29, %v725_v62  ;;  %v504_v17 = vadd.s32 88, %v11978_v59  ;;  %v727_v24 = vrot.slane %v12204_v46, 7  ;;  %v8206_v29 = vld [vmem:[%s17760_s1 + $0x2f0] sm:$0xf0]  ;;  %v8068_v57 = vld [vmem:[%s17760_s1 + $0x1c8] sm:$0xf] }
  0x49   : > { %vm11246_vm11 = vcmp.ne.s32.totalorder %v569_v0, 0  ;;  %v804_v10 = vsel %vm798_vm1, %v791_v1, %v792_v2  ;;  %v805_v11 = vsel %vm798_vm1, %v790_v31, %v791_v1  ;;  %v12240_v12 = vpack.c.bf16 %v740_v7, %v741_v9  ;;  %v10745_v58 = vld [vmem:[%s17760_s1 + $0x1d4] sm:$0xf0]  ;;  %v10738_v60 = vld [vmem:[%s17760_s1 + $0x1a4] sm:$0xf] }
  0x4a   : > { %vm12243_vm12 = vmpackc.low %vm11694_vm3, %vm11246_vm11  ;;  %v12250_v15 = vpack.c.bf16 %v804_v10, %v805_v11  ;;  %v728_v28 = vrot.slane %v12253_v16, 7  ;;  %v590_v30 = vand.u32 31, %v504_v17  ;;  %v793_v31 = vrot.slane %v12253_v16, 1  ;;  %v8046_v62 = vld [vmem:[%s17760_s1 + $0x1b0] sm:$0xf0] }
  0x4b   : > { %v794_v33 = vrot.slane %v12257_v18, 1  ;;  %v8209_v34 = vor.u32 %v10778_v25, %v8206_v29  ;;  %v8065_v44 = vor.u32 %v10742_v36, %v8062_v37  ;;  %v8193_v54 = vor.u32 %v10774_v38, %v8190_v47  ;;  %v10770_v0 = vld [vmem:[%s17760_s1 + $0x2a4] sm:$0xf]  ;;  %v8174_v1 = vld [vmem:[%s17760_s1 + $0x2b0] sm:$0xf0] }
  0x4c   : > { %v7941_v55 = vor.u32 %v10713_v49, %v7940_v48  ;;  %v8069_v61 = vor.u32 %v10745_v58, %v8068_v57  ;;  %v8049_v7 = vor.u32 %v10738_v60, %v8046_v62  ;;  %v7924_v9 = vld [vmem:[%s17760_s1 + $0xa8] sm:$0xf]  ;;  %v10709_v10 = vld [vmem:[%s17760_s1 + $0xb4] sm:$0xf0]  ;;  %v8177_v17 = vor.u32 %v10770_v0, %v8174_v1  ;;  %v8030_v36 = vld [vmem:[%s17760_s1 + $0x190] sm:$0xf0] }
  0x4d   : > { %1686 = vmatpush.bf16.msrb.mxu1 %v8209_v34  ;;  %1638 = vmatpush.bf16.msrb.mxu0 %v8065_v44  ;;  %v8052_v11 = vld [vmem:[%s17760_s1 + $0x1a8] sm:$0xf]  ;;  %v7925_v25 = vor.u32 %v10709_v10, %v7924_v9  ;;  %v10741_v29 = vld [vmem:[%s17760_s1 + $0x1b4] sm:$0xf0]  ;;  %v10734_v34 = vld [vmem:[%s17760_s1 + $0x184] sm:$0xf]  ;;  %v738_v48 = vsel %vm733_vm0, %v727_v24, %v728_v28  ;;  %v739_v49 = vsel %vm733_vm0, %v726_v63, %v727_v24 }
  0x4e   : > { %1736 = vmatpush.bf16.msrb.mxu2 %v7941_v55  ;;  %1785 = vmatpush.bf16.msrb.mxu3 %v8069_v61  ;;  %v8053_v37 = vor.u32 %v10741_v29, %v8052_v11  ;;  %v10766_v38 = vld [vmem:[%s17760_s1 + $0x284] sm:$0xf]  ;;  %v8158_v44 = vld [vmem:[%s17760_s1 + $0x290] sm:$0xf0]  ;;  %v7908_v47 = vld [vmem:[%s17760_s1 + $0x88] sm:$0xf]  ;;  %v802_v43 = vsel %vm798_vm1, %v793_v31, %v794_v33  ;;  %v803_v63 = vsel %vm798_vm1, %v792_v2, %v793_v31 }
  0x4f   : > { %v10705_v55 = vld [vmem:[%s17760_s1 + $0x94] sm:$0xf0]  ;;  %v8036_v57 = vld [vmem:[%s17760_s1 + $0x188] sm:$0xf]  ;;  %vm11250_vm13 = vcmp.ne.s32.totalorder %v590_v30, 31  ;;  %v8161_v60 = vor.u32 %v10766_v38, %v8158_v44  ;;  %v12365_v62 = vpack.c.bf16 %v738_v48, %v739_v49  ;;  %v505_v0 = vadd.s32 96, %v11978_v59 }
  0x50   : > { %v10737_v58 = vld [vmem:[%s17760_s1 + $0x194] sm:$0xf0]  ;;  %v7909_v24 = vor.u32 %v10705_v55, %v7908_v47  ;;  %v12370_v1 = vpack.c.bf16 %v12253_v16, %v12204_v46  ;;  %v12375_v9 = vld [vmem:[%s12010_s22 + $0x68] sm:$0xff]  ;;  %vm12378_vm14 = vmpackc.low %vm11250_vm13, %vm11694_vm3  ;;  %v18054_v2 = vmov 0  ;;  %v729_v31 = vrot.slane %v12257_v18, 7 }
  0x51   : > { %1687 = vmatpush.bf16.msrb.mxu1 %v8193_v54  ;;  %1639 = vmatpush.bf16.msrb.mxu0 %v8049_v7  ;;  %v8033_v54 = vor.u32 %v10734_v34, %v8030_v36  ;;  %v8037_v61 = vor.u32 %v10737_v58, %v8036_v57  ;;  %18052 = vst [vmem:[#allocation19_spill] sm:$0xff] %v12365_v62  ;;  %v18055_v2 = vsel %vm12378_vm14, 4294967295, %v18054_v2  ;;  %v12383_v30 = vld [vmem:[%s12010_s22 + $0x70] sm:$0xff]  ;;  %v597_v46 = vand.u32 31, %v505_v0  ;;  %v10730_v11 = vld [vmem:[%s17760_s1 + $0x164] sm:$0xf] }
  0x52   : > { %1737 = vmatpush.bf16.msrb.mxu2 %v7925_v25  ;;  %1786 = vmatpush.bf16.msrb.mxu3 %v8053_v37  ;;  %18053 = vst [vmem:[#allocation20_spill] sm:$0xff] %v12370_v1  ;;  %v12372_v7 = vpack.c.bf16 %v802_v43, %v803_v63  ;;  %v730_v10 = vrot.slane %v12375_v9, 7  ;;  %v795_v25 = vrot.slane %v12375_v9, 1  ;;  %v796_v29 = vrot.slane %v12383_v30, 1  ;;  %v10762_v36 = vld [vmem:[%s17760_s1 + $0x264] sm:$0xf] }
  0x53   : > { %1454 = vmatmul.bf16.gmra.mxu0 %v12119_v3  ;;  %18056 = vst [vmem:[#allocation21_spill] sm:$0xff] %v18055_v2  ;;  %v8142_v37 = vld [vmem:[%s17760_s1 + $0x270] sm:$0xf0]  ;;  %v7892_v44 = vld [vmem:[%s17760_s1 + $0x68] sm:$0xf]  ;;  %vm11247_vm15 = vcmp.ne.s32.totalorder %v597_v46, 0  ;;  %v737_v46 = vsel %vm733_vm0, %v728_v28, %v729_v31 }
  0x54   : > { %1503 = vmatmul.bf16.gmra.mxu1 %v12121_v4  ;;  %v8145_v38 = vor.u32 %v10762_v36, %v8142_v37  ;;  %v10701_v47 = vld [vmem:[%s17760_s1 + $0x74] sm:$0xf0]  ;;  %v8020_v48 = vld [vmem:[%s17760_s1 + $0x168] sm:$0xf]  ;;  %v10726_v55 = vld [vmem:[%s17760_s1 + $0x144] sm:$0xf] }
  0x55   : > { %8237 = vmatmul.msk.bf16.gmra.mxu2 %vm12126_vm6, %v12123_v5  ;;  %1601 = vmatmul.bf16.gmra.mxu3 %v12119_v3  ;;  %v7893_v49 = vor.u32 %v10701_v47, %v7892_v44  ;;  %v7998_v57 = vld [vmem:[%s17760_s1 + $0x150] sm:$0xf0]  ;;  %v10758_v63 = vld [vmem:[%s17760_s1 + $0x244] sm:$0xf]  ;;  %v10697_v0 = vld [vmem:[%s17760_s1 + $0x54] sm:$0xf0] }
  0x56   : > { %1688 = vmatpush.bf16.msrb.mxu1 %v8177_v17  ;;  %1640 = vmatpush.bf16.msrb.mxu0 %v8033_v54  ;;  %v8014_v17 = vld [vmem:[%s17760_s1 + $0x170] sm:$0xf0]  ;;  %v10733_v54 = vld [vmem:[%s17760_s1 + $0x174] sm:$0xf0]  ;;  %v8001_v43 = vor.u32 %v10726_v55, %v7998_v57  ;;  %v10722_v37 = vld [vmem:[%s17760_s1 + $0x124] sm:$0xf] }
  0x57   : > { %1738 = vmatpush.bf16.msrb.mxu2 %v7909_v24  ;;  %1787 = vmatpush.bf16.msrb.mxu3 %v8037_v61  ;;  %v8017_v34 = vor.u32 %v10730_v11, %v8014_v17  ;;  %v8021_v58 = vor.u32 %v10733_v54, %v8020_v48  ;;  %v8126_v24 = vld [vmem:[%s17760_s1 + $0x250] sm:$0xf0]  ;;  %v8004_v11 = vld [vmem:[%s17760_s1 + $0x148] sm:$0xf]  ;;  %v10729_v17 = vld [vmem:[%s17760_s1 + $0x154] sm:$0xf0] }
  0x58   : > { %v8129_v61 = vor.u32 %v10758_v63, %v8126_v24  ;;  %v8005_v36 = vor.u32 %v10729_v17, %v8004_v11  ;;  %v10754_v44 = vld [vmem:[%s17760_s1 + $0x224] sm:$0xf]  ;;  %v8110_v48 = vld [vmem:[%s17760_s1 + $0x230] sm:$0xf0]  ;;  %v10693_v54 = vld [vmem:[%s17760_s1 + $0x34] sm:$0xf0]  ;;  %v800_v24 = vsel %vm798_vm1, %v795_v25, %v796_v29 }
  0x59   : > { %v8113_v55 = vor.u32 %v10754_v44, %v8110_v48  ;;  %v7988_v57 = vld [vmem:[%s17760_s1 + $0x128] sm:$0xf]  ;;  %vm12484_vm2 = vmpackc.low %vm11694_vm3, %vm11247_vm15  ;;  %s11695_s22 = smov 112  }
  0x5a   : > { %1689 = vmatpush.bf16.msrb.mxu1 %v8161_v60  ;;  %1641 = vmatpush.bf16.msrb.mxu0 %v8017_v34  ;;  %v7876_v60 = vld [vmem:[%s17760_s1 + $0x48] sm:$0xf] }
  0x5b   : > { %1739 = vmatpush.bf16.msrb.mxu2 %v7893_v49  ;;  %1788 = vmatpush.bf16.msrb.mxu3 %v8021_v58  ;;  %v7877_v34 = vor.u32 %v10697_v0, %v7876_v60  ;;  %v7860_v49 = vld [vmem:[%s17760_s1 + $0x28] sm:$0xf]  ;;  %v10725_v58 = vld [vmem:[%s17760_s1 + $0x134] sm:$0xf0]  ;;  %v801_v60 = vsel %vm798_vm1, %v794_v33, %v795_v25  ;;  %v7966_v0 = vld [vmem:[%s17760_s1 + $0x110] sm:$0xf0]  ;;  %v12501_v25 = vpack.c.bf16 %v12375_v9, %v12257_v18 }
  0x5c   : > { %v7861_v63 = vor.u32 %v10693_v54, %v7860_v49  ;;  %v10750_v33 = vld [vmem:[%s17760_s1 + $0x204] sm:$0xf]  ;;  %v12503_v11 = vpack.c.bf16 %v800_v24, %v801_v60  ;;  %v7972_v44 = vld [vmem:[%s17760_s1 + $0x108] sm:$0xf]  ;;  %v508_v49 = vadd.s32 120, %v11978_v59  ;;  %v731_v54 = vrot.slane %v12383_v30, 7 }
  0x5e   : > { %1690 = vmatpush.bf16.msrb.mxu1 %v8145_v38  ;;  %v7982_v38 = vld [vmem:[%s17760_s1 + $0x130] sm:$0xf0]  ;;  %1642 = vmatpush.bf16.msrb.mxu0 %v8001_v43  ;;  %v736_v43 = vsel %vm733_vm0, %v729_v31, %v730_v10  ;;  %v10718_v31 = vld [vmem:[%s17760_s1 + $0x104] sm:$0xf] }
  0x5f   : > { %v7985_v47 = vor.u32 %v10722_v37, %v7982_v38  ;;  %1740 = vmatpush.bf16.msrb.mxu2 %v7877_v34  ;;  %1789 = vmatpush.bf16.msrb.mxu3 %v8005_v36  ;;  %v12488_v28 = vpack.c.bf16 %v736_v43, %v737_v46  ;;  %v7969_v17 = vor.u32 %v10718_v31, %v7966_v0  ;;  %v8094_v34 = vld [vmem:[%s17760_s1 + $0x210] sm:$0xf0]  ;;  %v7844_v36 = vld [vmem:[%s17760_s1 + $0x8] sm:$0xf]  ;;  %v10689_v37 = vld [vmem:[%s17760_s1 + $0x14] sm:$0xf0] }
  0x60   : > { %v8097_v38 = vor.u32 %v10750_v33, %v8094_v34  ;;  %v7845_v18 = vor.u32 %v10689_v37, %v7844_v36  ;;  %v735_v43 = vsel %vm733_vm0, %v730_v10, %v731_v54 }
  0x62   : > { %1691 = vmatpush.bf16.msrb.mxu1 %v8129_v61  ;;  %v7989_v61 = vor.u32 %v10725_v58, %v7988_v57  ;;  %1643 = vmatpush.bf16.msrb.mxu0 %v7985_v47  ;;  %v10721_v47 = vld [vmem:[%s17760_s1 + $0x114] sm:$0xf0]  ;;  %v618_v57 = vand.u32 31, %v508_v49  ;;  %v734_v58 = vsel %vm733_vm0, %v731_v54, %v732_v32  ;;  %v12551_v32 = vpack.c.bf16 %v12052_v26, %v12383_v30 }
  0x63   : > { %8225 = vmatmul.msk.bf16.gmra.mxu0 %vm12153_vm8, %v12150_v19  ;;  %1741 = vmatpush.bf16.msrb.mxu2 %v7861_v63  ;;  %v7973_v48 = vor.u32 %v10721_v47, %v7972_v44  ;;  %v12547_v24 = vpack.c.bf16 %v734_v58, %v735_v43 }
  0x64   : > { %1508 = vmatmul.bf16.gmra.mxu1 %v12157_v22  ;;  %1790 = vmatpush.bf16.msrb.mxu3 %v7989_v61  ;;  %vm11251_vm5 = vcmp.ne.s32.totalorder %v618_v57, 31 }
  0x65   : > { %1557 = vmatmul.bf16.gmra.mxu2 %v12159_v23  ;;  %8257 = vmatmul.msk.bf16.gmra.mxu3 %vm12153_vm8, %v12150_v19  ;;  %vm12556_vm7 = vmpackc.low %vm11251_vm5, %vm11694_vm3 }
  0x66   : > { %1692 = vmatpush.bf16.msrb.mxu1 %v8113_v55  ;;  %1644 = vmatpush.bf16.msrb.mxu0 %v7969_v17  ;;  %v797_v55 = vrot.slane %v12052_v26, 1  ;;  %v12572_v26 = vperm.slane %v12569_v20, 0 }
  0x67   : > { %1742 = vmatpush.bf16.msrb.mxu2 %v7845_v18 }
  0x68   : > { %1791 = vmatpush.bf16.msrb.mxu3 %v7973_v48  ;;  %v799_v46 = vsel %vm798_vm1, %v796_v29, %v797_v55  ;;  %v814_v63 = vsel %vm798_vm1, %v797_v55, %v782_v35 }
  0x69   : > { %v12553_v9 = vpack.c.bf16 %v814_v63, %v799_v46 }
  0x6a   : > { %1693 = vmatpush.bf16.msrb.mxu1 %v8097_v38 }
  0x73   : > { %1464 = vmatmul.bf16.gmra.mxu0 %v12183_v39 }
  0x74   : > { %1513 = vmatmul.bf16.gmra.mxu1 %v12185_v40 }
  0x75   : > { %8241 = vmatmul.msk.bf16.gmra.mxu2 %vm12190_vm10, %v12187_v41  ;;  %1611 = vmatmul.bf16.gmra.mxu3 %v12183_v39 }
  0x83   : > { %8229 = vmatmul.msk.bf16.gmra.mxu0 %vm12243_vm12, %v12240_v12 }
  0x84   : > { %1518 = vmatmul.bf16.gmra.mxu1 %v12248_v14 }
  0x85   : > { %1567 = vmatmul.bf16.gmra.mxu2 %v12250_v15  ;;  %8261 = vmatmul.msk.bf16.gmra.mxu3 %vm12243_vm12, %v12240_v12 }
  0x93   : > { %1474 = vmatmul.bf16.gmra.mxu0 %v12365_v62 }
  0x94   : > { %1523 = vmatmul.bf16.gmra.mxu1 %v12370_v1 }
  0x95   : > { %8245 = vmatmul.msk.bf16.gmra.mxu2 %vm12378_vm14, %v12372_v7  ;;  %1621 = vmatmul.bf16.gmra.mxu3 %v12365_v62 }
  0xa3   : > { %8233 = vmatmul.msk.bf16.gmra.mxu0 %vm12484_vm2, %v12488_v28 }
  0xa4   : > { %1528 = vmatmul.bf16.gmra.mxu1 %v12501_v25 }
  0xa5   : > { %1577 = vmatmul.bf16.gmra.mxu2 %v12503_v11  ;;  %8265 = vmatmul.msk.bf16.gmra.mxu3 %vm12484_vm2, %v12488_v28 }
  0xb3   : > { %1484 = vmatmul.bf16.gmra.mxu0 %v12547_v24 }
  0xb4   : > { %1533 = vmatmul.bf16.gmra.mxu1 %v12551_v32 }
  0xb5   : > { %8249 = vmatmul.msk.bf16.gmra.mxu2 %vm12556_vm7, %v12553_v9  ;;  %1631 = vmatmul.bf16.gmra.mxu3 %v12547_v24 }
  0xc0   : > { %v1450_v35 = vpop.f32.mrf.mxu0 }
  0xc1   : > { %v1451_v30 = vadd.f32 %v1450_v35, %v12572_v26  ;;  %v1499_v29 = vpop.f32.mrf.mxu1 }
  0xc3   : > { %v1500_v60 = vadd.f32 %v1499_v29, %v1451_v30  ;;  %1645 = vmatmul.bf16.vlgmr.msrb.gmra.mxu0 %v12093_v52 }
  0xc4   : > { %1694 = vmatmul.bf16.vlgmr.msrb.gmra.mxu1 %v12095_v53 }
  0xc5   : > { %8285 = vmatmul.msk.bf16.vlgmr.msrb.gmra.mxu2 %vm12087_vm4, %v12084_v50  ;;  %1792 = vmatmul.bf16.vlgmr.msrb.gmra.mxu3 %v12093_v52 }
  0xc8   : > { %v1548_v61 = vpop.f32.mrf.mxu2  ;;  %v12583_v0 = vpop.f32.mrf.mxu3 }
  0xc9   : > { %v12581_v31 = vadd.f32 %v1548_v61, %v1500_v60  ;;  %v1452_v33 = vpop.f32.mrf.mxu0  ;;  %v1501_v34 = vpop.f32.mrf.mxu1 }
  0xca   : > { %v1453_v17 = vadd.f32 %v1452_v33, %v12572_v26 }
  0xcb   : > { %18061 = vst [vmem:[#allocation22_spill] sm:$0xff] %v12581_v31 }
  0xcc   : > { %v1502_v36 = vadd.f32 %v1501_v34, %v1453_v17 }
  0xd0   : > { %v1550_v37 = vpop.f32.mrf.mxu2  ;;  %v12588_v18 = vpop.f32.mrf.mxu3 }
  0xd1   : > { %v12586_v38 = vadd.f32 %v1550_v37, %v1502_v36  ;;  %v1455_v44 = vpop.f32.mrf.mxu0  ;;  %v1504_v48 = vpop.f32.mrf.mxu1 }
  0xd2   : > { %v1456_v47 = vadd.f32 %v1455_v44, %v12572_v26 }
  0xd3   : > { %18062 = vst [vmem:[#allocation23_spill] sm:$0xff] %v12586_v38  ;;  %1650 = vmatmul.bf16.gmra.mxu0 %v12121_v4  ;;  %v8180_v38 = vld [vmem:[%s17760_s1 + $0x2a8] sm:$0xf] }
  0xd4   : > { %v1505_v49 = vadd.f32 %v1504_v48, %v1456_v47  ;;  %8269 = vmatmul.msk.bf16.gmra.mxu1 %vm12126_vm6, %v12123_v5 }
  0xd5   : > { %1748 = vmatmul.bf16.gmra.mxu2 %v12119_v3  ;;  %1797 = vmatmul.bf16.gmra.mxu3 %v12121_v4 }
  0xd8   : > { %v1553_v54 = vpop.f32.mrf.mxu2  ;;  %v12599_v57 = vpop.f32.mrf.mxu3 }
  0xd9   : > { %v12597_v55 = vadd.f32 %v1553_v54, %v1505_v49  ;;  %v1457_v58 = vpop.f32.mrf.mxu0  ;;  %v1506_v46 = vpop.f32.mrf.mxu1 }
  0xda   : > { %v1458_v43 = vadd.f32 %v1457_v58, %v12572_v26 }
  0xdb   : > { %18063 = vst [vmem:[#allocation24_spill] sm:$0xff] %v12597_v55 }
  0xdc   : > { %v1507_v63 = vadd.f32 %v1506_v46, %v1458_v43 }
  0xe0   : > { %v1555_v35 = vpop.f32.mrf.mxu2  ;;  %v12604_v29 = vpop.f32.mrf.mxu3 }
  0xe1   : > { %v12602_v30 = vadd.f32 %v1555_v35, %v1507_v63  ;;  %v1460_v60 = vpop.f32.mrf.mxu0  ;;  %v1509_v33 = vpop.f32.mrf.mxu1 }
  0xe2   : > { %v1461_v61 = vadd.f32 %v1460_v60, %v12572_v26 }
  0xe3   : > { %18064 = vst [vmem:[#allocation25_spill] sm:$0xff] %v12602_v30  ;;  %1655 = vmatmul.bf16.gmra.mxu0 %v12157_v22 }
  0xe4   : > { %v1510_v17 = vadd.f32 %v1509_v33, %v1461_v61  ;;  %1704 = vmatmul.bf16.gmra.mxu1 %v12159_v23 }
  0xe5   : > { %8289 = vmatmul.msk.bf16.gmra.mxu2 %vm12153_vm8, %v12150_v19  ;;  %1802 = vmatmul.bf16.gmra.mxu3 %v12157_v22 }
  0xe8   : > { %v1558_v34 = vpop.f32.mrf.mxu2  ;;  %v12615_v37 = vpop.f32.mrf.mxu3 }
  0xe9   : > { %v12613_v36 = vadd.f32 %v1558_v34, %v1510_v17  ;;  %v1462_v44 = vpop.f32.mrf.mxu0  ;;  %v1511_v48 = vpop.f32.mrf.mxu1 }
  0xea   : > { %v1463_v47 = vadd.f32 %v1462_v44, %v12572_v26 }
  0xeb   : > { %18065 = vst [vmem:[#allocation26_spill] sm:$0xff] %v12613_v36 }
  0xec   : > { %v1512_v49 = vadd.f32 %v1511_v48, %v1463_v47 }
  0xf0   : > { %v1560_v54 = vpop.f32.mrf.mxu2  ;;  %v12620_v43 = vpop.f32.mrf.mxu3 }
  0xf1   : > { %v12618_v58 = vadd.f32 %v1560_v54, %v1512_v49  ;;  %v1465_v46 = vpop.f32.mrf.mxu0  ;;  %v1514_v63 = vpop.f32.mrf.mxu1 }
  0xf2   : > { %v1466_v35 = vadd.f32 %v1465_v46, %v12572_v26 }
  0xf3   : > { %18066 = vst [vmem:[#allocation27_spill] sm:$0xff] %v12618_v58  ;;  %1660 = vmatmul.bf16.gmra.mxu0 %v12185_v40 }
  0xf4   : > { %8273 = vmatmul.msk.bf16.gmra.mxu1 %vm12190_vm10, %v12187_v41  ;;  %v1515_v34 = vadd.f32 %v1514_v63, %v1466_v35  ;;  %v10747_v63 = vld [vmem:[%s17760_s1 + $0x1ec] sm:$0xf]  ;;  %v8086_v35 = vld [vmem:[%s17760_s1 + $0x1f8] sm:$0xf0] }
  0xf5   : > { %1758 = vmatmul.bf16.gmra.mxu2 %v12183_v39  ;;  %1807 = vmatmul.bf16.gmra.mxu3 %v12185_v40 }
  0xf8   : > { %v1563_v60 = vpop.f32.mrf.mxu2  ;;  %v12629_v61 = vpop.f32.mrf.mxu3 }
  0xf9   : > { %v1467_v33 = vpop.f32.mrf.mxu0  ;;  %v1516_v17 = vpop.f32.mrf.mxu1  ;;  %v12632_v47 = vadd.f32 %v1563_v60, %v1515_v34  ;;  %v8212_v60 = vld [vmem:[%s17760_s1 + $0x2e8] sm:$0xf]  ;;  %v10781_v34 = vld [vmem:[%s17760_s1 + $0x2f4] sm:$0xf0] }
  0xfa   : > { %v1468_v44 = vadd.f32 %v1467_v33, %v12572_v26 }
  0xfb   : > { %18067 = vst [vmem:[#allocation28_spill] sm:$0xff] %v12632_v47  ;;  %v17784_v46 = vmax.f32 %v12632_v47, 0.0 }
  0xfc   : > { %v1517_v48 = vadd.f32 %v1516_v17, %v1468_v44  ;;  %v8089_v17 = vor.u32 %v10747_v63, %v8086_v35  ;;  %v10779_v44 = vld [vmem:[%s17760_s1 + $0x2ec] sm:$0xf]  ;;  %v7958_v35 = vld [vmem:[%s17760_s1 + $0xf8] sm:$0xf0] }
  0xfd   : > { %v10715_v63 = vld [vmem:[%s17760_s1 + $0xec] sm:$0xf] }
  0xfe   : > { %1931 = vmatpush.bf16.msra.mxu2 %v8089_v17 }
 0x100   : > { %v1565_v49 = vpop.f32.mrf.mxu2  ;;  %v12636_v45 = vpop.f32.mrf.mxu3 }
 0x101   : > { %v12634_v54 = vadd.f32 %v1565_v49, %v1517_v48  ;;  %v1470_v27 = vpop.f32.mrf.mxu0  ;;  %v1519_v56 = vpop.f32.mrf.mxu1  ;;  %v8214_v48 = vld [vmem:[%s17760_s1 + $0x2f8] sm:$0xf0]  ;;  %v8213_v49 = vor.u32 %v10781_v34, %v8212_v60  ;;  %v8196_v60 = vld [vmem:[%s17760_s1 + $0x2c8] sm:$0xf]  ;;  %v10777_v34 = vld [vmem:[%s17760_s1 + $0x2d4] sm:$0xf0] }
 0x102   : > { %v8217_v47 = vor.u32 %v10779_v44, %v8214_v48  ;;  %v8197_v17 = vor.u32 %v10777_v34, %v8196_v60  ;;  %v10743_v48 = vld [vmem:[%s17760_s1 + $0x1cc] sm:$0xf]  ;;  %v8198_v60 = vld [vmem:[%s17760_s1 + $0x2d8] sm:$0xf0] }
 0x103   : > { %18068 = vst [vmem:[#allocation29_spill] sm:$0xff] %v12634_v54  ;;  %v17783_v8 = vmax.f32 %v12634_v54, 0.0  ;;  %1665 = vmatmul.bf16.gmra.mxu0 %v12248_v14 }
 0x104   : > { %1714 = vmatmul.bf16.gmra.mxu1 %v12250_v15  ;;  %1833 = vmatpush.bf16.msra.mxu0 %v8213_v49  ;;  %v8070_v49 = vld [vmem:[%s17760_s1 + $0x1d8] sm:$0xf0] }
 0x105   : > { %8293 = vmatmul.msk.bf16.gmra.mxu2 %vm12243_vm12, %v12240_v12  ;;  %v11325_v33 = vpack.i.bf16 %v17783_v8, %v17784_v46  ;;  %1812 = vmatmul.bf16.gmra.mxu3 %v12248_v14  ;;  %v1471_v8 = vadd.f32 %v1470_v27, %v12572_v26  ;;  %v7961_v46 = vor.u32 %v10715_v63, %v7958_v35  ;;  %v10711_v27 = vld [vmem:[%s17760_s1 + $0xcc] sm:$0xf] }
 0x106   : > { %1980 = vmatpush.bf16.msra.mxu3 %v8217_v47  ;;  %v7942_v47 = vld [vmem:[%s17760_s1 + $0xd8] sm:$0xf0]  ;;  %v8073_v59 = vor.u32 %v10743_v48, %v8070_v49  ;;  %v10771_v49 = vld [vmem:[%s17760_s1 + $0x2ac] sm:$0xf] }
 0x107   : > { %11326 = vrot.lane.b32.xlu0 %v11325_v33, %s11695_s22  ;;  %1882 = vmatpush.bf16.msra.mxu1 %v7961_v46  ;;  %v7945_v35 = vor.u32 %v10711_v27, %v7942_v47  ;;  %v10775_v46 = vld [vmem:[%s17760_s1 + $0x2cc] sm:$0xf]  ;;  %v1520_v34 = vadd.f32 %v1519_v56, %v1471_v8  ;;  %v10773_v27 = vld [vmem:[%s17760_s1 + $0x2b4] sm:$0xf0]  ;;  %v7926_v8 = vld [vmem:[%s17760_s1 + $0xb8] sm:$0xf0] }
 0x108   : > { %v1568_v54 = vpop.f32.mrf.mxu2  ;;  %v12685_v44 = vpop.f32.mrf.mxu3  ;;  %v8201_v58 = vor.u32 %v10775_v46, %v8198_v60  ;;  %1834 = vmatpush.bf16.msra.mxu0 %v8197_v17  ;;  %1932 = vmatpush.bf16.msra.mxu2 %v8073_v59  ;;  %v10707_v47 = vld [vmem:[%s17760_s1 + $0xac] sm:$0xf]  ;;  %v8181_v56 = vor.u32 %v10773_v27, %v8180_v38  ;;  %v8182_v38 = vld [vmem:[%s17760_s1 + $0x2b8] sm:$0xf0]  ;;  %v8164_v27 = vld [vmem:[%s17760_s1 + $0x288] sm:$0xf] }
 0x109   : > { %v1472_v33 = vpop.f32.mrf.mxu0  ;;  %v1521_v63 = vpop.f32.mrf.mxu1  ;;  %v10739_v59 = vld [vmem:[%s17760_s1 + $0x1ac] sm:$0xf]  ;;  %v7929_v17 = vor.u32 %v10707_v47, %v7926_v8  ;;  %v8185_v46 = vor.u32 %v10771_v49, %v8182_v38  ;;  %v10769_v47 = vld [vmem:[%s17760_s1 + $0x294] sm:$0xf0] }
 0x10a   : > { %v1473_v36 = vadd.f32 %v1472_v33, %v12572_v26  ;;  %1981 = vmatpush.bf16.msra.mxu3 %v8201_v58  ;;  %v8054_v33 = vld [vmem:[%s17760_s1 + $0x1b8] sm:$0xf0]  ;;  %v12727_v58 = vadd.f32 %v1568_v54, %v1520_v34  ;;  %v10703_v8 = vld [vmem:[%s17760_s1 + $0x8c] sm:$0xf]  ;;  %v8165_v49 = vor.u32 %v10769_v47, %v8164_v27  ;;  %v8148_v27 = vld [vmem:[%s17760_s1 + $0x268] sm:$0xf] }
 0x10b   : > { %1883 = vmatpush.bf16.msra.mxu1 %v7945_v35  ;;  %v8057_v48 = vor.u32 %v10739_v59, %v8054_v33  ;;  %v10735_v34 = vld [vmem:[%s17760_s1 + $0x18c] sm:$0xf]  ;;  %v10765_v47 = vld [vmem:[%s17760_s1 + $0x274] sm:$0xf0] }
 0x10c   : > { %18069 = vst [vmem:[#allocation30_spill] sm:$0xff] %v12727_v58  ;;  %v1522_v35 = vadd.f32 %v1521_v63, %v1473_v36  ;;  %1835 = vmatpush.bf16.msra.mxu0 %v8181_v56  ;;  %v7910_v63 = vld [vmem:[%s17760_s1 + $0x98] sm:$0xf0] }
 0x10d   : > { %1933 = vmatpush.bf16.msra.mxu2 %v8057_v48  ;;  %v8038_v56 = vld [vmem:[%s17760_s1 + $0x198] sm:$0xf0]  ;;  %v7913_v55 = vor.u32 %v10703_v8, %v7910_v63 }
 0x10e   : > { %1982 = vmatpush.bf16.msra.mxu3 %v8185_v46  ;;  %v8041_v38 = vor.u32 %v10735_v34, %v8038_v56  ;;  %v17794_v46 = vmax.f32 %v12727_v58, 0.0  ;;  %v10699_v34 = vld [vmem:[%s17760_s1 + $0x6c] sm:$0xf]  ;;  %v7894_v63 = vld [vmem:[%s17760_s1 + $0x78] sm:$0xf0] }
 0x10f   : > { %1884 = vmatpush.bf16.msra.mxu1 %v7929_v17  ;;  %v10767_v17 = vld [vmem:[%s17760_s1 + $0x28c] sm:$0xf] }
 0x110   : > { %v1570_v60 = vpop.f32.mrf.mxu2  ;;  %v12740_v54 = vpop.f32.mrf.mxu3  ;;  %v10731_v56 = vld [vmem:[%s17760_s1 + $0x16c] sm:$0xf]  ;;  %1836 = vmatpush.bf16.msra.mxu0 %v8165_v49  ;;  %v8132_v49 = vld [vmem:[%s17760_s1 + $0x248] sm:$0xf] }
 0x111   : > { %v12738_v59 = vadd.f32 %v1570_v60, %v1522_v35  ;;  %18071 = vst [vmem:[#allocation32_spill] sm:$0xff] %v12740_v54  ;;  %v1475_v36 = vpop.f32.mrf.mxu0  ;;  %v1524_v48 = vpop.f32.mrf.mxu1  ;;  %v8166_v35 = vld [vmem:[%s17760_s1 + $0x298] sm:$0xf0]  ;;  %1934 = vmatpush.bf16.msra.mxu2 %v8041_v38  ;;  %v8116_v54 = vld [vmem:[%s17760_s1 + $0x228] sm:$0xf] }
 0x112   : > { %v1476_v33 = vadd.f32 %v1475_v36, %v12572_v26  ;;  %v8169_v36 = vor.u32 %v10767_v17, %v8166_v35  ;;  %v10763_v17 = vld [vmem:[%s17760_s1 + $0x26c] sm:$0xf]  ;;  %v8150_v35 = vld [vmem:[%s17760_s1 + $0x278] sm:$0xf0] }
 0x113   : > { %18070 = vst [vmem:[#allocation31_spill] sm:$0xff] %v12738_v59  ;;  %v17793_v60 = vmax.f32 %v12738_v59, 0.0  ;;  %1670 = vmatmul.bf16.gmra.mxu0 %v12370_v1  ;;  %1885 = vmatpush.bf16.msra.mxu1 %v7913_v55  ;;  %v8153_v59 = vor.u32 %v10763_v17, %v8150_v35  ;;  %v8134_v17 = vld [vmem:[%s17760_s1 + $0x258] sm:$0xf0] }
 0x114   : > { %v1525_v30 = vadd.f32 %v1524_v48, %v1476_v33  ;;  %8277 = vmatmul.msk.bf16.gmra.mxu1 %vm12378_vm14, %v12372_v7  ;;  %v8022_v33 = vld [vmem:[%s17760_s1 + $0x178] sm:$0xf0]  ;;  %v8149_v48 = vor.u32 %v10765_v47, %v8148_v27  ;;  %1983 = vmatpush.bf16.msra.mxu3 %v8169_v36  ;;  %v10761_v27 = vld [vmem:[%s17760_s1 + $0x254] sm:$0xf0]  ;;  %v10695_v47 = vld [vmem:[%s17760_s1 + $0x4c] sm:$0xf] }
 0x115   : > { %1768 = vmatmul.bf16.gmra.mxu2 %v12365_v62  ;;  %v11330_v8 = vpack.i.bf16 %v17793_v60, %v17794_v46  ;;  %1817 = vmatmul.bf16.gmra.mxu3 %v12370_v1  ;;  %v8025_v38 = vor.u32 %v10731_v56, %v8022_v33  ;;  %v7897_v60 = vor.u32 %v10699_v34, %v7894_v63  ;;  %v7878_v36 = vld [vmem:[%s17760_s1 + $0x58] sm:$0xf0] }
 0x116   : > { %v8006_v63 = vld [vmem:[%s17760_s1 + $0x158] sm:$0xf0]  ;;  %1837 = vmatpush.bf16.msra.mxu0 %v8149_v48  ;;  %v7881_v35 = vor.u32 %v10695_v47, %v7878_v36  ;;  %v10757_v48 = vld [vmem:[%s17760_s1 + $0x234] sm:$0xf0] }
 0x117   : > { %11331 = vrot.lane.b32.xlu2 %v11330_v8, %s11695_s22  ;;  %1935 = vmatpush.bf16.msra.mxu2 %v8025_v38  ;;  %v10727_v8 = vld [vmem:[%s17760_s1 + $0x14c] sm:$0xf]  ;;  %v8117_v47 = vor.u32 %v10757_v48, %v8116_v54  ;;  %v8100_v54 = vld [vmem:[%s17760_s1 + $0x208] sm:$0xf] }
 0x118   : > { %v1573_v46 = vpop.f32.mrf.mxu2  ;;  %v12806_v55 = vpop.f32.mrf.mxu3  ;;  %v10759_v38 = vld [vmem:[%s17760_s1 + $0x24c] sm:$0xf]  ;;  %1886 = vmatpush.bf16.msra.mxu1 %v7897_v60  ;;  %1984 = vmatpush.bf16.msra.mxu3 %v8153_v59  ;;  %v7862_v60 = vld [vmem:[%s17760_s1 + $0x38] sm:$0xf0] }
 0x119   : > { %v12804_v56 = vadd.f32 %v1573_v46, %v1525_v30  ;;  %v12808_v34 = vpop.f32.mrf.mxu0  ;;  %v12819_v33 = vpop.f32.mrf.mxu1  ;;  %v8133_v30 = vor.u32 %v10761_v27, %v8132_v49  ;;  %v8009_v46 = vor.u32 %v10727_v8, %v8006_v63  ;;  %v8137_v58 = vor.u32 %v10759_v38, %v8134_v17  ;;  %v10691_v49 = vld [vmem:[%s17760_s1 + $0x2c] sm:$0xf]  ;;  %v7990_v27 = vld [vmem:[%s17760_s1 + $0x138] sm:$0xf0] }
 0x11a   : > { %v10723_v59 = vld [vmem:[%s17760_s1 + $0x12c] sm:$0xf]  ;;  %v8118_v63 = vld [vmem:[%s17760_s1 + $0x238] sm:$0xf0] }
 0x11b   : > { %18072 = vst [vmem:[#allocation33_spill] sm:$0xff] %v12804_v56  ;;  %1936 = vmatpush.bf16.msra.mxu2 %v8009_v46  ;;  %1838 = vmatpush.bf16.msra.mxu0 %v8133_v30  ;;  %v7993_v36 = vor.u32 %v10723_v59, %v7990_v27  ;;  %v10755_v8 = vld [vmem:[%s17760_s1 + $0x22c] sm:$0xf]  ;;  %v7865_v46 = vor.u32 %v10691_v49, %v7862_v60  ;;  %v10753_v30 = vld [vmem:[%s17760_s1 + $0x214] sm:$0xf0] }
 0x11c   : > { %1887 = vmatpush.bf16.msra.mxu1 %v7881_v35  ;;  %1985 = vmatpush.bf16.msra.mxu3 %v8137_v58  ;;  %v8121_v17 = vor.u32 %v10755_v8, %v8118_v63  ;;  %v10687_v48 = vld [vmem:[%s17760_s1 + $0xc] sm:$0xf]  ;;  %v7846_v58 = vld [vmem:[%s17760_s1 + $0x18] sm:$0xf0]  ;;  %v8101_v8 = vor.u32 %v10753_v30, %v8100_v54 }
 0x11d   : > { %v10719_v49 = vld [vmem:[%s17760_s1 + $0x10c] sm:$0xf]  ;;  %v7974_v60 = vld [vmem:[%s17760_s1 + $0x118] sm:$0xf0]  ;;  %v7849_v56 = vor.u32 %v10687_v48, %v7846_v58 }
 0x11e   : > { %v10751_v63 = vld [vmem:[%s17760_s1 + $0x20c] sm:$0xf]  ;;  %v7977_v1 = vor.u32 %v10719_v49, %v7974_v60 }
 0x11f   : > { %1937 = vmatpush.bf16.msra.mxu2 %v7993_v36  ;;  %1839 = vmatpush.bf16.msra.mxu0 %v8117_v47 }
 0x120   : > { %v12851_v38 = vpop.f32.mrf.mxu2  ;;  %v12862_v59 = vpop.f32.mrf.mxu3  ;;  %1888 = vmatpush.bf16.msra.mxu1 %v7865_v46  ;;  %1986 = vmatpush.bf16.msra.mxu3 %v8121_v17 }
 0x121   : > { %18073 = vst [vmem:[#allocation34_spill] sm:$0xff] %v12862_v59  ;;  %v1480_v35 = vpop.f32.mrf.mxu0  ;;  %v1529_v36 = vpop.f32.mrf.mxu1  ;;  %v8102_v59 = vld [vmem:[%s17760_s1 + $0x218] sm:$0xf0] }
 0x122   : > { %v1481_v27 = vadd.f32 %v1480_v35, %v12572_v26  ;;  %v8105_v2 = vor.u32 %v10751_v63, %v8102_v59 }
 0x123   : > { %1675 = vmatmul.bf16.gmra.mxu0 %v12501_v25  ;;  %1938 = vmatpush.bf16.msra.mxu2 %v7977_v1 }
 0x124   : > { %v1530_v62 = vadd.f32 %v1529_v36, %v1481_v27  ;;  %1724 = vmatmul.bf16.gmra.mxu1 %v12503_v11  ;;  %1840 = vmatpush.bf16.msra.mxu0 %v8101_v8 }
 0x125   : > { %8297 = vmatmul.msk.bf16.gmra.mxu2 %vm12484_vm2, %v12488_v28  ;;  %1822 = vmatmul.bf16.gmra.mxu3 %v12501_v25 }
 0x126   : > { %1889 = vmatpush.bf16.msra.mxu1 %v7849_v56  ;;  %1987 = vmatpush.bf16.msra.mxu3 %v8105_v2 }
 0x128   : > { %v1578_v47 = vpop.f32.mrf.mxu2  ;;  %v12888_v54 = vpop.f32.mrf.mxu3 }
 0x129   : > { %v12886_v46 = vadd.f32 %v1578_v47, %v1530_v62  ;;  %v1482_v30 = vpop.f32.mrf.mxu0  ;;  %v1531_v48 = vpop.f32.mrf.mxu1 }
 0x12a   : > { %v1483_v17 = vadd.f32 %v1482_v30, %v12572_v26  ;;  %v17810_v30 = vmax.f32 %v12581_v31, 0.0 }
 0x12b   : > { %18074 = vst [vmem:[#allocation35_spill] sm:$0xff] %v12886_v46 }
 0x12c   : > { %v1532_v59 = vadd.f32 %v1531_v48, %v1483_v17  ;;  %v12910_v48 = vperm.slane %v12569_v20, 1 }
 0x12e   : > { %v1623_v13 = vadd.f32 %v12806_v55, %v12910_v48 }
 0x130   : > { %v1580_v35 = vpop.f32.mrf.mxu2  ;;  %v12893_v49 = vpop.f32.mrf.mxu3 }
 0x131   : > { %v12891_v58 = vadd.f32 %v1580_v35, %v1532_v59  ;;  %v1485_v60 = vpop.f32.mrf.mxu0  ;;  %v1534_v1 = vpop.f32.mrf.mxu1  ;;  %v1478_v59 = vadd.f32 %v12808_v34, %v12572_v26 }
 0x132   : > { %v1486_v56 = vadd.f32 %v1485_v60, %v12572_v26 }
 0x133   : > { %1680 = vmatmul.bf16.gmra.mxu0 %v12551_v32 }
 0x134   : > { %v1535_v62 = vadd.f32 %v1534_v1, %v1486_v56  ;;  %8281 = vmatmul.msk.bf16.gmra.mxu1 %vm12556_vm7, %v12553_v9  ;;  %v1598_v56 = vadd.f32 %v12583_v0, %v12910_v48  ;;  %v1527_v1 = vadd.f32 %v12819_v33, %v1478_v59  ;;  %v12937_v0 = vperm.slane %v12569_v20, 2 }
 0x135   : > { %1778 = vmatmul.bf16.gmra.mxu2 %v12547_v24  ;;  %1827 = vmatmul.bf16.gmra.mxu3 %v12551_v32 }
 0x138   : > { %v1583_v2 = vpop.f32.mrf.mxu2  ;;  %v12904_v36 = vpop.f32.mrf.mxu3 }
 0x139   : > { %v12902_v27 = vadd.f32 %v1583_v2, %v1535_v62  ;;  %v1487_v8 = vpop.f32.mrf.mxu0  ;;  %v1536_v47 = vpop.f32.mrf.mxu1 }
 0x13a   : > { %v1488_v63 = vadd.f32 %v1487_v8, %v12572_v26  ;;  %v12927_v26 = vadd.f32 %v12851_v38, %v1527_v1 }
 0x13b   : > { %18075 = vst [vmem:[#allocation36_spill] sm:$0xff] %v12902_v27  ;;  %v17805_v17 = vmax.f32 %v12902_v27, 0.0 }
 0x13c   : > { %v1537_v35 = vadd.f32 %v1536_v47, %v1488_v63  ;;  %18076 = vst [vmem:[#allocation37_spill] sm:$0xff] %v12927_v26  ;;  %v17803_v33 = vmax.f32 %v12927_v26, 0.0 }
 0x13d   : > { %v11335_v60 = vpack.i.bf16 %v17805_v17, %v17810_v30 }
 0x13f   : > { %11336 = vrot.lane.b32.xlu1 %v11335_v60, %s11695_s22 }
 0x140   : > { %v1585_v62 = vpop.f32.mrf.mxu2  ;;  %v12924_v8 = vpop.f32.mrf.mxu3 }
 0x141   : > { %v12922_v2 = vadd.f32 %v1585_v62, %v1537_v35  ;;  %v1646_v46 = vpop.f32.mrf.mxu0  ;;  %v1695_v63 = vpop.f32.mrf.mxu1 }
 0x142   : > { %v1647_v34 = vadd.f32 %v1646_v46, %v1598_v56  ;;  %v1600_v46 = vadd.f32 %v12588_v18, %v12910_v48  ;;  %v1603_v18 = vadd.f32 %v12599_v57, %v12910_v48  ;;  %v1605_v57 = vadd.f32 %v12604_v29, %v12910_v48 }
 0x143   : > { %1841 = vmatmul.bf16.vlgmr.msra.gmra.mxu0 %v12095_v53 }
 0x144   : > { %v12929_v47 = vadd.f32 %v1695_v63, %v1647_v34  ;;  %8317 = vmatmul.msk.bf16.vlgmr.msra.gmra.mxu1 %vm12087_vm4, %v12084_v50 }
 0x145   : > { %1939 = vmatmul.bf16.vlgmr.msra.gmra.mxu2 %v12093_v52  ;;  %1988 = vmatmul.bf16.vlgmr.msra.gmra.mxu3 %v12095_v53 }
 0x146   : > { %18077 = vst [vmem:[#allocation38_spill] sm:$0xff] %v12929_v47  ;;  %v17804_v38 = vmax.f32 %v12929_v47, 0.0 }
 0x148   : > { %v11340_v51 = vpack.i.bf16 %v17804_v38, %v17803_v33  ;;  %v1744_v50 = vpop.f32.mrf.mxu2  ;;  %v1793_v59 = vpop.f32.mrf.mxu3 }
 0x149   : > { %v1745_v52 = vadd.f32 %v1744_v50, %v12937_v0  ;;  %v1648_v35 = vpop.f32.mrf.mxu0  ;;  %v1697_v56 = vpop.f32.mrf.mxu1 }
 0x14a   : > { %v1649_v60 = vadd.f32 %v1648_v35, %v1600_v46  ;;  %11341 = vrot.lane.b32.xlu1 %v11340_v51, %s11695_s22 }
 0x14b   : > { %v12950_v1 = vadd.f32 %v1793_v59, %v1745_v52 }
 0x14c   : > { %v12952_v53 = vadd.f32 %v1697_v56, %v1649_v60 }
 0x14e   : > { %18078 = vst [vmem:[#allocation39_spill] sm:$0xff] %v12952_v53 }
 0x150   : > { %v1746_v62 = vpop.f32.mrf.mxu2  ;;  %v1795_v63 = vpop.f32.mrf.mxu3 }
 0x151   : > { %v1747_v34 = vadd.f32 %v1746_v62, %v12937_v0  ;;  %v1651_v33 = vpop.f32.mrf.mxu0  ;;  %v1700_v50 = vpop.f32.mrf.mxu1 }
 0x152   : > { %v1652_v38 = vadd.f32 %v1651_v33, %v1603_v18 }
 0x153   : > { %v12957_v17 = vadd.f32 %v1795_v63, %v1747_v34  ;;  %8301 = vmatmul.msk.bf16.gmra.mxu0 %vm12126_vm6, %v12123_v5 }
 0x154   : > { %v12959_v46 = vadd.f32 %v1700_v50, %v1652_v38  ;;  %1895 = vmatmul.bf16.gmra.mxu1 %v12119_v3  ;;  %v1608_v3 = vadd.f32 %v12615_v37, %v12910_v48  ;;  %v1610_v37 = vadd.f32 %v12620_v43, %v12910_v48 }
 0x155   : > { %18079 = vst [vmem:[#allocation40_spill] sm:$0xff] %v12957_v17  ;;  %1944 = vmatmul.bf16.gmra.mxu2 %v12121_v4  ;;  %8333 = vmatmul.msk.bf16.gmra.mxu3 %vm12126_vm6, %v12123_v5 }
 0x156   : > { %18080 = vst [vmem:[#allocation41_spill] sm:$0xff] %v12959_v46 }
 0x158   : > { %v1749_v33 = vpop.f32.mrf.mxu2  ;;  %v1798_v38 = vpop.f32.mrf.mxu3 }
 0x159   : > { %v1750_v51 = vadd.f32 %v1749_v33, %v12937_v0  ;;  %v1653_v52 = vpop.f32.mrf.mxu0  ;;  %v1702_v35 = vpop.f32.mrf.mxu1 }
 0x15a   : > { %v1654_v59 = vadd.f32 %v1653_v52, %v1605_v57 }
 0x15b   : > { %v12972_v60 = vadd.f32 %v1798_v38, %v1750_v51 }
 0x15c   : > { %v12974_v56 = vadd.f32 %v1702_v35, %v1654_v59 }
 0x15e   : > { %18081 = vst [vmem:[#allocation42_spill] sm:$0xff] %v12974_v56 }
 0x160   : > { %v1751_v4 = vpop.f32.mrf.mxu2  ;;  %v1800_v6 = vpop.f32.mrf.mxu3 }
 0x161   : > { %v1752_v5 = vadd.f32 %v1751_v4, %v12937_v0  ;;  %v1656_v18 = vpop.f32.mrf.mxu0  ;;  %v1705_v62 = vpop.f32.mrf.mxu1 }
 0x162   : > { %v1657_v29 = vadd.f32 %v1656_v18, %v1608_v3  ;;  %v1615_v18 = vadd.f32 %v12636_v45, %v12910_v48 }
 0x163   : > { %v12979_v34 = vadd.f32 %v1800_v6, %v1752_v5  ;;  %1851 = vmatmul.bf16.gmra.mxu0 %v12159_v23 }
 0x164   : > { %v12981_v63 = vadd.f32 %v1705_v62, %v1657_v29  ;;  %8321 = vmatmul.msk.bf16.gmra.mxu1 %vm12153_vm8, %v12150_v19  ;;  %v1613_v19 = vadd.f32 %v12629_v61, %v12910_v48 }
 0x165   : > { %1949 = vmatmul.bf16.gmra.mxu2 %v12157_v22  ;;  %1998 = vmatmul.bf16.gmra.mxu3 %v12159_v23 }
 0x168   : > { %v1754_v50 = vpop.f32.mrf.mxu2  ;;  %v1803_v33 = vpop.f32.mrf.mxu3 }
 0x169   : > { %v1755_v57 = vadd.f32 %v1754_v50, %v12937_v0  ;;  %v1658_v51 = vpop.f32.mrf.mxu0  ;;  %v1707_v52 = vpop.f32.mrf.mxu1 }
 0x16a   : > { %v1659_v38 = vadd.f32 %v1658_v51, %v1610_v37 }
 0x16b   : > { %v12992_v59 = vadd.f32 %v1803_v33, %v1755_v57 }
 0x16c   : > { %v12994_v35 = vadd.f32 %v1707_v52, %v1659_v38 }
 0x16e   : > { %18082 = vst [vmem:[#allocation43_spill] sm:$0xff] %v12994_v35 }
 0x170   : > { %v1756_v21 = vpop.f32.mrf.mxu2  ;;  %v1805_v23 = vpop.f32.mrf.mxu3 }
 0x171   : > { %v1757_v22 = vadd.f32 %v1756_v21, %v12937_v0  ;;  %v1661_v3 = vpop.f32.mrf.mxu0  ;;  %v1710_v43 = vpop.f32.mrf.mxu1 }
 0x172   : > { %v1662_v5 = vadd.f32 %v1661_v3, %v1613_v19 }
 0x173   : > { %v12999_v4 = vadd.f32 %v1805_v23, %v1757_v22  ;;  %8305 = vmatmul.msk.bf16.gmra.mxu0 %vm12190_vm10, %v12187_v41 }
 0x174   : > { %v13004_v6 = vadd.f32 %v1710_v43, %v1662_v5  ;;  %1905 = vmatmul.bf16.gmra.mxu1 %v12183_v39 }
 0x175   : > { %1954 = vmatmul.bf16.gmra.mxu2 %v12185_v40  ;;  %8337 = vmatmul.msk.bf16.gmra.mxu3 %vm12190_vm10, %v12187_v41  ;;  %v1618_v40 = vadd.f32 %v12685_v44, %v12910_v48 }
 0x176   : > { %18083 = vst [vmem:[#allocation44_spill] sm:$0xff] %v13004_v6 }
 0x178   : > { %v1759_v61 = vpop.f32.mrf.mxu2  ;;  %v1808_v62 = vpop.f32.mrf.mxu3 }
 0x179   : > { %v1760_v29 = vadd.f32 %v1759_v61, %v12937_v0  ;;  %v1663_v37 = vpop.f32.mrf.mxu0  ;;  %v1712_v50 = vpop.f32.mrf.mxu1 }
 0x17a   : > { %v1664_v33 = vadd.f32 %v1663_v37, %v1615_v18  ;;  %v18087_v37 = vld [vmem:[#allocation19_spill] sm:$0xff] }
 0x17b   : > { %v13014_v57 = vadd.f32 %v1808_v62, %v1760_v29 }
 0x17c   : > { %v13016_v51 = vadd.f32 %v1712_v50, %v1664_v33  ;;  %v18088_v50 = vld [vmem:[#allocation20_spill] sm:$0xff] }
 0x17e   : > { %18084 = vst [vmem:[#allocation45_spill] sm:$0xff] %v13016_v51 }
 0x180   : > { %v1761_v39 = vpop.f32.mrf.mxu2  ;;  %v1810_v42 = vpop.f32.mrf.mxu3 }
 0x181   : > { %v1762_v41 = vadd.f32 %v1761_v39, %v12937_v0  ;;  %v1666_v38 = vpop.f32.mrf.mxu0  ;;  %v1715_v52 = vpop.f32.mrf.mxu1 }
 0x182   : > { %v1667_v21 = vadd.f32 %v1666_v38, %v1618_v40 }
 0x183   : > { %v13021_v45 = vadd.f32 %v1810_v42, %v1762_v41  ;;  %1861 = vmatmul.bf16.gmra.mxu0 %v12250_v15 }
 0x184   : > { %v13024_v19 = vadd.f32 %v1715_v52, %v1667_v21  ;;  %8325 = vmatmul.msk.bf16.gmra.mxu1 %vm12243_vm12, %v12240_v12 }
 0x185   : > { %1959 = vmatmul.bf16.gmra.mxu2 %v12248_v14  ;;  %2008 = vmatmul.bf16.gmra.mxu3 %v12250_v15 }
 0x188   : > { %v1764_v44 = vpop.f32.mrf.mxu2  ;;  %v1813_v23 = vpop.f32.mrf.mxu3 }
 0x189   : > { %v1765_v22 = vadd.f32 %v1764_v44, %v12937_v0  ;;  %v13032_v3 = vpop.f32.mrf.mxu0  ;;  %v13034_v43 = vpop.f32.mrf.mxu1 }
 0x18b   : > { %v13036_v5 = vadd.f32 %v1813_v23, %v1765_v22 }
 0x190   : > { %v13038_v61 = vpop.f32.mrf.mxu2  ;;  %v13042_v12 = vpop.f32.mrf.mxu3 }
 0x191   : > { %v1671_v14 = vpop.f32.mrf.mxu0  ;;  %v1720_v18 = vpop.f32.mrf.mxu1 }
 0x192   : > { %v1672_v15 = vadd.f32 %v1671_v14, %v1623_v13  ;;  %v1630_v13 = vadd.f32 %v12893_v49, %v12910_v48 }
 0x193   : > { %8309 = vmatmul.msk.bf16.gmra.mxu0 %vm12378_vm14, %v12372_v7 }
 0x194   : > { %v13047_v62 = vadd.f32 %v1720_v18, %v1672_v15  ;;  %1915 = vmatmul.bf16.gmra.mxu1 %v18087_v37 }
 0x195   : > { %1964 = vmatmul.bf16.gmra.mxu2 %v18088_v50  ;;  %8341 = vmatmul.msk.bf16.gmra.mxu3 %vm12378_vm14, %v12372_v7  ;;  %v1628_v7 = vadd.f32 %v12888_v54, %v12910_v48 }
 0x196   : > { %18086 = vst [vmem:[#allocation21_spill] sm:$0xff] %v13047_v62 }
 0x198   : > { %v1769_v55 = vpop.f32.mrf.mxu2  ;;  %v1818_v39 = vpop.f32.mrf.mxu3 }
 0x199   : > { %v1770_v33 = vadd.f32 %v1769_v55, %v12937_v0  ;;  %v13055_v40 = vpop.f32.mrf.mxu0  ;;  %v13057_v41 = vpop.f32.mrf.mxu1 }
 0x19b   : > { %v13059_v42 = vadd.f32 %v1818_v39, %v1770_v33 }
 0x1a0   : > { %v13061_v38 = vpop.f32.mrf.mxu2  ;;  %v13063_v52 = vpop.f32.mrf.mxu3 }
 0x1a1   : > { %v1676_v21 = vpop.f32.mrf.mxu0  ;;  %v1725_v44 = vpop.f32.mrf.mxu1 }
 0x1a2   : > { %v1677_v22 = vadd.f32 %v1676_v21, %v1628_v7  ;;  %v1633_v21 = vadd.f32 %v12904_v36, %v12910_v48 }
 0x1a3   : > { %1871 = vmatmul.bf16.gmra.mxu0 %v12503_v11 }
 0x1a4   : > { %8329 = vmatmul.msk.bf16.gmra.mxu1 %vm12484_vm2, %v12488_v28  ;;  %v13076_v37 = vadd.f32 %v1725_v44, %v1677_v22  ;;  %v1635_v22 = vadd.f32 %v12924_v8, %v12910_v48  ;;  %v13119_v8 = vperm.slane %v12569_v20, 3 }
 0x1a5   : > { %1969 = vmatmul.bf16.gmra.mxu2 %v12501_v25  ;;  %2018 = vmatmul.bf16.gmra.mxu3 %v12503_v11 }
 0x1a6   : > { %18089 = vst [vmem:[#allocation19_spill] sm:$0xff] %v13076_v37  ;;  %v17809_v25 = vmax.f32 %v13076_v37, 0.0 }
 0x1a8   : > { %v1774_v23 = vpop.f32.mrf.mxu2  ;;  %v1823_v18 = vpop.f32.mrf.mxu3 }
 0x1a9   : > { %v1775_v14 = vadd.f32 %v1774_v23, %v12937_v0  ;;  %v1678_v15 = vpop.f32.mrf.mxu0  ;;  %v1727_v29 = vpop.f32.mrf.mxu1 }
 0x1aa   : > { %v1679_v16 = vadd.f32 %v1678_v15, %v1630_v13 }
 0x1ab   : > { %v13078_v54 = vadd.f32 %v1823_v18, %v1775_v14 }
 0x1ac   : > { %v13080_v28 = vadd.f32 %v1727_v29, %v1679_v16 }
 0x1ae   : > { %18090 = vst [vmem:[#allocation20_spill] sm:$0xff] %v13080_v28  ;;  %v17808_v11 = vmax.f32 %v13080_v28, 0.0 }
 0x1b0   : > { %v13084_v50 = vpop.f32.mrf.mxu2  ;;  %v13086_v55 = vpop.f32.mrf.mxu3  ;;  %v11345_v49 = vpack.i.bf16 %v17808_v11, %v17809_v25 }
 0x1b1   : > { %v1681_v33 = vpop.f32.mrf.mxu0  ;;  %v1730_v39 = vpop.f32.mrf.mxu1 }
 0x1b2   : > { %11346 = vrot.lane.b32.xlu0 %v11345_v49, %s11695_s22  ;;  %v1682_v44 = vadd.f32 %v1681_v33, %v1633_v21 }
 0x1b3   : > { %8313 = vmatmul.msk.bf16.gmra.mxu0 %vm12556_vm7, %v12553_v9 }
 0x1b4   : > { %1925 = vmatmul.bf16.gmra.mxu1 %v12547_v24  ;;  %v13106_v15 = vadd.f32 %v1730_v39, %v1682_v44 }
 0x1b5   : > { %1974 = vmatmul.bf16.gmra.mxu2 %v12551_v32  ;;  %8345 = vmatmul.msk.bf16.gmra.mxu3 %vm12556_vm7, %v12553_v9 }
 0x1b6   : > { %18091 = vst [vmem:[#allocation46_spill] sm:$0xff] %v13106_v15  ;;  %v17807_v10 = vmax.f32 %v13106_v15, 0.0 }
 0x1b8   : > { %v1779_v7 = vpop.f32.mrf.mxu2  ;;  %v1828_v13 = vpop.f32.mrf.mxu3 }
 0x1b9   : > { %v1780_v23 = vadd.f32 %v1779_v7, %v12937_v0  ;;  %v1683_v14 = vpop.f32.mrf.mxu0  ;;  %v1732_v18 = vpop.f32.mrf.mxu1 }
 0x1ba   : > { %v1684_v24 = vadd.f32 %v1683_v14, %v1635_v22 }
 0x1bb   : > { %v13108_v36 = vadd.f32 %v1828_v13, %v1780_v23 }
 0x1bc   : > { %v13110_v32 = vadd.f32 %v1732_v18, %v1684_v24 }
 0x1be   : > { %18092 = vst [vmem:[#allocation47_spill] sm:$0xff] %v13110_v32  ;;  %v17806_v9 = vmax.f32 %v13110_v32, 0.0 }
 0x1c0   : > { %v13114_v29 = vpop.f32.mrf.mxu2  ;;  %v13116_v16 = vpop.f32.mrf.mxu3  ;;  %v11350_v49 = vpack.i.bf16 %v17806_v9, %v17807_v10 }
 0x1c1   : > { %v1842_v33 = vpop.f32.mrf.mxu0  ;;  %v1891_v39 = vpop.f32.mrf.mxu1 }
 0x1c2   : > { %v13126_v21 = vadd.f32 %v1842_v33, %v12950_v1  ;;  %11351 = vrot.lane.b32.xlu2 %v11350_v49, %s11695_s22  ;;  %v1892_v44 = vadd.f32 %v1891_v39, %v13119_v8 }
 0x1c8   : > { %v1940_v7 = vpop.f32.mrf.mxu2  ;;  %v1989_v23 = vpop.f32.mrf.mxu3 }
 0x1c9   : > { %v1941_v22 = vadd.f32 %v1940_v7, %v1892_v44  ;;  %v13130_v13 = vpop.f32.mrf.mxu0  ;;  %v13132_v20 = vpop.f32.mrf.mxu1 }
 0x1ca   : > { %18093 = vst [vmem:[#allocation48_spill] sm:$0xff] %v13130_v13 }
 0x1cb   : > { %v13134_v14 = vadd.f32 %v1989_v23, %v1941_v22 }
 0x1cd   : > { %18094 = vst [vmem:[#allocation49_spill] sm:$0xff] %v13134_v14 }
 0x1d0   : > { %v13136_v18 = vpop.f32.mrf.mxu2  ;;  %v13138_v24 = vpop.f32.mrf.mxu3 }
 0x1d1   : > { %v1847_v9 = vpop.f32.mrf.mxu0  ;;  %v1896_v1 = vpop.f32.mrf.mxu1 }
 0x1d2   : > { %v13141_v33 = vadd.f32 %v1847_v9, %v12972_v60  ;;  %v1897_v49 = vadd.f32 %v1896_v1, %v13119_v8 }
 0x1d4   : > { %18095 = vst [vmem:[#allocation50_spill] sm:$0xff] %v13141_v33 }
 0x1d8   : > { %v1945_v39 = vpop.f32.mrf.mxu2  ;;  %v1994_v7 = vpop.f32.mrf.mxu3 }
 0x1d9   : > { %v1946_v44 = vadd.f32 %v1945_v39, %v1897_v49  ;;  %v13144_v10 = vpop.f32.mrf.mxu0  ;;  %v13146_v11 = vpop.f32.mrf.mxu1 }
 0x1db   : > { %v13148_v22 = vadd.f32 %v1994_v7, %v1946_v44 }
 0x1dd   : > { %18096 = vst [vmem:[#allocation51_spill] sm:$0xff] %v13148_v22 }
 0x1e0   : > { %v13150_v23 = vpop.f32.mrf.mxu2  ;;  %v13152_v25 = vpop.f32.mrf.mxu3 }
 0x1e1   : > { %v1852_v30 = vpop.f32.mrf.mxu0  ;;  %v1901_v26 = vpop.f32.mrf.mxu1 }
 0x1e2   : > { %v13155_v60 = vadd.f32 %v1852_v30, %v12992_v59  ;;  %v1902_v9 = vadd.f32 %v1901_v26, %v13119_v8 }
 0x1e4   : > { %18097 = vst [vmem:[#allocation52_spill] sm:$0xff] %v13155_v60 }
 0x1e8   : > { %v1950_v1 = vpop.f32.mrf.mxu2  ;;  %v1999_v39 = vpop.f32.mrf.mxu3 }
 0x1e9   : > { %v1951_v49 = vadd.f32 %v1950_v1, %v1902_v9  ;;  %v13158_v32 = vpop.f32.mrf.mxu0  ;;  %v13160_v47 = vpop.f32.mrf.mxu1 }
 0x1eb   : > { %v13162_v44 = vadd.f32 %v1999_v39, %v1951_v49 }
 0x1ed   : > { %18098 = vst [vmem:[#allocation53_spill] sm:$0xff] %v13162_v44 }
 0x1f0   : > { %v13164_v7 = vpop.f32.mrf.mxu2  ;;  %v13166_v15 = vpop.f32.mrf.mxu3 }
 0x1f1   : > { %v1857_v28 = vpop.f32.mrf.mxu0  ;;  %v1906_v37 = vpop.f32.mrf.mxu1 }
 0x1f2   : > { %v13169_v30 = vadd.f32 %v1857_v28, %v13014_v57  ;;  %v1907_v26 = vadd.f32 %v1906_v37, %v13119_v8 }
 0x1f4   : > { %18099 = vst [vmem:[#allocation54_spill] sm:$0xff] %v13169_v30  ;;  %v17822_v49 = vmax.f32 %v13169_v30, 0.0  ;;  %v17831_v30 = vmax.f32 %v12891_v58, 0.0 }
 0x1f8   : > { %v1955_v27 = vpop.f32.mrf.mxu2  ;;  %v2004_v59 = vpop.f32.mrf.mxu3 }
 0x1f9   : > { %v1859_v9 = vpop.f32.mrf.mxu0  ;;  %v1908_v1 = vpop.f32.mrf.mxu1  ;;  %v1956_v39 = vadd.f32 %v1955_v27, %v1907_v26  ;;  %v1767_v27 = vadd.f32 %v13038_v61, %v12937_v0 }
 0x1fa   : > { %v13173_v31 = vadd.f32 %v1859_v9, %v13021_v45  ;;  %v1909_v46 = vadd.f32 %v1908_v1, %v13119_v8 }
 0x1fb   : > { %v13182_v37 = vadd.f32 %v2004_v59, %v1956_v39  ;;  %v1816_v39 = vadd.f32 %v13042_v12, %v1767_v27 }
 0x1fc   : > { %v17823_v56 = vmax.f32 %v13173_v31, 0.0 }
 0x1fd   : > { %v17825_v26 = vmax.f32 %v13182_v37, 0.0 }
 0x1fe   : > { %v11355_v57 = vpack.i.bf16 %v17823_v56, %v17822_v49 }
 0x200   : > { %v1957_v28 = vpop.f32.mrf.mxu2  ;;  %v2006_v13 = vpop.f32.mrf.mxu3  ;;  %11356 = vrot.lane.b32.xlu1 %v11355_v57, %s11695_s22 }
 0x201   : > { %v1958_v35 = vadd.f32 %v1957_v28, %v1909_v46  ;;  %v1862_v45 = vpop.f32.mrf.mxu0  ;;  %v1911_v9 = vpop.f32.mrf.mxu1 }
 0x202   : > { %v13197_v57 = vadd.f32 %v1862_v45, %v13036_v5  ;;  %v1912_v5 = vadd.f32 %v1911_v9, %v13119_v8 }
 0x203   : > { %v13185_v17 = vadd.f32 %v2006_v13, %v1958_v35 }
 0x204   : > { %18100 = vst [vmem:[#allocation55_spill] sm:$0xff] %v13197_v57  ;;  %v17828_v49 = vmax.f32 %v13197_v57, 0.0  ;;  %v1772_v57 = vadd.f32 %v13061_v38, %v12937_v0 }
 0x205   : > { %v17824_v1 = vmax.f32 %v13185_v17, 0.0 }
 0x207   : > { %v11360_v59 = vpack.i.bf16 %v17824_v1, %v17825_v26 }
 0x208   : > { %v1960_v46 = vpop.f32.mrf.mxu2  ;;  %v2009_v35 = vpop.f32.mrf.mxu3 }
 0x209   : > { %11361 = vrot.lane.b32.xlu2 %v11360_v59, %s11695_s22  ;;  %v1864_v13 = vpop.f32.mrf.mxu0  ;;  %v1913_v61 = vpop.f32.mrf.mxu1 }
 0x20a   : > { %v13200_v28 = vadd.f32 %v1864_v13, %v1816_v39  ;;  %v1914_v45 = vadd.f32 %v1913_v61, %v13119_v8 }
 0x20c   : > { %18101 = vst [vmem:[#allocation56_spill] sm:$0xff] %v13200_v28  ;;  %v17829_v56 = vmax.f32 %v13200_v28, 0.0 }
 0x20e   : > { %v11365_v1 = vpack.i.bf16 %v17829_v56, %v17828_v49  ;;  %v1961_v49 = vadd.f32 %v1960_v46, %v1912_v5 }
 0x210   : > { %v1962_v12 = vpop.f32.mrf.mxu2  ;;  %v2011_v27 = vpop.f32.mrf.mxu3  ;;  %11366 = vrot.lane.b32.xlu0 %v11365_v1, %s11695_s22 }
 0x211   : > { %v1867_v59 = vpop.f32.mrf.mxu0  ;;  %v1916_v39 = vpop.f32.mrf.mxu1  ;;  %v1963_v13 = vadd.f32 %v1962_v12, %v1914_v45  ;;  %v13226_v45 = vadd.f32 %v2009_v35, %v1961_v49 }
 0x212   : > { %v13212_v26 = vadd.f32 %v1867_v59, %v13059_v42  ;;  %v1917_v9 = vadd.f32 %v1916_v39, %v13119_v8  ;;  %v1821_v42 = vadd.f32 %v13063_v52, %v1772_v57 }
 0x213   : > { %v13219_v61 = vadd.f32 %v2011_v27, %v1963_v13  ;;  %v17834_v13 = vmax.f32 %v13226_v45, 0.0 }
 0x214   : > { %v17836_v56 = vmax.f32 %v13212_v26, 0.0 }
 0x215   : > { %v17835_v5 = vmax.f32 %v13219_v61, 0.0 }
 0x216   : > { %v11370_v1 = vpack.i.bf16 %v17836_v56, %v17831_v30 }
 0x217   : > { %v11375_v35 = vpack.i.bf16 %v17835_v5, %v17834_v13  ;;  %v1777_v13 = vadd.f32 %v13084_v50, %v12937_v0 }
 0x218   : > { %v1965_v12 = vpop.f32.mrf.mxu2  ;;  %v2014_v28 = vpop.f32.mrf.mxu3  ;;  %11371 = vrot.lane.b32.xlu1 %v11370_v1, %s11695_s22 }
 0x219   : > { %v1966_v59 = vadd.f32 %v1965_v12, %v1917_v9  ;;  %v1869_v38 = vpop.f32.mrf.mxu0  ;;  %v1918_v46 = vpop.f32.mrf.mxu1 }
 0x21a   : > { %v13232_v39 = vadd.f32 %v1869_v38, %v1821_v42  ;;  %v1919_v49 = vadd.f32 %v1918_v46, %v13119_v8  ;;  %v18103_v46 = vld [vmem:[#allocation33_spill] sm:$0xff] }
 0x21b   : > { %v13230_v27 = vadd.f32 %v2014_v28, %v1966_v59 }
 0x21c   : > { %v17833_v52 = vmax.f32 %v13232_v39, 0.0 }
 0x21d   : > { %18102 = vst [vmem:[#allocation57_spill] sm:$0xff] %v13230_v27  ;;  %v17832_v30 = vmax.f32 %v13230_v27, 0.0 }
 0x21f   : > { %v11380_v57 = vpack.i.bf16 %v17832_v30, %v17833_v52  ;;  %v17840_v30 = vmax.f32 %v18103_v46, 0.0  ;;  %v17839_v52 = vmax.f32 %v12922_v2, 0.0  ;;  %v1904_v46 = vadd.f32 %v13160_v47, %v13119_v8 }
 0x220   : > { %v1967_v28 = vpop.f32.mrf.mxu2  ;;  %v2016_v1 = vpop.f32.mrf.mxu3  ;;  %11376 = vrot.lane.b32.xlu1 %v11375_v35, %s11695_s22 }
 0x221   : > { %v1968_v9 = vadd.f32 %v1967_v28, %v1919_v49  ;;  %11381 = vrot.lane.b32.xlu2 %v11380_v57, %s11695_s22  ;;  %v1872_v12 = vpop.f32.mrf.mxu0  ;;  %v1921_v42 = vpop.f32.mrf.mxu1 }
 0x222   : > { %v13251_v38 = vadd.f32 %v1872_v12, %v13078_v54  ;;  %v1922_v35 = vadd.f32 %v1921_v42, %v13119_v8 }
 0x223   : > { %v13248_v59 = vadd.f32 %v2016_v1, %v1968_v9  ;;  %v1826_v1 = vadd.f32 %v13086_v55, %v1777_v13 }
 0x224   : > { %v17838_v57 = vmax.f32 %v13251_v38, 0.0 }
 0x225   : > { %v17847_v49 = vmax.f32 %v13248_v59, 0.0 }
 0x226   : > { %v11385_v28 = vpack.i.bf16 %v17838_v57, %v17839_v52 }
 0x227   : > { %v11390_v54 = vpack.i.bf16 %v17840_v30, %v17847_v49  ;;  %v13279_v30 = vadd.f32 %v13158_v32, %v12999_v4 }
 0x228   : > { %v1970_v9 = vpop.f32.mrf.mxu2  ;;  %v2019_v12 = vpop.f32.mrf.mxu3 }
 0x229   : > { %v1971_v50 = vadd.f32 %v1970_v9, %v1922_v35  ;;  %11386 = vrot.lane.b32.xlu2 %v11385_v28, %s11695_s22  ;;  %11391 = vrot.lane.b32.xlu0 %v11390_v54, %s11695_s22  ;;  %v1874_v42 = vpop.f32.mrf.mxu0  ;;  %v1923_v5 = vpop.f32.mrf.mxu1  ;;  %18104 = vst [vmem:[#allocation58_spill] sm:$0xff] %v13279_v30  ;;  %v18105_v35 = vld [vmem:[#allocation32_spill] sm:$0xff]  ;;  %v17846_v4 = vmax.f32 %v13279_v30, 0.0  ;;  %v18155_v30 = vld [vmem:[#allocation19_spill] sm:$0xff] }
 0x22a   : > { %v13273_v27 = vadd.f32 %v1874_v42, %v1826_v1  ;;  %v1620_v28 = vadd.f32 %v18105_v35, %v12910_v48  ;;  %v1924_v54 = vadd.f32 %v1923_v5, %v13119_v8 }
 0x22b   : > { %v13271_v56 = vadd.f32 %v2019_v12, %v1971_v50 }
 0x22c   : > { %v17841_v52 = vmax.f32 %v13273_v27, 0.0  ;;  %v1669_v12 = vadd.f32 %v13032_v3, %v1620_v28  ;;  %v1782_v28 = vadd.f32 %v13114_v29, %v12937_v0 }
 0x22d   : > { %v17842_v57 = vmax.f32 %v13271_v56, 0.0 }
 0x22e   : > { %v13298_v5 = vadd.f32 %v13034_v43, %v1669_v12 }
 0x22f   : > { %v11395_v55 = vpack.i.bf16 %v17842_v57, %v17841_v52  ;;  %v17844_v52 = vmax.f32 %v13126_v21, 0.0  ;;  %v17845_v57 = vmax.f32 %v13155_v60, 0.0 }
 0x230   : > { %v1972_v13 = vpop.f32.mrf.mxu2  ;;  %v2021_v9 = vpop.f32.mrf.mxu3 }
 0x231   : > { %11396 = vrot.lane.b32.xlu2 %v11395_v55, %s11695_s22  ;;  %v1877_v1 = vpop.f32.mrf.mxu0  ;;  %v1926_v50 = vpop.f32.mrf.mxu1  ;;  %v1973_v32 = vadd.f32 %v1972_v13, %v1924_v54 }
 0x232   : > { %v13292_v42 = vadd.f32 %v1877_v1, %v13108_v36  ;;  %v11425_v36 = vpack.i.bf16 %v17846_v4, %v17845_v57  ;;  %v1927_v54 = vadd.f32 %v1926_v50, %v13119_v8  ;;  %v17878_v57 = vmax.f32 %v13024_v19, 0.0 }
 0x233   : > { %v13300_v55 = vadd.f32 %v2021_v9, %v1973_v32  ;;  %v17849_v9 = vmax.f32 %v13298_v5, 0.0  ;;  %v1831_v4 = vadd.f32 %v13116_v16, %v1782_v28 }
 0x234   : > { %18106 = vst [vmem:[#allocation32_spill] sm:$0xff] %v13292_v42  ;;  %v17843_v35 = vmax.f32 %v13292_v42, 0.0 }
 0x235   : > { %v17850_v1 = vmax.f32 %v13300_v55, 0.0 }
 0x236   : > { %v11400_v3 = vpack.i.bf16 %v17843_v35, %v17844_v52  ;;  %v18107_v35 = vld [vmem:[#allocation35_spill] sm:$0xff] }
 0x237   : > { %v17851_v52 = vmax.f32 %v18107_v35, 0.0 }
 0x238   : > { %v1975_v13 = vpop.f32.mrf.mxu2  ;;  %v2024_v43 = vpop.f32.mrf.mxu3  ;;  %11401 = vrot.lane.b32.xlu0 %v11400_v3, %s11695_s22  ;;  %v11440_v3 = vpack.i.bf16 %v17849_v9, %v17878_v57  ;;  %v1953_v9 = vadd.f32 %v13164_v7, %v1904_v46 }
 0x239   : > { %11426 = vrot.lane.b32.xlu2 %v11425_v36, %s11695_s22  ;;  %v1879_v12 = vpop.f32.mrf.mxu0  ;;  %v1928_v32 = vpop.f32.mrf.mxu1  ;;  %v1976_v0 = vadd.f32 %v1975_v13, %v1927_v54  ;;  %v11405_v36 = vpack.i.bf16 %v17851_v52, %v17850_v1  ;;  %v18110_v13 = vld [vmem:[#allocation34_spill] sm:$0xff] }
 0x23a   : > { %v13320_v29 = vadd.f32 %v1879_v12, %v1831_v4  ;;  %v1929_v50 = vadd.f32 %v1928_v32, %v13119_v8  ;;  %v1625_v28 = vadd.f32 %v18110_v13, %v12910_v48  ;;  %v18111_v12 = vld [vmem:[#allocation25_spill] sm:$0xff]  ;;  %v13350_v48 = vadd.f32 %v13166_v15, %v1953_v9  ;;  %v18116_v13 = vld [vmem:[#allocation23_spill] sm:$0xff] }
 0x23b   : > { %v13333_v16 = vadd.f32 %v2024_v43, %v1976_v0  ;;  %v17852_v32 = vmax.f32 %v18111_v12, 0.0  ;;  %v18113_v43 = vld [vmem:[#allocation24_spill] sm:$0xff]  ;;  %v17875_v0 = vmax.f32 %v13134_v14, 0.0  ;;  %v17877_v15 = vmax.f32 %v12981_v63, 0.0 }
 0x23c   : > { %18108 = vst [vmem:[#allocation35_spill] sm:$0xff] %v13320_v29  ;;  %v17874_v1 = vmax.f32 %v13320_v29, 0.0  ;;  %v1674_v47 = vadd.f32 %v13055_v40, %v1625_v28  ;;  %v17855_v9 = vmax.f32 %v13350_v48, 0.0  ;;  %v17876_v28 = vmax.f32 %v18116_v13, 0.0  ;;  %v18160_v29 = vld [vmem:[#allocation56_spill] sm:$0xff] }
 0x23d   : > { %18109 = vst [vmem:[#allocation59_spill] sm:$0xff] %v13333_v16 }
 0x23e   : > { %18114 = vst [vmem:[#allocation60_spill] sm:$0xff] %v13350_v48  ;;  %v11410_v7 = vpack.i.bf16 %v17875_v0, %v17874_v1  ;;  %v13479_v1 = vpop.permute.xlu0 %11326 }
 0x23f   : > { %18131 = vst [vmem:[#allocation65_spill] sm:$0xff] %v13479_v1 }
 0x240   : > { %v1977_v49 = vpop.f32.mrf.mxu2  ;;  %11406 = vrot.lane.b32.xlu0 %v11405_v36, %s11695_s22  ;;  %v2026_v54 = vpop.f32.mrf.mxu3  ;;  %v13365_v36 = vadd.f32 %v13057_v41, %v1674_v47  ;;  %v11470_v41 = vpack.i.bf16 %v17877_v15, %v17876_v28  ;;  %v13382_v47 = vadd.f32 %v13144_v10, %v12979_v34  ;;  %v18118_v10 = vld [vmem:[#allocation27_spill] sm:$0xff] }
 0x241   : > { %v1978_v4 = vadd.f32 %v1977_v49, %v1929_v50  ;;  %11441 = vrot.lane.b32.xlu2 %v11440_v3, %s11695_s22  ;;  %v17853_v49 = vmax.f32 %v18113_v43, 0.0  ;;  %v17856_v50 = vmax.f32 %v13333_v16, 0.0  ;;  %v18156_v16 = vmax.f32 %v18155_v30, 0.0 }
 0x242   : > { %18115 = vst [vmem:[#allocation61_spill] sm:$0xff] %v13365_v36  ;;  %v17862_v34 = vmax.f32 %v13382_v47, 0.0 }
 0x243   : > { %v13342_v52 = vadd.f32 %v2026_v54, %v1978_v4  ;;  %v11455_v40 = vpack.i.bf16 %v17852_v32, %v17853_v49  ;;  %v17870_v4 = vmax.f32 %v13365_v36, 0.0  ;;  %v17854_v54 = vmax.f32 %v13162_v44, 0.0  ;;  %18117 = vst [vmem:[#allocation23_spill] sm:$0xff] %v13382_v47 }
 0x244   : > { %v17858_v32 = vmax.f32 %v13047_v62, 0.0  ;;  %v17859_v49 = vmax.f32 %v18118_v10, 0.0  ;;  %v18142_v47 = vmax.f32 %v13185_v17, 0.0 }
 0x245   : > { %18112 = vst [vmem:[#allocation34_spill] sm:$0xff] %v13342_v52  ;;  %v17857_v3 = vmax.f32 %v13342_v52, 0.0 }
 0x247   : > { %v11415_v46 = vpack.i.bf16 %v17857_v3, %v17856_v50  ;;  %v18119_v50 = vld [vmem:[#allocation26_spill] sm:$0xff] }
 0x248   : > { %11411 = vrot.lane.b32.xlu0 %v11410_v7, %s11695_s22  ;;  %v11430_v7 = vpack.i.bf16 %v17855_v9, %v17854_v54  ;;  %v17861_v9 = vmax.f32 %v13141_v33, 0.0  ;;  %v17869_v3 = vmax.f32 %v18119_v50, 0.0  ;;  %v17902_v33 = vunpack.i.h.bf16 %v13479_v1 }
 0x249   : > { %11456 = vrot.lane.b32.xlu2 %v11455_v40, %s11695_s22  ;;  %11416 = vrot.lane.b32.xlu1 %v11415_v46, %s11695_s22  ;;  %v11420_v40 = vpack.i.bf16 %v17870_v4, %v17858_v32  ;;  %v1899_v46 = vadd.f32 %v13146_v11, %v13119_v8  ;;  %v17860_v32 = vmax.f32 %v12952_v53, 0.0 }
 0x24b   : > { %v1948_v54 = vadd.f32 %v13150_v23, %v1899_v46  ;;  %v1894_v23 = vadd.f32 %v13132_v20, %v13119_v8  ;;  %v17864_v46 = vmax.f32 %v13004_v6, 0.0  ;;  %v18122_v20 = vld [vmem:[#allocation40_spill] sm:$0xff]  ;;  %v18145_v6 = vld [vmem:[#allocation54_spill] sm:$0xff] }
 0x24d   : > { %v13408_v11 = vadd.f32 %v13152_v25, %v1948_v54  ;;  %v1943_v25 = vadd.f32 %v13136_v18, %v1894_v23  ;;  %v18123_v18 = vld [vmem:[#allocation48_spill] sm:$0xff]  ;;  %v18125_v23 = vld [vmem:[#allocation43_spill] sm:$0xff] }
 0x24f   : > { %18120 = vst [vmem:[#allocation62_spill] sm:$0xff] %v13408_v11  ;;  %v17866_v54 = vmax.f32 %v13408_v11, 0.0 }
 0x250   : > { %11431 = vrot.lane.b32.xlu0 %v11430_v7, %s11695_s22  ;;  %v11435_v7 = vpack.i.bf16 %v17859_v49, %v17869_v3  ;;  %v17865_v49 = vmax.f32 %v13148_v22, 0.0  ;;  %v17899_v22 = vunpack.i.l.bf16 %v13479_v1 }
 0x251   : > { %11471 = vrot.lane.b32.xlu2 %v11470_v41, %s11695_s22  ;;  %11421 = vrot.lane.b32.xlu1 %v11420_v40, %s11695_s22  ;;  %v11445_v41 = vpack.i.bf16 %v17862_v34, %v17861_v9  ;;  %v17863_v40 = vmax.f32 %v13016_v51, 0.0  ;;  %v17867_v9 = vmax.f32 %v18125_v23, 0.0  ;;  %v13444_v34 = vpop.permute.xlu2 %11331 }
 0x252   : > { %v11450_v8 = vpack.i.bf16 %v17866_v54, %v17865_v49  ;;  %v13465_v54 = vpop.permute.xlu1 %11336  ;;  %v18153_v62 = vunpack.i.h.bf16 %v13444_v34  ;;  %v18154_v60 = vunpack.i.l.bf16 %v13444_v34 }
 0x258   : > { %11446 = vrot.lane.b32.xlu0 %v11445_v41, %s11695_s22  ;;  %v11460_v41 = vpack.i.bf16 %v17863_v40, %v17864_v46 }
 0x259   : > { %2127 = vrot.lane.b32.xlu2 %v17860_v32, %s11695_s22  ;;  %11436 = vrot.lane.b32.xlu1 %v11435_v7, %s11695_s22  ;;  %v13431_v32 = vadd.f32 %v13138_v24, %v1943_v25  ;;  %v13440_v7 = vadd.f32 %v18123_v18, %v18122_v20  ;;  %v18126_v25 = vld [vmem:[#allocation41_spill] sm:$0xff]  ;;  %v13459_v20 = vpop.permute.xlu2 %11351  ;;  %v18127_v18 = vld [vmem:[#allocation42_spill] sm:$0xff] }
 0x25a   : > { %v17868_v40 = vmax.f32 %v18126_v25, 0.0  ;;  %v17873_v49 = vmax.f32 %v18127_v18, 0.0  ;;  %v13470_v4 = vpop.permute.xlu1 %11341  ;;  %v17892_v57 = vunpack.i.h.bf16 %v13459_v20  ;;  %v18134_v18 = vld [vmem:[#allocation22_spill] sm:$0xff] }
 0x25b   : > { %18121 = vst [vmem:[#allocation63_spill] sm:$0xff] %v13431_v32  ;;  %v17872_v24 = vmax.f32 %v13431_v32, 0.0  ;;  %v17871_v46 = vmax.f32 %v13440_v7, 0.0  ;;  %v18135_v53 = vmax.f32 %v18134_v18, 0.0 }
 0x25c   : > { %18124 = vst [vmem:[#allocation40_spill] sm:$0xff] %v13440_v7 }
 0x260   : > { %11461 = vrot.lane.b32.xlu0 %v11460_v41, %s11695_s22  ;;  %v11475_v41 = vpack.i.bf16 %v17868_v40, %v17867_v9  ;;  %v18128_v40 = vlaneseq }
 0x261   : > { %11451 = vrot.lane.b32.xlu1 %v11450_v8, %s11695_s22  ;;  %v11465_v8 = vpack.i.bf16 %v17872_v24, %v17871_v46  ;;  %v17886_v24 = vunpack.i.h.bf16 %v13465_v54 }
 0x262   : > { %v13468_v3 = vand.u32 127, %v18128_v40 }
 0x263   : > { %v11362_v9 = vpop.permute.xlu2 %11361 }
 0x264   : > { %18129 = vst [vmem:[#allocation48_spill] sm:$0xff] %v13468_v3  ;;  %vm2223_vm4 = vcmp.lt.s32.totalorder %v13468_v3, 112 }
 0x268   : > { %11476 = vrot.lane.b32.xlu0 %v11475_v41, %s11695_s22  ;;  %v17884_v41 = vunpack.i.h.bf16 %v13470_v4 }
 0x269   : > { %11466 = vrot.lane.b32.xlu1 %v11465_v8, %s11695_s22  ;;  %v17887_v8 = vunpack.i.l.bf16 %v13459_v20 }
 0x26b   : > { %v2270_v0 = vsel %vm2223_vm4, %v17886_v24, %v17887_v8  ;;  %v18139_v8 = vmax.f32 %v12922_v2, 0.0 }
 0x271   : > { %2131 = vrot.lane.b32.xlu1 %v17873_v49, %s11695_s22  ;;  %v17883_v49 = vunpack.i.l.bf16 %v13465_v54  ;;  %s7737_s22 = scalar_lea.hbm %s17772_s13, %s10683_s23 }
 0x272   : > { %v13493_v28 = vpop.permute.xlu1 %11356  ;;  %s7741_s21 = sshll.u32 %s7737_s22, 4  ;;  %s7742_s21 = int_to_ptr.hbm [resolvable:$true] %s7741_s21 }
 0x273   : > { %v2256_v40 = vsel %vm2223_vm4, %v17883_v49, %v17884_v41  ;;  %18132 = vst [vmem:[#allocation66_spill] sm:$0xff] %v13493_v28  ;;  %v18137_v49 = vld [vmem:[#allocation36_spill] sm:$0xff]  ;;  %s11632_s29 = sshra.s32 %s7742_s21, 4  ;;  %s11633_s29 = int_to_ptr.hbm [resolvable:$true] %s11632_s29 }
 0x274   : > { %v13501_v7 = vmax.f32 %v18135_v53, %v2256_v40  ;;  %v18138_v41 = vmax.f32 %v18137_v49, 0.0  ;;  %v13517_v40 = vpop.permute.xlu0 %11346  ;;  %v18140_v49 = vld [vmem:[#allocation15_spill] sm:$0xff]  ;;  %s11634_s19 = scalar_lea.hbm %s11633_s29, 4  ;;  %p11639_p3 = scmp.lt.s32.totalorder %s11633_s29, %s17772_s13 }
 0x275   : > { %p11635_p0 = scmp.ne.s32.totalorder %s11633_s29, %s11634_s19  ;;  %p11640_p4 = scmp.lt.s32.totalorder %s11638_s15, %s11634_s19 }
 0x276   : > { %18136 = vst [vmem:[#allocation22_spill] sm:$0xff] %v13501_v7  ;;  %v13505_v32 = vmax.f32 %v18138_v41, %v2270_v0  ;;  %v17896_v10 = vrot.slane %v13501_v7, 1 }
 0x277   : > { %p11636_p1 = pnand %p11635_p0, %p11805_p5  ;;  %p11641_p7 = por %p11640_p4, %p11639_p3 }
 0x278   : > { %v17898_v18 = vrot.slane %v13505_v32, 1 }
 0x279   : > { %p11637_p2 = pneg %p11636_p1 }
 0x27b   : > { %v13472_v46 = vpop.permute.xlu2 %11381  ;;  %p11642_p8 = pnand %p11641_p7, %p11637_p2 }
 0x27c   : > { %18130 = vst [vmem:[#allocation64_spill] sm:$0xff] %v13472_v46 }
 0x283   : > { %v13495_v15 = vpop.permute.xlu2 %11386 }
 0x284   : > { %18133 = vst [vmem:[#allocation67_spill] sm:$0xff] %v13495_v15  ;;  %v17891_v12 = vunpack.i.l.bf16 %v13495_v15 }
 0x286   : > { %v2271_v24 = vsel %vm2223_vm4, %v17891_v12, %v17892_v57  ;;  %v11363_v12 = vunpack.i.l.bf16 %v11362_v9  ;;  %v11364_v57 = vunpack.i.h.bf16 %v11362_v9 }
 0x287   : > { %v2348_v23 = vmax.f32 %v18139_v8, %v2271_v24 }
 0x288   : > { %v2278_v11 = vsel %vm2223_vm4, %v11363_v12, %v17899_v22  ;;  %v2279_v9 = vsel %vm2223_vm4, %v11364_v57, %v17902_v33  ;;  %v18143_v33 = vunpack.i.l.bf16 %v13493_v28 }
 0x289   : > { %v2412_v53 = vrot.slane %v2348_v23, 1  ;;  %v13561_v51 = vmax.f32 %v18142_v47, %v2279_v9 }
 0x28a   : > { %v13525_v25 = vpop.permute.xlu1 %11371 }
 0x28b   : > { %v2476_v0 = vsel %vm798_vm1, %v2412_v53, %v17896_v10  ;;  %v13523_v41 = vpop.permute.xlu2 %11396  ;;  %v2416_v2 = vsel %vm798_vm1, %v17898_v18, %v2412_v53  ;;  %v17903_v10 = vunpack.i.h.bf16 %v13493_v28  ;;  %v18151_v28 = vunpack.i.h.bf16 %v13525_v25 }
 0x28c   : > { %v2540_v24 = vmax.f32 %v2348_v23, %v2476_v0  ;;  %v2536_v8 = vmax.f32 %v13505_v32, %v2416_v2  ;;  %v13540_v23 = vpop.permute.xlu0 %11366  ;;  %v18152_v50 = vunpack.i.l.bf16 %v13525_v25 }
 0x28d   : > { %v2231_v22 = vsel %vm2223_vm4, %v17903_v10, %v11364_v57  ;;  %v18144_v10 = vmax.f32 %v13173_v31, 0.0  ;;  %v11384_v31 = vunpack.i.h.bf16 %v13472_v46 }
 0x28e   : > { %v2580_v43 = vpack.c.bf16 %v2540_v24, %v2536_v8  ;;  %v18141_v8 = vmax.f32 %v13182_v37, 0.0  ;;  %v11389_v37 = vunpack.i.h.bf16 %v13495_v15  ;;  %v11369_v24 = vunpack.i.h.bf16 %v13540_v23 }
 0x28f   : > { %v13573_v53 = vmax.f32 %v18144_v10, %v2231_v22  ;;  %v18147_v22 = vunpack.i.l.bf16 %v13517_v40  ;;  %v2234_v44 = vsel %vm2223_vm4, %v18151_v28, %v11384_v31  ;;  %v18161_v15 = vmax.f32 %v18160_v29, 0.0 }
 0x290   : > { %2608 = vmatpush.bf16.msrb.mxu0 %v2580_v43  ;;  %v13552_v18 = vmax.f32 %v18141_v8, %v2278_v11  ;;  %v2230_v43 = vsel %vm2223_vm4, %v18143_v33, %v11363_v12  ;;  %v11349_v33 = vunpack.i.h.bf16 %v13517_v40  ;;  %v18146_v11 = vmax.f32 %v18145_v6, 0.0 }
 0x291   : > { %v2252_v10 = vsel %vm2223_vm4, %v18147_v22, %v11389_v37  ;;  %v18149_v6 = vunpack.i.h.bf16 %v13523_v41  ;;  %v18167_v29 = vmax.f32 %v13219_v61, 0.0  ;;  %v18171_v61 = vmax.f32 %v13232_v39, 0.0 }
 0x292   : > { %v11377_v2 = vpop.permute.xlu1 %11376  ;;  %v13581_v1 = vmax.f32 %v18146_v11, %v2230_v43  ;;  %v18150_v11 = vunpack.i.l.bf16 %v13523_v41 }
 0x293   : > { %v13542_v0 = vpop.permute.xlu2 %11426  ;;  %v11379_v57 = vunpack.i.h.bf16 %v11377_v2  ;;  %v11378_v9 = vunpack.i.l.bf16 %v11377_v2  ;;  %v11368_v2 = vunpack.i.l.bf16 %v13540_v23  ;;  %v2236_v43 = vsel %vm2223_vm4, %v11389_v37, %v18149_v6 }
 0x294   : > { %v2253_v12 = vsel %vm2223_vm4, %v11349_v33, %v18150_v11  ;;  %v2382_v23 = vrot.slane %v13573_v53, 1  ;;  %v2269_v37 = vsel %vm2223_vm4, %v18152_v50, %v11349_v33  ;;  %v13627_v50 = vmax.f32 %v18156_v16, %v2252_v10  ;;  %v18158_v11 = vld [vmem:[#allocation20_spill] sm:$0xff]  ;;  %v18164_v16 = vld [vmem:[#allocation55_spill] sm:$0xff] }
 0x295   : > { %v2233_v8 = vsel %vm2223_vm4, %v11369_v24, %v11379_v57  ;;  %v2232_v6 = vsel %vm2223_vm4, %v11368_v2, %v11378_v9  ;;  %v2281_v36 = vsel %vm2223_vm4, %v11379_v57, %v18153_v62  ;;  %v2280_v28 = vsel %vm2223_vm4, %v11378_v9, %v18154_v60 }
 0x296   : > { %v18157_v33 = vmax.f32 %v13251_v38, 0.0  ;;  %v18159_v48 = vmax.f32 %v18158_v11, 0.0  ;;  %v13639_v62 = vmax.f32 %v18161_v15, %v2233_v8  ;;  %v18162_v57 = vmax.f32 %v13212_v26, 0.0 }
 0x297   : > { %v18163_v60 = vmax.f32 %v12891_v58, 0.0  ;;  %v18165_v9 = vmax.f32 %v18164_v16, 0.0  ;;  %v18166_v10 = vunpack.i.l.bf16 %v13472_v46  ;;  %v13657_v15 = vmax.f32 %v18167_v29, %v2281_v36 }
 0x298   : > { %v13631_v42 = vmax.f32 %v18157_v33, %v2236_v43  ;;  %v13635_v52 = vmax.f32 %v18159_v48, %v2253_v12  ;;  %v2330_v14 = vmax.f32 %v18162_v57, %v2234_v44  ;;  %v18168_v26 = vmax.f32 %v13226_v45, 0.0  ;;  %v18175_v57 = vld [vmem:[#allocation30_spill] sm:$0xff] }
 0x299   : > { %v13645_v30 = vmax.f32 %v18163_v60, %v2269_v37  ;;  %v13649_v38 = vmax.f32 %v18165_v9, %v2232_v6  ;;  %v18169_v8 = vrot.slane %v13561_v51, 1  ;;  %v18170_v12 = vrot.slane %v13552_v18, 1 }
 0x29a   : > { %v13661_v44 = vmax.f32 %v18168_v26, %v2280_v28  ;;  %v18172_v11 = vrot.slane %v13581_v1, 1  ;;  %v17925_v33 = vrot.slane %v13631_v42, 1  ;;  %v2390_v60 = vrot.slane %v13639_v62, 1 }
 0x29b   : > { %v11442_v47 = vpop.permute.xlu2 %11441  ;;  %v13591_v17 = vpop.permute.xlu0 %11391  ;;  %v13669_v43 = vsel %vm798_vm1, %v18170_v12, %v18169_v8  ;;  %v2394_v16 = vrot.slane %v2330_v14, 1  ;;  %v2386_v9 = vrot.slane %v13649_v38, 1  ;;  %v18173_v8 = vunpack.i.l.bf16 %v13444_v34 }
 0x29c   : > { %18148 = vst [vmem:[#allocation36_spill] sm:$0xff] %v13591_v17  ;;  %v11393_v22 = vunpack.i.l.bf16 %v13591_v17  ;;  %v11443_v58 = vunpack.i.l.bf16 %v11442_v47  ;;  %v11444_v37 = vunpack.i.h.bf16 %v11442_v47  ;;  %v17924_v6 = vunpack.i.h.bf16 %v13591_v17 }
 0x29d   : > { %v13678_v45 = vsel %vm798_vm1, %v18172_v11, %v2382_v23  ;;  %v2387_v29 = vrot.slane %v13661_v44, 1  ;;  %v18176_v17 = vmax.f32 %v18175_v57, 0.0 }
 0x29e   : > { %v2235_v48 = vsel %vm2223_vm4, %v18166_v10, %v11393_v22  ;;  %v2248_v26 = vsel %vm2223_vm4, %v11443_v58, %v11368_v2  ;;  %v2264_v12 = vsel %vm2223_vm4, %v18173_v8, %v11443_v58  ;;  %v2282_v39 = vsel %vm2223_vm4, %v11384_v31, %v17924_v6 }
 0x29f   : > { %v2334_v36 = vmax.f32 %v18171_v61, %v2235_v48  ;;  %v2391_v48 = vrot.slane %v13657_v15, 1  ;;  %v18174_v61 = vunpack.i.h.bf16 %v13444_v34  ;;  %v2249_v58 = vsel %vm2223_vm4, %v11444_v37, %v11369_v24 }
 0x2a0   : > { %v13716_v46 = vmax.f32 %v18176_v17, %v2264_v12  ;;  %v18177_v31 = vunpack.i.l.bf16 %v13470_v4  ;;  %v2446_v24 = vsel %vm798_vm1, %v2382_v23, %v2386_v9  ;;  %v18181_v17 = vld [vmem:[#allocation57_spill] sm:$0xff]  ;;  %v18184_v23 = vrot.slane %v13635_v52, 1 }
 0x2a1   : > { %v2398_v10 = vrot.slane %v2334_v36, 1  ;;  %v2265_v11 = vsel %vm2223_vm4, %v18174_v61, %v11444_v37  ;;  %v2438_v61 = vsel %vm798_vm1, %v2390_v60, %v2394_v16 }
 0x2a2   : > { %v2283_v6 = vsel %vm2223_vm4, %v11393_v22, %v18177_v31  ;;  %v18183_v22 = vmax.f32 %v13298_v5, 0.0  ;;  %v18186_v5 = vmax.f32 %v13248_v59, 0.0  ;;  %v18187_v31 = vrot.slane %v13505_v32, 1 }
 0x2a3   : > { %v13684_v47 = vpop.permute.xlu2 %11456  ;;  %v2430_v2 = vsel %vm798_vm1, %v2398_v10, %v17925_v33  ;;  %v2434_v28 = vsel %vm798_vm1, %v2394_v16, %v2398_v10  ;;  %v2442_v10 = vsel %vm798_vm1, %v2386_v9, %v2390_v60  ;;  %v18182_v16 = vmax.f32 %v18181_v17, 0.0  ;;  %v18197_v33 = vld [vmem:[#allocation38_spill] sm:$0xff] }
 0x2a4   : > { %v2522_v34 = vmax.f32 %v2330_v14, %v2434_v28  ;;  %v2526_v8 = vmax.f32 %v2334_v36, %v2430_v2  ;;  %v18178_v14 = vmax.f32 %v13024_v19, 0.0  ;;  %v18179_v36 = vld [vmem:[#allocation31_spill] sm:$0xff]  ;;  %v13742_v60 = vmax.f32 %v18183_v22, %v2249_v58 }
 0x2a5   : > { %v18180_v28 = vmax.f32 %v18179_v36, 0.0  ;;  %v13736_v12 = vmax.f32 %v18182_v16, %v2282_v39  ;;  %v18185_v19 = vrot.slane %v13627_v50, 1  ;;  %v13759_v58 = vmax.f32 %v18186_v5, %v2283_v6 }
 0x2a6   : > { %v13728_v37 = vmax.f32 %v18178_v14, %v2248_v26  ;;  %v13738_v2 = vpack.c.bf16 %v2526_v8, %v2522_v34  ;;  %v2506_v26 = vmax.f32 %v13581_v1, %v13678_v45  ;;  %v18188_v14 = vrot.slane %v13645_v30, 1 }
 0x2a7   : > { %v13732_v57 = vmax.f32 %v18180_v28, %v2265_v11  ;;  %v13750_v9 = vsel %vm798_vm1, %v18185_v19, %v18184_v23  ;;  %v2443_v36 = vsel %vm798_vm1, %v2387_v29, %v2391_v48  ;;  %v2514_v59 = vmax.f32 %v13649_v38, %v2442_v10 }
 0x2a8   : > { %v13771_v45 = vsel %vm798_vm1, %v18188_v14, %v18187_v31  ;;  %v2518_v6 = vmax.f32 %v13639_v62, %v2438_v61  ;;  %v2510_v17 = vmax.f32 %v13573_v53, %v2446_v24  ;;  %v17927_v16 = vrot.slane %v13716_v46, 1  ;;  %v18190_v24 = vld [vmem:[#allocation46_spill] sm:$0xff] }
 0x2a9   : > { %v17928_v22 = vrot.slane %v13732_v57, 1  ;;  %v2395_v23 = vrot.slane %v13736_v12, 1  ;;  %v17929_v19 = vrot.slane %v13742_v60, 1  ;;  %v18189_v5 = vunpack.i.l.bf16 %v13459_v20 }
 0x2aa   : > { %v13761_v34 = vpop.permute.xlu0 %11401  ;;  %v17931_v61 = vunpack.i.l.bf16 %v13542_v0  ;;  %v18191_v31 = vmax.f32 %v18190_v24, 0.0  ;;  %v2529_v11 = vmax.f32 %v13627_v50, %v13750_v9  ;;  %v13802_v39 = vpack.c.bf16 %v2518_v6, %v2514_v59 }
 0x2ab   : > { %v13763_v8 = vpop.permute.xlu2 %11471  ;;  %v17926_v28 = vunpack.i.h.bf16 %v13761_v34  ;;  %v17933_v62 = vunpack.i.l.bf16 %v13761_v34  ;;  %v13816_v9 = vsel %vm798_vm1, %v17927_v16, %v17928_v22  ;;  %v2439_v59 = vsel %vm798_vm1, %v2391_v48, %v2395_v23 }
 0x2ac   : > { %v17930_v53 = vunpack.i.h.bf16 %v13763_v8  ;;  %v13820_v6 = vpack.c.bf16 %v2510_v17, %v2506_v26  ;;  %v18194_v48 = vrot.slane %v13728_v37, 1  ;;  %v18196_v16 = vrot.slane %v13759_v58, 1 }
 0x2ad   : > { %v2254_v38 = vsel %vm2223_vm4, %v18189_v5, %v17926_v28  ;;  %v2515_v5 = vmax.f32 %v13661_v44, %v2443_v36  ;;  %v18192_v28 = vrot.slane %v13561_v51, 1  ;;  %v18193_v44 = vunpack.i.h.bf16 %v13470_v4 }
 0x2ae   : > { %v13796_v14 = vmax.f32 %v18191_v31, %v2254_v38  ;;  %v2244_v36 = vsel %vm2223_vm4, %v17930_v53, %v17931_v61  ;;  %v13841_v26 = vsel %vm798_vm1, %v18194_v48, %v17929_v19  ;;  %v18195_v31 = vrot.slane %v13635_v52, 1 }
 0x2af   : > { %v2447_v32 = vsel %vm798_vm1, %v18192_v28, %v2387_v29  ;;  %v2240_v29 = vsel %vm2223_vm4, %v18193_v44, %v17933_v62  ;;  %v17934_v28 = vunpack.i.l.bf16 %v13763_v8  ;;  %v13856_v22 = vsel %vm798_vm1, %v2395_v23, %v18196_v16 }
 0x2b0   : > { %v17932_v10 = vrot.slane %v13796_v14, 1  ;;  %v2511_v48 = vmax.f32 %v13561_v51, %v2447_v32  ;;  %v2519_v61 = vmax.f32 %v13657_v15, %v2439_v59  ;;  %v18200_v62 = vmax.f32 %v12981_v63, 0.0 }
 0x2b1   : > { %v18201_v51 = vmax.f32 %v18116_v13, 0.0  ;;  %v18204_v15 = vunpack.i.l.bf16 %v13523_v41  ;;  %v18205_v63 = vunpack.i.l.bf16 %v13517_v40  ;;  %v18206_v13 = vunpack.i.l.bf16 %v13525_v25 }
 0x2b2   : > { %v11407_v38 = vpop.permute.xlu0 %11406  ;;  %v2421_v44 = vsel %vm798_vm1, %v18195_v31, %v17932_v10  ;;  %v18198_v31 = vmax.f32 %v18197_v33, 0.0  ;;  %v13871_v16 = vmax.f32 %v18200_v62, %v2244_v36  ;;  %v18209_v36 = vmax.f32 %v13273_v27, 0.0 }
 0x2b3   : > { %v13844_v24 = vpop.permute.xlu2 %2127  ;;  %v11409_v19 = vunpack.i.h.bf16 %v11407_v38  ;;  %v11408_v17 = vunpack.i.l.bf16 %v11407_v38  ;;  %v2533_v23 = vmax.f32 %v13635_v52, %v2421_v44  ;;  %v18203_v38 = vunpack.i.h.bf16 %v13523_v41 }
 0x2b4   : > { %v2257_v53 = vsel %vm2223_vm4, %v17934_v28, %v13844_v24  ;;  %v13867_v10 = vmax.f32 %v18198_v31, %v2240_v29  ;;  %v18208_v29 = vmax.f32 %v18107_v35, 0.0  ;;  %v18210_v40 = vmax.f32 %v13300_v55, 0.0 }
 0x2b5   : > { %v13875_v32 = vmax.f32 %v18201_v51, %v2257_v53  ;;  %v2284_v28 = vsel %vm2223_vm4, %v18203_v38, %v11409_v19  ;;  %v2237_v33 = vsel %vm2223_vm4, %v18204_v15, %v11408_v17  ;;  %v2268_v62 = vsel %vm2223_vm4, %v11409_v19, %v18205_v63 }
 0x2b6   : > { %18199 = vst [vmem:[#allocation54_spill] sm:$0xff] %v13867_v10  ;;  %v2285_v52 = vsel %vm2223_vm4, %v11408_v17, %v18206_v13  ;;  %v18207_v53 = vmax.f32 %v13271_v56, 0.0  ;;  %v13900_v41 = vmax.f32 %v18208_v29, %v2268_v62  ;;  %v13904_v44 = vmax.f32 %v18209_v36, %v2237_v33 }
 0x2b7   : > { %18202 = vst [vmem:[#allocation19_spill] sm:$0xff] %v13875_v32  ;;  %v13908_v19 = vmax.f32 %v18210_v40, %v2285_v52  ;;  %v17935_v17 = vrot.slane %v13875_v32, 1  ;;  %v13923_v33 = vpack.c.bf16 %v2519_v61, %v2515_v5  ;;  %v18211_v63 = vmax.f32 %v13552_v18, %v13669_v43  ;;  %v18246_v32 = vld [vmem:[#allocation52_spill] sm:$0xff] }
 0x2b8   : > { %v13896_v59 = vmax.f32 %v18207_v53, %v2284_v28  ;;  %v17936_v27 = vrot.slane %v13900_v41, 1  ;;  %v17938_v51 = vrot.slane %v13904_v44, 1  ;;  %v18212_v53 = vrot.slane %v13645_v30, 1 }
 0x2b9   : > { %v17937_v55 = vrot.slane %v13908_v19, 1  ;;  %v13928_v62 = vpack.c.bf16 %v2511_v48, %v18211_v63  ;;  %v13937_v36 = vpack.c.bf16 %v2533_v23, %v2529_v11  ;;  %v18213_v61 = vrot.slane %v13501_v7, 1 }
 0x2ba   : > { %v2403_v28 = vrot.slane %v13896_v59, 1  ;;  %v11412_v52 = vpop.permute.xlu0 %11411  ;;  %v2424_v29 = vsel %vm798_vm1, %v17936_v27, %v18212_v53  ;;  %v18215_v13 = vrot.slane %v13631_v42, 1  ;;  %v18219_v56 = vunpack.i.l.bf16 %v13465_v54 }
 0x2bb   : > { %v13945_v43 = vsel %vm798_vm1, %v18213_v61, %v17935_v17  ;;  %v11414_v5 = vunpack.i.h.bf16 %v11412_v52  ;;  %v11413_v48 = vunpack.i.l.bf16 %v11412_v52  ;;  %v11417_v40 = vpop.permute.xlu1 %11416  ;;  %v2528_v63 = vmax.f32 %v13900_v41, %v2424_v29 }
 0x2bc   : > { %18214 = vst [vmem:[#allocation20_spill] sm:$0xff] %v13945_v43  ;;  %v13954_v11 = vsel %vm798_vm1, %v18215_v13, %v17938_v51  ;;  %v11419_v23 = vunpack.i.h.bf16 %v11417_v40  ;;  %v11418_v53 = vunpack.i.l.bf16 %v11417_v40  ;;  %v13960_v61 = vsel %vm798_vm1, %v2403_v28, %v17937_v55  ;;  %v18223_v51 = vld [vmem:[#allocation49_spill] sm:$0xff]  ;;  %v18228_v43 = vld [vmem:[#allocation67_spill] sm:$0xff] }
 0x2bd   : > { %v18216_v52 = vrot.slane %v13759_v58, 1  ;;  %v18217_v17 = vunpack.i.l.bf16 %v13761_v34  ;;  %v18218_v13 = vunpack.i.h.bf16 %v13459_v20  ;;  %v2272_v31 = vsel %vm2223_vm4, %v11414_v5, %v18219_v56  ;;  %v18226_v20 = vld [vmem:[#allocation47_spill] sm:$0xff] }
 0x2be   : > { %v18220_v27 = vmax.f32 %v13645_v30, %v13771_v45  ;;  %v18227_v38 = vmax.f32 %v18226_v20, 0.0  ;;  %v2239_v7 = vsel %vm2223_vm4, %v11413_v48, %v11419_v23  ;;  %v18229_v56 = vunpack.i.l.bf16 %v18228_v43  ;;  %v18230_v45 = vld [vmem:[#allocation35_spill] sm:$0xff] }
 0x2bf   : > { %v2431_v29 = vsel %vm798_vm1, %v18216_v52, %v2403_v28  ;;  %v2224_v35 = vsel %vm2223_vm4, %v18217_v17, %v11414_v5  ;;  %v2255_v40 = vsel %vm2223_vm4, %v18218_v13, %v11413_v48  ;;  %v18221_v28 = vmax.f32 %v13126_v21, 0.0  ;;  %v18238_v20 = vld [vmem:[#allocation59_spill] sm:$0xff] }
 0x2c0   : > { %v2576_v55 = vpack.c.bf16 %v18220_v27, %v2528_v63  ;;  %v18224_v17 = vmax.f32 %v18223_v51, 0.0  ;;  %v2349_v13 = vmax.f32 %v18227_v38, %v2255_v40  ;;  %v2287_v30 = vsel %vm2223_vm4, %v11419_v23, %v18229_v56  ;;  %v18234_v63 = vld [vmem:[#allocation34_spill] sm:$0xff] }
 0x2c1   : > { %v13983_v52 = vmax.f32 %v18221_v28, %v2224_v35  ;;  %v18231_v27 = vmax.f32 %v18230_v45, 0.0  ;;  %v18232_v35 = vunpack.i.h.bf16 %v13761_v34  ;;  %v18233_v51 = vunpack.i.h.bf16 %v13465_v54  ;;  %v18236_v28 = vld [vmem:[#allocation32_spill] sm:$0xff] }
 0x2c2   : > { %v13987_v15 = vmax.f32 %v18224_v17, %v2272_v31  ;;  %2609 = vmatpush.bf16.msrb.mxu0 %v2576_v55  ;;  %v2413_v48 = vrot.slane %v2349_v13, 1  ;;  %v18235_v23 = vmax.f32 %v18234_v63, 0.0  ;;  %v18237_v34 = vmax.f32 %v18236_v28, 0.0 }
 0x2c3   : > { %18222 = vst [vmem:[#allocation56_spill] sm:$0xff] %v13983_v52  ;;  %v2350_v21 = vmax.f32 %v18231_v27, %v2239_v7  ;;  %v2238_v31 = vsel %vm2223_vm4, %v18232_v35, %v11418_v53  ;;  %v2286_v38 = vsel %vm2223_vm4, %v11418_v53, %v18233_v51  ;;  %v17940_v5 = vrot.slane %v13983_v52, 1  ;;  %v11432_v35 = vpop.permute.xlu0 %11431 }
 0x2c4   : > { %18225 = vst [vmem:[#allocation55_spill] sm:$0xff] %v13987_v15  ;;  %v17941_v43 = vrot.slane %v13987_v15, 1  ;;  %v2351_v40 = vmax.f32 %v18235_v23, %v2287_v30  ;;  %v2346_v17 = vmax.f32 %v18237_v34, %v2238_v31  ;;  %v18239_v56 = vmax.f32 %v18238_v20, 0.0  ;;  %v11422_v34 = vpop.permute.xlu1 %11421 }
 0x2c5   : > { %v2414_v7 = vrot.slane %v2350_v21, 1  ;;  %v18240_v55 = vrot.slane %v13867_v10, 1  ;;  %v18241_v51 = vrot.slane %v13796_v14, 1  ;;  %v2527_v31 = vmax.f32 %v13759_v58, %v2431_v29 }
 0x2c6   : > { %v2347_v45 = vmax.f32 %v18239_v56, %v2286_v38  ;;  %v2415_v27 = vrot.slane %v2351_v40, 1  ;;  %v2410_v23 = vrot.slane %v2346_v17, 1  ;;  %v11433_v54 = vunpack.i.l.bf16 %v11432_v35 }
 0x2c7   : > { %v2477_v53 = vsel %vm798_vm1, %v2413_v48, %v18240_v55  ;;  %v2417_v30 = vsel %vm798_vm1, %v18241_v51, %v2413_v48  ;;  %v2478_v38 = vsel %vm798_vm1, %v2414_v7, %v17940_v5  ;;  %v11434_v55 = vunpack.i.h.bf16 %v11432_v35 }
 0x2c8   : > { %v2541_v63 = vmax.f32 %v2349_v13, %v2477_v53  ;;  %v2411_v28 = vrot.slane %v2347_v45, 1  ;;  %v2542_v20 = vmax.f32 %v2350_v21, %v2478_v38  ;;  %v2479_v56 = vsel %vm798_vm1, %v2415_v27, %v17941_v43  ;;  %v18244_v43 = vld [vmem:[#allocation58_spill] sm:$0xff] }
 0x2c9   : > { %v2418_v58 = vsel %vm798_vm1, %v2410_v23, %v2414_v7  ;;  %v2543_v13 = vmax.f32 %v2351_v40, %v2479_v56  ;;  %v11424_v48 = vunpack.i.h.bf16 %v11422_v34  ;;  %v18242_v5 = vunpack.i.h.bf16 %v13542_v0 }
 0x2ca   : > { %v2419_v29 = vsel %vm798_vm1, %v2411_v28, %v2415_v27  ;;  %v2538_v53 = vmax.f32 %v2346_v17, %v2418_v58  ;;  %v18243_v38 = vunpack.i.l.bf16 %v13542_v0  ;;  %v18245_v10 = vmax.f32 %v18244_v43, 0.0  ;;  %v18248_v17 = vld [vmem:[#allocation64_spill] sm:$0xff] }
 0x2cb   : > { %v2539_v51 = vmax.f32 %v2347_v45, %v2419_v29  ;;  %v2229_v21 = vsel %vm2223_vm4, %v18242_v5, %v11434_v55  ;;  %v18247_v27 = vmax.f32 %v18246_v32, 0.0  ;;  %v18249_v45 = vunpack.i.l.bf16 %v18248_v17  ;;  %v18250_v5 = vld [vmem:[#allocation61_spill] sm:$0xff] }
 0x2cc   : > { %v2228_v35 = vsel %vm2223_vm4, %v18243_v38, %v11433_v54  ;;  %v14048_v7 = vmax.f32 %v18245_v10, %v2229_v21  ;;  %v11423_v58 = vunpack.i.l.bf16 %v11422_v34  ;;  %v18251_v29 = vmax.f32 %v18250_v5, 0.0 }
 0x2cd   : > { %v14052_v40 = vmax.f32 %v18247_v27, %v2228_v35  ;;  %v2251_v56 = vsel %vm2223_vm4, %v11424_v48, %v18249_v45  ;;  %v18252_v52 = vunpack.i.l.bf16 %v13470_v4  ;;  %v2537_v10 = vmax.f32 %v13796_v14, %v2417_v30  ;;  %v18254_v35 = vld [vmem:[#allocation36_spill] sm:$0xff]  ;;  %v18257_v30 = vld [vmem:[#allocation33_spill] sm:$0xff] }
 0x2ce   : > { %v2333_v15 = vmax.f32 %v18251_v29, %v2251_v56  ;;  %v2582_v21 = vpack.c.bf16 %v2542_v20, %v2538_v53  ;;  %v18253_v32 = vunpack.i.h.bf16 %v13525_v25  ;;  %v18255_v27 = vunpack.i.h.bf16 %v18254_v35  ;;  %v18261_v56 = vld [vmem:[#allocation37_spill] sm:$0xff] }
 0x2cf   : > { %v2267_v43 = vsel %vm2223_vm4, %v18252_v52, %v11424_v48  ;;  %v2531_v17 = vmax.f32 %v13896_v59, %v13960_v61  ;;  %v18256_v4 = vmax.f32 %v13736_v12, %v13856_v22  ;;  %v18258_v20 = vmax.f32 %v18257_v30, 0.0  ;;  %v18259_v48 = vld [vmem:[#allocation21_spill] sm:$0xff] }
 0x2d0   : > { %v2250_v38 = vsel %vm2223_vm4, %v11423_v58, %v18253_v32  ;;  %v2266_v34 = vsel %vm2223_vm4, %v18255_v27, %v11423_v58  ;;  %v2397_v14 = vrot.slane %v2333_v15, 1  ;;  %v18260_v53 = vmax.f32 %v18259_v48, 0.0  ;;  %2666 = vmatpush.bf16.msrb.mxu2 %v2582_v21  ;;  %v14088_v58 = vpop.permute.xlu0 %11446 }
 0x2d1   : > { %v14078_v52 = vpack.c.bf16 %v2527_v31, %v18256_v4  ;;  %v2328_v25 = vmax.f32 %v18258_v20, %v2266_v34  ;;  %v18262_v5 = vmax.f32 %v18261_v56, 0.0  ;;  %v2374_v59 = vrot.slane %v14048_v7, 1  ;;  %v14092_v31 = vpop.permute.xlu1 %11436 }
 0x2d2   : > { %v14084_v45 = vmax.f32 %v18260_v53, %v2250_v38  ;;  %v2370_v12 = vrot.slane %v14052_v40, 1  ;;  %v2581_v22 = vpack.c.bf16 %v2541_v63, %v2537_v10  ;;  %v2583_v61 = vpack.c.bf16 %v2543_v13, %v2539_v51 }
 0x2d3   : > { %v2332_v29 = vmax.f32 %v18262_v5, %v2267_v43  ;;  %v2392_v32 = vrot.slane %v2328_v25, 1  ;;  %v11439_v38 = vunpack.i.h.bf16 %v14092_v31  ;;  %v11438_v43 = vunpack.i.l.bf16 %v14092_v31  ;;  %v18312_v31 = vld [vmem:[#allocation43_spill] sm:$0xff] }
 0x2d4   : > { %v2393_v35 = vrot.slane %v14084_v45, 1  ;;  %2637 = vmatpush.bf16.msrb.mxu1 %v2581_v22  ;;  %2695 = vmatpush.bf16.msrb.mxu3 %v2583_v61  ;;  %v18263_v21 = vrot.slane %v13904_v44, 1  ;;  %v18264_v63 = vrot.slane %v13908_v19, 1  ;;  %v18265_v51 = vrot.slane %v13627_v50, 1 }
 0x2d5   : > { %v2396_v27 = vrot.slane %v2332_v29, 1  ;;  %v2277_v4 = vsel %vm2223_vm4, %v11434_v55, %v11439_v38  ;;  %v18269_v56 = vunpack.i.h.bf16 %v13763_v8  ;;  %v2276_v55 = vsel %vm2223_vm4, %v11433_v54, %v11438_v43 }
 0x2d6   : > { %v2422_v34 = vsel %vm798_vm1, %v18263_v21, %v2410_v23  ;;  %v2423_v13 = vsel %vm798_vm1, %v18264_v63, %v2411_v28  ;;  %v2429_v10 = vsel %vm798_vm1, %v2397_v14, %v18265_v51  ;;  %v18266_v23 = vrot.slane %v13900_v41, 1  ;;  %v18267_v28 = vld [vmem:[#allocation60_spill] sm:$0xff] }
 0x2d7   : > { %v2534_v30 = vmax.f32 %v13904_v44, %v2422_v34  ;;  %v2535_v20 = vmax.f32 %v13908_v19, %v2423_v13  ;;  %v18268_v53 = vmax.f32 %v18267_v28, 0.0  ;;  %v2260_v5 = vsel %vm2223_vm4, %v11438_v43, %v18269_v56  ;;  %v18271_v34 = vld [vmem:[#allocation26_spill] sm:$0xff] }
 0x2d8   : > { %v2428_v48 = vsel %vm798_vm1, %v2396_v27, %v18266_v23  ;;  %v2432_v44 = vsel %vm798_vm1, %v2392_v32, %v2396_v27  ;;  %v11449_v41 = vunpack.i.h.bf16 %v14088_v58  ;;  %v11448_v19 = vunpack.i.l.bf16 %v14088_v58  ;;  %2638 = vmatpush.bf16.msrb.mxu1 %v13937_v36 }
 0x2d9   : > { %v14121_v50 = vmax.f32 %v18268_v53, %v2277_v4  ;;  %v18270_v22 = vmax.f32 %v13631_v42, %v13954_v11  ;;  %v2579_v21 = vpack.c.bf16 %v2535_v20, %v2531_v17  ;;  %v18272_v63 = vmax.f32 %v18271_v34, 0.0  ;;  %v18273_v4 = vld [vmem:[#allocation53_spill] sm:$0xff]  ;;  %v11452_v20 = vpop.permute.xlu1 %11451 }
 0x2da   : > { %v2520_v51 = vmax.f32 %v2328_v25, %v2432_v44  ;;  %v2524_v54 = vmax.f32 %v2332_v29, %v2428_v48  ;;  %v2433_v27 = vsel %vm798_vm1, %v2393_v35, %v2397_v14  ;;  %v18274_v23 = vmax.f32 %v18273_v4, 0.0  ;;  %v18284_v4 = vld [vmem:[#allocation44_spill] sm:$0xff] }
 0x2db   : > { %v2578_v61 = vpack.c.bf16 %v2534_v30, %v18270_v22  ;;  %v14138_v13 = vmax.f32 %v18272_v63, %v2260_v5  ;;  %v2375_v43 = vrot.slane %v14121_v50, 1  ;;  %2696 = vmatpush.bf16.msrb.mxu3 %v2579_v21  ;;  %v2521_v11 = vmax.f32 %v14084_v45, %v2433_v27  ;;  %v11462_v30 = vpop.permute.xlu0 %11461 }
 0x2dc   : > { %v14148_v42 = vmax.f32 %v18274_v23, %v2276_v55  ;;  %v2525_v17 = vmax.f32 %v2333_v15, %v2429_v10  ;;  %v2572_v36 = vpack.c.bf16 %v2524_v54, %v2520_v51  ;;  %v11464_v25 = vunpack.i.h.bf16 %v11462_v30  ;;  %v18276_v55 = vld [vmem:[#allocation66_spill] sm:$0xff]  ;;  %v18282_v51 = vld [vmem:[#allocation28_spill] sm:$0xff] }
 0x2dd   : > { %2667 = vmatpush.bf16.msrb.mxu2 %v2578_v61  ;;  %v11463_v29 = vunpack.i.l.bf16 %v11462_v30  ;;  %v18275_v48 = vrot.slane %v13732_v57, 1  ;;  %v11454_v53 = vunpack.i.h.bf16 %v11452_v20  ;;  %v11453_v56 = vunpack.i.l.bf16 %v11452_v20  ;;  %v18279_v61 = vld [vmem:[#allocation65_spill] sm:$0xff] }
 0x2de   : > { %v2573_v28 = vpack.c.bf16 %v2525_v17, %v2521_v11  ;;  %2610 = vmatpush.bf16.msrb.mxu0 %v2572_v36  ;;  %v18277_v44 = vunpack.i.l.bf16 %v18276_v55  ;;  %v18278_v10 = vunpack.i.h.bf16 %v18276_v55  ;;  %v18280_v21 = vunpack.i.l.bf16 %v18279_v61  ;;  %v18286_v17 = vld [vmem:[#allocation29_spill] sm:$0xff] }
 0x2df   : > { %v2436_v14 = vsel %vm798_vm1, %v18275_v48, %v2392_v32  ;;  %v18281_v34 = vunpack.i.h.bf16 %v18279_v61  ;;  %v2368_v63 = vrot.slane %v14138_v13, 1  ;;  %v18283_v54 = vmax.f32 %v18282_v51, 0.0  ;;  %2697 = vmatpush.bf16.msrb.mxu3 %v14078_v52  ;;  %v18296_v51 = vld [vmem:[#allocation50_spill] sm:$0xff] }
 0x2e0   : > { %v2516_v5 = vmax.f32 %v13732_v57, %v2436_v14  ;;  %v2246_v15 = vsel %vm2223_vm4, %v11463_v29, %v18277_v44  ;;  %v2247_v22 = vsel %vm2223_vm4, %v11464_v25, %v18278_v10  ;;  %v2262_v32 = vsel %vm2223_vm4, %v18280_v21, %v11463_v29  ;;  %2639 = vmatpush.bf16.msrb.mxu1 %v2573_v28  ;;  %v18293_v21 = vld [vmem:[#allocation62_spill] sm:$0xff] }
 0x2e1   : > { %v2263_v57 = vsel %vm2223_vm4, %v18281_v34, %v11464_v25  ;;  %2668 = vmatpush.bf16.msrb.mxu2 %v13738_v2  ;;  %v14176_v27 = vmax.f32 %v18283_v54, %v2262_v32  ;;  %v18285_v23 = vmax.f32 %v18284_v4, 0.0  ;;  %v18287_v30 = vmax.f32 %v18286_v17, 0.0  ;;  %v18288_v25 = vld [vmem:[#allocation45_spill] sm:$0xff]  ;;  %v11467_v45 = vpop.permute.xlu1 %11466 }
 0x2e2   : > { %v18289_v29 = vmax.f32 %v18288_v25, 0.0  ;;  %v2227_v2 = vsel %vm2223_vm4, %v11449_v41, %v11454_v53  ;;  %v18290_v48 = vunpack.i.h.bf16 %v13684_v47  ;;  %v2226_v28 = vsel %vm2223_vm4, %v11448_v19, %v11453_v56 }
 0x2e3   : > { %v14180_v11 = vmax.f32 %v18285_v23, %v2246_v15  ;;  %v14184_v36 = vmax.f32 %v18287_v30, %v2263_v57  ;;  %v2371_v52 = vrot.slane %v14148_v42, 1  ;;  %v2376_v55 = vrot.slane %v14176_v27, 1  ;;  %v18291_v15 = vld [vmem:[#allocation23_spill] sm:$0xff]  ;;  %2698 = vmatpush.bf16.msrb.mxu3 %v13923_v33 }
 0x2e4   : > { %v14189_v20 = vmax.f32 %v18289_v29, %v2247_v22  ;;  %v2275_v14 = vsel %vm2223_vm4, %v11454_v53, %v18290_v48  ;;  %v18292_v10 = vmax.f32 %v18291_v15, 0.0  ;;  %v18294_v32 = vmax.f32 %v18293_v21, 0.0 }
 0x2e5   : > { %v2377_v44 = vrot.slane %v14180_v11, 1  ;;  %v2380_v61 = vrot.slane %v14184_v36, 1  ;;  %v18295_v34 = vunpack.i.l.bf16 %v13684_v47  ;;  %v18297_v54 = vmax.f32 %v18296_v51, 0.0  ;;  %2669 = vmatpush.bf16.msrb.mxu2 %v13802_v39 }
 0x2e6   : > { %v14208_v22 = vmax.f32 %v18292_v10, %v2227_v2  ;;  %v14213_v53 = vmax.f32 %v18294_v32, %v2275_v14  ;;  %v2381_v23 = vrot.slane %v14189_v20, 1  ;;  %v18298_v30 = vmax.f32 %v13716_v46, %v13816_v9  ;;  %v18300_v14 = vld [vmem:[#allocation51_spill] sm:$0xff] }
 0x2e7   : > { %v2274_v57 = vsel %vm2223_vm4, %v11453_v56, %v18295_v34  ;;  %v14221_v4 = vmax.f32 %v18297_v54, %v2226_v28  ;;  %v18299_v29 = vrot.slane %v13742_v60, 1  ;;  %v11477_v56 = vpop.permute.xlu0 %11476  ;;  %v18301_v28 = vmax.f32 %v18300_v14, 0.0  ;;  %2699 = vmatpush.bf16.msrb.mxu3 %v13928_v62 }
 0x2e8   : > { %v2366_v17 = vrot.slane %v14208_v22, 1  ;;  %v2568_v25 = vpack.c.bf16 %v2516_v5, %v18298_v30  ;;  %v2367_v48 = vrot.slane %v14213_v53, 1  ;;  %v11479_v9 = vunpack.i.h.bf16 %v11477_v56 }
 0x2e9   : > { %v2437_v2 = vsel %vm798_vm1, %v18299_v29, %v2393_v35  ;;  %v14238_v15 = vmax.f32 %v18301_v28, %v2274_v57  ;;  %v2362_v5 = vrot.slane %v14221_v4, 1  ;;  %v11478_v21 = vunpack.i.l.bf16 %v11477_v56  ;;  %2670 = vmatpush.bf16.msrb.mxu2 %v13820_v6 }
 0x2ea   : > { %v2517_v10 = vmax.f32 %v13742_v60, %v2437_v2  ;;  %2611 = vmatpush.bf16.msrb.mxu0 %v2568_v25  ;;  %v11469_v35 = vunpack.i.h.bf16 %v11467_v45  ;;  %v11468_v32 = vunpack.i.l.bf16 %v11467_v45  ;;  %v18302_v39 = vmax.f32 %v13728_v37, %v13841_v26  ;;  %v18306_v25 = vld [vmem:[#allocation24_spill] sm:$0xff]  ;;  %v18308_v2 = vld [vmem:[#allocation41_spill] sm:$0xff] }
 0x2eb   : > { %v2242_v57 = vsel %vm2223_vm4, %v11479_v9, %v11448_v19  ;;  %v18303_v60 = vunpack.i.l.bf16 %v13684_v47  ;;  %v18304_v51 = vrot.slane %v13581_v1, 1  ;;  %v18305_v26 = vunpack.i.h.bf16 %v13542_v0  ;;  %v18310_v0 = vld [vmem:[#allocation27_spill] sm:$0xff] }
 0x2ec   : > { %v2569_v34 = vpack.c.bf16 %v2517_v10, %v18302_v39  ;;  %v2261_v19 = vsel %vm2223_vm4, %v11439_v38, %v11478_v21  ;;  %v18307_v29 = vmax.f32 %v18306_v25, 0.0  ;;  %v18309_v56 = vmax.f32 %v18308_v2, 0.0  ;;  %v18319_v2 = vld [vmem:[#allocation39_spill] sm:$0xff] }
 0x2ed   : > { %v2258_v33 = vsel %vm2223_vm4, %v18303_v60, %v11479_v9  ;;  %v2454_v54 = vsel %vm798_vm1, %v2374_v59, %v18304_v51  ;;  %v2245_v30 = vsel %vm2223_vm4, %v11478_v21, %v18305_v26  ;;  %v2363_v6 = vrot.slane %v14238_v15, 1 }
 0x2ee   : > { %v14271_v1 = vmax.f32 %v18307_v29, %v2258_v33  ;;  %v14275_v14 = vmax.f32 %v18309_v56, %v2242_v57  ;;  %2640 = vmatpush.bf16.msrb.mxu1 %v2569_v34  ;;  %v18311_v28 = vmax.f32 %v18310_v0, 0.0  ;;  %v18313_v9 = vmax.f32 %v18312_v31, 0.0  ;;  %v18315_v34 = vld [vmem:[#allocation63_spill] sm:$0xff] }
 0x2ef   : > { %v18314_v45 = vunpack.i.l.bf16 %v13763_v8  ;;  %v18316_v60 = vmax.f32 %v18315_v34, 0.0  ;;  %v2225_v33 = vsel %vm2223_vm4, %v11468_v32, %v11469_v35  ;;  %v2241_v8 = vsel %vm2223_vm4, %v13844_v24, %v11468_v32 }
 0x2f0   : > { %v14281_v10 = vmax.f32 %v18311_v28, %v2261_v19  ;;  %v14285_v38 = vmax.f32 %v18313_v9, %v2245_v30  ;;  %v2360_v39 = vrot.slane %v14271_v1, 1  ;;  %v2361_v57 = vrot.slane %v14275_v14, 1  ;;  %v18317_v30 = vld [vmem:[#allocation40_spill] sm:$0xff] }
 0x2f1   : > { %v2273_v21 = vsel %vm2223_vm4, %v11469_v35, %v18314_v45  ;;  %v18318_v19 = vmax.f32 %v18317_v30, 0.0  ;;  %v18320_v56 = vmax.f32 %v18319_v2, 0.0  ;;  %v2458_v35 = vsel %vm798_vm1, %v2370_v12, %v2374_v59  ;;  %v2132_v2 = vpop.permute.xlu1 %2131 }
 0x2f2   : > { %v14295_v62 = vmax.f32 %v18316_v60, %v2273_v21  ;;  %v2372_v51 = vrot.slane %v14281_v10, 1  ;;  %v2373_v26 = vrot.slane %v14285_v38, 1  ;;  %v2502_v28 = vmax.f32 %v14048_v7, %v2454_v54 }
 0x2f3   : > { %v14306_v25 = vmax.f32 %v18318_v19, %v2225_v33  ;;  %v14311_v0 = vmax.f32 %v18320_v56, %v2241_v8  ;;  %v2498_v32 = vmax.f32 %v14052_v40, %v2458_v35  ;;  %v18321_v31 = vrot.slane %v13552_v18, 1 }
 0x2f4   : > { %v2359_v29 = vrot.slane %v14295_v62, 1  ;;  %v2459_v59 = vsel %vm798_vm1, %v2371_v52, %v2375_v43  ;;  %v18322_v18 = vrot.slane %v13716_v46, 1  ;;  %v2448_v60 = vsel %vm798_vm1, %v2376_v55, %v2380_v61 }
 0x2f5   : > { %v2358_v24 = vrot.slane %v14306_v25, 1  ;;  %v2455_v9 = vsel %vm798_vm1, %v2375_v43, %v18321_v31  ;;  %v2357_v7 = vrot.slane %v14311_v0, 1  ;;  %v2499_v54 = vmax.f32 %v14148_v42, %v2459_v59  ;;  %v18325_v31 = vld [vmem:[#allocation42_spill] sm:$0xff]  ;;  %v18327_v59 = vld [vmem:[#allocation25_spill] sm:$0xff] }
 0x2f6   : > { %v2503_v45 = vmax.f32 %v14121_v50, %v2455_v9  ;;  %v2444_v21 = vsel %vm798_vm1, %v2380_v61, %v18322_v18  ;;  %v2562_v34 = vpack.c.bf16 %v2502_v28, %v2498_v32  ;;  %v18323_v43 = vrot.slane %v13728_v37, 1 }
 0x2f7   : > { %v2508_v33 = vmax.f32 %v14184_v36, %v2444_v21  ;;  %v2504_v50 = vmax.f32 %v14176_v27, %v2448_v60  ;;  %v2449_v46 = vsel %vm798_vm1, %v2377_v44, %v2381_v23  ;;  %v2462_v37 = vsel %vm798_vm1, %v2366_v17, %v2370_v12 }
 0x2f8   : > { %v2445_v8 = vsel %vm798_vm1, %v2381_v23, %v18323_v43  ;;  %v2563_v30 = vpack.c.bf16 %v2503_v45, %v2499_v54  ;;  %2671 = vmatpush.bf16.msrb.mxu2 %v2562_v34  ;;  %v2505_v61 = vmax.f32 %v14180_v11, %v2449_v46  ;;  %v2466_v36 = vsel %vm798_vm1, %v2362_v5, %v2366_v17 }
 0x2f9   : > { %v2509_v19 = vmax.f32 %v14189_v20, %v2445_v8  ;;  %v2463_v20 = vsel %vm798_vm1, %v2367_v48, %v2371_v52  ;;  %v2564_v40 = vpack.c.bf16 %v2508_v33, %v2504_v50  ;;  %v2490_v23 = vmax.f32 %v14221_v4, %v2466_v36  ;;  %v18331_v8 = vld [vmem:[#allocation56_spill] sm:$0xff]  ;;  %v18335_v36 = vld [vmem:[#allocation19_spill] sm:$0xff] }
 0x2fa   : > { %2700 = vmatpush.bf16.msrb.mxu3 %v2563_v30  ;;  %v2494_v12 = vmax.f32 %v14208_v22, %v2462_v37  ;;  %v2467_v17 = vsel %vm798_vm1, %v2363_v6, %v2367_v48  ;;  %v2495_v35 = vmax.f32 %v14213_v53, %v2463_v20  ;;  %v2243_v52 = vsel %vm2223_vm4, %v2132_v2, %v11449_v41  ;;  %v10782_v37 = vld [vmem:[%s17763_s4] sm:$0xff] }
 0x2fb   : > { %v2565_v56 = vpack.c.bf16 %v2509_v19, %v2505_v61  ;;  %v2491_v42 = vmax.f32 %v14238_v15, %v2467_v17  ;;  %2612 = vmatpush.bf16.msrb.mxu0 %v2564_v40  ;;  %v18324_v22 = vunpack.i.h.bf16 %v13684_v47  ;;  %v18326_v9 = vmax.f32 %v18325_v31, 0.0 }
 0x2fc   : > { %v2558_v28 = vpack.c.bf16 %v2494_v12, %v2490_v23  ;;  %v2452_v53 = vsel %vm798_vm1, %v2372_v51, %v2376_v55  ;;  %v18328_v54 = vmax.f32 %v18327_v59, 0.0  ;;  %v2456_v47 = vsel %vm798_vm1, %v2368_v63, %v2372_v51  ;;  %v18337_v23 = vld [vmem:[#allocation54_spill] sm:$0xff]  ;;  %v8420_v59 = vld [vmem:[#allocation2 + $0x70] sm:$0xf] }
 0x2fd   : > { %v2259_v32 = vsel %vm2223_vm4, %v18324_v22, %v2132_v2  ;;  %v2301_v48 = vmax.f32 %v18326_v9, %v2243_v52  ;;  %2641 = vmatpush.bf16.msrb.mxu1 %v2565_v56  ;;  %v2559_v58 = vpack.c.bf16 %v2495_v35, %v2491_v42  ;;  %v2500_v45 = vmax.f32 %v14281_v10, %v2452_v53  ;;  %v18339_v35 = vld [vmem:[#allocation20_spill] sm:$0xff]  ;;  %v18340_v52 = vld [vmem:[#allocation22_spill] sm:$0xff] }
 0x2fe   : > { %v2300_v41 = vmax.f32 %v18328_v54, %v2259_v32  ;;  %2672 = vmatpush.bf16.msrb.mxu2 %v2558_v28  ;;  %v2496_v21 = vmax.f32 %v14138_v13, %v2456_v47  ;;  %v2453_v27 = vsel %vm798_vm1, %v2373_v26, %v2377_v44  ;;  %v18329_v55 = vrot.slane %v13871_v16, 1  ;;  %v8548_v9 = vld [vmem:[#allocation2 + $0x170] sm:$0xf]  ;;  %v10801_v54 = vld [vmem:[#allocation2 + $0x74] sm:$0xf0] }
 0x2ff   : > { %v2365_v18 = vrot.slane %v2301_v48, 1  ;;  %2701 = vmatpush.bf16.msrb.mxu3 %v2559_v58  ;;  %v2501_v10 = vmax.f32 %v14285_v38, %v2453_v27  ;;  %v2470_v33 = vsel %vm798_vm1, %v2358_v24, %v2362_v5  ;;  %v18332_v30 = vrot.slane %v18331_v8, 1  ;;  %v10849_v58 = vld [vmem:[#allocation2 + $0x1f4] sm:$0xf0]  ;;  %v8540_v27 = vld [vmem:[#allocation2 + $0x160] sm:$0xf] }
 0x300   : > { %v2457_v34 = vsel %vm798_vm1, %v18329_v55, %v2373_v26  ;;  %v2364_v60 = vrot.slane %v2300_v41, 1  ;;  %v18330_v11 = vmov %v18329_v55  ;;  %v2560_v43 = vpack.c.bf16 %v2500_v45, %v2496_v21  ;;  %v10817_v21 = vld [vmem:[#allocation2 + $0xf4] sm:$0xf0] }
 0x301   : > { %v2497_v51 = vmax.f32 %v13871_v16, %v2457_v34  ;;  %v2461_v44 = vsel %vm798_vm1, %v2365_v18, %v18330_v11  ;;  %v2474_v26 = vsel %vm798_vm1, %v18332_v30, %v2358_v24  ;;  %v2486_v50 = vmax.f32 %v14306_v25, %v2470_v33  ;;  %v18333_v25 = vld [vmem:[#allocation55_spill] sm:$0xff]  ;;  %v8412_v11 = vld [vmem:[#allocation2 + $0x60] sm:$0xf] }
 0x302   : > { %v2460_v4 = vsel %vm798_vm1, %v2364_v60, %v2368_v63  ;;  %v2493_v38 = vmax.f32 %v2301_v48, %v2461_v44  ;;  %v2482_v16 = vmax.f32 %v18331_v8, %v2474_v26  ;;  %2613 = vmatpush.bf16.msrb.mxu0 %v2560_v43  ;;  %v2471_v24 = vsel %vm798_vm1, %v2359_v29, %v2363_v6  ;;  %v10833_v48 = vld [vmem:[#allocation2 + $0x174] sm:$0xf0]  ;;  %v10831_v34 = vld [vmem:[#allocation2 + $0x164] sm:$0xf0]  ;;  %v8476_v43 = vld [vmem:[#allocation2 + $0xe0] sm:$0xf] }
 0x303   : > { %v2561_v5 = vpack.c.bf16 %v2501_v10, %v2497_v51  ;;  %v2492_v46 = vmax.f32 %v2300_v41, %v2460_v4  ;;  %v18334_v13 = vrot.slane %v18333_v25, 1  ;;  %v2464_v19 = vsel %vm798_vm1, %v2360_v39, %v2364_v60  ;;  %v14491_v41 = vld [vmem:[%s17763_s4 + $0x10] sm:$0xff]  ;;  %v8604_v60 = vld [vmem:[#allocation2 + $0x1e0] sm:$0xf]  ;;  %v10847_v51 = vld [vmem:[#allocation2 + $0x1e4] sm:$0xf0] }
 0x304   : > { %v2554_v2 = vpack.c.bf16 %v2486_v50, %v2482_v16  ;;  %v2487_v61 = vmax.f32 %v14295_v62, %v2471_v24  ;;  %v2488_v6 = vmax.f32 %v14271_v1, %v2464_v19  ;;  %v18336_v20 = vrot.slane %v18335_v36, 1  ;;  %v10799_v44 = vld [vmem:[#allocation2 + $0x64] sm:$0xf0]  ;;  %v8532_v26 = vld [vmem:[#allocation2 + $0x150] sm:$0xf] }
 0x305   : > { %v2475_v63 = vsel %vm798_vm1, %v18334_v13, %v2359_v29  ;;  %2642 = vmatpush.bf16.msrb.mxu1 %v2561_v5  ;;  %v2465_v29 = vsel %vm798_vm1, %v2361_v57, %v2365_v18  ;;  %v2469_v62 = vsel %vm798_vm1, %v2357_v7, %v2361_v57  ;;  %v18338_v12 = vrot.slane %v18337_v23, 1  ;;  %v8484_v18 = vld [vmem:[#allocation2 + $0xf0] sm:$0xf]  ;;  %v10815_v30 = vld [vmem:[#allocation2 + $0xe4] sm:$0xf0] }
 0x306   : > { %v2483_v15 = vmax.f32 %v18333_v25, %v2475_v63  ;;  %v2468_v40 = vsel %vm798_vm1, %v18336_v20, %v2360_v39  ;;  %2673 = vmatpush.bf16.msrb.mxu2 %v2554_v2  ;;  %v2556_v56 = vpack.c.bf16 %v2492_v46, %v2488_v6  ;;  %v2489_v42 = vmax.f32 %v14275_v14, %v2465_v29  ;;  %v10783_v14 = vld [vmem:[%s17763_s4 + $0x8] sm:$0xff]  ;;  %v10829_v50 = vld [vmem:[#allocation2 + $0x154] sm:$0xf0]  ;;  %v8404_v16 = vld [vmem:[#allocation2 + $0x50] sm:$0xf] }
 0x307   : > { %v2473_v17 = vsel %vm798_vm1, %v18338_v12, %v2357_v7  ;;  %v2484_v39 = vmax.f32 %v18335_v36, %v2468_v40  ;;  %v2480_v28 = vmax.f32 %v18340_v52, %v18339_v35  ;;  %v2485_v32 = vmax.f32 %v14311_v0, %v2469_v62  ;;  %v8612_v0 = vld [vmem:[#allocation2 + $0x1f0] sm:$0xf]  ;;  %v10845_v5 = vld [vmem:[#allocation2 + $0x1d4] sm:$0xf0]  ;;  %v8524_v19 = vld [vmem:[#allocation2 + $0x140] sm:$0xf] }
 0x308   : > { %v2555_v1 = vpack.c.bf16 %v2487_v61, %v2483_v15  ;;  %2614 = vmatpush.bf16.msrb.mxu0 %v2556_v56  ;;  %v2557_v57 = vpack.c.bf16 %v2493_v38, %v2489_v42  ;;  %v2481_v22 = vmax.f32 %v18337_v23, %v2473_v17  ;;  %v8549_v53 = vor.u32 %v10833_v48, %v8548_v9  ;;  %v8596_v38 = vld [vmem:[#allocation2 + $0x1d0] sm:$0xf]  ;;  %v10797_v24 = vld [vmem:[#allocation2 + $0x54] sm:$0xf0]  ;;  %v10827_v2 = vld [vmem:[#allocation2 + $0x144] sm:$0xf0] }
 0x309   : > { %2674 = vmatmul.bf16.vlgmr.msrb.gmra.mxu2 %v10782_v37  ;;  %v2552_v7 = vpack.c.bf16 %v2484_v39, %v2480_v28  ;;  %v8613_v47 = vor.u32 %v10849_v58, %v8612_v0  ;;  %v8421_v45 = vor.u32 %v10801_v54, %v8420_v59  ;;  %v8485_v55 = vor.u32 %v10817_v21, %v8484_v18  ;;  %v8468_v25 = vld [vmem:[#allocation2 + $0xd0] sm:$0xf]  ;;  %v10813_v13 = vld [vmem:[#allocation2 + $0xd4] sm:$0xf0]  ;;  %v8588_v6 = vld [vmem:[#allocation2 + $0x1c0] sm:$0xf] }
 0x30a   : > { %2702 = vmatpush.bf16.msrb.mxu3 %v2555_v1  ;;  %2643 = vmatpush.bf16.msrb.mxu1 %v2557_v57  ;;  %v2553_v31 = vpack.c.bf16 %v2485_v32, %v2481_v22  ;;  %v8541_v10 = vor.u32 %v10831_v34, %v8540_v27  ;;  %v8605_v33 = vor.u32 %v10847_v51, %v8604_v60  ;;  %v8396_v29 = vld [vmem:[#allocation2 + $0x40] sm:$0xf]  ;;  %v10795_v36 = vld [vmem:[#allocation2 + $0x44] sm:$0xf0]  ;;  %v8516_v12 = vld [vmem:[#allocation2 + $0x130] sm:$0xf] }
 0x30b   : > { %3182 = vmatpush.bf16.msra.mxu2 %v8549_v53  ;;  %v8413_v8 = vor.u32 %v10799_v44, %v8412_v11  ;;  %v8477_v4 = vor.u32 %v10815_v30, %v8476_v43  ;;  %v8533_v46 = vor.u32 %v10829_v50, %v8532_v26  ;;  %v8597_v63 = vor.u32 %v10845_v5, %v8596_v38  ;;  %v8460_v20 = vld [vmem:[#allocation2 + $0xc0] sm:$0xf]  ;;  %v10811_v40 = vld [vmem:[#allocation2 + $0xc4] sm:$0xf0]  ;;  %v10825_v17 = vld [vmem:[#allocation2 + $0x134] sm:$0xf0] }
 0x30c   : > { %2615 = vmatpush.bf16.msrb.mxu0 %v2552_v7  ;;  %v8405_v15 = vor.u32 %v10797_v24, %v8404_v16  ;;  %v8469_v61 = vor.u32 %v10813_v13, %v8468_v25  ;;  %v8525_v62 = vor.u32 %v10827_v2, %v8524_v19  ;;  %v8397_v1 = vor.u32 %v10795_v36, %v8396_v29  ;;  %v8580_v42 = vld [vmem:[#allocation2 + $0x1b0] sm:$0xf]  ;;  %v10841_v39 = vld [vmem:[#allocation2 + $0x1b4] sm:$0xf0]  ;;  %v10823_v9 = vld [vmem:[#allocation2 + $0x124] sm:$0xf0] }
 0x30d   : > { %2703 = vmatmul.bf16.vlgmr.msrb.gmra.mxu3 %v10782_v37  ;;  %v8461_v56 = vor.u32 %v10811_v40, %v8460_v20  ;;  %v8517_v35 = vor.u32 %v10825_v17, %v8516_v12  ;;  %v8581_v52 = vor.u32 %v10841_v39, %v8580_v42  ;;  %v10785_v28 = vld [vmem:[%s17763_s4 + $0x18] sm:$0xff]  ;;  %v8388_v57 = vld [vmem:[#allocation2 + $0x30] sm:$0xf]  ;;  %v8572_v53 = vld [vmem:[#allocation2 + $0x1a0] sm:$0xf] }
 0x30e   : > { %2644 = vmatpush.bf16.msrb.mxu1 %v2553_v31  ;;  %3211 = vmatpush.bf16.msra.mxu3 %v8613_v47  ;;  %v10793_v22 = vld [vmem:[#allocation2 + $0x34] sm:$0xf0]  ;;  %v8452_v32 = vld [vmem:[#allocation2 + $0xb0] sm:$0xf]  ;;  %v10839_v58 = vld [vmem:[#allocation2 + $0x1a4] sm:$0xf0] }
 0x30f   : > { %2616 = vmatmul.bf16.vlgmr.msrb.gmra.mxu0 %v10782_v37  ;;  %3183 = vmatpush.bf16.msra.mxu2 %v8541_v10  ;;  %v8389_v7 = vor.u32 %v10793_v22, %v8388_v57  ;;  %v10809_v31 = vld [vmem:[#allocation2 + $0xb4] sm:$0xf0]  ;;  %v8380_v59 = vld [vmem:[#allocation2 + $0x20] sm:$0xf]  ;;  %v8573_v54 = vor.u32 %v10839_v58, %v8572_v53  ;;  %v8500_v27 = vld [vmem:[#allocation2 + $0x110] sm:$0xf] }
 0x310   : > { %3124 = vmatpush.bf16.msra.mxu0 %v8421_v45  ;;  %v8453_v48 = vor.u32 %v10809_v31, %v8452_v32  ;;  %v8444_v47 = vld [vmem:[#allocation2 + $0xa0] sm:$0xf]  ;;  %v10807_v45 = vld [vmem:[#allocation2 + $0xa4] sm:$0xf0]  ;;  %v8564_v34 = vld [vmem:[#allocation2 + $0x190] sm:$0xf] }
 0x311   : > { %2645 = vmatmul.bf16.vlgmr.msrb.gmra.mxu1 %v10782_v37  ;;  %v10843_v37 = vld [vmem:[#allocation2 + $0x1c4] sm:$0xf0]  ;;  %v8445_v21 = vor.u32 %v10807_v45, %v8444_v47  ;;  %v10837_v51 = vld [vmem:[#allocation2 + $0x194] sm:$0xf0]  ;;  %v8436_v44 = vld [vmem:[#allocation2 + $0x90] sm:$0xf] }
 0x312   : > { %3153 = vmatpush.bf16.msra.mxu1 %v8485_v55  ;;  %3212 = vmatpush.bf16.msra.mxu3 %v8605_v33  ;;  %v8589_v23 = vor.u32 %v10843_v37, %v8588_v6  ;;  %v10821_v55 = vld [vmem:[#allocation2 + $0x114] sm:$0xf0]  ;;  %v8565_v10 = vor.u32 %v10837_v51, %v8564_v34  ;;  %v8372_v33 = vld [vmem:[#allocation2 + $0x10] sm:$0xf]  ;;  %v8492_v30 = vld [vmem:[#allocation2 + $0x100] sm:$0xf] }
 0x313   : > { %3184 = vmatpush.bf16.msra.mxu2 %v8533_v46  ;;  %v8501_v60 = vor.u32 %v10821_v55, %v8500_v27  ;;  %v10789_v11 = vld [vmem:[#allocation2 + $0x14] sm:$0xf0]  ;;  %v10819_v26 = vld [vmem:[#allocation2 + $0x104] sm:$0xf0]  ;;  %v8556_v38 = vld [vmem:[#allocation2 + $0x180] sm:$0xf] }
 0x314   : > { %3125 = vmatpush.bf16.msra.mxu0 %v8413_v8  ;;  %v8373_v43 = vor.u32 %v10789_v11, %v8372_v33  ;;  %v10805_v8 = vld [vmem:[#allocation2 + $0x94] sm:$0xf0]  ;;  %v10835_v5 = vld [vmem:[#allocation2 + $0x184] sm:$0xf0]  ;;  %v8364_v16 = vld [vmem:[#allocation2] sm:$0xf] }
 0x315   : > { %v8437_v50 = vor.u32 %v10805_v8, %v8436_v44  ;;  %v8557_v46 = vor.u32 %v10835_v5, %v8556_v38  ;;  %v10787_v24 = vld [vmem:[#allocation2 + $0x4] sm:$0xf0]  ;;  %v8428_v25 = vld [vmem:[#allocation2 + $0x80] sm:$0xf]  ;;  %v10832_v17 = vld [vmem:[#allocation2 + $0x174] sm:$0xf] }
 0x316   : > { %3154 = vmatpush.bf16.msra.mxu1 %v8477_v4  ;;  %3213 = vmatpush.bf16.msra.mxu3 %v8597_v63  ;;  %v8493_v4 = vor.u32 %v10819_v26, %v8492_v30  ;;  %v10803_v13 = vld [vmem:[#allocation2 + $0x84] sm:$0xf0]  ;;  %v8365_v63 = vor.u32 %v10787_v24, %v8364_v16  ;;  %v8614_v39 = vld [vmem:[#allocation2 + $0x1f8] sm:$0xf0]  ;;  %v10800_v32 = vld [vmem:[#allocation2 + $0x74] sm:$0xf] }
 0x317   : > { %3185 = vmatpush.bf16.msra.mxu2 %v8525_v62  ;;  %v8429_v19 = vor.u32 %v10803_v13, %v8428_v25  ;;  %v10816_v31 = vld [vmem:[#allocation2 + $0xf4] sm:$0xf]  ;;  %v8414_v45 = vld [vmem:[#allocation2 + $0x68] sm:$0xf0]  ;;  %v8598_v33 = vld [vmem:[#allocation2 + $0x1d8] sm:$0xf0] }
 0x318   : > { %3126 = vmatpush.bf16.msra.mxu0 %v8405_v15  ;;  %v10828_v34 = vld [vmem:[#allocation2 + $0x154] sm:$0xf]  ;;  %v8406_v16 = vld [vmem:[#allocation2 + $0x58] sm:$0xf0]  ;;  %v10826_v13 = vld [vmem:[#allocation2 + $0x144] sm:$0xf] }
 0x319   : > { %2679 = vmatmul.bf16.gmra.mxu2 %v10783_v14  ;;  %v10844_v51 = vld [vmem:[#allocation2 + $0x1d4] sm:$0xf]  ;;  %v8470_v25 = vld [vmem:[#allocation2 + $0xd8] sm:$0xf0] }
 0x31a   : > { %3155 = vmatpush.bf16.msra.mxu1 %v8469_v61  ;;  %3214 = vmatpush.bf16.msra.mxu3 %v8589_v23  ;;  %v10796_v5 = vld [vmem:[#allocation2 + $0x54] sm:$0xf] }
 0x31b   : > { %3186 = vmatpush.bf16.msra.mxu2 %v8517_v35  ;;  %v8409_v24 = vor.u32 %v10796_v5, %v8406_v16  ;;  %v10804_v16 = vld [vmem:[#allocation2 + $0x94] sm:$0xf] }
 0x31c   : > { %3127 = vmatpush.bf16.msra.mxu0 %v8397_v1  ;;  %v8550_v1 = vld [vmem:[#allocation2 + $0x178] sm:$0xf0] }
 0x31d   : > { %2708 = vmatmul.bf16.gmra.mxu3 %v10783_v14  ;;  %v8553_v42 = vor.u32 %v10832_v17, %v8550_v1 }
 0x31e   : > { %3156 = vmatpush.bf16.msra.mxu1 %v8461_v56  ;;  %3215 = vmatpush.bf16.msra.mxu3 %v8581_v52  ;;  %v10848_v56 = vld [vmem:[#allocation2 + $0x1f4] sm:$0xf] }
 0x31f   : > { %2621 = vmatmul.bf16.gmra.mxu0 %v10783_v14  ;;  %v8617_v35 = vor.u32 %v10848_v56, %v8614_v39  ;;  %v10824_v56 = vld [vmem:[#allocation2 + $0x134] sm:$0xf] }
 0x320   : > { %3128 = vmatpush.bf16.msra.mxu0 %v8389_v7  ;;  %v8422_v7 = vld [vmem:[#allocation2 + $0x78] sm:$0xf0]  ;;  %v10840_v39 = vld [vmem:[#allocation2 + $0x1b4] sm:$0xf] }
 0x321   : > { %2650 = vmatmul.bf16.gmra.mxu1 %v10783_v14  ;;  %v8508_v14 = vld [vmem:[#allocation2 + $0x120] sm:$0xf] }
 0x322   : > { %v8509_v0 = vor.u32 %v10823_v9, %v8508_v14  ;;  %3157 = vmatpush.bf16.msra.mxu1 %v8453_v48  ;;  %3216 = vmatpush.bf16.msra.mxu3 %v8573_v54  ;;  %v8425_v14 = vor.u32 %v10800_v32, %v8422_v7  ;;  %v8486_v9 = vld [vmem:[#allocation2 + $0xf8] sm:$0xf0]  ;;  %v10830_v48 = vld [vmem:[#allocation2 + $0x164] sm:$0xf]  ;;  %v8606_v54 = vld [vmem:[#allocation2 + $0x1e8] sm:$0xf0] }
 0x323   : > { %v8489_v53 = vor.u32 %v10816_v31, %v8486_v9  ;;  %v8390_v32 = vld [vmem:[#allocation2 + $0x38] sm:$0xf0]  ;;  %v10808_v31 = vld [vmem:[#allocation2 + $0xb4] sm:$0xf]  ;;  %v10822_v9 = vld [vmem:[#allocation2 + $0x124] sm:$0xf] }
 0x324   : > { %3187 = vmatpush.bf16.msra.mxu2 %v8509_v0  ;;  %v8542_v0 = vld [vmem:[#allocation2 + $0x168] sm:$0xf0] }
 0x325   : > { %v8545_v58 = vor.u32 %v10830_v48, %v8542_v0 }
 0x326   : > { %3158 = vmatpush.bf16.msra.mxu1 %v8445_v21  ;;  %3217 = vmatpush.bf16.msra.mxu3 %v8565_v10  ;;  %v8478_v21 = vld [vmem:[#allocation2 + $0xe8] sm:$0xf0] }
 0x328   : > { %3188 = vmatpush.bf16.msra.mxu2 %v8501_v60  ;;  %v8534_v60 = vld [vmem:[#allocation2 + $0x158] sm:$0xf0] }
 0x329   : > { %2684 = vmatmul.bf16.gmra.mxu2 %v14491_v41  ;;  %v8537_v10 = vor.u32 %v10828_v34, %v8534_v60  ;;  %v10820_v34 = vld [vmem:[#allocation2 + $0x114] sm:$0xf]  ;;  %v8502_v60 = vld [vmem:[#allocation2 + $0x118] sm:$0xf0] }
 0x32a   : > { %3159 = vmatpush.bf16.msra.mxu1 %v8437_v50  ;;  %3218 = vmatpush.bf16.msra.mxu3 %v8557_v46  ;;  %v10812_v46 = vld [vmem:[#allocation2 + $0xd4] sm:$0xf]  ;;  %v8505_v5 = vor.u32 %v10820_v34, %v8502_v60  ;;  %v10924_v34 = vld [vmem:[%s17764_s5 + $0x24c] sm:$0xf0] }
 0x32c   : > { %3189 = vmatpush.bf16.msra.mxu2 %v8493_v4 }
 0x32d   : > { %2713 = vmatmul.bf16.gmra.mxu3 %v14491_v41 }
 0x32e   : > { %3160 = vmatpush.bf16.msra.mxu1 %v8429_v19  ;;  %3327 = vmatpush.bf16.msrb.mxu3 %v8617_v35  ;;  %v8473_v19 = vor.u32 %v10812_v46, %v8470_v25  ;;  %v8438_v25 = vld [vmem:[#allocation2 + $0x98] sm:$0xf0] }
 0x32f   : > { %2626 = vmatmul.bf16.gmra.mxu0 %v14491_v41 }
 0x330   : > { %3298 = vmatpush.bf16.msrb.mxu2 %v8553_v42  ;;  %v8518_v42 = vld [vmem:[#allocation2 + $0x138] sm:$0xf0] }
 0x331   : > { %2655 = vmatmul.bf16.gmra.mxu1 %v14491_v41  ;;  %v10791_v41 = vld [vmem:[#allocation2 + $0x24] sm:$0xf0] }
 0x332   : > { %v8381_v18 = vor.u32 %v10791_v41, %v8380_v59  ;;  %v10846_v59 = vld [vmem:[#allocation2 + $0x1e4] sm:$0xf]  ;;  %3269 = vmatpush.bf16.msrb.mxu1 %v8489_v53 }
 0x333   : > { %v10798_v41 = vld [vmem:[#allocation2 + $0x64] sm:$0xf]  ;;  %v8609_v47 = vor.u32 %v10846_v59, %v8606_v54  ;;  %v8574_v54 = vld [vmem:[#allocation2 + $0x1a8] sm:$0xf0] }
 0x334   : > { %3129 = vmatpush.bf16.msra.mxu0 %v8381_v18  ;;  %v10814_v18 = vld [vmem:[#allocation2 + $0xe4] sm:$0xf]  ;;  %3299 = vmatpush.bf16.msrb.mxu2 %v8545_v58  ;;  %v8417_v27 = vor.u32 %v10798_v41, %v8414_v45  ;;  %v8510_v58 = vld [vmem:[#allocation2 + $0x128] sm:$0xf0] }
 0x335   : > { %v8481_v55 = vor.u32 %v10814_v18, %v8478_v21  ;;  %3328 = vmatpush.bf16.msrb.mxu3 %v8609_v47  ;;  %v10838_v59 = vld [vmem:[#allocation2 + $0x1a4] sm:$0xf]  ;;  %v8513_v47 = vor.u32 %v10822_v9, %v8510_v58  ;;  %v8382_v18 = vld [vmem:[#allocation2 + $0x28] sm:$0xf0] }
 0x336   : > { %v10790_v45 = vld [vmem:[#allocation2 + $0x24] sm:$0xf]  ;;  %v8577_v21 = vor.u32 %v10838_v59, %v8574_v54  ;;  %v8988_v54 = vld [vmem:[%s17764_s5 + $0x2e0] sm:$0xf] }
 0x337   : > { %3270 = vmatpush.bf16.msrb.mxu1 %v8481_v55  ;;  %v8446_v55 = vld [vmem:[#allocation2 + $0xa8] sm:$0xf0] }
 0x338   : > { %3130 = vmatpush.bf16.msra.mxu0 %v8373_v43  ;;  %v8601_v43 = vor.u32 %v10844_v51, %v8598_v33  ;;  %3300 = vmatpush.bf16.msrb.mxu2 %v8537_v10  ;;  %v8385_v51 = vor.u32 %v10790_v45, %v8382_v18  ;;  %v10836_v10 = vld [vmem:[#allocation2 + $0x194] sm:$0xf]  ;;  %v8566_v33 = vld [vmem:[#allocation2 + $0x198] sm:$0xf0]  ;;  %v8924_v18 = vld [vmem:[%s17764_s5 + $0x260] sm:$0xf] }
 0x339   : > { %2689 = vmatmul.bf16.gmra.mxu2 %v10785_v28 }
 0x33a   : > { %3329 = vmatpush.bf16.msrb.mxu3 %v8601_v43 }
 0x33b   : > { %3271 = vmatpush.bf16.msrb.mxu1 %v8473_v19 }
 0x33c   : > { %3131 = vmatpush.bf16.msra.mxu0 %v8365_v63  ;;  %v8526_v63 = vld [vmem:[#allocation2 + $0x148] sm:$0xf0] }
 0x33d   : > { %2718 = vmatmul.bf16.gmra.mxu3 %v10785_v28 }
 0x33f   : > { %2631 = vmatmul.bf16.gmra.mxu0 %v10785_v28 }
 0x340   : > { %3240 = vmatpush.bf16.msrb.mxu0 %v8425_v14  ;;  %v8454_v14 = vld [vmem:[#allocation2 + $0xb8] sm:$0xf0] }
 0x341   : > { %2660 = vmatmul.bf16.gmra.mxu1 %v10785_v28  ;;  %v8457_v41 = vor.u32 %v10808_v31, %v8454_v14 }
 0x344   : > { %3241 = vmatpush.bf16.msrb.mxu0 %v8417_v27  ;;  %v10806_v27 = vld [vmem:[#allocation2 + $0xa4] sm:$0xf] }
 0x348   : > { %3242 = vmatpush.bf16.msrb.mxu0 %v8409_v24 }
 0x38c   : > { %v2675_v2 = vpop.f32.mrf.mxu2  ;;  %v2617_v15 = vpop.f32.mrf.mxu0 }
 0x38e   : > { %v2646_v6 = vpop.f32.mrf.mxu1 }
 0x390   : > { %v2704_v61 = vpop.f32.mrf.mxu3 }
 0x394   : > { %v2677_v37 = vpop.f32.mrf.mxu2  ;;  %v2619_v29 = vpop.f32.mrf.mxu0 }
 0x395   : > { %v14500_v36 = vpack.c.bf16 %v2677_v37, %v2675_v2  ;;  %v14502_v20 = vpack.c.bf16 %v2619_v29, %v2617_v15  ;;  %v8529_v2 = vor.u32 %v10826_v13, %v8526_v63  ;;  %v10842_v15 = vld [vmem:[#allocation2 + $0x1c4] sm:$0xf]  ;;  %v8398_v29 = vld [vmem:[#allocation2 + $0x48] sm:$0xf0] }
 0x396   : > { %v2648_v62 = vpop.f32.mrf.mxu1  ;;  %v10818_v13 = vld [vmem:[#allocation2 + $0x104] sm:$0xf]  ;;  %v8494_v63 = vld [vmem:[#allocation2 + $0x108] sm:$0xf0] }
 0x397   : > { %3190 = vmatmul.bf16.vlgmr.msra.gmra.mxu2 %v14500_v36  ;;  %v14507_v12 = vpack.c.bf16 %v2648_v62, %v2646_v6  ;;  %3132 = vmatmul.bf16.vlgmr.msra.gmra.mxu0 %v14502_v20  ;;  %v10794_v6 = vld [vmem:[#allocation2 + $0x44] sm:$0xf]  ;;  %v8462_v62 = vld [vmem:[#allocation2 + $0xc8] sm:$0xf0] }
 0x398   : > { %v2706_v40 = vpop.f32.mrf.mxu3  ;;  %3301 = vmatpush.bf16.msrb.mxu2 %v8529_v2  ;;  %v8401_v17 = vor.u32 %v10794_v6, %v8398_v29  ;;  %v10834_v29 = vld [vmem:[#allocation2 + $0x184] sm:$0xf] }
 0x399   : > { %v14504_v23 = vpack.c.bf16 %v2706_v40, %v2704_v61  ;;  %3161 = vmatmul.bf16.vlgmr.msra.gmra.mxu1 %v14507_v12  ;;  %v8590_v61 = vld [vmem:[#allocation2 + $0x1c8] sm:$0xf0]  ;;  %v10810_v40 = vld [vmem:[#allocation2 + $0xc4] sm:$0xf] }
 0x39a   : > { %v8593_v37 = vor.u32 %v10842_v15, %v8590_v61  ;;  %v8465_v1 = vor.u32 %v10810_v40, %v8462_v62  ;;  %3243 = vmatpush.bf16.msrb.mxu0 %v8401_v17  ;;  %v8569_v15 = vor.u32 %v10836_v10, %v8566_v33  ;;  %v8558_v40 = vld [vmem:[#allocation2 + $0x188] sm:$0xf0]  ;;  %v8441_v62 = vor.u32 %v10804_v16, %v8438_v25  ;;  %v10920_v10 = vld [vmem:[%s17764_s5 + $0x22c] sm:$0xf0]  ;;  %v8876_v33 = vld [vmem:[%s17764_s5 + $0x200] sm:$0xf] }
 0x39b   : > { %3219 = vmatmul.bf16.vlgmr.msra.gmra.mxu3 %v14504_v23  ;;  %v8497_v17 = vor.u32 %v10818_v13, %v8494_v63 }
 0x39c   : > { %v2680_v52 = vpop.f32.mrf.mxu2  ;;  %v2622_v28 = vpop.f32.mrf.mxu0  ;;  %3330 = vmatpush.bf16.msrb.mxu3 %v8593_v37  ;;  %3272 = vmatpush.bf16.msrb.mxu1 %v8465_v1  ;;  %v10786_v1 = vld [vmem:[#allocation2 + $0x4] sm:$0xf] }
 0x39e   : > { %v2651_v22 = vpop.f32.mrf.mxu1 }
 0x3a0   : > { %v2709_v57 = vpop.f32.mrf.mxu3  ;;  %3273 = vmatpush.bf16.msrb.mxu1 %v8457_v41  ;;  %v8940_v41 = vld [vmem:[%s17764_s5 + $0x280] sm:$0xf] }
 0x3a4   : > { %v2682_v11 = vpop.f32.mrf.mxu2  ;;  %v2624_v44 = vpop.f32.mrf.mxu0 }
 0x3a5   : > { %v14512_v8 = vpack.c.bf16 %v2682_v11, %v2680_v52  ;;  %v14514_v30 = vpack.c.bf16 %v2624_v44, %v2622_v28  ;;  %v8521_v28 = vor.u32 %v10824_v56, %v8518_v42  ;;  %v10788_v11 = vld [vmem:[#allocation2 + $0x14] sm:$0xf]  ;;  %v8374_v44 = vld [vmem:[#allocation2 + $0x18] sm:$0xf0]  ;;  %v8366_v56 = vld [vmem:[#allocation2 + $0x8] sm:$0xf0] }
 0x3a6   : > { %v2653_v50 = vpop.f32.mrf.mxu1  ;;  %v8377_v61 = vor.u32 %v10788_v11, %v8374_v44  ;;  %v10802_v42 = vld [vmem:[#allocation2 + $0x84] sm:$0xf]  ;;  %v10916_v44 = vld [vmem:[%s17764_s5 + $0x20c] sm:$0xf0] }
 0x3a7   : > { %3195 = vmatmul.bf16.gmra.mxu2 %v14512_v8  ;;  %v14519_v38 = vpack.c.bf16 %v2653_v50, %v2651_v22  ;;  %3137 = vmatmul.bf16.gmra.mxu0 %v14514_v30  ;;  %v10792_v22 = vld [vmem:[#allocation2 + $0x34] sm:$0xf]  ;;  %v8449_v50 = vor.u32 %v10806_v27, %v8446_v55  ;;  %v8908_v27 = vld [vmem:[%s17764_s5 + $0x240] sm:$0xf] }
 0x3a8   : > { %v2711_v26 = vpop.f32.mrf.mxu3  ;;  %v8393_v53 = vor.u32 %v10792_v22, %v8390_v32  ;;  %3302 = vmatpush.bf16.msrb.mxu2 %v8521_v28  ;;  %v8909_v60 = vor.u32 %v10924_v34, %v8908_v27 }
 0x3a9   : > { %v14516_v4 = vpack.c.bf16 %v2711_v26, %v2709_v57  ;;  %3166 = vmatmul.bf16.gmra.mxu1 %v14519_v38  ;;  %v8582_v57 = vld [vmem:[#allocation2 + $0x1b8] sm:$0xf0] }
 0x3aa   : > { %v8585_v7 = vor.u32 %v10840_v39, %v8582_v57  ;;  %3244 = vmatpush.bf16.msrb.mxu0 %v8393_v53  ;;  %3274 = vmatpush.bf16.msrb.mxu1 %v8449_v50  ;;  %v8561_v39 = vor.u32 %v10834_v29, %v8558_v40 }
 0x3ab   : > { %3224 = vmatmul.bf16.gmra.mxu3 %v14516_v4 }
 0x3ac   : > { %v2685_v35 = vpop.f32.mrf.mxu2  ;;  %v2627_v52 = vpop.f32.mrf.mxu0  ;;  %3331 = vmatpush.bf16.msrb.mxu3 %v8585_v7  ;;  %3303 = vmatpush.bf16.msrb.mxu2 %v8513_v47  ;;  %v10932_v47 = vld [vmem:[%s17764_s5 + $0x28c] sm:$0xf0] }
 0x3ad   : > { %v8941_v45 = vor.u32 %v10932_v47, %v8940_v41 }
 0x3ae   : > { %v2656_v0 = vpop.f32.mrf.mxu1  ;;  %3245 = vmatpush.bf16.msrb.mxu0 %v8385_v51  ;;  %3275 = vmatpush.bf16.msrb.mxu1 %v8441_v62  ;;  %v8892_v51 = vld [vmem:[%s17764_s5 + $0x220] sm:$0xf] }
 0x3af   : > { %v8893_v11 = vor.u32 %v10920_v10, %v8892_v51  ;;  %v10874_v51 = vld [vmem:[%s17764_s5 + $0xc4] sm:$0xf]  ;;  %v8718_v10 = vld [vmem:[%s17764_s5 + $0xd0] sm:$0xf0] }
 0x3b0   : > { %v2714_v48 = vpop.f32.mrf.mxu3  ;;  %3332 = vmatpush.bf16.msrb.mxu3 %v8577_v21  ;;  %3304 = vmatpush.bf16.msrb.mxu2 %v8505_v5  ;;  %v10928_v21 = vld [vmem:[%s17764_s5 + $0x26c] sm:$0xf0] }
 0x3b1   : > { %v8925_v55 = vor.u32 %v10928_v21, %v8924_v18  ;;  %v9100_v18 = vld [vmem:[%s17764_s5 + $0x3c0] sm:$0xf]  ;;  %v10972_v21 = vld [vmem:[%s17764_s5 + $0x3cc] sm:$0xf0] }
 0x3b2   : > { %3246 = vmatpush.bf16.msrb.mxu0 %v8377_v61  ;;  %v8716_v61 = vld [vmem:[%s17764_s5 + $0xc0] sm:$0xf] }
 0x3b4   : > { %v2687_v43 = vpop.f32.mrf.mxu2  ;;  %v2629_v26 = vpop.f32.mrf.mxu0  ;;  %3333 = vmatpush.bf16.msrb.mxu3 %v8569_v15  ;;  %3305 = vmatpush.bf16.msrb.mxu2 %v8497_v17 }
 0x3b5   : > { %v14524_v46 = vpack.c.bf16 %v2687_v43, %v2685_v35  ;;  %v14526_v24 = vpack.c.bf16 %v2629_v26, %v2627_v52  ;;  %v8369_v35 = vor.u32 %v10786_v1, %v8366_v56  ;;  %v8430_v52 = vld [vmem:[#allocation2 + $0x88] sm:$0xf0]  ;;  %v8877_v43 = vor.u32 %v10916_v44, %v8876_v33  ;;  %v8652_v33 = vld [vmem:[%s17764_s5 + $0x40] sm:$0xf] }
 0x3b6   : > { %v2658_v2 = vpop.f32.mrf.mxu1  ;;  %v8433_v22 = vor.u32 %v10802_v42, %v8430_v52  ;;  %v8721_v44 = vor.u32 %v10874_v51, %v8718_v10 }
 0x3b7   : > { %3200 = vmatmul.bf16.gmra.mxu2 %v14524_v46  ;;  %v14531_v37 = vpack.c.bf16 %v2658_v2, %v2656_v0  ;;  %3142 = vmatmul.bf16.gmra.mxu0 %v14526_v24  ;;  %v10880_v2 = vld [vmem:[%s17764_s5 + $0xec] sm:$0xf0] }
 0x3b8   : > { %v2716_v19 = vpop.f32.mrf.mxu3  ;;  %3334 = vmatpush.bf16.msrb.mxu3 %v8561_v39  ;;  %3247 = vmatpush.bf16.msrb.mxu0 %v8369_v35 }
 0x3b9   : > { %v14528_v6 = vpack.c.bf16 %v2716_v19, %v2714_v48  ;;  %3171 = vmatmul.bf16.gmra.mxu1 %v14531_v37  ;;  %v8732_v19 = vld [vmem:[%s17764_s5 + $0xe0] sm:$0xf] }
 0x3ba   : > { %3276 = vmatpush.bf16.msrb.mxu1 %v8433_v22  ;;  %v8733_v15 = vor.u32 %v10880_v2, %v8732_v19  ;;  %v10872_v22 = vld [vmem:[%s17764_s5 + $0xac] sm:$0xf0]  ;;  %v9084_v2 = vld [vmem:[%s17764_s5 + $0x3a0] sm:$0xf] }
 0x3bb   : > { %3229 = vmatmul.bf16.gmra.mxu3 %v14528_v6 }
 0x3bc   : > { %v2690_v28 = vpop.f32.mrf.mxu2  ;;  %v2632_v57 = vpop.f32.mrf.mxu0  ;;  %4750 = vmatpush.bf16.msra.mxu0 %v8733_v15  ;;  %v10968_v15 = vld [vmem:[%s17764_s5 + $0x3ac] sm:$0xf0] }
 0x3be   : > { %v2661_v7 = vpop.f32.mrf.mxu1 }
 0x3c0   : > { %v2719_v32 = vpop.f32.mrf.mxu3 }
 0x3c4   : > { %v2692_v31 = vpop.f32.mrf.mxu2  ;;  %v2634_v14 = vpop.f32.mrf.mxu0 }
 0x3c5   : > { %v2738_v9 = vpack.c.bf16 %v2692_v31, %v2690_v28  ;;  %v2736_v48 = vpack.c.bf16 %v2634_v14, %v2632_v57  ;;  %v8700_v57 = vld [vmem:[%s17764_s5 + $0xa0] sm:$0xf]  ;;  %v10868_v31 = vld [vmem:[%s17764_s5 + $0x8c] sm:$0xf0] }
 0x3c6   : > { %v2663_v53 = vpop.f32.mrf.mxu1 }
 0x3c7   : > { %3205 = vmatmul.bf16.gmra.mxu2 %v2738_v9  ;;  %v2737_v59 = vpack.c.bf16 %v2663_v53, %v2661_v7  ;;  %3147 = vmatmul.bf16.gmra.mxu0 %v2736_v48  ;;  %v8684_v7 = vld [vmem:[%s17764_s5 + $0x80] sm:$0xf] }
 0x3c8   : > { %v2721_v0 = vpop.f32.mrf.mxu3 }
 0x3c9   : > { %v2739_v58 = vpack.c.bf16 %v2721_v0, %v2719_v32  ;;  %3176 = vmatmul.bf16.gmra.mxu1 %v2737_v59  ;;  %v8701_v32 = vor.u32 %v10872_v22, %v8700_v57  ;;  %v9068_v57 = vld [vmem:[%s17764_s5 + $0x380] sm:$0xf]  ;;  %v10964_v22 = vld [vmem:[%s17764_s5 + $0x38c] sm:$0xf0] }
 0x3cb   : > { %3234 = vmatmul.bf16.gmra.mxu3 %v2739_v58 }
 0x3d7   : > { %3306 = vmatmul.bf16.vlgmr.msrb.gmra.mxu2 %v14500_v36  ;;  %3248 = vmatmul.bf16.vlgmr.msrb.gmra.mxu0 %v14502_v20  ;;  %v10944_v36 = vld [vmem:[%s17764_s5 + $0x2ec] sm:$0xf0]  ;;  %v8972_v20 = vld [vmem:[%s17764_s5 + $0x2c0] sm:$0xf] }
 0x3d9   : > { %3277 = vmatmul.bf16.vlgmr.msrb.gmra.mxu1 %v14507_v12  ;;  %v10940_v12 = vld [vmem:[%s17764_s5 + $0x2cc] sm:$0xf0] }
 0x3db   : > { %3335 = vmatmul.bf16.vlgmr.msrb.gmra.mxu3 %v14504_v23  ;;  %v8989_v23 = vor.u32 %v10944_v36, %v8988_v54 }
 0x3dd   : > { %4808 = vmatpush.bf16.msra.mxu2 %v8989_v23  ;;  %v9116_v23 = vld [vmem:[%s17764_s5 + $0x3e0] sm:$0xf] }
 0x3e7   : > { %3311 = vmatmul.bf16.gmra.mxu2 %v14512_v8  ;;  %3253 = vmatmul.bf16.gmra.mxu0 %v14514_v30  ;;  %v8973_v8 = vor.u32 %v10940_v12, %v8972_v20  ;;  %v8956_v30 = vld [vmem:[%s17764_s5 + $0x2a0] sm:$0xf]  ;;  %v10976_v12 = vld [vmem:[%s17764_s5 + $0x3ec] sm:$0xf0] }
 0x3e9   : > { %3282 = vmatmul.bf16.gmra.mxu1 %v14519_v38  ;;  %4809 = vmatpush.bf16.msra.mxu2 %v8973_v8  ;;  %v9117_v8 = vor.u32 %v10976_v12, %v9116_v23  ;;  %v10960_v23 = vld [vmem:[%s17764_s5 + $0x36c] sm:$0xf0]  ;;  %v10862_v12 = vld [vmem:[%s17764_s5 + $0x64] sm:$0xf] }
 0x3eb   : > { %3340 = vmatmul.bf16.gmra.mxu3 %v14516_v4  ;;  %v10936_v4 = vld [vmem:[%s17764_s5 + $0x2ac] sm:$0xf0] }
 0x3ec   : > { %v8957_v38 = vor.u32 %v10936_v4, %v8956_v30  ;;  %v10878_v30 = vld [vmem:[%s17764_s5 + $0xe4] sm:$0xf]  ;;  %v8734_v4 = vld [vmem:[%s17764_s5 + $0xf0] sm:$0xf0]  ;;  %4837 = vmatpush.bf16.msra.mxu3 %v9117_v8 }
 0x3ed   : > { %v8737_v47 = vor.u32 %v10878_v30, %v8734_v4  ;;  %v8670_v8 = vld [vmem:[%s17764_s5 + $0x70] sm:$0xf0] }
 0x3ee   : > { %4810 = vmatpush.bf16.msra.mxu2 %v8957_v38  ;;  %v8668_v38 = vld [vmem:[%s17764_s5 + $0x60] sm:$0xf] }
 0x3f2   : > { %4811 = vmatpush.bf16.msra.mxu2 %v8941_v45  ;;  %v10864_v45 = vld [vmem:[%s17764_s5 + $0x6c] sm:$0xf0] }
 0x3f3   : > { %v8669_v34 = vor.u32 %v10864_v45, %v8668_v38  ;;  %v10956_v45 = vld [vmem:[%s17764_s5 + $0x34c] sm:$0xf0] }
 0x3f6   : > { %4812 = vmatpush.bf16.msra.mxu2 %v8925_v55 }
 0x3f7   : > { %3316 = vmatmul.bf16.gmra.mxu2 %v14524_v46  ;;  %3258 = vmatmul.bf16.gmra.mxu0 %v14526_v24 }
 0x3f9   : > { %3287 = vmatmul.bf16.gmra.mxu1 %v14531_v37 }
 0x3fa   : > { %4813 = vmatpush.bf16.msra.mxu2 %v8909_v60  ;;  %v9101_v60 = vor.u32 %v10972_v21, %v9100_v18 }
 0x3fb   : > { %3345 = vmatmul.bf16.gmra.mxu3 %v14528_v6  ;;  %v10876_v6 = vld [vmem:[%s17764_s5 + $0xcc] sm:$0xf0] }
 0x3fc   : > { %v8717_v29 = vor.u32 %v10876_v6, %v8716_v61  ;;  %4838 = vmatpush.bf16.msra.mxu3 %v9101_v60  ;;  %v10870_v61 = vld [vmem:[%s17764_s5 + $0xa4] sm:$0xf] }
 0x3fe   : > { %4814 = vmatpush.bf16.msra.mxu2 %v8893_v11  ;;  %4751 = vmatpush.bf16.msra.mxu0 %v8717_v29  ;;  %v8702_v29 = vld [vmem:[%s17764_s5 + $0xb0] sm:$0xf0] }
 0x402   : > { %4815 = vmatpush.bf16.msra.mxu2 %v8877_v43  ;;  %4752 = vmatpush.bf16.msra.mxu0 %v8701_v32  ;;  %v10860_v43 = vld [vmem:[%s17764_s5 + $0x4c] sm:$0xf0]  ;;  %v10866_v32 = vld [vmem:[%s17764_s5 + $0x84] sm:$0xf] }
 0x406   : > { %4924 = vmatpush.bf16.msrb.mxu2 %v8737_v47  ;;  %v9036_v47 = vld [vmem:[%s17764_s5 + $0x340] sm:$0xf] }
 0x407   : > { %3321 = vmatmul.bf16.gmra.mxu2 %v2738_v9  ;;  %3263 = vmatmul.bf16.gmra.mxu0 %v2736_v48  ;;  %v8685_v48 = vor.u32 %v10868_v31, %v8684_v7  ;;  %v9069_v31 = vor.u32 %v10964_v22, %v9068_v57 }
 0x409   : > { %3292 = vmatmul.bf16.gmra.mxu1 %v2737_v59  ;;  %4753 = vmatpush.bf16.msra.mxu0 %v8685_v48  ;;  %v10852_v48 = vld [vmem:[%s17764_s5 + $0xc] sm:$0xf0] }
 0x40a   : > { %4925 = vmatpush.bf16.msrb.mxu2 %v8721_v44 }
 0x40b   : > { %3350 = vmatmul.bf16.gmra.mxu3 %v2739_v58 }
 0x40d   : > { %4754 = vmatpush.bf16.msra.mxu0 %v8669_v34  ;;  %v8654_v34 = vld [vmem:[%s17764_s5 + $0x50] sm:$0xf0] }
 0x414   : > { %v3133_v26 = vpop.f32.mrf.mxu0 }
 0x416   : > { %v3162_v50 = vpop.f32.mrf.mxu1 }
 0x417   : > { %v3163_v16 = vadd.f32 %v3162_v50, %v3133_v26 }
 0x41a   : > { %v3191_v5 = vpop.f32.mrf.mxu2 }
 0x41b   : > { %v3192_v13 = vadd.f32 %v3191_v5, %v3163_v16  ;;  %v8653_v5 = vor.u32 %v10860_v43, %v8652_v33  ;;  %v9037_v33 = vor.u32 %v10956_v45, %v9036_v47 }
 0x41c   : > { %v3135_v24 = vpop.f32.mrf.mxu0 }
 0x41d   : > { %4755 = vmatpush.bf16.msra.mxu0 %v8653_v5  ;;  %v9020_v5 = vld [vmem:[%s17764_s5 + $0x320] sm:$0xf] }
 0x41e   : > { %v3220_v46 = vpop.f32.mrf.mxu3  ;;  %v3164_v25 = vpop.f32.mrf.mxu1 }
 0x41f   : > { %v3165_v63 = vadd.f32 %v3164_v25, %v3135_v24  ;;  %v14608_v40 = vadd.f32 %v3220_v46, %v3192_v13 }
 0x421   : > { %v3516_v39 = vrot.slane %v14608_v40, 1 }
 0x422   : > { %v3193_v37 = vpop.f32.mrf.mxu2 }
 0x423   : > { %v3194_v62 = vadd.f32 %v3193_v37, %v3165_v63  ;;  %v9085_v37 = vor.u32 %v10968_v15, %v9084_v2  ;;  %v8638_v2 = vld [vmem:[%s17764_s5 + $0x30] sm:$0xf0]  ;;  %v9004_v15 = vld [vmem:[%s17764_s5 + $0x300] sm:$0xf] }
 0x424   : > { %v3138_v1 = vpop.f32.mrf.mxu0 }
 0x425   : > { %4839 = vmatpush.bf16.msra.mxu3 %v9085_v37 }
 0x426   : > { %v3222_v17 = vpop.f32.mrf.mxu3  ;;  %v3167_v42 = vpop.f32.mrf.mxu1 }
 0x427   : > { %v14610_v56 = vadd.f32 %v3222_v17, %v3194_v62  ;;  %v3168_v28 = vadd.f32 %v3167_v42, %v3138_v1  ;;  %v8636_v62 = vld [vmem:[%s17764_s5 + $0x20] sm:$0xf]  ;;  %v10856_v17 = vld [vmem:[%s17764_s5 + $0x2c] sm:$0xf0] }
 0x429   : > { %v3518_v35 = vrot.slane %v14610_v56, 1  ;;  %v14616_v52 = vpack.c.bf16 %v14610_v56, %v14608_v40  ;;  %4840 = vmatpush.bf16.msra.mxu3 %v9069_v31 }
 0x42a   : > { %v3196_v9 = vpop.f32.mrf.mxu2 }
 0x42b   : > { %18341 = vst [vmem:[#allocation30_spill] sm:$0xff] %v14616_v52  ;;  %v3544_v14 = vsel %vm798_vm1, %v3516_v39, %v3518_v35  ;;  %4816 = vmatmul.bf16.vlgmr.msra.gmra.mxu2 %v14616_v52  ;;  %v3197_v0 = vadd.f32 %v3196_v9, %v3168_v28  ;;  %v8637_v28 = vor.u32 %v10856_v17, %v8636_v62  ;;  %v8620_v9 = vld [vmem:[%s17764_s5] sm:$0xf]  ;;  %v8622_v62 = vld [vmem:[%s17764_s5 + $0x10] sm:$0xf0] }
 0x42c   : > { %v3140_v58 = vpop.f32.mrf.mxu0 }
 0x42d   : > { %4756 = vmatpush.bf16.msra.mxu0 %v8637_v28 }
 0x42e   : > { %v3225_v53 = vpop.f32.mrf.mxu3  ;;  %v3169_v54 = vpop.f32.mrf.mxu1 }
 0x42f   : > { %v14635_v59 = vadd.f32 %v3225_v53, %v3197_v0  ;;  %v3170_v20 = vadd.f32 %v3169_v54, %v3140_v58  ;;  %v8621_v58 = vor.u32 %v10852_v48, %v8620_v9  ;;  %v3360_v9 = vand.u32 15, %v18140_v49 }
 0x431   : > { %v3520_v36 = vrot.slane %v14635_v59, 1  ;;  %4757 = vmatpush.bf16.msra.mxu0 %v8621_v58  ;;  %vm11252_vm6 = vcmp.ne.s32.totalorder %v3360_v9, 0 }
 0x432   : > { %v3198_v55 = vpop.f32.mrf.mxu2  ;;  %vm14817_vm8 = vmpackc.low %vm11694_vm3, %vm11252_vm6 }
 0x433   : > { %v3542_v41 = vsel %vm798_vm1, %v3518_v35, %v3520_v36  ;;  %v3199_v11 = vadd.f32 %v3198_v55, %v3170_v20  ;;  %v8705_v35 = vor.u32 %v10870_v61, %v8702_v29  ;;  %v9052_v20 = vld [vmem:[%s17764_s5 + $0x360] sm:$0xf]  ;;  %v10858_v55 = vld [vmem:[%s17764_s5 + $0x44] sm:$0xf]  ;;  %v10948_v61 = vld [vmem:[%s17764_s5 + $0x30c] sm:$0xf0] }
 0x434   : > { %v14664_v27 = vpack.c.bf16 %v3542_v41, %v3544_v14  ;;  %v3143_v50 = vpop.f32.mrf.mxu0  ;;  %v8686_v14 = vld [vmem:[%s17764_s5 + $0x90] sm:$0xf0]  ;;  %v9053_v30 = vor.u32 %v10960_v23, %v9052_v20  ;;  %v8673_v41 = vor.u32 %v10862_v12, %v8670_v8  ;;  %v8657_v44 = vor.u32 %v10858_v55, %v8654_v34  ;;  %v10850_v29 = vld [vmem:[%s17764_s5 + $0x4] sm:$0xf] }
 0x435   : > { %4926 = vmatpush.bf16.msrb.mxu2 %v8705_v35  ;;  %v8689_v53 = vor.u32 %v10866_v32, %v8686_v14  ;;  %v9005_v35 = vor.u32 %v10948_v61, %v9004_v15  ;;  %v8625_v57 = vor.u32 %v10850_v29, %v8622_v62  ;;  %v3460_v23 = vrot.slane %v14608_v40, 7  ;;  %v9228_v15 = vld [vmem:[%s17764_s5 + $0x4c0] sm:$0xf]  ;;  %v11004_v61 = vld [vmem:[%s17764_s5 + $0x4cc] sm:$0xf0] }
 0x436   : > { %v3227_v26 = vpop.f32.mrf.mxu3  ;;  %v3172_v46 = vpop.f32.mrf.mxu1  ;;  %4841 = vmatpush.bf16.msra.mxu3 %v9053_v30 }
 0x437   : > { %v14678_v16 = vadd.f32 %v3227_v26, %v3199_v11  ;;  %v3173_v13 = vadd.f32 %v3172_v46, %v3143_v50  ;;  %v10952_v46 = vld [vmem:[%s17764_s5 + $0x32c] sm:$0xf0] }
 0x439   : > { %v3522_v24 = vrot.slane %v14678_v16, 1  ;;  %v14683_v25 = vpack.c.bf16 %v14678_v16, %v14635_v59  ;;  %4927 = vmatpush.bf16.msrb.mxu2 %v8689_v53 }
 0x43a   : > { %v3201_v19 = vpop.f32.mrf.mxu2  ;;  %4842 = vmatpush.bf16.msra.mxu3 %v9037_v33 }
 0x43b   : > { %18342 = vst [vmem:[#allocation31_spill] sm:$0xff] %v14683_v25  ;;  %4821 = vmatmul.bf16.gmra.mxu2 %v14683_v25  ;;  %v3540_v63 = vsel %vm798_vm1, %v3520_v36, %v3522_v24  ;;  %v3202_v6 = vadd.f32 %v3201_v19, %v3173_v13  ;;  %v9021_v19 = vor.u32 %v10952_v46, %v9020_v5  ;;  %v10912_v5 = vld [vmem:[%s17764_s5 + $0x1ec] sm:$0xf0] }
 0x43c   : > { %v3145_v42 = vpop.f32.mrf.mxu0 }
 0x43d   : > { %4928 = vmatpush.bf16.msrb.mxu2 %v8673_v41  ;;  %v9332_v41 = vld [vmem:[%s17764_s5 + $0x588] sm:$0xf] }
 0x43e   : > { %v3230_v1 = vpop.f32.mrf.mxu3  ;;  %v3174_v0 = vpop.f32.mrf.mxu1  ;;  %4843 = vmatpush.bf16.msra.mxu3 %v9021_v19 }
 0x43f   : > { %v14715_v7 = vadd.f32 %v3230_v1, %v3202_v6  ;;  %v3175_v36 = vadd.f32 %v3174_v0, %v3145_v42 }
 0x441   : > { %v3524_v54 = vrot.slane %v14715_v7, 1  ;;  %4929 = vmatpush.bf16.msrb.mxu2 %v8657_v44 }
 0x442   : > { %v3203_v38 = vpop.f32.mrf.mxu2  ;;  %4844 = vmatpush.bf16.msra.mxu3 %v9005_v35  ;;  %v3464_v35 = vrot.slane %v14635_v59, 7 }
 0x443   : > { %v3538_v4 = vsel %vm798_vm1, %v3522_v24, %v3524_v54  ;;  %v3204_v21 = vadd.f32 %v3203_v38, %v3175_v36  ;;  %v10854_v24 = vld [vmem:[%s17764_s5 + $0x24] sm:$0xf] }
 0x444   : > { %v14747_v18 = vpack.c.bf16 %v3538_v4, %v3540_v63  ;;  %v3148_v51 = vpop.f32.mrf.mxu0  ;;  %v8641_v37 = vor.u32 %v10854_v24, %v8638_v2  ;;  %v9244_v24 = vld [vmem:[%s17764_s5 + $0x4e0] sm:$0xf]  ;;  %v10908_v2 = vld [vmem:[%s17764_s5 + $0x1cc] sm:$0xf0] }
 0x446   : > { %v3232_v60 = vpop.f32.mrf.mxu3  ;;  %v3177_v11 = vpop.f32.mrf.mxu1  ;;  %4930 = vmatpush.bf16.msrb.mxu2 %v8641_v37 }
 0x447   : > { %v14755_v10 = vadd.f32 %v3232_v60, %v3204_v21  ;;  %v3178_v50 = vadd.f32 %v3177_v11, %v3148_v51  ;;  %v495_v51 = vadd.s32 16, %v18140_v49 }
 0x449   : > { %v3526_v43 = vrot.slane %v14755_v10, 1  ;;  %v14760_v26 = vpack.c.bf16 %v14755_v10, %v14715_v7 }
 0x44a   : > { %v3206_v63 = vpop.f32.mrf.mxu2  ;;  %4931 = vmatpush.bf16.msrb.mxu2 %v8625_v57 }
 0x44b   : > { %18343 = vst [vmem:[#allocation57_spill] sm:$0xff] %v14760_v26  ;;  %4826 = vmatmul.bf16.gmra.mxu2 %v14760_v26  ;;  %v3536_v13 = vsel %vm798_vm1, %v3524_v54, %v3526_v43  ;;  %v3207_v6 = vadd.f32 %v3206_v63, %v3178_v50  ;;  %v3462_v54 = vrot.slane %v14610_v56, 7  ;;  %v3374_v50 = vand.u32 15, %v495_v51  ;;  %v8844_v63 = vld [vmem:[%s17764_s5 + $0x1c0] sm:$0xf] }
 0x44c   : > { %v3150_v1 = vpop.f32.mrf.mxu0  ;;  %v8845_v29 = vor.u32 %v10908_v2, %v8844_v63  ;;  %v9196_v51 = vld [vmem:[%s17764_s5 + $0x480] sm:$0xf]  ;;  %v8862_v63 = vld [vmem:[%s17764_s5 + $0x1f0] sm:$0xf0]  ;;  %v11006_v2 = vld [vmem:[%s17764_s5 + $0x4e4] sm:$0xf] }
 0x44d   : > { %v3488_v4 = vsel %vm733_vm0, %v3460_v23, %v3462_v54  ;;  %vm11253_vm9 = vcmp.ne.s32.totalorder %v3374_v50, 0 }
 0x44e   : > { %v3235_v17 = vpop.f32.mrf.mxu3  ;;  %v3179_v28 = vpop.f32.mrf.mxu1  ;;  %vm14876_vm10 = vmpackc.low %vm11694_vm3, %vm11253_vm9 }
 0x44f   : > { %v14789_v42 = vadd.f32 %v3235_v17, %v3207_v6  ;;  %v3180_v32 = vadd.f32 %v3179_v28, %v3150_v1  ;;  %v3466_v6 = vrot.slane %v14678_v16, 7  ;;  %v9229_v1 = vor.u32 %v11004_v61, %v9228_v15  ;;  %v9246_v15 = vld [vmem:[%s17764_s5 + $0x4f0] sm:$0xf0] }
 0x450   : > { %v8830_v16 = vld [vmem:[%s17764_s5 + $0x1b0] sm:$0xf0] }
 0x451   : > { %v3528_v22 = vrot.slane %v14789_v42, 1 }
 0x452   : > { %v3208_v14 = vpop.f32.mrf.mxu2 }
 0x453   : > { %v3534_v31 = vsel %vm798_vm1, %v3526_v43, %v3528_v22  ;;  %v3209_v0 = vadd.f32 %v3208_v14, %v3180_v32 }
 0x454   : > { %v14795_v48 = vpack.c.bf16 %v3534_v31, %v3536_v13  ;;  %v3249_v58 = vpop.f32.mrf.mxu0  ;;  %v11008_v13 = vld [vmem:[%s17764_s5 + $0x4ec] sm:$0xf0]  ;;  %v3484_v31 = vsel %vm733_vm0, %v3464_v35, %v3466_v6 }
 0x455   : > { %v9245_v19 = vor.u32 %v11008_v13, %v9244_v24  ;;  %v10910_v13 = vld [vmem:[%s17764_s5 + $0x1e4] sm:$0xf] }
 0x456   : > { %v3237_v53 = vpop.f32.mrf.mxu3  ;;  %v3278_v20 = vpop.f32.mrf.mxu1 }
 0x457   : > { %v14798_v36 = vadd.f32 %v3237_v53, %v3209_v0  ;;  %v3279_v60 = vadd.f32 %v3278_v20, %v3249_v58  ;;  %4866 = vmatpush.bf16.msrb.mxu0 %v9245_v19  ;;  %v8828_v58 = vld [vmem:[%s17764_s5 + $0x1a0] sm:$0xf]  ;;  %v10904_v20 = vld [vmem:[%s17764_s5 + $0x1ac] sm:$0xf0]  ;;  %v8865_v19 = vor.u32 %v10910_v13, %v8862_v63 }
 0x459   : > { %v3474_v12 = vrot.slane %v14798_v36, 7  ;;  %v3530_v8 = vrot.slane %v14798_v36, 1  ;;  %v14805_v30 = vpack.c.bf16 %v14798_v36, %v14789_v42  ;;  %4953 = vmatpush.bf16.msrb.mxu3 %v8865_v19  ;;  %v9270_v19 = vld [vmem:[%s17764_s5 + $0x518] sm:$0xf0] }
 0x45a   : > { %v3307_v55 = vpop.f32.mrf.mxu2 }
 0x45b   : > { %18344 = vst [vmem:[#allocation46_spill] sm:$0xff] %v14805_v30  ;;  %v3490_v38 = vsel %vm733_vm0, %v3474_v12, %v3460_v23  ;;  %4831 = vmatmul.bf16.gmra.mxu2 %v14805_v30  ;;  %v3532_v47 = vsel %vm798_vm1, %v3528_v22, %v3530_v8  ;;  %v3546_v45 = vsel %vm798_vm1, %v3530_v8, %v3516_v39  ;;  %v8860_v39 = vld [vmem:[%s17764_s5 + $0x1e0] sm:$0xf] }
 0x45c   : > { %v14827_v21 = vpack.c.bf16 %v3488_v4, %v3490_v38  ;;  %v14829_v34 = vpack.c.bf16 %v3546_v45, %v3532_v47  ;;  %v3251_v11 = vpop.f32.mrf.mxu0  ;;  %v3308_v43 = vadd.f32 %v3307_v55, %v3279_v60  ;;  %v8861_v46 = vor.u32 %v10912_v5, %v8860_v39  ;;  %4867 = vmatpush.bf16.msrb.mxu0 %v9229_v1  ;;  %v9212_v8 = vld [vmem:[%s17764_s5 + $0x4a0] sm:$0xf]  ;;  %v11000_v4 = vld [vmem:[%s17764_s5 + $0x4ac] sm:$0xf0] }
 0x45d   : > { %v8829_v23 = vor.u32 %v10904_v20, %v8828_v58  ;;  %v8812_v38 = vld [vmem:[%s17764_s5 + $0x180] sm:$0xf]  ;;  %v3486_v45 = vsel %vm733_vm0, %v3462_v54, %v3464_v35  ;;  %v9213_v55 = vor.u32 %v11000_v4, %v9212_v8  ;;  %v10900_v60 = vld [vmem:[%s17764_s5 + $0x18c] sm:$0xf0]  ;;  %v18350_v35 = vld [vmem:[#allocation17_spill] sm:$0xff] }
 0x45e   : > { %18347 = vst [vmem:[#allocation38_spill] sm:$0xff] %v14829_v34  ;;  %v3336_v33 = vpop.f32.mrf.mxu3  ;;  %9389 = vmatmul.msk.bf16.vlgmr.msra.gmra.mxu0 %vm14817_vm8, %v14827_v21  ;;  %v3280_v44 = vpop.f32.mrf.mxu1  ;;  %4779 = vmatpush.bf16.msra.mxu1 %v8861_v46  ;;  %v8813_v56 = vor.u32 %v10900_v60, %v8812_v38  ;;  %v9180_v1 = vld [vmem:[%s17764_s5 + $0x460] sm:$0xf]  ;;  %v10906_v58 = vld [vmem:[%s17764_s5 + $0x1c4] sm:$0xf] }
 0x45f   : > { %v3281_v40 = vadd.f32 %v3280_v44, %v3251_v11  ;;  %v14860_v62 = vadd.f32 %v3336_v33, %v3308_v43  ;;  %v10996_v33 = vld [vmem:[%s17764_s5 + $0x48c] sm:$0xf0]  ;;  %v14916_v44 = vpack.c.bf16 %v3484_v31, %v3486_v45  ;;  %v8846_v8 = vld [vmem:[%s17764_s5 + $0x1d0] sm:$0xf0]  ;;  %v11002_v4 = vld [vmem:[%s17764_s5 + $0x4c4] sm:$0xf] }
 0x460   : > { %4868 = vmatpush.bf16.msrb.mxu0 %v9213_v55  ;;  %v9197_v54 = vor.u32 %v10996_v33, %v9196_v51  ;;  %v9230_v38 = vld [vmem:[%s17764_s5 + $0x4d0] sm:$0xf0]  ;;  %v8849_v55 = vor.u32 %v10906_v58, %v8846_v8  ;;  %v8780_v51 = vld [vmem:[%s17764_s5 + $0x140] sm:$0xf]  ;;  %v10892_v33 = vld [vmem:[%s17764_s5 + $0x14c] sm:$0xf0] }
 0x461   : > { %v3517_v14 = vrot.slane %v14860_v62, 1  ;;  %v9233_v60 = vor.u32 %v11002_v4, %v9230_v38  ;;  %v10984_v8 = vld [vmem:[%s17764_s5 + $0x42c] sm:$0xf0]  ;;  %v10898_v4 = vld [vmem:[%s17764_s5 + $0x184] sm:$0xf] }
 0x462   : > { %v3309_v37 = vpop.f32.mrf.mxu2  ;;  %4780 = vmatpush.bf16.msra.mxu1 %v8845_v29  ;;  %v8796_v29 = vld [vmem:[%s17764_s5 + $0x160] sm:$0xf]  ;;  %4954 = vmatpush.bf16.msrb.mxu3 %v8849_v55  ;;  %v10994_v55 = vld [vmem:[%s17764_s5 + $0x484] sm:$0xf] }
 0x463   : > { %v3310_v17 = vadd.f32 %v3309_v37, %v3281_v40  ;;  %v9249_v37 = vor.u32 %v11006_v2, %v9246_v15  ;;  %v15004_v15 = vadd.s32 48, %v18140_v49 }
 0x464   : > { %v3254_v57 = vpop.f32.mrf.mxu0  ;;  %4869 = vmatpush.bf16.msrb.mxu0 %v9197_v54  ;;  %v9164_v54 = vld [vmem:[%s17764_s5 + $0x440] sm:$0xf] }
 0x465   : > { %5040 = vmatpush.bf16.msra.mxu2 %v9249_v37 }
 0x466   : > { %v3338_v28 = vpop.f32.mrf.mxu3  ;;  %v3283_v32 = vpop.f32.mrf.mxu1  ;;  %4781 = vmatpush.bf16.msra.mxu1 %v8829_v23 }
 0x467   : > { %v14863_v22 = vadd.f32 %v3338_v28, %v3310_v17  ;;  %v3284_v59 = vadd.f32 %v3283_v32, %v3254_v57  ;;  %v10896_v17 = vld [vmem:[%s17764_s5 + $0x16c] sm:$0xf0]  ;;  %v3388_v28 = vand.u32 15, %v18350_v35  ;;  %v3470_v57 = vrot.slane %v14755_v10, 7 }
 0x469   : > { %v3519_v9 = vrot.slane %v14863_v22, 1  ;;  %v14873_v0 = vpack.c.bf16 %v14863_v22, %v14860_v62  ;;  %vm11254_vm11 = vcmp.ne.s32.totalorder %v3388_v28, 0  ;;  %5041 = vmatpush.bf16.msra.mxu2 %v9233_v60  ;;  %v8764_v28 = vld [vmem:[%s17764_s5 + $0x120] sm:$0xf]  ;;  %v9198_v60 = vld [vmem:[%s17764_s5 + $0x490] sm:$0xf0] }
 0x46a   : > { %v3312_v11 = vpop.f32.mrf.mxu2  ;;  %4782 = vmatpush.bf16.msra.mxu1 %v8813_v56  ;;  %vm14991_vm12 = vmpackc.low %vm11694_vm3, %vm11254_vm11 }
 0x46b   : > { %v3545_v47 = vsel %vm798_vm1, %v3517_v14, %v3519_v9  ;;  %4845 = vmatmul.bf16.vlgmr.msra.gmra.mxu3 %v14873_v0  ;;  %9453 = vmatmul.msk.bf16.vlgmr.msrb.gmra.mxu2 %vm14817_vm8, %v14827_v21  ;;  %v3313_v43 = vadd.f32 %v3312_v11, %v3284_v59  ;;  %v10992_v59 = vld [vmem:[%s17764_s5 + $0x46c] sm:$0xf0]  ;;  %v3468_v11 = vrot.slane %v14715_v7, 7 }
 0x46c   : > { %v3256_v50 = vpop.f32.mrf.mxu0  ;;  %v9181_v23 = vor.u32 %v10992_v59, %v9180_v1 }
 0x46d   : > { %v3480_v63 = vsel %vm733_vm0, %v3468_v11, %v3470_v57  ;;  %v3482_v2 = vsel %vm733_vm0, %v3466_v6, %v3468_v11  ;;  %v10998_v6 = vld [vmem:[%s17764_s5 + $0x4a4] sm:$0xf]  ;;  %v9201_v11 = vor.u32 %v10994_v55, %v9198_v60 }
 0x46e   : > { %v3341_v40 = vpop.f32.mrf.mxu3  ;;  %9393 = vmatmul.msk.bf16.gmra.mxu0 %vm14876_vm10, %v14916_v44  ;;  %v3285_v5 = vpop.f32.mrf.mxu1 }
 0x46f   : > { %v14921_v39 = vadd.f32 %v3341_v40, %v3313_v43  ;;  %v3286_v24 = vadd.f32 %v3285_v5, %v3256_v50  ;;  %4870 = vmatpush.bf16.msrb.mxu0 %v9181_v23  ;;  %v8781_v43 = vor.u32 %v10892_v33, %v8780_v51  ;;  %v10988_v40 = vld [vmem:[%s17764_s5 + $0x44c] sm:$0xf0]  ;;  %v9148_v23 = vld [vmem:[%s17764_s5 + $0x420] sm:$0xf] }
 0x470   : > { %v9165_v5 = vor.u32 %v10988_v40, %v9164_v54  ;;  %v10884_v54 = vld [vmem:[%s17764_s5 + $0x10c] sm:$0xf0]  ;;  %v9132_v40 = vld [vmem:[%s17764_s5 + $0x400] sm:$0xf] }
 0x471   : > { %v3521_v46 = vrot.slane %v14921_v39, 1 }
 0x472   : > { %v3314_v31 = vpop.f32.mrf.mxu2 }
 0x473   : > { %v3543_v61 = vsel %vm798_vm1, %v3519_v9, %v3521_v46  ;;  %v8797_v9 = vor.u32 %v10896_v17, %v8796_v29  ;;  %v3315_v20 = vadd.f32 %v3314_v31, %v3286_v24  ;;  %v15010_v29 = vpack.c.bf16 %v3480_v63, %v3482_v2  ;;  %4871 = vmatpush.bf16.msrb.mxu0 %v9165_v5  ;;  %v10902_v17 = vld [vmem:[%s17764_s5 + $0x1a4] sm:$0xf]  ;;  %v10888_v31 = vld [vmem:[%s17764_s5 + $0x12c] sm:$0xf0] }
 0x474   : > { %v14949_v32 = vpack.c.bf16 %v3543_v61, %v3545_v47  ;;  %v3259_v45 = vpop.f32.mrf.mxu0  ;;  %v8833_v35 = vor.u32 %v10902_v17, %v8830_v16  ;;  %v10980_v63 = vld [vmem:[%s17764_s5 + $0x40c] sm:$0xf0]  ;;  %v10894_v2 = vld [vmem:[%s17764_s5 + $0x164] sm:$0xf]  ;;  %v8798_v17 = vld [vmem:[%s17764_s5 + $0x170] sm:$0xf0] }
 0x475   : > { %4783 = vmatpush.bf16.msra.mxu1 %v8797_v9  ;;  %v10990_v16 = vld [vmem:[%s17764_s5 + $0x464] sm:$0xf] }
 0x476   : > { %18351 = vst [vmem:[#allocation49_spill] sm:$0xff] %v14949_v32  ;;  %v3343_v47 = vpop.f32.mrf.mxu3  ;;  %v3288_v50 = vpop.f32.mrf.mxu1  ;;  %4955 = vmatpush.bf16.msrb.mxu3 %v8833_v35 }
 0x477   : > { %v14973_v56 = vadd.f32 %v3343_v47, %v3315_v20  ;;  %v3289_v13 = vadd.f32 %v3288_v50, %v3259_v45  ;;  %v8765_v20 = vor.u32 %v10888_v31, %v8764_v28  ;;  %v9149_v47 = vor.u32 %v10984_v8, %v9148_v23  ;;  %v8814_v45 = vld [vmem:[%s17764_s5 + $0x190] sm:$0xf0]  ;;  %v10890_v31 = vld [vmem:[%s17764_s5 + $0x144] sm:$0xf] }
 0x478   : > { %v8817_v33 = vor.u32 %v10898_v4, %v8814_v45 }
 0x479   : > { %v3523_v24 = vrot.slane %v14973_v56, 1  ;;  %v14984_v7 = vpack.c.bf16 %v14973_v56, %v14921_v39  ;;  %4784 = vmatpush.bf16.msra.mxu1 %v8781_v43  ;;  %v8748_v43 = vld [vmem:[%s17764_s5 + $0x100] sm:$0xf]  ;;  %4872 = vmatpush.bf16.msrb.mxu0 %v9149_v47 }
 0x47a   : > { %v3317_v37 = vpop.f32.mrf.mxu2  ;;  %4956 = vmatpush.bf16.msrb.mxu3 %v8817_v33  ;;  %v8766_v33 = vld [vmem:[%s17764_s5 + $0x130] sm:$0xf0] }
 0x47b   : > { %4850 = vmatmul.bf16.gmra.mxu3 %v14984_v7  ;;  %9457 = vmatmul.msk.bf16.gmra.mxu2 %vm14876_vm10, %v14916_v44  ;;  %v3541_v61 = vsel %vm798_vm1, %v3521_v46, %v3523_v24  ;;  %v3318_v1 = vadd.f32 %v3317_v37, %v3289_v13  ;;  %v9214_v46 = vld [vmem:[%s17764_s5 + $0x4b0] sm:$0xf0]  ;;  %v8749_v13 = vor.u32 %v10884_v54, %v8748_v43 }
 0x47c   : > { %v3261_v59 = vpop.f32.mrf.mxu0  ;;  %v9217_v58 = vor.u32 %v10998_v6, %v9214_v46  ;;  %v9133_v37 = vor.u32 %v10980_v63, %v9132_v40  ;;  %v9182_v6 = vld [vmem:[%s17764_s5 + $0x470] sm:$0xf0]  ;;  %v3402_v46 = vand.u32 15, %v15004_v15  ;;  %v10986_v15 = vld [vmem:[%s17764_s5 + $0x444] sm:$0xf] }
 0x47d   : > { %4785 = vmatpush.bf16.msra.mxu1 %v8765_v20  ;;  %v9185_v28 = vor.u32 %v10990_v16, %v9182_v6  ;;  %v9166_v20 = vld [vmem:[%s17764_s5 + $0x450] sm:$0xf0]  ;;  %v10982_v40 = vld [vmem:[%s17764_s5 + $0x424] sm:$0xf] }
 0x47e   : > { %v3346_v9 = vpop.f32.mrf.mxu3  ;;  %9397 = vmatmul.msk.bf16.gmra.mxu0 %vm14991_vm12, %v15010_v29  ;;  %v3290_v51 = vpop.f32.mrf.mxu1  ;;  %5042 = vmatpush.bf16.msra.mxu2 %v9217_v58  ;;  %v8782_v58 = vld [vmem:[%s17764_s5 + $0x150] sm:$0xf0]  ;;  %vm15100_vm13 = vcmp.ne.s32.totalorder %v3402_v46, 0 }
 0x47f   : > { %v15042_v38 = vadd.f32 %v3346_v9, %v3318_v1  ;;  %v3291_v5 = vadd.f32 %v3290_v51, %v3261_v59  ;;  %v8801_v1 = vor.u32 %v10894_v2, %v8798_v17  ;;  %4873 = vmatpush.bf16.msrb.mxu0 %v9133_v37  ;;  %v8785_v60 = vor.u32 %v10890_v31, %v8782_v58  ;;  %vm15136_vm14 = vmpackc.low %vm11694_vm3, %vm15100_vm13  ;;  %v8750_v16 = vld [vmem:[%s17764_s5 + $0x110] sm:$0xf0] }
 0x480   : > { %v9169_v51 = vor.u32 %v10986_v15, %v9166_v20  ;;  %v9134_v6 = vld [vmem:[%s17764_s5 + $0x410] sm:$0xf0]  ;;  %v494_v31 = vadd.s32 8, %v18140_v49 }
 0x481   : > { %v3525_v50 = vrot.slane %v15042_v38, 1  ;;  %4786 = vmatpush.bf16.msra.mxu1 %v8749_v13  ;;  %4957 = vmatpush.bf16.msrb.mxu3 %v8801_v1 }
 0x482   : > { %v3319_v35 = vpop.f32.mrf.mxu2  ;;  %5043 = vmatpush.bf16.msra.mxu2 %v9201_v11 }
 0x483   : > { %v3539_v9 = vsel %vm798_vm1, %v3523_v24, %v3525_v50  ;;  %v3320_v59 = vadd.f32 %v3319_v35, %v3291_v5  ;;  %v3472_v24 = vrot.slane %v14789_v42, 7  ;;  %v9150_v5 = vld [vmem:[%s17764_s5 + $0x430] sm:$0xf0] }
 0x484   : > { %v15095_v23 = vpack.c.bf16 %v3539_v9, %v3541_v61  ;;  %v3264_v4 = vpop.f32.mrf.mxu0  ;;  %v10886_v61 = vld [vmem:[%s17764_s5 + $0x124] sm:$0xf]  ;;  %v9153_v10 = vor.u32 %v10982_v40, %v9150_v5 }
 0x485   : > { %v3476_v54 = vsel %vm733_vm0, %v3472_v24, %v3474_v12  ;;  %v3478_v36 = vsel %vm733_vm0, %v3470_v57, %v3472_v24  ;;  %4958 = vmatpush.bf16.msrb.mxu3 %v8785_v60  ;;  %v8769_v37 = vor.u32 %v10886_v61, %v8766_v33  ;;  %v10882_v57 = vld [vmem:[%s17764_s5 + $0x104] sm:$0xf]  ;;  %v3463_v60 = vrot.slane %v14863_v22, 7 }
 0x486   : > { %18354 = vst [vmem:[#allocation47_spill] sm:$0xff] %v15095_v23  ;;  %v3348_v8 = vpop.f32.mrf.mxu3  ;;  %v3293_v45 = vpop.f32.mrf.mxu1  ;;  %5044 = vmatpush.bf16.msra.mxu2 %v9185_v28  ;;  %v15142_v2 = vpack.c.bf16 %v3476_v54, %v3478_v36  ;;  %v8753_v9 = vor.u32 %v10882_v57, %v8750_v16  ;;  %v3461_v61 = vrot.slane %v14860_v62, 7  ;;  %v11040_v62 = vld [vmem:[%s17764_s5 + $0x5ec] sm:$0xf0]  ;;  %v8990_v57 = vld [vmem:[%s17764_s5 + $0x2f0] sm:$0xf0] }
 0x487   : > { %v15098_v47 = vadd.f32 %v3348_v8, %v3320_v59  ;;  %v3294_v43 = vadd.f32 %v3293_v45, %v3264_v4  ;;  %v3367_v4 = vand.u32 15, %v494_v31  ;;  %v8974_v31 = vld [vmem:[%s17764_s5 + $0x2d0] sm:$0xf0] }
 0x488   : > { %v3489_v54 = vsel %vm733_vm0, %v3461_v61, %v3463_v60 }
 0x489   : > { %v3527_v42 = vrot.slane %v15098_v47, 1  ;;  %v15113_v11 = vpack.c.bf16 %v15098_v47, %v15042_v38  ;;  %4959 = vmatpush.bf16.msrb.mxu3 %v8769_v37  ;;  %vm11256_vm15 = vcmp.ne.s32.totalorder %v3367_v4, 15  ;;  %v9372_v37 = vld [vmem:[%s17764_s5 + $0x5e0] sm:$0xf]  ;;  %v10934_v4 = vld [vmem:[%s17764_s5 + $0x2a4] sm:$0xf] }
 0x48a   : > { %v3322_v63 = vpop.f32.mrf.mxu2  ;;  %5045 = vmatpush.bf16.msra.mxu2 %v9169_v51  ;;  %vm15188_vm2 = vmpackc.low %vm11256_vm15, %vm11694_vm3 }
 0x48b   : > { %4855 = vmatmul.bf16.gmra.mxu3 %v15113_v11  ;;  %9461 = vmatmul.msk.bf16.gmra.mxu2 %vm14991_vm12, %v15010_v29  ;;  %v3537_v13 = vsel %vm798_vm1, %v3525_v50, %v3527_v42  ;;  %v3323_v17 = vadd.f32 %v3322_v63, %v3294_v43  ;;  %v10978_v50 = vld [vmem:[%s17764_s5 + $0x404] sm:$0xf] }
 0x48c   : > { %v3266_v35 = vpop.f32.mrf.mxu0  ;;  %v9137_v59 = vor.u32 %v10978_v50, %v9134_v6  ;;  %v11036_v50 = vld [vmem:[%s17764_s5 + $0x5cc] sm:$0xf0]  ;;  %v10938_v6 = vld [vmem:[%s17764_s5 + $0x2c4] sm:$0xf] }
 0x48d   : > { %4960 = vmatpush.bf16.msrb.mxu3 %v8753_v9  ;;  %v8977_v9 = vor.u32 %v10938_v6, %v8974_v31  ;;  %v11024_v31 = vld [vmem:[%s17764_s5 + $0x56c] sm:$0xf0] }
 0x48e   : > { %v3351_v1 = vpop.f32.mrf.mxu3  ;;  %9401 = vmatmul.msk.bf16.gmra.mxu0 %vm15136_vm14, %v15142_v2  ;;  %v3295_v28 = vpop.f32.mrf.mxu1  ;;  %5046 = vmatpush.bf16.msra.mxu2 %v9153_v10  ;;  %v9373_v10 = vor.u32 %v11040_v62, %v9372_v37  ;;  %v10930_v37 = vld [vmem:[%s17764_s5 + $0x284] sm:$0xf]  ;;  %v8942_v62 = vld [vmem:[%s17764_s5 + $0x290] sm:$0xf0] }
 0x48f   : > { %v15159_v46 = vadd.f32 %v3351_v1, %v3323_v17  ;;  %v3296_v15 = vadd.f32 %v3295_v28, %v3266_v35  ;;  %v9356_v17 = vld [vmem:[%s17764_s5 + $0x5c0] sm:$0xf]  ;;  %v18363_v1 = vld [vmem:[#allocation16_spill] sm:$0xff] }
 0x490   : > { %v3381_v35 = vand.u32 15, %v18363_v1  ;;  %4895 = vmatpush.bf16.msrb.mxu1 %v9373_v10  ;;  %v9357_v28 = vor.u32 %v11036_v50, %v9356_v17  ;;  %v11038_v10 = vld [vmem:[%s17764_s5 + $0x5e4] sm:$0xf]  ;;  %v9374_v17 = vld [vmem:[%s17764_s5 + $0x5f0] sm:$0xf0]  ;;  %v498_v50 = vadd.s32 40, %v18140_v49 }
 0x491   : > { %v3529_v58 = vrot.slane %v15159_v46, 1  ;;  %v9377_v6 = vor.u32 %v11038_v10, %v9374_v17  ;;  %v9342_v10 = vld [vmem:[%s17764_s5 + $0x5b0] sm:$0xf0] }
 0x492   : > { %v3324_v8 = vpop.f32.mrf.mxu2  ;;  %5047 = vmatpush.bf16.msra.mxu2 %v9137_v59  ;;  %vm15233_vm5 = vcmp.ne.s32.totalorder %v3381_v35, 15 }
 0x493   : > { %v3535_v20 = vsel %vm798_vm1, %v3527_v42, %v3529_v58  ;;  %v3325_v45 = vadd.f32 %v3324_v8, %v3296_v15  ;;  %v3467_v15 = vrot.slane %v14973_v56, 7  ;;  %v11032_v8 = vld [vmem:[%s17764_s5 + $0x5ac] sm:$0xf0]  ;;  %vm15264_vm7 = vmpackc.low %vm15233_vm5, %vm11694_vm3  ;;  %5069 = vmatpush.bf16.msra.mxu3 %v9377_v6  ;;  %v3395_v6 = vand.u32 15, %v498_v50  ;;  %v10918_v50 = vld [vmem:[%s17764_s5 + $0x224] sm:$0xf] }
 0x494   : > { %v15165_v24 = vpack.c.bf16 %v3535_v20, %v3537_v13  ;;  %4896 = vmatpush.bf16.msrb.mxu1 %v9357_v28  ;;  %v9340_v20 = vld [vmem:[%s17764_s5 + $0x5a0] sm:$0xf]  ;;  %v11012_v56 = vld [vmem:[%s17764_s5 + $0x50c] sm:$0xf0] }
 0x495   : > { %v9308_v28 = vld [vmem:[%s17764_s5 + $0x560] sm:$0xf]  ;;  %vm11258_vm4 = vcmp.ne.s32.totalorder %v3395_v6, 15 }
 0x496   : > { %18359 = vst [vmem:[#allocation67_spill] sm:$0xff] %v15165_v24  ;;  %v3353_v55 = vpop.f32.mrf.mxu3  ;;  %v9309_v59 = vor.u32 %v11024_v31, %v9308_v28  ;;  %v3469_v28 = vrot.slane %v15042_v38, 7  ;;  %v3471_v31 = vrot.slane %v15098_v47, 7  ;;  %vm15396_vm6 = vmpackc.low %vm11258_vm4, %vm11694_vm3 }
 0x497   : > { %v15168_v51 = vadd.f32 %v3353_v55, %v3325_v45  ;;  %v9341_v45 = vor.u32 %v11032_v8, %v9340_v20  ;;  %v9324_v55 = vld [vmem:[%s17764_s5 + $0x580] sm:$0xf]  ;;  %v11034_v20 = vld [vmem:[%s17764_s5 + $0x5c4] sm:$0xf]  ;;  %v9358_v8 = vld [vmem:[%s17764_s5 + $0x5d0] sm:$0xf0] }
 0x499   : > { %v3475_v33 = vrot.slane %v15168_v51, 7  ;;  %v3531_v43 = vrot.slane %v15168_v51, 1  ;;  %v15175_v42 = vpack.c.bf16 %v15168_v51, %v15159_v46  ;;  %4897 = vmatpush.bf16.msrb.mxu1 %v9341_v45  ;;  %v9361_v45 = vor.u32 %v11034_v20, %v9358_v8  ;;  %v8894_v20 = vld [vmem:[%s17764_s5 + $0x230] sm:$0xf0]  ;;  %v11026_v8 = vld [vmem:[%s17764_s5 + $0x584] sm:$0xf] }
 0x49b   : > { %v3491_v22 = vsel %vm733_vm0, %v3475_v33, %v3461_v61  ;;  %4860 = vmatmul.bf16.gmra.mxu3 %v15175_v42  ;;  %9465 = vmatmul.msk.bf16.gmra.mxu2 %vm15136_vm14, %v15142_v2  ;;  %v3533_v5 = vsel %vm798_vm1, %v3529_v58, %v3531_v43  ;;  %v3547_v13 = vsel %vm798_vm1, %v3531_v43, %v3517_v14  ;;  %v10942_v14 = vld [vmem:[%s17764_s5 + $0x2e4] sm:$0xf]  ;;  %v3465_v58 = vrot.slane %v14921_v39, 7  ;;  %v8958_v39 = vld [vmem:[%s17764_s5 + $0x2b0] sm:$0xf0] }
 0x49c   : > { %v15194_v36 = vpack.c.bf16 %v3489_v54, %v3491_v22  ;;  %v15200_v63 = vpack.c.bf16 %v3547_v13, %v3533_v5  ;;  %v8993_v16 = vor.u32 %v10942_v14, %v8990_v57  ;;  %v11028_v61 = vld [vmem:[%s17764_s5 + $0x58c] sm:$0xf0]  ;;  %v8961_v43 = vor.u32 %v10934_v4, %v8958_v39  ;;  %v8980_v39 = vld [vmem:[%s17764_s5 + $0x2c8] sm:$0xf]  ;;  %5070 = vmatpush.bf16.msra.mxu3 %v9361_v45 }
 0x49d   : > { %v3485_v54 = vsel %vm733_vm0, %v3465_v58, %v3467_v15  ;;  %v9325_v22 = vor.u32 %v11028_v61, %v9324_v55  ;;  %v3487_v13 = vsel %vm733_vm0, %v3463_v60, %v3465_v58  ;;  %v8945_v57 = vor.u32 %v10930_v37, %v8942_v62  ;;  %v8996_v60 = vld [vmem:[%s17764_s5 + $0x2e8] sm:$0xf]  ;;  %v8926_v58 = vld [vmem:[%s17764_s5 + $0x270] sm:$0xf0]  ;;  %v10941_v55 = vld [vmem:[%s17764_s5 + $0x2d4] sm:$0xf0] }
 0x49e   : > { %18362 = vst [vmem:[#allocation35_spill] sm:$0xff] %v15200_v63  ;;  %9405 = vmatmul.msk.bf16.vlgmr.msra.gmra.mxu1 %vm14817_vm8, %v15194_v36  ;;  %9421 = vmatmul.msk.bf16.vlgmr.msrb.gmra.mxu0 %vm15188_vm2, %v14664_v27  ;;  %v15285_v14 = vpack.c.bf16 %v3485_v54, %v3487_v13  ;;  %v9292_v61 = vld [vmem:[%s17764_s5 + $0x540] sm:$0xf]  ;;  %v11020_v54 = vld [vmem:[%s17764_s5 + $0x54c] sm:$0xf0]  ;;  %v8897_v45 = vor.u32 %v10918_v50, %v8894_v20 }
 0x49f   : > { %4982 = vmatpush.bf16.msra.mxu0 %v8993_v16  ;;  %v10945_v16 = vld [vmem:[%s17764_s5 + $0x2f4] sm:$0xf0]  ;;  %4898 = vmatpush.bf16.msrb.mxu1 %v9325_v22  ;;  %v10922_v22 = vld [vmem:[%s17764_s5 + $0x244] sm:$0xf]  ;;  %v8910_v13 = vld [vmem:[%s17764_s5 + $0x250] sm:$0xf0]  ;;  %v9293_v37 = vor.u32 %v11020_v54, %v9292_v61 }
 0x4a0   : > { %v8997_v1 = vor.u32 %v10945_v16, %v8996_v60  ;;  %v11030_v62 = vld [vmem:[%s17764_s5 + $0x5a4] sm:$0xf]  ;;  %v8913_v17 = vor.u32 %v10922_v22, %v8910_v13  ;;  %v10937_v16 = vld [vmem:[%s17764_s5 + $0x2b4] sm:$0xf0]  ;;  %v3483_v22 = vsel %vm733_vm0, %v3467_v15, %v3469_v28  ;;  %v18368_v13 = vmov 0 }
 0x4a1   : > { %v9345_v60 = vor.u32 %v11030_v62, %v9342_v10  ;;  %v10933_v61 = vld [vmem:[%s17764_s5 + $0x294] sm:$0xf0]  ;;  %v18369_v13 = vsel %vm15396_vm6, 4294967295, %v18368_v13  ;;  %v9260_v62 = vld [vmem:[%s17764_s5 + $0x500] sm:$0xf] }
 0x4a2   : > { %5156 = vmatpush.bf16.msrb.mxu2 %v8997_v1  ;;  %18370 = vst [vmem:[#allocation34_spill] sm:$0xff] %v18369_v13  ;;  %v10914_v15 = vld [vmem:[%s17764_s5 + $0x204] sm:$0xf]  ;;  %v9261_v10 = vor.u32 %v11012_v56, %v9260_v62  ;;  %v8916_v20 = vld [vmem:[%s17764_s5 + $0x248] sm:$0xf] }
 0x4a3   : > { %4983 = vmatpush.bf16.msra.mxu0 %v8977_v9  ;;  %v10926_v9 = vld [vmem:[%s17764_s5 + $0x264] sm:$0xf]  ;;  %4899 = vmatpush.bf16.msrb.mxu1 %v9309_v59  ;;  %v9276_v59 = vld [vmem:[%s17764_s5 + $0x520] sm:$0xf]  ;;  %v10921_v62 = vld [vmem:[%s17764_s5 + $0x234] sm:$0xf0] }
 0x4a4   : > { %v8929_v4 = vor.u32 %v10926_v9, %v8926_v58  ;;  %v11016_v58 = vld [vmem:[%s17764_s5 + $0x52c] sm:$0xf0]  ;;  %5071 = vmatpush.bf16.msra.mxu3 %v9345_v60  ;;  %v9310_v60 = vld [vmem:[%s17764_s5 + $0x570] sm:$0xf0] }
 0x4a5   : > { %v9277_v38 = vor.u32 %v11016_v58, %v9276_v59  ;;  %v10929_v59 = vld [vmem:[%s17764_s5 + $0x274] sm:$0xf0]  ;;  %v11018_v58 = vld [vmem:[%s17764_s5 + $0x544] sm:$0xf] }
 0x4a7   : > { %4984 = vmatpush.bf16.msra.mxu0 %v8961_v43  ;;  %v8981_v43 = vor.u32 %v10941_v55, %v8980_v39  ;;  %4900 = vmatpush.bf16.msrb.mxu1 %v9293_v37  ;;  %v8948_v55 = vld [vmem:[%s17764_s5 + $0x288] sm:$0xf] }
 0x4a8   : > { %v8949_v54 = vor.u32 %v10933_v61, %v8948_v55  ;;  %v11014_v61 = vld [vmem:[%s17764_s5 + $0x524] sm:$0xf] }
 0x4a9   : > { %5157 = vmatpush.bf16.msrb.mxu2 %v8981_v43  ;;  %v3481_v43 = vsel %vm733_vm0, %v3469_v28, %v3471_v31  ;;  %v8932_v28 = vld [vmem:[%s17764_s5 + $0x268] sm:$0xf] }
 0x4aa   : > { %v15400_v37 = vpack.c.bf16 %v3481_v43, %v3483_v22  ;;  %v8933_v50 = vor.u32 %v10929_v59, %v8932_v28  ;;  %v9278_v43 = vld [vmem:[%s17764_s5 + $0x530] sm:$0xf0] }
 0x4ab   : > { %9469 = vmatmul.msk.bf16.vlgmr.msrb.gmra.mxu3 %vm14817_vm8, %v15194_v36  ;;  %9485 = vmatmul.msk.bf16.vlgmr.msra.gmra.mxu2 %vm15188_vm2, %v14664_v27  ;;  %v9281_v22 = vor.u32 %v11014_v61, %v9278_v43 }
 0x4ac   : > { %4985 = vmatpush.bf16.msra.mxu0 %v8945_v57  ;;  %v8964_v57 = vld [vmem:[%s17764_s5 + $0x2a8] sm:$0xf]  ;;  %4901 = vmatpush.bf16.msrb.mxu1 %v9277_v38  ;;  %v9294_v38 = vld [vmem:[%s17764_s5 + $0x550] sm:$0xf0] }
 0x4ad   : > { %v8965_v1 = vor.u32 %v10937_v16, %v8964_v57  ;;  %v8878_v57 = vld [vmem:[%s17764_s5 + $0x210] sm:$0xf0] }
 0x4ae   : > { %9409 = vmatmul.msk.bf16.gmra.mxu1 %vm14876_vm10, %v15285_v14  ;;  %v15300_v35 = vpop.f32.mrf.mxu2  ;;  %9425 = vmatmul.msk.bf16.gmra.mxu0 %vm15264_vm7, %v14747_v18  ;;  %v8881_v6 = vor.u32 %v10914_v15, %v8878_v57  ;;  %v9262_v57 = vld [vmem:[%s17764_s5 + $0x510] sm:$0xf0] }
 0x4af   : > { %5158 = vmatpush.bf16.msrb.mxu2 %v8965_v1 }
 0x4b0   : > { %4986 = vmatpush.bf16.msra.mxu0 %v8929_v4  ;;  %v9326_v4 = vld [vmem:[%s17764_s5 + $0x590] sm:$0xf0]  ;;  %4902 = vmatpush.bf16.msrb.mxu1 %v9261_v10  ;;  %v11010_v10 = vld [vmem:[%s17764_s5 + $0x504] sm:$0xf] }
 0x4b1   : > { %v9329_v39 = vor.u32 %v11026_v8, %v9326_v4  ;;  %v10925_v8 = vld [vmem:[%s17764_s5 + $0x254] sm:$0xf0]  ;;  %v9297_v4 = vor.u32 %v11018_v58, %v9294_v38 }
 0x4b3   : > { %5072 = vmatpush.bf16.msra.mxu3 %v9329_v39  ;;  %5159 = vmatpush.bf16.msrb.mxu2 %v8949_v54  ;;  %v18371_v39 = vld [vmem:[#allocation18_spill] sm:$0xff]  ;;  %v8900_v54 = vld [vmem:[%s17764_s5 + $0x228] sm:$0xf] }
 0x4b4   : > { %4987 = vmatpush.bf16.msra.mxu0 %v8913_v17  ;;  %v11022_v17 = vld [vmem:[%s17764_s5 + $0x564] sm:$0xf]  ;;  %v3409_v55 = vand.u32 15, %v18371_v39  ;;  %v8901_v15 = vor.u32 %v10921_v62, %v8900_v54  ;;  %v10881_v39 = vld [vmem:[%s17764_s5 + $0xf4] sm:$0xf0] }
 0x4b5   : > { %v9313_v1 = vor.u32 %v11022_v17, %v9310_v60  ;;  %v8884_v17 = vld [vmem:[%s17764_s5 + $0x208] sm:$0xf]  ;;  %v3473_v60 = vrot.slane %v15159_v46, 7  ;;  %v9102_v62 = vld [vmem:[%s17764_s5 + $0x3d0] sm:$0xf0] }
 0x4b6   : > { %v15355_v9 = vpop.f32.mrf.mxu2  ;;  %vm11259_vm9 = vcmp.ne.s32.totalorder %v3409_v55, 15 }
 0x4b7   : > { %5073 = vmatpush.bf16.msra.mxu3 %v9313_v1  ;;  %5160 = vmatpush.bf16.msrb.mxu2 %v8933_v50  ;;  %v9265_v1 = vor.u32 %v11010_v10, %v9262_v57  ;;  %v3477_v28 = vsel %vm733_vm0, %v3473_v60, %v3475_v33  ;;  %vm15479_vm11 = vmpackc.low %vm11259_vm9, %vm11694_vm3  ;;  %v3479_v46 = vsel %vm733_vm0, %v3471_v31, %v3473_v60  ;;  %v15516_v31 = vld [vmem:[%s17765_s6] sm:$0xf]  ;;  %v10877_v57 = vld [vmem:[%s17764_s5 + $0xd4] sm:$0xf0]  ;;  %vm5733_vm3 = vcmask 523264  }
 0x4b8   : > { %4988 = vmatpush.bf16.msra.mxu0 %v8897_v45  ;;  %v8917_v45 = vor.u32 %v10925_v8, %v8916_v20  ;;  %v15493_v51 = vpack.c.bf16 %v3477_v28, %v3479_v46  ;;  %v10974_v20 = vld [vmem:[%s17764_s5 + $0x3e4] sm:$0xf]  ;;  %v9118_v8 = vld [vmem:[%s17764_s5 + $0x3f0] sm:$0xf0]  ;;  %v15537_v61 = vperm.slane %v15516_v31, 0 }
 0x4b9   : > { %v8708_v28 = vld [vmem:[%s17764_s5 + $0xa8] sm:$0xf]  ;;  %v10873_v46 = vld [vmem:[%s17764_s5 + $0xb4] sm:$0xf0] }
 0x4ba   : > { %18374 = vst [vmem:[#allocation32_spill] sm:$0xff] %v15493_v51 }
 0x4bb   : > { %9473 = vmatmul.msk.bf16.gmra.mxu3 %vm14876_vm10, %v15285_v14  ;;  %9489 = vmatmul.msk.bf16.gmra.mxu2 %vm15264_vm7, %v14747_v18 }
 0x4bc   : > { %4989 = vmatpush.bf16.msra.mxu0 %v8881_v6  ;;  %5074 = vmatpush.bf16.msra.mxu3 %v9297_v4  ;;  %v10917_v6 = vld [vmem:[%s17764_s5 + $0x214] sm:$0xf0]  ;;  %v8740_v4 = vld [vmem:[%s17764_s5 + $0xe8] sm:$0xf] }
 0x4bd   : > { %5161 = vmatpush.bf16.msrb.mxu2 %v8917_v45  ;;  %v8885_v59 = vor.u32 %v10917_v6, %v8884_v17  ;;  %v9121_v45 = vor.u32 %v10974_v20, %v9118_v8  ;;  %v8741_v55 = vor.u32 %v10881_v39, %v8740_v4  ;;  %v10966_v6 = vld [vmem:[%s17764_s5 + $0x3a4] sm:$0xf]  ;;  %v8709_v20 = vor.u32 %v10873_v46, %v8708_v28  ;;  %v9070_v39 = vld [vmem:[%s17764_s5 + $0x390] sm:$0xf0]  ;;  %v8742_v28 = vld [vmem:[%s17764_s5 + $0xf8] sm:$0xf0] }
 0x4be   : > { %9413 = vmatmul.msk.bf16.gmra.mxu1 %vm14991_vm12, %v15400_v37  ;;  %v15423_v16 = vpop.f32.mrf.mxu2  ;;  %9429 = vmatmul.msk.bf16.gmra.mxu0 %vm15396_vm6, %v14795_v48  ;;  %v10958_v46 = vld [vmem:[%s17764_s5 + $0x364] sm:$0xf] }
 0x4bf   : > { %5011 = vmatpush.bf16.msra.mxu1 %v9121_v45  ;;  %v10962_v45 = vld [vmem:[%s17764_s5 + $0x384] sm:$0xf] }
 0x4c0   : > { %5075 = vmatpush.bf16.msra.mxu3 %v9281_v22  ;;  %5098 = vmatpush.bf16.msrb.mxu0 %v8741_v55  ;;  %v10970_v22 = vld [vmem:[%s17764_s5 + $0x3c4] sm:$0xf]  ;;  %v8692_v55 = vld [vmem:[%s17764_s5 + $0x88] sm:$0xf] }
 0x4c1   : > { %5162 = vmatpush.bf16.msrb.mxu2 %v8901_v15  ;;  %v8724_v15 = vld [vmem:[%s17764_s5 + $0xc8] sm:$0xf]  ;;  %v9105_v10 = vor.u32 %v10970_v22, %v9102_v62  ;;  %v10869_v22 = vld [vmem:[%s17764_s5 + $0x94] sm:$0xf0] }
 0x4c2   : > { %v8725_v60 = vor.u32 %v10877_v57, %v8724_v15  ;;  %v9124_v62 = vld [vmem:[%s17764_s5 + $0x3e8] sm:$0xf]  ;;  %v10977_v15 = vld [vmem:[%s17764_s5 + $0x3f4] sm:$0xf0] }
 0x4c3   : > { %5012 = vmatpush.bf16.msra.mxu1 %v9105_v10 }
 0x4c4   : > { %5076 = vmatpush.bf16.msra.mxu3 %v9265_v1  ;;  %v9086_v1 = vld [vmem:[%s17764_s5 + $0x3b0] sm:$0xf0]  ;;  %5099 = vmatpush.bf16.msrb.mxu0 %v8725_v60  ;;  %v8693_v60 = vor.u32 %v10869_v22, %v8692_v55  ;;  %v9108_v55 = vld [vmem:[%s17764_s5 + $0x3c8] sm:$0xf]  ;;  %v10973_v22 = vld [vmem:[%s17764_s5 + $0x3d4] sm:$0xf0] }
 0x4c5   : > { %5163 = vmatpush.bf16.msrb.mxu2 %v8885_v59  ;;  %v9089_v59 = vor.u32 %v10966_v6, %v9086_v1  ;;  %v9125_v6 = vor.u32 %v10977_v15, %v9124_v62  ;;  %v10879_v1 = vld [vmem:[%s17764_s5 + $0xec] sm:$0xf]  ;;  %v9109_v15 = vor.u32 %v10973_v22, %v9108_v55  ;;  %v10969_v55 = vld [vmem:[%s17764_s5 + $0x3b4] sm:$0xf0] }
 0x4c6   : > { %v15459_v56 = vpop.f32.mrf.mxu2 }
 0x4c7   : > { %5013 = vmatpush.bf16.msra.mxu1 %v9089_v59  ;;  %v8745_v59 = vor.u32 %v10879_v1, %v8742_v28 }
 0x4c8   : > { %5100 = vmatpush.bf16.msrb.mxu0 %v8709_v20  ;;  %v9054_v20 = vld [vmem:[%s17764_s5 + $0x370] sm:$0xf0]  ;;  %5185 = vmatpush.bf16.msrb.mxu3 %v9125_v6  ;;  %v10954_v6 = vld [vmem:[%s17764_s5 + $0x344] sm:$0xf] }
 0x4c9   : > { %5272 = vmatpush.bf16.msra.mxu2 %v8745_v59  ;;  %v9038_v59 = vld [vmem:[%s17764_s5 + $0x350] sm:$0xf0] }
 0x4cb   : > { %9477 = vmatmul.msk.bf16.gmra.mxu3 %vm14991_vm12, %v15400_v37  ;;  %9493 = vmatmul.msk.bf16.gmra.mxu2 %vm15396_vm6, %v14795_v48 }
 0x4cc   : > { %5101 = vmatpush.bf16.msrb.mxu0 %v8693_v60  ;;  %v8726_v60 = vld [vmem:[%s17764_s5 + $0xd8] sm:$0xf0]  ;;  %5186 = vmatpush.bf16.msrb.mxu3 %v9109_v15 }
 0x4ce   : > { %9417 = vmatmul.msk.bf16.gmra.mxu1 %vm15136_vm14, %v15493_v51  ;;  %v15498_v33 = vpop.f32.mrf.mxu2  ;;  %9433 = vmatmul.msk.bf16.gmra.mxu0 %vm15479_vm11, %v14829_v34 }
 0x4d6   : > { %v15503_v50 = vpop.f32.mrf.mxu2 }
 0x4db   : > { %v15505_v47 = vpop.f32.mrf.mxu0  ;;  %9481 = vmatmul.msk.bf16.gmra.mxu3 %vm15136_vm14, %v15493_v51  ;;  %9497 = vmatmul.msk.bf16.gmra.mxu2 %vm15479_vm11, %v14829_v34 }
 0x4de   : > { %v15518_v38 = vpop.f32.mrf.mxu2  ;;  %9437 = vmatmul.msk.bf16.vlgmr.msrb.gmra.mxu1 %vm15188_vm2, %v14949_v32  ;;  %4990 = vmatmul.bf16.vlgmr.msra.gmra.mxu0 %v14616_v52 }
 0x4df   : > { %18375 = vst [vmem:[#allocation59_spill] sm:$0xff] %v15518_v38  ;;  %v4760_v38 = vadd.f32 %v15505_v47, %v15537_v61  ;;  %v8868_v47 = vld [vmem:[%s17764_s5 + $0x1e8] sm:$0xf] }
 0x4e3   : > { %v4761_v43 = vpop.f32.mrf.mxu0 }
 0x4e4   : > { %v15540_v54 = vadd.f32 %v4761_v43, %v15537_v61  ;;  %v9073_v43 = vor.u32 %v10962_v45, %v9070_v39  ;;  %v9057_v45 = vor.u32 %v10958_v46, %v9054_v20  ;;  %v10865_v39 = vld [vmem:[%s17764_s5 + $0x74] sm:$0xf0]  ;;  %v8660_v20 = vld [vmem:[%s17764_s5 + $0x48] sm:$0xf] }
 0x4e6   : > { %v15554_v17 = vpop.f32.mrf.mxu2  ;;  %5014 = vmatpush.bf16.msra.mxu1 %v9073_v43  ;;  %v10875_v43 = vld [vmem:[%s17764_s5 + $0xcc] sm:$0xf] }
 0x4e7   : > { %v8729_v1 = vor.u32 %v10875_v43, %v8726_v60  ;;  %v10871_v60 = vld [vmem:[%s17764_s5 + $0xac] sm:$0xf] }
 0x4e9   : > { %5273 = vmatpush.bf16.msra.mxu2 %v8729_v1  ;;  %v8710_v1 = vld [vmem:[%s17764_s5 + $0xb8] sm:$0xf0] }
 0x4ea   : > { %5015 = vmatpush.bf16.msra.mxu1 %v9057_v45  ;;  %v10861_v45 = vld [vmem:[%s17764_s5 + $0x54] sm:$0xf0] }
 0x4eb   : > { %v4764_v8 = vpop.f32.mrf.mxu0  ;;  %9501 = vmatmul.msk.bf16.vlgmr.msra.gmra.mxu3 %vm15188_vm2, %v14949_v32  ;;  %5164 = vmatmul.bf16.vlgmr.msrb.gmra.mxu2 %v14616_v52  ;;  %v8661_v43 = vor.u32 %v10861_v45, %v8660_v20  ;;  %v8644_v20 = vld [vmem:[%s17764_s5 + $0x28] sm:$0xf]  ;;  %v10953_v52 = vld [vmem:[%s17764_s5 + $0x334] sm:$0xf0]  ;;  %v10855_v32 = vld [vmem:[%s17764_s5 + $0x2c] sm:$0xf] }
 0x4ec   : > { %v15573_v4 = vadd.f32 %v4764_v8, %v15537_v61  ;;  %v8676_v8 = vld [vmem:[%s17764_s5 + $0x68] sm:$0xf] }
 0x4ed   : > { %v8677_v62 = vor.u32 %v10865_v39, %v8676_v8  ;;  %v9041_v8 = vor.u32 %v10954_v6, %v9038_v59  ;;  %v9092_v39 = vld [vmem:[%s17764_s5 + $0x3a8] sm:$0xf]  ;;  %v10950_v6 = vld [vmem:[%s17764_s5 + $0x324] sm:$0xf]  ;;  %v9022_v59 = vld [vmem:[%s17764_s5 + $0x330] sm:$0xf0] }
 0x4ee   : > { %v15593_v10 = vpop.f32.mrf.mxu3  ;;  %9441 = vmatmul.msk.bf16.gmra.mxu1 %vm15264_vm7, %v15095_v23  ;;  %v15598_v57 = vpop.f32.mrf.mxu2  ;;  %4995 = vmatmul.bf16.gmra.mxu0 %v14683_v25  ;;  %v9093_v15 = vor.u32 %v10969_v55, %v9092_v39  ;;  %v9025_v45 = vor.u32 %v10950_v6, %v9022_v59  ;;  %v10857_v39 = vld [vmem:[%s17764_s5 + $0x34] sm:$0xf0]  ;;  %v9076_v55 = vld [vmem:[%s17764_s5 + $0x388] sm:$0xf] }
 0x4ef   : > { %5102 = vmatpush.bf16.msrb.mxu0 %v8677_v62  ;;  %5016 = vmatpush.bf16.msra.mxu1 %v9041_v8  ;;  %v10867_v8 = vld [vmem:[%s17764_s5 + $0x8c] sm:$0xf] }
 0x4f0   : > { %5187 = vmatpush.bf16.msrb.mxu3 %v9093_v15 }
 0x4f3   : > { %v4766_v28 = vpop.f32.mrf.mxu0  ;;  %5103 = vmatpush.bf16.msrb.mxu0 %v8661_v43  ;;  %v8694_v43 = vld [vmem:[%s17764_s5 + $0x98] sm:$0xf0]  ;;  %5017 = vmatpush.bf16.msra.mxu1 %v9025_v45  ;;  %v10946_v45 = vld [vmem:[%s17764_s5 + $0x304] sm:$0xf] }
 0x4f4   : > { %v15632_v46 = vadd.f32 %v4766_v28, %v15537_v61  ;;  %v8713_v28 = vor.u32 %v10871_v60, %v8710_v1  ;;  %v10965_v60 = vld [vmem:[%s17764_s5 + $0x394] sm:$0xf0]  ;;  %v8645_v1 = vor.u32 %v10857_v39, %v8644_v20  ;;  %v8697_v6 = vor.u32 %v10867_v8, %v8694_v43  ;;  %v9060_v43 = vld [vmem:[%s17764_s5 + $0x368] sm:$0xf] }
 0x4f5   : > { %v9077_v49 = vor.u32 %v10965_v60, %v9076_v55  ;;  %v10853_v8 = vld [vmem:[%s17764_s5 + $0x14] sm:$0xf0] }
 0x4f6   : > { %v15652_v22 = vpop.f32.mrf.mxu3  ;;  %v15654_v62 = vpop.f32.mrf.mxu2  ;;  %5274 = vmatpush.bf16.msra.mxu2 %v8713_v28  ;;  %v15694_v28 = vperm.slane %v15516_v31, 1  ;;  %v8628_v31 = vld [vmem:[%s17764_s5 + $0x8] sm:$0xf] }
 0x4f7   : > { %5104 = vmatpush.bf16.msrb.mxu0 %v8645_v1  ;;  %5188 = vmatpush.bf16.msrb.mxu3 %v9077_v49  ;;  %v9006_v49 = vld [vmem:[%s17764_s5 + $0x310] sm:$0xf0] }
 0x4f8   : > { %v9009_v1 = vor.u32 %v10946_v45, %v9006_v49  ;;  %v10863_v45 = vld [vmem:[%s17764_s5 + $0x6c] sm:$0xf]  ;;  %v8678_v49 = vld [vmem:[%s17764_s5 + $0x78] sm:$0xf0] }
 0x4fa   : > { %5275 = vmatpush.bf16.msra.mxu2 %v8697_v6  ;;  %v10961_v6 = vld [vmem:[%s17764_s5 + $0x374] sm:$0xf0]  ;;  %5018 = vmatpush.bf16.msra.mxu1 %v9009_v1 }
 0x4fb   : > { %v4769_v59 = vpop.f32.mrf.mxu0  ;;  %9505 = vmatmul.msk.bf16.gmra.mxu3 %vm15264_vm7, %v15095_v23  ;;  %5169 = vmatmul.bf16.gmra.mxu2 %v14683_v25  ;;  %v9061_v3 = vor.u32 %v10961_v6, %v9060_v43  ;;  %v9044_v25 = vld [vmem:[%s17764_s5 + $0x348] sm:$0xf]  ;;  %v8681_v23 = vor.u32 %v10863_v45, %v8678_v49 }
 0x4fc   : > { %v15691_v15 = vadd.f32 %v4769_v59, %v15537_v61  ;;  %v9028_v49 = vld [vmem:[%s17764_s5 + $0x328] sm:$0xf] }
 0x4fd   : > { %5189 = vmatpush.bf16.msrb.mxu3 %v9061_v3  ;;  %v9029_v3 = vor.u32 %v10953_v52, %v9028_v49  ;;  %v8630_v52 = vld [vmem:[%s17764_s5 + $0x18] sm:$0xf0] }
 0x4fe   : > { %v15696_v20 = vpop.f32.mrf.mxu3  ;;  %9445 = vmatmul.msk.bf16.gmra.mxu1 %vm15396_vm6, %v15165_v24  ;;  %v4938_v39 = vpop.f32.mrf.mxu2  ;;  %5000 = vmatmul.bf16.gmra.mxu0 %v14760_v26 }
 0x4ff   : > { %v15703_v55 = vadd.f32 %v4938_v39, %v15694_v28  ;;  %v8629_v39 = vor.u32 %v10853_v8, %v8628_v31  ;;  %v10859_v31 = vld [vmem:[%s17764_s5 + $0x4c] sm:$0xf]  ;;  %v8662_v8 = vld [vmem:[%s17764_s5 + $0x58] sm:$0xf0]  ;;  %5276 = vmatpush.bf16.msra.mxu2 %v8681_v23 }
 0x500   : > { %v8665_v45 = vor.u32 %v10859_v31, %v8662_v8  ;;  %v10851_v31 = vld [vmem:[%s17764_s5 + $0xc] sm:$0xf] }
 0x501   : > { %5105 = vmatpush.bf16.msrb.mxu0 %v8629_v39  ;;  %v9012_v39 = vld [vmem:[%s17764_s5 + $0x308] sm:$0xf] }
 0x503   : > { %v4771_v60 = vpop.f32.mrf.mxu0  ;;  %5277 = vmatpush.bf16.msra.mxu2 %v8665_v45  ;;  %v8633_v45 = vor.u32 %v10851_v31, %v8630_v52 }
 0x504   : > { %v15724_v59 = vadd.f32 %v4771_v60, %v15537_v61  ;;  %v10957_v60 = vld [vmem:[%s17764_s5 + $0x354] sm:$0xf0] }
 0x505   : > { %v9045_v1 = vor.u32 %v10957_v60, %v9044_v25  ;;  %v8646_v25 = vld [vmem:[%s17764_s5 + $0x38] sm:$0xf0]  ;;  %v10949_v60 = vld [vmem:[%s17764_s5 + $0x314] sm:$0xf0] }
 0x506   : > { %v15744_v43 = vpop.f32.mrf.mxu3  ;;  %v15746_v6 = vpop.f32.mrf.mxu2  ;;  %v8649_v23 = vor.u32 %v10855_v32, %v8646_v25 }
 0x507   : > { %5190 = vmatpush.bf16.msrb.mxu3 %v9045_v1  ;;  %v9013_v1 = vor.u32 %v10949_v60, %v9012_v39 }
 0x508   : > { %5278 = vmatpush.bf16.msra.mxu2 %v8649_v23 }
 0x50b   : > { %v15757_v34 = vpop.f32.mrf.mxu0  ;;  %9509 = vmatmul.msk.bf16.gmra.mxu3 %vm15396_vm6, %v15165_v24  ;;  %5174 = vmatmul.bf16.gmra.mxu2 %v14760_v26 }
 0x50c   : > { %5191 = vmatpush.bf16.msrb.mxu3 %v9029_v3  ;;  %5279 = vmatpush.bf16.msra.mxu2 %v8633_v45 }
 0x50e   : > { %v15778_v8 = vpop.f32.mrf.mxu3  ;;  %9449 = vmatmul.msk.bf16.gmra.mxu1 %vm15479_vm11, %v15200_v63  ;;  %v15783_v32 = vpop.f32.mrf.mxu2  ;;  %5005 = vmatmul.bf16.gmra.mxu0 %v14805_v30 }
 0x510   : > { %5192 = vmatpush.bf16.msrb.mxu3 %v9013_v1 }
 0x513   : > { %v4776_v49 = vpop.f32.mrf.mxu0 }
 0x514   : > { %v15787_v25 = vadd.f32 %v4776_v49, %v15537_v61 }
 0x516   : > { %v15789_v26 = vpop.f32.mrf.mxu3  ;;  %v4945_v24 = vpop.f32.mrf.mxu2 }
 0x517   : > { %v15792_v51 = vadd.f32 %v4945_v24, %v15694_v28 }
 0x51b   : > { %v4788_v13 = vpop.f32.mrf.mxu1  ;;  %v15796_v3 = vpop.f32.mrf.mxu0  ;;  %9513 = vmatmul.msk.bf16.gmra.mxu3 %vm15479_vm11, %v15200_v63  ;;  %5179 = vmatmul.bf16.gmra.mxu2 %v14805_v30 }
 0x51c   : > { %v4789_v23 = vadd.f32 %v4788_v13, %v4760_v38  ;;  %v10913_v13 = vld [vmem:[%s17764_s5 + $0x1f4] sm:$0xf0] }
 0x51d   : > { %v8869_v52 = vor.u32 %v10913_v13, %v8868_v47  ;;  %v8852_v47 = vld [vmem:[%s17764_s5 + $0x1c8] sm:$0xf] }
 0x51e   : > { %v4818_v39 = vadd.f32 %v15300_v35, %v4789_v23  ;;  %v15803_v60 = vpop.f32.mrf.mxu3  ;;  %5019 = vmatmul.bf16.vlgmr.msra.gmra.mxu1 %v14873_v0  ;;  %9517 = vmatmul.msk.bf16.vlgmr.msrb.gmra.mxu0 %vm14817_vm8, %v14827_v21  ;;  %v9252_v35 = vld [vmem:[%s17764_s5 + $0x4e8] sm:$0xf]  ;;  %v15829_v30 = vpop.f32.mrf.mxu2 }
 0x51f   : > { %5127 = vmatpush.bf16.msrb.mxu1 %v8869_v52  ;;  %v10905_v52 = vld [vmem:[%s17764_s5 + $0x1b4] sm:$0xf0] }
 0x520   : > { %v15810_v24 = vadd.f32 %v15593_v10, %v4818_v39  ;;  %v11009_v10 = vld [vmem:[%s17764_s5 + $0x4f4] sm:$0xf0] }
 0x521   : > { %v9253_v45 = vor.u32 %v11009_v10, %v9252_v35 }
 0x523   : > { %v4790_v38 = vpop.f32.mrf.mxu1  ;;  %v4877_v31 = vpop.f32.mrf.mxu0  ;;  %5214 = vmatpush.bf16.msra.mxu0 %v9253_v45  ;;  %v11001_v45 = vld [vmem:[%s17764_s5 + $0x4b4] sm:$0xf0] }
 0x524   : > { %v4791_v1 = vadd.f32 %v4790_v38, %v15540_v54  ;;  %v10909_v54 = vld [vmem:[%s17764_s5 + $0x1d4] sm:$0xf0] }
 0x525   : > { %v11005_v38 = vld [vmem:[%s17764_s5 + $0x4d4] sm:$0xf0] }
 0x526   : > { %v4820_v49 = vadd.f32 %v15355_v9, %v4791_v1  ;;  %v15826_v23 = vpop.f32.mrf.mxu3  ;;  %v9236_v9 = vld [vmem:[%s17764_s5 + $0x4c8] sm:$0xf] }
 0x527   : > { %v9237_v1 = vor.u32 %v11005_v38, %v9236_v9 }
 0x528   : > { %v4849_v39 = vadd.f32 %v15652_v22, %v4820_v49  ;;  %v8853_v22 = vor.u32 %v10909_v54, %v8852_v47  ;;  %v4934_v49 = vadd.f32 %v15598_v57, %v15694_v28  ;;  %v10901_v57 = vld [vmem:[%s17764_s5 + $0x194] sm:$0xf0] }
 0x529   : > { %5215 = vmatpush.bf16.msra.mxu0 %v9237_v1  ;;  %v8870_v1 = vld [vmem:[%s17764_s5 + $0x1f8] sm:$0xf0] }
 0x52a   : > { %v15831_v63 = vadd.f32 %v4877_v31, %v4849_v39  ;;  %v8836_v31 = vld [vmem:[%s17764_s5 + $0x1a8] sm:$0xf]  ;;  %5128 = vmatpush.bf16.msrb.mxu1 %v8853_v22 }
 0x52b   : > { %v4793_v13 = vpop.f32.mrf.mxu1  ;;  %v4880_v35 = vpop.f32.mrf.mxu0  ;;  %5193 = vmatmul.bf16.vlgmr.msrb.gmra.mxu3 %v14873_v0  ;;  %9581 = vmatmul.msk.bf16.vlgmr.msra.gmra.mxu2 %vm14817_vm8, %v14827_v21  ;;  %v9220_v21 = vld [vmem:[%s17764_s5 + $0x4a8] sm:$0xf]  ;;  %v8837_v39 = vor.u32 %v10905_v52, %v8836_v31 }
 0x52c   : > { %v4794_v10 = vadd.f32 %v4793_v13, %v15573_v4  ;;  %v9221_v9 = vor.u32 %v11001_v45, %v9220_v21  ;;  %v9204_v22 = vld [vmem:[%s17764_s5 + $0x488] sm:$0xf]  ;;  %v15892_v21 = vpop.f32.mrf.mxu2 }
 0x52e   : > { %v4823_v47 = vadd.f32 %v15423_v16, %v4794_v10  ;;  %v4962_v54 = vpop.f32.mrf.mxu3  ;;  %5024 = vmatmul.bf16.gmra.mxu1 %v14984_v7  ;;  %9521 = vmatmul.msk.bf16.gmra.mxu0 %vm14876_vm10, %v14916_v44  ;;  %v8820_v16 = vld [vmem:[%s17764_s5 + $0x188] sm:$0xf] }
 0x52f   : > { %v15869_v4 = vadd.f32 %v4962_v54, %v4934_v49  ;;  %5129 = vmatpush.bf16.msrb.mxu1 %v8837_v39  ;;  %5216 = vmatpush.bf16.msra.mxu0 %v9221_v9  ;;  %v8821_v10 = vor.u32 %v10901_v57, %v8820_v16  ;;  %v9254_v54 = vld [vmem:[%s17764_s5 + $0x4f8] sm:$0xf0]  ;;  %v8804_v9 = vld [vmem:[%s17764_s5 + $0x168] sm:$0xf] }
 0x530   : > { %v4852_v13 = vadd.f32 %v15696_v20, %v4823_v47  ;;  %v10997_v20 = vld [vmem:[%s17764_s5 + $0x494] sm:$0xf0]  ;;  %v11007_v47 = vld [vmem:[%s17764_s5 + $0x4ec] sm:$0xf]  ;;  %v9188_v57 = vld [vmem:[%s17764_s5 + $0x468] sm:$0xf] }
 0x531   : > { %v9205_v49 = vor.u32 %v10997_v20, %v9204_v22  ;;  %v9257_v16 = vor.u32 %v11007_v47, %v9254_v54  ;;  %v10993_v22 = vld [vmem:[%s17764_s5 + $0x474] sm:$0xf0] }
 0x532   : > { %v15872_v38 = vadd.f32 %v4880_v35, %v4852_v13  ;;  %v10911_v35 = vld [vmem:[%s17764_s5 + $0x1ec] sm:$0xf]  ;;  %v4936_v13 = vadd.f32 %v15654_v62, %v15694_v28  ;;  %v9189_v54 = vor.u32 %v10993_v22, %v9188_v57  ;;  %v10989_v57 = vld [vmem:[%s17764_s5 + $0x454] sm:$0xf0] }
 0x533   : > { %v4795_v31 = vpop.f32.mrf.mxu1  ;;  %v4882_v52 = vpop.f32.mrf.mxu0  ;;  %v8873_v39 = vor.u32 %v10911_v35, %v8870_v1  ;;  %5130 = vmatpush.bf16.msrb.mxu1 %v8821_v10  ;;  %v10907_v62 = vld [vmem:[%s17764_s5 + $0x1cc] sm:$0xf]  ;;  %v8854_v10 = vld [vmem:[%s17764_s5 + $0x1d8] sm:$0xf0]  ;;  %5217 = vmatpush.bf16.msra.mxu0 %v9205_v49  ;;  %v10893_v49 = vld [vmem:[%s17764_s5 + $0x154] sm:$0xf0] }
 0x534   : > { %v4796_v45 = vadd.f32 %v4795_v31, %v15632_v46  ;;  %v10897_v46 = vld [vmem:[%s17764_s5 + $0x174] sm:$0xf0]  ;;  %v11003_v1 = vld [vmem:[%s17764_s5 + $0x4cc] sm:$0xf]  ;;  %5388 = vmatpush.bf16.msrb.mxu2 %v9257_v16  ;;  %v9172_v16 = vld [vmem:[%s17764_s5 + $0x448] sm:$0xf] }
 0x535   : > { %5301 = vmatpush.bf16.msra.mxu3 %v8873_v39  ;;  %v8805_v35 = vor.u32 %v10897_v46, %v8804_v9  ;;  %v10903_v22 = vld [vmem:[%s17764_s5 + $0x1ac] sm:$0xf] }
 0x536   : > { %v4825_v31 = vadd.f32 %v15459_v56, %v4796_v45  ;;  %v4964_v20 = vpop.f32.mrf.mxu3  ;;  %v8857_v56 = vor.u32 %v10907_v62, %v8854_v10  ;;  %v9238_v45 = vld [vmem:[%s17764_s5 + $0x4d8] sm:$0xf0]  ;;  %v9173_v62 = vor.u32 %v10989_v57, %v9172_v16 }
 0x537   : > { %v15925_v47 = vadd.f32 %v4964_v20, %v4936_v13  ;;  %v9241_v9 = vor.u32 %v11003_v1, %v9238_v45  ;;  %5131 = vmatpush.bf16.msrb.mxu1 %v8805_v35  ;;  %v8788_v13 = vld [vmem:[%s17764_s5 + $0x148] sm:$0xf]  ;;  %5218 = vmatpush.bf16.msra.mxu0 %v9189_v54  ;;  %v9222_v1 = vld [vmem:[%s17764_s5 + $0x4b8] sm:$0xf0]  ;;  %v10985_v54 = vld [vmem:[%s17764_s5 + $0x434] sm:$0xf0] }
 0x538   : > { %v4854_v39 = vadd.f32 %v15744_v43, %v4825_v31  ;;  %v8838_v31 = vld [vmem:[%s17764_s5 + $0x1b8] sm:$0xf0] }
 0x539   : > { %5302 = vmatpush.bf16.msra.mxu3 %v8857_v56  ;;  %5389 = vmatpush.bf16.msrb.mxu2 %v9241_v9  ;;  %v8841_v10 = vor.u32 %v10903_v22, %v8838_v31  ;;  %v8772_v56 = vld [vmem:[%s17764_s5 + $0x128] sm:$0xf]  ;;  %v15974_v9 = vpop.f32.mrf.mxu2  ;;  %v9206_v31 = vld [vmem:[%s17764_s5 + $0x498] sm:$0xf0] }
 0x53a   : > { %v15931_v46 = vadd.f32 %v4882_v52, %v4854_v39  ;;  %v8789_v52 = vor.u32 %v10893_v49, %v8788_v13  ;;  %v9156_v39 = vld [vmem:[%s17764_s5 + $0x428] sm:$0xf] }
 0x53b   : > { %v4798_v20 = vpop.f32.mrf.mxu1  ;;  %v4885_v43 = vpop.f32.mrf.mxu0  ;;  %5198 = vmatmul.bf16.gmra.mxu3 %v14984_v7  ;;  %9585 = vmatmul.msk.bf16.gmra.mxu2 %vm14876_vm10, %v14916_v44  ;;  %v10999_v44 = vld [vmem:[%s17764_s5 + $0x4ac] sm:$0xf] }
 0x53c   : > { %v4799_v35 = vadd.f32 %v4798_v20, %v15691_v15  ;;  %5132 = vmatpush.bf16.msrb.mxu1 %v8789_v52  ;;  %v9225_v45 = vor.u32 %v10999_v44, %v9222_v1  ;;  %v10889_v15 = vld [vmem:[%s17764_s5 + $0x134] sm:$0xf0]  ;;  %v10899_v20 = vld [vmem:[%s17764_s5 + $0x18c] sm:$0xf]  ;;  %v8822_v52 = vld [vmem:[%s17764_s5 + $0x198] sm:$0xf0]  ;;  %5219 = vmatpush.bf16.msra.mxu0 %v9173_v62 }
 0x53d   : > { %v8773_v16 = vor.u32 %v10889_v15, %v8772_v56  ;;  %5303 = vmatpush.bf16.msra.mxu3 %v8841_v10  ;;  %v8825_v22 = vor.u32 %v10899_v20, %v8822_v52  ;;  %v10885_v44 = vld [vmem:[%s17764_s5 + $0x114] sm:$0xf0]  ;;  %v9140_v10 = vld [vmem:[%s17764_s5 + $0x408] sm:$0xf]  ;;  %v10991_v62 = vld [vmem:[%s17764_s5 + $0x46c] sm:$0xf] }
 0x53e   : > { %v4828_v13 = vadd.f32 %v15498_v33, %v4799_v35  ;;  %v4967_v49 = vpop.f32.mrf.mxu3  ;;  %5029 = vmatmul.bf16.gmra.mxu1 %v15113_v11  ;;  %9525 = vmatmul.msk.bf16.gmra.mxu0 %vm14991_vm12, %v15010_v29  ;;  %v10995_v33 = vld [vmem:[%s17764_s5 + $0x48c] sm:$0xf]  ;;  %v8756_v35 = vld [vmem:[%s17764_s5 + $0x108] sm:$0xf]  ;;  %v10981_v15 = vld [vmem:[%s17764_s5 + $0x414] sm:$0xf0] }
 0x53f   : > { %v15991_v57 = vadd.f32 %v4967_v49, %v15703_v55  ;;  %5390 = vmatpush.bf16.msrb.mxu2 %v9225_v45  ;;  %v9157_v55 = vor.u32 %v10985_v54, %v9156_v39  ;;  %v9209_v56 = vor.u32 %v10995_v33, %v9206_v31  ;;  %v10895_v49 = vld [vmem:[%s17764_s5 + $0x16c] sm:$0xf]  ;;  %v8757_v20 = vor.u32 %v10885_v44, %v8756_v35  ;;  %v9190_v45 = vld [vmem:[%s17764_s5 + $0x478] sm:$0xf0] }
 0x540   : > { %v4857_v1 = vadd.f32 %v15778_v8, %v4828_v13  ;;  %5133 = vmatpush.bf16.msrb.mxu1 %v8773_v16  ;;  %v8806_v8 = vld [vmem:[%s17764_s5 + $0x178] sm:$0xf0]  ;;  %v9141_v33 = vor.u32 %v10981_v15, %v9140_v10  ;;  %v9193_v31 = vor.u32 %v10991_v62, %v9190_v45  ;;  %v10891_v35 = vld [vmem:[%s17764_s5 + $0x14c] sm:$0xf]  ;;  %v4941_v44 = vadd.f32 %v15746_v6, %v15694_v28 }
 0x541   : > { %5304 = vmatpush.bf16.msra.mxu3 %v8825_v22  ;;  %v8809_v52 = vor.u32 %v10895_v49, %v8806_v8  ;;  %5220 = vmatpush.bf16.msra.mxu0 %v9157_v55  ;;  %v9174_v22 = vld [vmem:[%s17764_s5 + $0x458] sm:$0xf0]  ;;  %v16041_v6 = vpop.f32.mrf.mxu2  ;;  %v10983_v8 = vld [vmem:[%s17764_s5 + $0x42c] sm:$0xf] }
 0x542   : > { %v16021_v39 = vadd.f32 %v4885_v43, %v4857_v1  ;;  %v8790_v43 = vld [vmem:[%s17764_s5 + $0x158] sm:$0xf0] }
 0x543   : > { %v4800_v54 = vpop.f32.mrf.mxu1  ;;  %v4887_v13 = vpop.f32.mrf.mxu0  ;;  %5391 = vmatpush.bf16.msrb.mxu2 %v9209_v56  ;;  %v8793_v15 = vor.u32 %v10891_v35, %v8790_v43  ;;  %v10979_v35 = vld [vmem:[%s17764_s5 + $0x40c] sm:$0xf] }
 0x544   : > { %v4801_v16 = vadd.f32 %v4800_v54, %v15724_v59  ;;  %5134 = vmatpush.bf16.msrb.mxu1 %v8757_v20  ;;  %v10987_v59 = vld [vmem:[%s17764_s5 + $0x44c] sm:$0xf] }
 0x545   : > { %5305 = vmatpush.bf16.msra.mxu3 %v8809_v52  ;;  %5221 = vmatpush.bf16.msra.mxu0 %v9141_v33  ;;  %v9177_v49 = vor.u32 %v10987_v59, %v9174_v22  ;;  %v10887_v20 = vld [vmem:[%s17764_s5 + $0x12c] sm:$0xf] }
 0x546   : > { %v4830_v1 = vadd.f32 %v15503_v50, %v4801_v16  ;;  %v4969_v55 = vpop.f32.mrf.mxu3  ;;  %v8774_v50 = vld [vmem:[%s17764_s5 + $0x138] sm:$0xf0]  ;;  %v10883_v33 = vld [vmem:[%s17764_s5 + $0x10c] sm:$0xf] }
 0x547   : > { %v16039_v56 = vadd.f32 %v4969_v55, %v4941_v44  ;;  %5392 = vmatpush.bf16.msrb.mxu2 %v9193_v31  ;;  %v8777_v52 = vor.u32 %v10887_v20, %v8774_v50  ;;  %v8758_v31 = vld [vmem:[%s17764_s5 + $0x118] sm:$0xf0] }
 0x548   : > { %v4859_v10 = vadd.f32 %v15789_v26, %v4830_v1  ;;  %v9158_v26 = vld [vmem:[%s17764_s5 + $0x438] sm:$0xf0]  ;;  %v8761_v43 = vor.u32 %v10883_v33, %v8758_v31  ;;  %v10943_v33 = vld [vmem:[%s17764_s5 + $0x2ec] sm:$0xf] }
 0x549   : > { %5306 = vmatpush.bf16.msra.mxu3 %v8793_v15  ;;  %v9161_v16 = vor.u32 %v10983_v8, %v9158_v26  ;;  %v16086_v22 = vpop.f32.mrf.mxu2 }
 0x54a   : > { %v16056_v62 = vadd.f32 %v4887_v13, %v4859_v10  ;;  %v4944_v13 = vadd.f32 %v15783_v32, %v15694_v28 }
 0x54b   : > { %v16058_v45 = vpop.f32.mrf.mxu1  ;;  %v16060_v54 = vpop.f32.mrf.mxu0  ;;  %5203 = vmatmul.bf16.gmra.mxu3 %v15113_v11  ;;  %9589 = vmatmul.msk.bf16.gmra.mxu2 %vm14991_vm12, %v15010_v29  ;;  %v9142_v29 = vld [vmem:[%s17764_s5 + $0x418] sm:$0xf0] }
 0x54c   : > { %5393 = vmatpush.bf16.msrb.mxu2 %v9177_v49  ;;  %v9145_v59 = vor.u32 %v10979_v35, %v9142_v29 }
 0x54d   : > { %5307 = vmatpush.bf16.msra.mxu3 %v8777_v52 }
 0x54e   : > { %v4972_v44 = vpop.f32.mrf.mxu3  ;;  %5034 = vmatmul.bf16.gmra.mxu1 %v15175_v42  ;;  %9529 = vmatmul.msk.bf16.gmra.mxu0 %vm15136_vm14, %v15142_v2 }
 0x54f   : > { %v16084_v32 = vadd.f32 %v4972_v44, %v4944_v13  ;;  %v8998_v13 = vld [vmem:[%s17764_s5 + $0x2f8] sm:$0xf0] }
 0x550   : > { %5394 = vmatpush.bf16.msrb.mxu2 %v9161_v16  ;;  %v9001_v31 = vor.u32 %v10943_v33, %v8998_v13 }
 0x551   : > { %5308 = vmatpush.bf16.msra.mxu3 %v8761_v43 }
 0x552   : > { %5330 = vmatpush.bf16.msrb.mxu0 %v9001_v31 }
 0x553   : > { %v4805_v1 = vpop.f32.mrf.mxu1  ;;  %v4892_v55 = vpop.f32.mrf.mxu0 }
 0x554   : > { %v4806_v10 = vadd.f32 %v4805_v1, %v15787_v25  ;;  %5395 = vmatpush.bf16.msrb.mxu2 %v9145_v59  ;;  %v16102_v25 = vpop.f32.mrf.mxu2  ;;  %v4951_v59 = vadd.f32 %v15892_v21, %v15694_v28  ;;  %v9348_v21 = vld [vmem:[%s17764_s5 + $0x5a8] sm:$0xf] }
 0x556   : > { %v4835_v15 = vadd.f32 %v15554_v17, %v4806_v10  ;;  %v4974_v49 = vpop.f32.mrf.mxu3  ;;  %v9364_v10 = vld [vmem:[%s17764_s5 + $0x5c8] sm:$0xf] }
 0x557   : > { %v16091_v20 = vadd.f32 %v4974_v49, %v15792_v51  ;;  %v4949_v51 = vadd.f32 %v15829_v30, %v15694_v28  ;;  %v8982_v28 = vld [vmem:[%s17764_s5 + $0x2d8] sm:$0xf0] }
 0x558   : > { %v4864_v50 = vadd.f32 %v15826_v23, %v4835_v15  ;;  %v11037_v15 = vld [vmem:[%s17764_s5 + $0x5d4] sm:$0xf0] }
 0x55a   : > { %v16094_v8 = vadd.f32 %v4892_v55, %v4864_v50 }
 0x55b   : > { %v16096_v26 = vpop.f32.mrf.mxu1  ;;  %v4991_v52 = vpop.f32.mrf.mxu0  ;;  %5208 = vmatmul.bf16.gmra.mxu3 %v15175_v42  ;;  %9593 = vmatmul.msk.bf16.gmra.mxu2 %vm15136_vm14, %v15142_v2  ;;  %v9380_v2 = vld [vmem:[%s17764_s5 + $0x5e8] sm:$0xf] }
 0x55c   : > { %v16105_v17 = vadd.f32 %v4991_v52, %v15869_v4  ;;  %v11041_v4 = vld [vmem:[%s17764_s5 + $0x5f4] sm:$0xf0]  ;;  %v16137_v1 = vpop.f32.mrf.mxu2 }
 0x55d   : > { %v9381_v30 = vor.u32 %v11041_v4, %v9380_v2  ;;  %v11033_v52 = vld [vmem:[%s17764_s5 + $0x5b4] sm:$0xf0] }
 0x55e   : > { %v4977_v23 = vpop.f32.mrf.mxu3  ;;  %9533 = vmatmul.msk.bf16.vlgmr.msrb.gmra.mxu1 %vm14817_vm8, %v15194_v36  ;;  %9549 = vmatmul.msk.bf16.vlgmr.msra.gmra.mxu0 %vm15188_vm2, %v14664_v27  ;;  %v9349_v2 = vor.u32 %v11033_v52, %v9348_v21 }
 0x55f   : > { %v16121_v16 = vadd.f32 %v4977_v23, %v4949_v51  ;;  %5243 = vmatpush.bf16.msra.mxu1 %v9381_v30  ;;  %v10935_v51 = vld [vmem:[%s17764_s5 + $0x2ac] sm:$0xf]  ;;  %v8966_v23 = vld [vmem:[%s17764_s5 + $0x2b8] sm:$0xf0] }
 0x560   : > { %v8969_v33 = vor.u32 %v10935_v51, %v8966_v23  ;;  %v8934_v51 = vld [vmem:[%s17764_s5 + $0x278] sm:$0xf0]  ;;  %v11035_v23 = vld [vmem:[%s17764_s5 + $0x5cc] sm:$0xf] }
 0x563   : > { %v4906_v35 = vpop.f32.mrf.mxu1  ;;  %v4993_v29 = vpop.f32.mrf.mxu0 }
 0x564   : > { %v16130_v44 = vadd.f32 %v4906_v35, %v15831_v63  ;;  %v16133_v43 = vadd.f32 %v4993_v29, %v15925_v47  ;;  %v9365_v63 = vor.u32 %v11037_v15, %v9364_v10  ;;  %v10939_v47 = vld [vmem:[%s17764_s5 + $0x2cc] sm:$0xf]  ;;  %v8950_v29 = vld [vmem:[%s17764_s5 + $0x298] sm:$0xf0] }
 0x565   : > { %v8985_v50 = vor.u32 %v10939_v47, %v8982_v28  ;;  %v11025_v47 = vld [vmem:[%s17764_s5 + $0x574] sm:$0xf0]  ;;  %v10927_v28 = vld [vmem:[%s17764_s5 + $0x26c] sm:$0xf] }
 0x566   : > { %v4979_v55 = vpop.f32.mrf.mxu3  ;;  %5244 = vmatpush.bf16.msra.mxu1 %v9365_v63  ;;  %v9316_v63 = vld [vmem:[%s17764_s5 + $0x568] sm:$0xf] }
 0x567   : > { %v16145_v49 = vadd.f32 %v4979_v55, %v4951_v59  ;;  %5331 = vmatpush.bf16.msrb.mxu0 %v8985_v50  ;;  %v11039_v59 = vld [vmem:[%s17764_s5 + $0x5ec] sm:$0xf]  ;;  %v9382_v55 = vld [vmem:[%s17764_s5 + $0x5f8] sm:$0xf0]  ;;  %v9317_v52 = vor.u32 %v11025_v47, %v9316_v63  ;;  %v11017_v63 = vld [vmem:[%s17764_s5 + $0x534] sm:$0xf0] }
 0x568   : > { %v9385_v15 = vor.u32 %v11039_v59, %v9382_v55 }
 0x56a   : > { %5245 = vmatpush.bf16.msra.mxu1 %v9349_v2  ;;  %v9366_v2 = vld [vmem:[%s17764_s5 + $0x5d8] sm:$0xf0]  ;;  %5417 = vmatpush.bf16.msrb.mxu3 %v9385_v15  ;;  %v9284_v15 = vld [vmem:[%s17764_s5 + $0x528] sm:$0xf] }
 0x56b   : > { %v4909_v4 = vpop.f32.mrf.mxu1  ;;  %v4996_v30 = vpop.f32.mrf.mxu0  ;;  %9597 = vmatmul.msk.bf16.vlgmr.msra.gmra.mxu3 %vm14817_vm8, %v15194_v36  ;;  %9613 = vmatmul.msk.bf16.vlgmr.msrb.gmra.mxu2 %vm15188_vm2, %v14664_v27  ;;  %v11029_v36 = vld [vmem:[%s17764_s5 + $0x594] sm:$0xf0] }
 0x56c   : > { %v16172_v13 = vadd.f32 %v4909_v4, %v15872_v38  ;;  %v16175_v31 = vadd.f32 %v4996_v30, %v15991_v57  ;;  %5332 = vmatpush.bf16.msrb.mxu0 %v8969_v33  ;;  %v16185_v27 = vpop.f32.mrf.mxu2  ;;  %v10931_v38 = vld [vmem:[%s17764_s5 + $0x28c] sm:$0xf]  ;;  %v9333_v57 = vor.u32 %v11029_v36, %v9332_v41  ;;  %v8937_v33 = vor.u32 %v10927_v28, %v8934_v51  ;;  %v9334_v51 = vld [vmem:[%s17764_s5 + $0x598] sm:$0xf0] }
 0x56d   : > { %v8953_v10 = vor.u32 %v10931_v38, %v8950_v29  ;;  %v9369_v41 = vor.u32 %v11035_v23, %v9366_v2  ;;  %v9300_v38 = vld [vmem:[%s17764_s5 + $0x548] sm:$0xf]  ;;  %v11031_v29 = vld [vmem:[%s17764_s5 + $0x5ac] sm:$0xf]  ;;  %v4775_v23 = vadd.f32 %v15757_v34, %v15537_v61 }
 0x56e   : > { %v16177_v35 = vpop.f32.mrf.mxu3  ;;  %9537 = vmatmul.msk.bf16.gmra.mxu1 %vm14876_vm10, %v15285_v14  ;;  %9553 = vmatmul.msk.bf16.gmra.mxu0 %vm15264_vm7, %v14747_v18  ;;  %v10919_v28 = vld [vmem:[%s17764_s5 + $0x22c] sm:$0xf] }
 0x56f   : > { %5246 = vmatpush.bf16.msra.mxu1 %v9333_v57  ;;  %v11021_v57 = vld [vmem:[%s17764_s5 + $0x554] sm:$0xf0]  ;;  %5418 = vmatpush.bf16.msrb.mxu3 %v9369_v41  ;;  %v9285_v41 = vor.u32 %v11017_v63, %v9284_v15  ;;  %v11023_v15 = vld [vmem:[%s17764_s5 + $0x56c] sm:$0xf] }
 0x570   : > { %5333 = vmatpush.bf16.msrb.mxu0 %v8953_v10  ;;  %v9301_v59 = vor.u32 %v11021_v57, %v9300_v38  ;;  %v9350_v10 = vld [vmem:[%s17764_s5 + $0x5b8] sm:$0xf0] }
 0x571   : > { %v9353_v47 = vor.u32 %v11031_v29, %v9350_v10  ;;  %v8886_v10 = vld [vmem:[%s17764_s5 + $0x218] sm:$0xf0] }
 0x573   : > { %v4911_v21 = vpop.f32.mrf.mxu1  ;;  %v4998_v50 = vpop.f32.mrf.mxu0  ;;  %5247 = vmatpush.bf16.msra.mxu1 %v9317_v52  ;;  %v11027_v52 = vld [vmem:[%s17764_s5 + $0x58c] sm:$0xf]  ;;  %5419 = vmatpush.bf16.msrb.mxu3 %v9353_v47 }
 0x574   : > { %v16224_v4 = vadd.f32 %v4911_v21, %v15931_v46  ;;  %v16227_v30 = vadd.f32 %v4998_v50, %v16039_v56  ;;  %v10923_v46 = vld [vmem:[%s17764_s5 + $0x24c] sm:$0xf]  ;;  %v8918_v56 = vld [vmem:[%s17764_s5 + $0x258] sm:$0xf0]  ;;  %5334 = vmatpush.bf16.msrb.mxu0 %v8937_v33  ;;  %v16261_v50 = vpop.f32.mrf.mxu2  ;;  %v9337_v61 = vor.u32 %v11027_v52, %v9334_v51 }
 0x575   : > { %v8921_v55 = vor.u32 %v10923_v46, %v8918_v56  ;;  %v8902_v21 = vld [vmem:[%s17764_s5 + $0x238] sm:$0xf0]  ;;  %v4804_v46 = vadd.f32 %v16058_v45, %v4775_v23  ;;  %v11013_v45 = vld [vmem:[%s17764_s5 + $0x514] sm:$0xf0]  ;;  %v11019_v23 = vld [vmem:[%s17764_s5 + $0x54c] sm:$0xf] }
 0x576   : > { %v16229_v36 = vpop.f32.mrf.mxu3  ;;  %v8905_v34 = vor.u32 %v10919_v28, %v8902_v21  ;;  %v9318_v52 = vld [vmem:[%s17764_s5 + $0x578] sm:$0xf0] }
 0x577   : > { %5248 = vmatpush.bf16.msra.mxu1 %v9301_v59  ;;  %5420 = vmatpush.bf16.msrb.mxu3 %v9337_v61  ;;  %v9321_v51 = vor.u32 %v11023_v15, %v9318_v52  ;;  %v9286_v61 = vld [vmem:[%s17764_s5 + $0x538] sm:$0xf0] }
 0x578   : > { %5335 = vmatpush.bf16.msrb.mxu0 %v8921_v55  ;;  %v10915_v55 = vld [vmem:[%s17764_s5 + $0x20c] sm:$0xf] }
 0x579   : > { %v8889_v21 = vor.u32 %v10915_v55, %v8886_v10 }
 0x57b   : > { %v4914_v2 = vpop.f32.mrf.mxu1  ;;  %v5001_v33 = vpop.f32.mrf.mxu0  ;;  %9601 = vmatmul.msk.bf16.gmra.mxu3 %vm14876_vm10, %v15285_v14  ;;  %9617 = vmatmul.msk.bf16.gmra.mxu2 %vm15264_vm7, %v14747_v18  ;;  %v18378_v14 = vld [vmem:[#allocation59_spill] sm:$0xff] }
 0x57c   : > { %v16278_v38 = vadd.f32 %v4914_v2, %v16021_v39  ;;  %v16281_v57 = vadd.f32 %v5001_v33, %v16084_v32  ;;  %5249 = vmatpush.bf16.msra.mxu1 %v9285_v41  ;;  %5336 = vmatpush.bf16.msrb.mxu0 %v8905_v34  ;;  %v4833_v39 = vadd.f32 %v18378_v14, %v4804_v46  ;;  %v9268_v32 = vld [vmem:[%s17764_s5 + $0x508] sm:$0xf]  ;;  %v16308_v63 = vpop.f32.mrf.mxu2  ;;  %v9302_v2 = vld [vmem:[%s17764_s5 + $0x558] sm:$0xf0]  ;;  %v11015_v34 = vld [vmem:[%s17764_s5 + $0x52c] sm:$0xf] }
 0x57d   : > { %v9269_v59 = vor.u32 %v11013_v45, %v9268_v32  ;;  %5421 = vmatpush.bf16.msrb.mxu3 %v9321_v51  ;;  %v9305_v41 = vor.u32 %v11019_v23, %v9302_v2 }
 0x57e   : > { %18376 = vst [vmem:[#allocation58_spill] sm:$0xff] %v16278_v38  ;;  %v16284_v53 = vpop.f32.mrf.mxu3  ;;  %9541 = vmatmul.msk.bf16.gmra.mxu1 %vm14991_vm12, %v15400_v37  ;;  %9557 = vmatmul.msk.bf16.gmra.mxu0 %vm15396_vm6, %v14795_v48 }
 0x580   : > { %5250 = vmatpush.bf16.msra.mxu1 %v9269_v59  ;;  %5337 = vmatpush.bf16.msrb.mxu0 %v8889_v21 }
 0x581   : > { %5422 = vmatpush.bf16.msrb.mxu3 %v9305_v41 }
 0x583   : > { %v4916_v56 = vpop.f32.mrf.mxu1  ;;  %v5003_v29 = vpop.f32.mrf.mxu0 }
 0x584   : > { %v16311_v47 = vadd.f32 %v4916_v56, %v16056_v62  ;;  %v16314_v28 = vadd.f32 %v5003_v29, %v16091_v20  ;;  %v4862_v62 = vadd.f32 %v15803_v60, %v4833_v39  ;;  %v4876_v20 = vadd.f32 %v15796_v3, %v15810_v24  ;;  %v16358_v32 = vpop.f32.mrf.mxu2  ;;  %v18382_v56 = vld [vmem:[#allocation38_spill] sm:$0xff] }
 0x586   : > { %v16326_v33 = vpop.f32.mrf.mxu3  ;;  %v4891_v46 = vadd.f32 %v16060_v54, %v4862_v62  ;;  %v16338_v60 = vadd.f32 %v16096_v26, %v4876_v20  ;;  %v9289_v54 = vor.u32 %v11015_v34, %v9286_v61  ;;  %v11011_v26 = vld [vmem:[%s17764_s5 + $0x50c] sm:$0xf]  ;;  %v18384_v62 = vld [vmem:[#allocation49_spill] sm:$0xff]  ;;  %v18385_v20 = vld [vmem:[#allocation30_spill] sm:$0xff] }
 0x587   : > { %v9273_v59 = vor.u32 %v11011_v26, %v9270_v19  ;;  %v10975_v34 = vld [vmem:[%s17764_s5 + $0x3ec] sm:$0xf] }
 0x588   : > { %18379 = vst [vmem:[#allocation52_spill] sm:$0xff] %v16338_v60  ;;  %5423 = vmatpush.bf16.msrb.mxu3 %v9289_v54  ;;  %v9110_v54 = vld [vmem:[%s17764_s5 + $0x3d8] sm:$0xf0]  ;;  %v10967_v26 = vld [vmem:[%s17764_s5 + $0x3ac] sm:$0xf] }
 0x58b   : > { %v4919_v14 = vpop.f32.mrf.mxu1  ;;  %v5006_v39 = vpop.f32.mrf.mxu0  ;;  %9605 = vmatmul.msk.bf16.gmra.mxu3 %vm14991_vm12, %v15400_v37  ;;  %9621 = vmatmul.msk.bf16.gmra.mxu2 %vm15396_vm6, %v14795_v48  ;;  %v17972_v37 = vmax.f32 %v16338_v60, 0.0 }
 0x58c   : > { %v16346_v3 = vadd.f32 %v4919_v14, %v4891_v46  ;;  %v16349_v24 = vadd.f32 %v5006_v39, %v16121_v16  ;;  %v18381_v16 = vld [vmem:[#allocation32_spill] sm:$0xff]  ;;  %5424 = vmatpush.bf16.msrb.mxu3 %v9273_v59  ;;  %v16382_v51 = vpop.f32.mrf.mxu2 }
 0x58d   : > { %18383 = vst [vmem:[#allocation61_spill] sm:$0xff] %v16382_v51 }
 0x58e   : > { %18380 = vst [vmem:[#allocation64_spill] sm:$0xff] %v16346_v3  ;;  %v17971_v48 = vmax.f32 %v16346_v3, 0.0  ;;  %v16361_v45 = vpop.f32.mrf.mxu3  ;;  %9545 = vmatmul.msk.bf16.gmra.mxu1 %vm15136_vm14, %v18381_v16  ;;  %9561 = vmatmul.msk.bf16.gmra.mxu0 %vm15479_vm11, %v18382_v56 }
 0x590   : > { %v11480_v29 = vpack.i.bf16 %v17971_v48, %v17972_v37 }
 0x592   : > { %11481 = vrot.lane.b32.xlu0 %v11480_v29, %s11696_s14 }
 0x593   : > { %v4921_v55 = vpop.f32.mrf.mxu1  ;;  %v5008_v10 = vpop.f32.mrf.mxu0 }
 0x594   : > { %v16375_v15 = vadd.f32 %v4921_v55, %v16094_v8  ;;  %v16378_v21 = vadd.f32 %v5008_v10, %v16145_v49  ;;  %v16401_v12 = vpop.f32.mrf.mxu2 }
 0x596   : > { %v16380_v52 = vpop.f32.mrf.mxu3 }
 0x59b   : > { %v5020_v23 = vpop.f32.mrf.mxu1  ;;  %9609 = vmatmul.msk.bf16.gmra.mxu3 %vm15136_vm14, %v18381_v16  ;;  %9625 = vmatmul.msk.bf16.gmra.mxu2 %vm15479_vm11, %v18382_v56  ;;  %v9094_v16 = vld [vmem:[%s17764_s5 + $0x3b8] sm:$0xf0] }
 0x59c   : > { %v5021_v8 = vadd.f32 %v5020_v23, %v16105_v17  ;;  %v9097_v29 = vor.u32 %v10967_v26, %v9094_v16  ;;  %v16433_v59 = vpop.f32.mrf.mxu2  ;;  %v18386_v23 = vld [vmem:[#allocation47_spill] sm:$0xff] }
 0x59e   : > { %v5050_v2 = vadd.f32 %v15974_v9, %v5021_v8  ;;  %v16392_v49 = vpop.f32.mrf.mxu3  ;;  %9565 = vmatmul.msk.bf16.vlgmr.msra.gmra.mxu1 %vm15188_vm2, %v18384_v62  ;;  %5338 = vmatmul.bf16.vlgmr.msrb.gmra.mxu0 %v18385_v20  ;;  %v9126_v9 = vld [vmem:[%s17764_s5 + $0x3f8] sm:$0xf0]  ;;  %v18387_v8 = vld [vmem:[#allocation31_spill] sm:$0xff] }
 0x59f   : > { %v9129_v61 = vor.u32 %v10975_v34, %v9126_v9  ;;  %v10959_v34 = vld [vmem:[%s17764_s5 + $0x36c] sm:$0xf] }
 0x5a0   : > { %v16399_v41 = vadd.f32 %v16177_v35, %v5050_v2  ;;  %v10971_v35 = vld [vmem:[%s17764_s5 + $0x3cc] sm:$0xf] }
 0x5a1   : > { %5359 = vmatpush.bf16.msrb.mxu1 %v9129_v61  ;;  %v10963_v2 = vld [vmem:[%s17764_s5 + $0x38c] sm:$0xf] }
 0x5a3   : > { %v5022_v17 = vpop.f32.mrf.mxu1 }
 0x5a4   : > { %v5023_v46 = vadd.f32 %v5022_v17, %v16133_v43  ;;  %v16425_v43 = vpop.f32.mrf.mxu0  ;;  %v16461_v61 = vpop.f32.mrf.mxu2 }
 0x5a6   : > { %v5052_v14 = vadd.f32 %v16041_v6, %v5023_v46  ;;  %v16411_v39 = vpop.f32.mrf.mxu3  ;;  %v9113_v6 = vor.u32 %v10971_v35, %v9110_v54  ;;  %v10955_v35 = vld [vmem:[%s17764_s5 + $0x34c] sm:$0xf]  ;;  %v9046_v54 = vld [vmem:[%s17764_s5 + $0x358] sm:$0xf0] }
 0x5a8   : > { %v16423_v19 = vadd.f32 %v16229_v36, %v5052_v14  ;;  %5360 = vmatpush.bf16.msrb.mxu1 %v9113_v6  ;;  %v10951_v6 = vld [vmem:[%s17764_s5 + $0x32c] sm:$0xf] }
 0x5ab   : > { %v5025_v56 = vpop.f32.mrf.mxu1  ;;  %9629 = vmatmul.msk.bf16.vlgmr.msrb.gmra.mxu3 %vm15188_vm2, %v18384_v62 }
 0x5ac   : > { %v5026_v55 = vadd.f32 %v5025_v56, %v16175_v31  ;;  %5361 = vmatpush.bf16.msrb.mxu1 %v9097_v29  ;;  %v16452_v31 = vpop.f32.mrf.mxu0 }
 0x5ae   : > { %v5055_v36 = vadd.f32 %v16086_v22, %v5026_v55  ;;  %v16437_v10 = vpop.f32.mrf.mxu3  ;;  %9569 = vmatmul.msk.bf16.gmra.mxu1 %vm15264_vm7, %v18386_v23  ;;  %5343 = vmatmul.bf16.gmra.mxu0 %v18387_v8  ;;  %v9078_v22 = vld [vmem:[%s17764_s5 + $0x398] sm:$0xf0]  ;;  %v18391_v8 = vld [vmem:[#allocation67_spill] sm:$0xff] }
 0x5af   : > { %v9081_v20 = vor.u32 %v10963_v2, %v9078_v22  ;;  %v18392_v2 = vld [vmem:[#allocation57_spill] sm:$0xff]  ;;  %v16494_v22 = vpop.f32.mrf.mxu2 }
 0x5b0   : > { %v16444_v40 = vadd.f32 %v16284_v53, %v5055_v36  ;;  %v9062_v53 = vld [vmem:[%s17764_s5 + $0x378] sm:$0xf0] }
 0x5b1   : > { %5362 = vmatpush.bf16.msrb.mxu1 %v9081_v20  ;;  %v9065_v17 = vor.u32 %v10959_v34, %v9062_v53 }
 0x5b2   : > { %18388 = vst [vmem:[#allocation36_spill] sm:$0xff] %v16444_v40 }
 0x5b3   : > { %v5027_v62 = vpop.f32.mrf.mxu1 }
 0x5b4   : > { %v5028_v9 = vadd.f32 %v5027_v62, %v16227_v30  ;;  %v9049_v30 = vor.u32 %v10955_v35, %v9046_v54  ;;  %v16485_v29 = vpop.f32.mrf.mxu0 }
 0x5b5   : > { %5363 = vmatpush.bf16.msrb.mxu1 %v9065_v17 }
 0x5b6   : > { %v5057_v46 = vadd.f32 %v16102_v25, %v5028_v9  ;;  %v16464_v14 = vpop.f32.mrf.mxu3  ;;  %v9030_v25 = vld [vmem:[%s17764_s5 + $0x338] sm:$0xf0] }
 0x5b7   : > { %18389 = vst [vmem:[#allocation33_spill] sm:$0xff] %v16464_v14  ;;  %v16514_v17 = vpop.f32.mrf.mxu2 }
 0x5b8   : > { %v16473_v26 = vadd.f32 %v16326_v33, %v5057_v46  ;;  %v9033_v33 = vor.u32 %v10951_v6, %v9030_v25 }
 0x5b9   : > { %5364 = vmatpush.bf16.msrb.mxu1 %v9049_v30  ;;  %v18395_v30 = vld [vmem:[#allocation46_spill] sm:$0xff] }
 0x5ba   : > { %18390 = vst [vmem:[#allocation21_spill] sm:$0xff] %v16473_v26 }
 0x5bb   : > { %v5030_v16 = vpop.f32.mrf.mxu1  ;;  %9633 = vmatmul.msk.bf16.gmra.mxu3 %vm15264_vm7, %v18386_v23 }
 0x5bc   : > { %v5031_v56 = vadd.f32 %v5030_v16, %v16281_v57  ;;  %v10947_v57 = vld [vmem:[%s17764_s5 + $0x30c] sm:$0xf] }
 0x5bd   : > { %5365 = vmatpush.bf16.msrb.mxu1 %v9033_v33 }
 0x5be   : > { %v5060_v55 = vadd.f32 %v16137_v1, %v5031_v56  ;;  %v16488_v36 = vpop.f32.mrf.mxu3  ;;  %9573 = vmatmul.msk.bf16.gmra.mxu1 %vm15396_vm6, %v18391_v8  ;;  %5348 = vmatmul.bf16.gmra.mxu0 %v18392_v2  ;;  %v9014_v1 = vld [vmem:[%s17764_s5 + $0x318] sm:$0xf0] }
 0x5bf   : > { %v9017_v62 = vor.u32 %v10947_v57, %v9014_v1  ;;  %v16530_v16 = vpop.f32.mrf.mxu2 }
 0x5c0   : > { %v16497_v5 = vadd.f32 %v16361_v45, %v5060_v55  ;;  %v16509_v45 = vpop.f32.mrf.mxu0 }
 0x5c1   : > { %5366 = vmatpush.bf16.msrb.mxu1 %v9017_v62 }
 0x5c3   : > { %v5032_v23 = vpop.f32.mrf.mxu1 }
 0x5c4   : > { %v5033_v20 = vadd.f32 %v5032_v23, %v16314_v28 }
 0x5c6   : > { %v5062_v34 = vadd.f32 %v16185_v27, %v5033_v20  ;;  %v16507_v53 = vpop.f32.mrf.mxu3  ;;  %v18394_v27 = vld [vmem:[#allocation35_spill] sm:$0xff] }
 0x5c7   : > { %v16551_v57 = vpop.f32.mrf.mxu2 }
 0x5c8   : > { %v16512_v9 = vadd.f32 %v16380_v52, %v5062_v34  ;;  %v5117_v6 = vpop.f32.mrf.mxu0 }
 0x5ca   : > { %18393 = vst [vmem:[#allocation37_spill] sm:$0xff] %v16512_v9 }
 0x5cb   : > { %v5035_v46 = vpop.f32.mrf.mxu1  ;;  %9637 = vmatmul.msk.bf16.gmra.mxu3 %vm15396_vm6, %v18391_v8 }
 0x5cc   : > { %v5036_v35 = vadd.f32 %v5035_v46, %v16349_v24 }
 0x5ce   : > { %v5065_v28 = vadd.f32 %v16261_v50, %v5036_v35  ;;  %v16521_v54 = vpop.f32.mrf.mxu3  ;;  %9577 = vmatmul.msk.bf16.gmra.mxu1 %vm15479_vm11, %v18394_v27  ;;  %5353 = vmatmul.bf16.gmra.mxu0 %v18395_v30  ;;  %v11557_v50 = vld [vmem:[%s17765_s6] sm:$0xf] }
 0x5cf   : > { %v16536_v24 = vperm.slane %v11557_v50, 2  ;;  %v16564_v20 = vpop.f32.mrf.mxu2  ;;  %v16599_v60 = vperm.slane %v11557_v50, 3 }
 0x5d0   : > { %v16528_v52 = vadd.f32 %v16392_v49, %v5065_v28  ;;  %v16546_v8 = vpop.f32.mrf.mxu0 }
 0x5d1   : > { %v5108_v49 = vadd.f32 %v16425_v43, %v16536_v24  ;;  %v5113_v9 = vadd.f32 %v16485_v29, %v16536_v24 }
 0x5d2   : > { %18396 = vst [vmem:[#allocation60_spill] sm:$0xff] %v16528_v52 }
 0x5d3   : > { %v5037_v25 = vpop.f32.mrf.mxu1 }
 0x5d4   : > { %v5038_v18 = vadd.f32 %v5037_v25, %v16378_v21 }
 0x5d6   : > { %v5067_v56 = vadd.f32 %v16308_v63, %v5038_v18  ;;  %v16539_v33 = vpop.f32.mrf.mxu3 }
 0x5d7   : > { %v16571_v46 = vpop.f32.mrf.mxu2 }
 0x5d8   : > { %v16542_v55 = vadd.f32 %v16411_v39, %v5067_v56  ;;  %v5122_v23 = vpop.f32.mrf.mxu0 }
 0x5da   : > { %18397 = vst [vmem:[#allocation26_spill] sm:$0xff] %v16542_v55 }
 0x5db   : > { %v5136_v2 = vpop.f32.mrf.mxu1  ;;  %9641 = vmatmul.msk.bf16.gmra.mxu3 %vm15479_vm11, %v18394_v27 }
 0x5dc   : > { %v5137_v21 = vadd.f32 %v5136_v2, %v5108_v49 }
 0x5de   : > { %v5166_v63 = vadd.f32 %v16358_v32, %v5137_v21  ;;  %v16554_v1 = vpop.f32.mrf.mxu3  ;;  %5367 = vmatmul.bf16.vlgmr.msrb.gmra.mxu1 %v14873_v0 }
 0x5df   : > { %v16577_v27 = vpop.f32.mrf.mxu2 }
 0x5e0   : > { %v16558_v39 = vadd.f32 %v16437_v10, %v5166_v63  ;;  %v16569_v32 = vpop.f32.mrf.mxu0 }
 0x5e3   : > { %v16560_v43 = vpop.f32.mrf.mxu1 }
 0x5e4   : > { %18398 = vst [vmem:[#allocation53_spill] sm:$0xff] %v16560_v43  ;;  %v5118_v43 = vadd.f32 %v5117_v6, %v16536_v24 }
 0x5e6   : > { %v16562_v62 = vpop.f32.mrf.mxu3 }
 0x5e8   : > { %v5223_v35 = vpop.f32.mrf.mxu0 }
 0x5eb   : > { %v5141_v58 = vpop.f32.mrf.mxu1 }
 0x5ec   : > { %v5142_v55 = vadd.f32 %v5141_v58, %v5113_v9  ;;  %v17982_v58 = vmax.f32 %v16375_v15, 0.0 }
 0x5ee   : > { %v16566_v34 = vpop.f32.mrf.mxu3  ;;  %5372 = vmatmul.bf16.gmra.mxu1 %v14984_v7  ;;  %v16586_v7 = vpop.f32.mrf.mxu2  ;;  %v5171_v38 = vadd.f32 %v16401_v12, %v5142_v55  ;;  %v5123_v55 = vadd.f32 %v5122_v23, %v16536_v24 }
 0x5f0   : > { %v16582_v25 = vpop.f32.mrf.mxu0  ;;  %v5200_v51 = vadd.f32 %v16488_v36, %v5171_v38 }
 0x5f1   : > { %18400 = vst [vmem:[#allocation65_spill] sm:$0xff] %v16582_v25 }
 0x5f3   : > { %v16573_v0 = vpop.f32.mrf.mxu1 }
 0x5f6   : > { %v16575_v10 = vpop.f32.mrf.mxu3  ;;  %v16593_v63 = vpop.f32.mrf.mxu2 }
 0x5f7   : > { %18399 = vst [vmem:[#allocation66_spill] sm:$0xff] %v16575_v10 }
 0x5f8   : > { %v5228_v2 = vpop.f32.mrf.mxu0 }
 0x5fb   : > { %v5146_v28 = vpop.f32.mrf.mxu1 }
 0x5fc   : > { %v5147_v9 = vadd.f32 %v5146_v28, %v5118_v43 }
 0x5fe   : > { %v16579_v30 = vpop.f32.mrf.mxu3  ;;  %5377 = vmatmul.bf16.gmra.mxu1 %v15113_v11  ;;  %v5296_v3 = vpop.f32.mrf.mxu2  ;;  %v5176_v38 = vadd.f32 %v16461_v61, %v5147_v9 }
 0x5ff   : > { %v5297_v52 = vadd.f32 %v5296_v3, %v16599_v60  ;;  %v17981_v3 = vmax.f32 %v16311_v47, 0.0 }
 0x600   : > { %v16597_v11 = vpop.f32.mrf.mxu0 }
 0x603   : > { %v16584_v18 = vpop.f32.mrf.mxu1 }
 0x606   : > { %v16588_v56 = vpop.f32.mrf.mxu3  ;;  %v16639_v23 = vpop.f32.mrf.mxu2 }
 0x60b   : > { %v5151_v49 = vpop.f32.mrf.mxu1 }
 0x60e   : > { %v16590_v21 = vpop.f32.mrf.mxu3  ;;  %5382 = vmatmul.bf16.gmra.mxu1 %v15175_v42  ;;  %v5233_v42 = vpop.f32.mrf.mxu0 }
 0x613   : > { %v5153_v48 = vpop.f32.mrf.mxu1 }
 0x616   : > { %v16595_v37 = vpop.f32.mrf.mxu3  ;;  %v16610_v50 = vpop.f32.mrf.mxu0 }
 0x617   : > { %18401 = vst [vmem:[#allocation28_spill] sm:$0xff] %v16595_v37  ;;  %v5229_v37 = vadd.f32 %v5228_v2, %v5200_v51 }
 0x61b   : > { %v5252_v40 = vpop.f32.mrf.mxu1 }
 0x61e   : > { %v5325_v26 = vpop.f32.mrf.mxu3  ;;  %v5238_v36 = vpop.f32.mrf.mxu0 }
 0x61f   : > { %v16604_v25 = vadd.f32 %v5325_v26, %v5297_v52 }
 0x623   : > { %v16607_v14 = vpop.f32.mrf.mxu1 }
 0x626   : > { %v5240_v2 = vpop.f32.mrf.mxu0 }
 0x62b   : > { %v5257_v10 = vpop.f32.mrf.mxu1 }
 0x62c   : > { %v16613_v29 = vadd.f32 %v5257_v10, %v5229_v37  ;;  %v5205_v37 = vadd.f32 %v16521_v54, %v5176_v38  ;;  %v5152_v10 = vadd.f32 %v5151_v49, %v5123_v55  ;;  %v5224_v49 = vadd.f32 %v5223_v35, %v16558_v39 }
 0x62e   : > { %v5456_v26 = vmax.f32 %v16613_v29, 0.0  ;;  %v5234_v52 = vadd.f32 %v5233_v42, %v5205_v37  ;;  %v5181_v9 = vadd.f32 %v16514_v17, %v5152_v10  ;;  %v5339_v38 = vpop.f32.mrf.mxu0  ;;  %v5125_v17 = vadd.f32 %v16569_v32, %v16536_v24 }
 0x62f   : > { %v5282_v32 = vadd.f32 %v16551_v57, %v16599_v60 }
 0x630   : > { %v11485_v12 = vpack.i.bf16 %v5456_v26, %v17981_v3  ;;  %v5210_v42 = vadd.f32 %v16554_v1, %v5181_v9  ;;  %v5397_v3 = vpop.f32.mrf.mxu2  ;;  %v5154_v1 = vadd.f32 %v5153_v48, %v5125_v17 }
 0x632   : > { %11486 = vrot.lane.b32.xlu1 %v11485_v12, %s11696_s14  ;;  %v16642_v12 = vpop.f32.mrf.mxu3  ;;  %v5239_v37 = vadd.f32 %v5238_v36, %v5210_v42  ;;  %v5183_v9 = vadd.f32 %v16530_v16, %v5154_v1  ;;  %v5311_v42 = vadd.f32 %v16566_v34, %v5282_v32 }
 0x633   : > { %v16623_v51 = vpop.f32.mrf.mxu1 }
 0x634   : > { %v5212_v48 = vadd.f32 %v16562_v62, %v5183_v9 }
 0x63a   : > { %v5426_v35 = vpop.f32.mrf.mxu3 }
 0x63b   : > { %v5262_v6 = vpop.f32.mrf.mxu1 }
 0x63c   : > { %v16627_v43 = vadd.f32 %v5262_v6, %v5234_v52  ;;  %v16645_v52 = vadd.f32 %v5252_v40, %v5224_v49  ;;  %v16658_v40 = vpop.f32.mrf.mxu0  ;;  %v16665_v49 = vpop.f32.mrf.mxu2 }
 0x63e   : > { %v17984_v28 = vmax.f32 %v16627_v43, 0.0  ;;  %v5448_v10 = vmax.f32 %v16645_v52, 0.0 }
 0x640   : > { %v11490_v61 = vpack.i.bf16 %v17984_v28, %v17982_v58  ;;  %v5241_v58 = vadd.f32 %v5240_v2, %v5212_v48  ;;  %v5115_v28 = vadd.f32 %v16509_v45, %v16536_v24 }
 0x642   : > { %11491 = vrot.lane.b32.xlu1 %v11490_v61, %s11696_s14  ;;  %v5144_v57 = vadd.f32 %v16573_v0, %v5115_v28  ;;  %v5287_v0 = vadd.f32 %v16571_v46, %v16599_v60  ;;  %v18004_v28 = vmax.f32 %v16399_v41, 0.0 }
 0x643   : > { %v16637_v54 = vpop.f32.mrf.mxu1 }
 0x644   : > { %v5402_v9 = vpop.f32.mrf.mxu2  ;;  %v5173_v2 = vadd.f32 %v16433_v59, %v5144_v57  ;;  %v17986_v59 = vmax.f32 %v16224_v4, 0.0  ;;  %v18002_v57 = vmax.f32 %v16497_v5, 0.0 }
 0x646   : > { %v11505_v46 = vpack.i.bf16 %v18004_v28, %v17986_v59 }
 0x64b   : > { %v5267_v6 = vpop.f32.mrf.mxu1 }
 0x64c   : > { %v16647_v55 = vadd.f32 %v5267_v6, %v5239_v37  ;;  %v5340_v37 = vadd.f32 %v5339_v38, %v5311_v42  ;;  %v16667_v6 = vpop.f32.mrf.mxu3 }
 0x64e   : > { %v17983_v61 = vmax.f32 %v16647_v55, 0.0 }
 0x650   : > { %v11495_v39 = vpack.i.bf16 %v17983_v61, %v5448_v10  ;;  %v5344_v61 = vpop.f32.mrf.mxu0 }
 0x652   : > { %11496 = vrot.lane.b32.xlu0 %v11495_v39, %s11696_s14 }
 0x653   : > { %v5269_v36 = vpop.f32.mrf.mxu1 }
 0x654   : > { %v16671_v16 = vadd.f32 %v5269_v36, %v5241_v58  ;;  %v5431_v58 = vpop.f32.mrf.mxu3  ;;  %v5316_v36 = vadd.f32 %v16579_v30, %v5287_v0 }
 0x656   : > { %v18000_v62 = vmax.f32 %v16671_v16, 0.0  ;;  %v5345_v42 = vadd.f32 %v5344_v61, %v5316_v36 }
 0x65b   : > { %v5368_v17 = vpop.f32.mrf.mxu1 }
 0x65c   : > { %v5369_v39 = vadd.f32 %v5368_v17, %v5340_v37 }
 0x65e   : > { %v5398_v1 = vadd.f32 %v5397_v3, %v5369_v39  ;;  %v5346_v3 = vpop.f32.mrf.mxu0  ;;  %v5404_v39 = vpop.f32.mrf.mxu2 }
 0x660   : > { %v16674_v34 = vadd.f32 %v5426_v35, %v5398_v1  ;;  %v5202_v35 = vadd.f32 %v16507_v53, %v5173_v2  ;;  %v5120_v1 = vadd.f32 %v16546_v8, %v16536_v24  ;;  %v5289_v53 = vadd.f32 %v16577_v27, %v16599_v60 }
 0x661   : > { %v18007_v8 = vmax.f32 %v16130_v44, 0.0 }
 0x662   : > { %v5449_v38 = vmax.f32 %v16674_v34, 0.0  ;;  %v5231_v37 = vadd.f32 %v16597_v11, %v5202_v35  ;;  %v5433_v11 = vpop.f32.mrf.mxu3  ;;  %v5149_v2 = vadd.f32 %v16584_v18, %v5120_v1  ;;  %v18418_v34 = vmax.f32 %v16130_v44, 0.0 }
 0x663   : > { %v16678_v32 = vpop.f32.mrf.mxu1 }
 0x664   : > { %v11500_v45 = vpack.i.bf16 %v5449_v38, %v18000_v62  ;;  %v16702_v30 = vadd.f32 %v16623_v51, %v5231_v37 }
 0x666   : > { %11501 = vrot.lane.b32.xlu1 %v11500_v45, %s11696_s14  ;;  %v5318_v45 = vadd.f32 %v16588_v56, %v5289_v53  ;;  %v5349_v35 = vpop.f32.mrf.mxu0  ;;  %v18009_v27 = vmax.f32 %v16702_v30, 0.0  ;;  %v11545_v56 = vpack.i.bf16 %v18002_v57, %v18007_v8  ;;  %v17992_v53 = vmax.f32 %v16172_v13, 0.0 }
 0x668   : > { %v5347_v36 = vadd.f32 %v5346_v3, %v5318_v45 }
 0x66a   : > { %v5436_v1 = vpop.f32.mrf.mxu3 }
 0x66b   : > { %v5373_v48 = vpop.f32.mrf.mxu1 }
 0x66c   : > { %v5374_v17 = vadd.f32 %v5373_v48, %v5345_v42  ;;  %v5178_v42 = vadd.f32 %v16494_v22, %v5149_v2  ;;  %v5407_v22 = vpop.f32.mrf.mxu2 }
 0x66e   : > { %v5403_v61 = vadd.f32 %v5402_v9, %v5374_v17  ;;  %11506 = vrot.lane.b32.xlu1 %v11505_v46, %s11696_s14  ;;  %v5207_v37 = vadd.f32 %v16539_v33, %v5178_v42  ;;  %v5351_v45 = vpop.f32.mrf.mxu0 }
 0x670   : > { %v16708_v0 = vadd.f32 %v5431_v58, %v5403_v61  ;;  %v5292_v58 = vadd.f32 %v16586_v7, %v16599_v60 }
 0x672   : > { %v18006_v51 = vmax.f32 %v16708_v0, 0.0  ;;  %v5321_v17 = vadd.f32 %v16590_v21, %v5292_v58  ;;  %v5110_v21 = vadd.f32 %v16452_v31, %v16536_v24  ;;  %v18404_v24 = vld [vmem:[#allocation28_spill] sm:$0xff] }
 0x673   : > { %v5375_v9 = vpop.f32.mrf.mxu1 }
 0x674   : > { %v5376_v48 = vadd.f32 %v5375_v9, %v5347_v36  ;;  %v11510_v18 = vpack.i.bf16 %v18006_v51, %v18009_v27  ;;  %v5350_v61 = vadd.f32 %v5349_v35, %v5321_v17  ;;  %v17988_v9 = vmax.f32 %v16423_v19, 0.0  ;;  %v5438_v17 = vpop.f32.mrf.mxu3 }
 0x675   : > { %v5294_v35 = vadd.f32 %v16593_v63, %v16599_v60 }
 0x676   : > { %v5405_v3 = vadd.f32 %v5404_v39, %v5376_v48  ;;  %11511 = vrot.lane.b32.xlu2 %v11510_v18, %s11696_s14  ;;  %11546 = vrot.lane.b32.xlu1 %v11545_v56, %s11696_s14  ;;  %v5236_v39 = vadd.f32 %v16610_v50, %v5207_v37  ;;  %v18402_v48 = vld [vmem:[#allocation53_spill] sm:$0xff]  ;;  %v18403_v56 = vld [vmem:[#allocation66_spill] sm:$0xff] }
 0x677   : > { %v5139_v18 = vadd.f32 %v18402_v48, %v5110_v21  ;;  %v5323_v58 = vadd.f32 %v18404_v24, %v5294_v35  ;;  %v5354_v21 = vpop.f32.mrf.mxu0  ;;  %v18407_v48 = vld [vmem:[#allocation58_spill] sm:$0xff]  ;;  %v18408_v24 = vld [vmem:[#allocation65_spill] sm:$0xff] }
 0x678   : > { %v16728_v46 = vadd.f32 %v5433_v11, %v5405_v3  ;;  %v5284_v11 = vadd.f32 %v16564_v20, %v16599_v60  ;;  %v16745_v42 = vadd.f32 %v16637_v54, %v5236_v39  ;;  %v5409_v3 = vpop.f32.mrf.mxu2 }
 0x67a   : > { %v18005_v2 = vmax.f32 %v16728_v46, 0.0  ;;  %v5313_v31 = vadd.f32 %v18403_v56, %v5284_v11  ;;  %v17994_v54 = vmax.f32 %v16745_v42, 0.0 }
 0x67b   : > { %v5378_v7 = vpop.f32.mrf.mxu1 }
 0x67c   : > { %v5379_v36 = vadd.f32 %v5378_v7, %v5350_v61  ;;  %v11515_v33 = vpack.i.bf16 %v17992_v53, %v18005_v2  ;;  %v5342_v63 = vadd.f32 %v16658_v40, %v5313_v31  ;;  %v18405_v7 = vld [vmem:[#allocation61_spill] sm:$0xff] }
 0x67d   : > { %v5168_v39 = vadd.f32 %v18405_v7, %v5139_v18  ;;  %v18406_v40 = vld [vmem:[#allocation33_spill] sm:$0xff]  ;;  %v17996_v18 = vmax.f32 %v18407_v48, 0.0 }
 0x67e   : > { %v5408_v50 = vadd.f32 %v5407_v22, %v5379_v36  ;;  %5496 = vrot.lane.b32.xlu1 %v17988_v9, %s11696_s14  ;;  %11516 = vrot.lane.b32.xlu0 %v11515_v33, %s11696_s14  ;;  %v5352_v22 = vadd.f32 %v5351_v45, %v5323_v58  ;;  %v5371_v36 = vadd.f32 %v16678_v32, %v5342_v63 }
 0x67f   : > { %v5197_v45 = vadd.f32 %v18406_v40, %v5168_v39  ;;  %v5355_v63 = vadd.f32 %v5354_v21, %v16604_v25  ;;  %v5356_v39 = vpop.f32.mrf.mxu0 }
 0x680   : > { %v16754_v20 = vadd.f32 %v5436_v1, %v5408_v50  ;;  %v5400_v35 = vadd.f32 %v16665_v49, %v5371_v36  ;;  %v5412_v56 = vpop.f32.mrf.mxu2 }
 0x681   : > { %v5226_v58 = vadd.f32 %v18408_v24, %v5197_v45  ;;  %v18409_v24 = vld [vmem:[#allocation21_spill] sm:$0xff] }
 0x682   : > { %v17995_v37 = vmax.f32 %v16754_v20, 0.0 }
 0x683   : > { %v5380_v61 = vpop.f32.mrf.mxu1 }
 0x684   : > { %v5381_v33 = vadd.f32 %v5380_v61, %v5352_v22  ;;  %v11520_v1 = vpack.i.bf16 %v17995_v37, %v17994_v54  ;;  %v5441_v22 = vpop.f32.mrf.mxu3  ;;  %v16784_v61 = vadd.f32 %v16607_v14, %v5226_v58  ;;  %v17985_v58 = vmax.f32 %v18409_v24, 0.0 }
 0x686   : > { %v5410_v11 = vadd.f32 %v5409_v3, %v5381_v33  ;;  %11521 = vrot.lane.b32.xlu2 %v11520_v1, %s11696_s14  ;;  %v16775_v3 = vadd.f32 %v16667_v6, %v5400_v35  ;;  %v17987_v36 = vmax.f32 %v16784_v61, 0.0 }
 0x688   : > { %v16768_v50 = vadd.f32 %v5438_v17, %v5410_v11  ;;  %v5299_v17 = vadd.f32 %v16639_v23, %v16599_v60  ;;  %v17989_v6 = vmax.f32 %v16775_v3, 0.0  ;;  %v5414_v14 = vpop.f32.mrf.mxu2 }
 0x68a   : > { %v17993_v32 = vmax.f32 %v16768_v50, 0.0  ;;  %v5328_v25 = vadd.f32 %v16642_v12, %v5299_v17  ;;  %v11540_v60 = vpack.i.bf16 %v17989_v6, %v17987_v36  ;;  %v18414_v36 = vld [vmem:[#allocation48_spill] sm:$0xff] }
 0x68b   : > { %v5383_v31 = vpop.f32.mrf.mxu1  ;;  %vm5542_vm0 = vcmp.lt.s32.totalorder %v18414_v36, 96 }
 0x68c   : > { %v11525_v49 = vpack.i.bf16 %v17996_v18, %v17993_v32  ;;  %v5384_v7 = vadd.f32 %v5383_v31, %v5355_v63  ;;  %v5357_v33 = vadd.f32 %v5356_v39, %v5328_v25  ;;  %v5443_v12 = vpop.f32.mrf.mxu3  ;;  %v18410_v63 = vld [vmem:[#allocation26_spill] sm:$0xff]  ;;  %v18412_v39 = vld [vmem:[#allocation37_spill] sm:$0xff] }
 0x68d   : > { %v17990_v25 = vmax.f32 %v18412_v39, 0.0 }
 0x68e   : > { %11526 = vrot.lane.b32.xlu0 %v11525_v49, %s11696_s14  ;;  %v5413_v1 = vadd.f32 %v5412_v56, %v5384_v7  ;;  %v17997_v49 = vmax.f32 %v18410_v63, 0.0 }
 0x690   : > { %v16794_v23 = vadd.f32 %v5441_v22, %v5413_v1  ;;  %v18411_v22 = vld [vmem:[#allocation60_spill] sm:$0xff] }
 0x691   : > { %v17998_v17 = vmax.f32 %v18411_v22, 0.0 }
 0x692   : > { %v18001_v35 = vmax.f32 %v16794_v23, 0.0 }
 0x693   : > { %v5385_v21 = vpop.f32.mrf.mxu1  ;;  %v11535_v7 = vpack.i.bf16 %v17997_v49, %v17998_v17 }
 0x694   : > { %v5386_v11 = vadd.f32 %v5385_v21, %v5357_v33  ;;  %v18413_v33 = vld [vmem:[#allocation36_spill] sm:$0xff] }
 0x695   : > { %v17991_v1 = vmax.f32 %v18413_v33, 0.0 }
 0x696   : > { %v5415_v40 = vadd.f32 %v5414_v14, %v5386_v11  ;;  %11541 = vrot.lane.b32.xlu0 %v11540_v60, %s11696_s14 }
 0x697   : > { %v11550_v21 = vpack.i.bf16 %v17991_v1, %v17990_v25 }
 0x698   : > { %v16797_v45 = vadd.f32 %v5443_v12, %v5415_v40  ;;  %v16830_v40 = vpop.permute.xlu0 %11481 }
 0x699   : > { %v11483_v1 = vunpack.i.l.bf16 %v16830_v40 }
 0x69a   : > { %v17999_v56 = vmax.f32 %v16797_v45, 0.0 }
 0x69c   : > { %v11530_v31 = vpack.i.bf16 %v17999_v56, %v18001_v35 }
 0x69e   : > { %11531 = vrot.lane.b32.xlu2 %v11530_v31, %s11696_s14  ;;  %5500 = vrot.lane.b32.xlu0 %v17985_v58, %s11696_s14 }
 0x6a4   : > { %v16824_v11 = vpop.permute.xlu1 %11486 }
 0x6a5   : > { %v18003_v6 = vunpack.i.h.bf16 %v16824_v11 }
 0x6a6   : > { %11536 = vrot.lane.b32.xlu2 %v11535_v7, %s11696_s14 }
 0x6ae   : > { %11551 = vrot.lane.b32.xlu2 %v11550_v21, %s11696_s14  ;;  %s468_s14 = scalar_lea.vmem [#allocation7], %s7831_s27 }
 0x6af   : > { %s7739_s24 = sshll.u32 %s468_s14, 4  ;;  %s7740_s24 = int_to_ptr.vmem [resolvable:$true] %s7739_s24 }
 0x6b4   : > { %v16826_v60 = vpop.permute.xlu1 %11491 }
 0x6b5   : > { %v11494_v32 = vunpack.i.h.bf16 %v16826_v60 }
 0x6c4   : > { %v16836_v7 = vpop.permute.xlu0 %11496 }
 0x6c5   : > { %v11498_v53 = vunpack.i.l.bf16 %v16836_v7 }
 0x6d0   : > { %v16834_v31 = vpop.permute.xlu2 %11511 }
 0x6d1   : > { %v11514_v21 = vunpack.i.h.bf16 %v16834_v31  ;;  %v18011_v54 = vunpack.i.l.bf16 %v16834_v31 }
 0x6d3   : > { %v5545_v37 = vsel %vm5542_vm0, %v18003_v6, %v11514_v21 }
 0x6d4   : > { %v16875_v51 = vmax.f32 %v5456_v26, %v5545_v37 }
 0x6d6   : > { %v18015_v44 = vrot.slane %v16875_v51, 1 }
 0x6d8   : > { %v16828_v14 = vpop.permute.xlu1 %11501 }
 0x6d9   : > { %v11504_v9 = vunpack.i.h.bf16 %v16828_v14 }
 0x6db   : > { %v5543_v18 = vsel %vm5542_vm0, %v11498_v53, %v11504_v9  ;;  %v5567_v49 = vsel %vm5542_vm0, %v11504_v9, %v11483_v1 }
 0x6dc   : > { %v16885_v27 = vmax.f32 %v5448_v10, %v5543_v18  ;;  %v16902_v52 = vmax.f32 %v5449_v38, %v5567_v49  ;;  %v18416_v10 = vmax.f32 %v16627_v43, 0.0  ;;  %v18421_v49 = vmax.f32 %v16728_v46, 0.0 }
 0x6dd   : > { %v18425_v46 = vmax.f32 %v16399_v41, 0.0 }
 0x6de   : > { %18415 = vst [vmem:[#allocation44_spill] sm:$0xff] %v16885_v27 }
 0x6e0   : > { %v16832_v12 = vpop.permute.xlu1 %11506  ;;  %v16840_v59 = vpop.permute.xlu2 %11521 }
 0x6e1   : > { %v18008_v25 = vunpack.i.h.bf16 %v16840_v59  ;;  %v11509_v17 = vunpack.i.h.bf16 %v16832_v12  ;;  %v18013_v6 = vunpack.i.l.bf16 %v16832_v12 }
 0x6e3   : > { %v5547_v57 = vsel %vm5542_vm0, %v11494_v32, %v18008_v25 }
 0x6e4   : > { %v16906_v18 = vmax.f32 %v18416_v10, %v5547_v57 }
 0x6e8   : > { %v16838_v58 = vpop.permute.xlu1 %11546 }
 0x6e9   : > { %v18010_v56 = vunpack.i.l.bf16 %v16838_v58  ;;  %v18014_v8 = vunpack.i.h.bf16 %v16838_v58 }
 0x6eb   : > { %v5555_v43 = vsel %vm5542_vm0, %v18014_v8, %v11494_v32 }
 0x6f0   : > { %v16861_v62 = vpop.permute.xlu1 %5496  ;;  %v16863_v35 = vpop.permute.xlu0 %11516 }
 0x6f1   : > { %v18012_v28 = vunpack.i.h.bf16 %v16863_v35  ;;  %v11518_v2 = vunpack.i.l.bf16 %v16863_v35  ;;  %v5560_v25 = vsel %vm5542_vm0, %v18010_v56, %v16861_v62 }
 0x6f2   : > { %v16919_v38 = vmax.f32 %v18418_v34, %v5560_v25  ;;  %v11503_v25 = vunpack.i.l.bf16 %v16828_v14 }
 0x6f3   : > { %v5569_v9 = vsel %vm5542_vm0, %v11514_v21, %v18012_v28  ;;  %v5546_v29 = vsel %vm5542_vm0, %v18011_v54, %v11518_v2  ;;  %v5570_v26 = vsel %vm5542_vm0, %v11518_v2, %v18013_v6  ;;  %v18417_v21 = vmax.f32 %v16702_v30, 0.0 }
 0x6f4   : > { %v18020_v54 = vunpack.i.l.bf16 %v16826_v60  ;;  %v5551_v28 = vsel %vm5542_vm0, %v11509_v17, %v11498_v53  ;;  %v5559_v2 = vsel %vm5542_vm0, %v11483_v1, %v11509_v17  ;;  %18419 = vst [vmem:[#allocation29_spill] sm:$0xff] %v16919_v38  ;;  %v18420_v30 = vmax.f32 %v16708_v0, 0.0 }
 0x6f5   : > { %v16910_v56 = vmax.f32 %v18417_v21, %v5546_v29  ;;  %v16931_v29 = vmax.f32 %v18421_v49, %v5570_v26  ;;  %v11499_v17 = vunpack.i.h.bf16 %v16836_v7  ;;  %v18016_v0 = vrot.slane %v16906_v18, 1 }
 0x6f6   : > { %v16927_v57 = vmax.f32 %v18420_v30, %v5569_v9  ;;  %v18422_v9 = vld [vmem:[#allocation52_spill] sm:$0xff]  ;;  %v16946_v26 = vmax.f32 %v18425_v46, %v5551_v28  ;;  %v18426_v7 = vmax.f32 %v16497_v5, 0.0  ;;  %v18432_v1 = vmax.f32 %v16797_v45, 0.0 }
 0x6f7   : > { %v5621_v53 = vrot.slane %v16910_v56, 1  ;;  %v18423_v10 = vmax.f32 %v18422_v9, 0.0  ;;  %v18018_v8 = vrot.slane %v16931_v29, 1  ;;  %v18428_v9 = vunpack.i.h.bf16 %v16830_v40 }
 0x6f8   : > { %v11532_v34 = vpop.permute.xlu2 %11531  ;;  %v16950_v30 = vmax.f32 %v18426_v7, %v5555_v43  ;;  %v18017_v37 = vrot.slane %v16927_v57, 1  ;;  %v18472_v36 = vrot.slane %v16931_v29, 1 }
 0x6f9   : > { %v16942_v21 = vmax.f32 %v18423_v10, %v5559_v2  ;;  %v11534_v49 = vunpack.i.h.bf16 %v11532_v34  ;;  %v11533_v6 = vunpack.i.l.bf16 %v11532_v34  ;;  %v5653_v41 = vsel %vm798_vm1, %v5621_v53, %v18016_v0 }
 0x6fa   : > { %v5657_v5 = vsel %vm798_vm1, %v18015_v44, %v5621_v53  ;;  %v18429_v34 = vmax.f32 %v16647_v55, 0.0  ;;  %v18430_v53 = vmax.f32 %v16794_v23, 0.0  ;;  %v18431_v0 = vmax.f32 %v16671_v16, 0.0 }
 0x6fb   : > { %18424 = vst [vmem:[#allocation45_spill] sm:$0xff] %v16942_v21  ;;  %v5549_v28 = vsel %vm5542_vm0, %v11499_v17, %v11533_v6  ;;  %v5550_v43 = vsel %vm5542_vm0, %v11503_v25, %v11534_v49  ;;  %v5573_v10 = vsel %vm5542_vm0, %v11533_v6, %v18428_v9  ;;  %v5574_v46 = vsel %vm5542_vm0, %v11534_v49, %v18020_v54 }
 0x6fc   : > { %v16977_v7 = vmax.f32 %v18429_v34, %v5549_v28  ;;  %v16981_v44 = vmax.f32 %v18430_v53, %v5573_v10  ;;  %v5605_v32 = vmax.f32 %v18431_v0, %v5550_v43  ;;  %v5606_v14 = vmax.f32 %v18432_v1, %v5574_v46 }
 0x6fd   : > { %v5607_v9 = vrot.slane %v16942_v21, 1  ;;  %v5681_v16 = vmax.f32 %v16875_v51, %v5657_v5  ;;  %v5685_v0 = vmax.f32 %v16910_v56, %v5653_v41  ;;  %v17001_v45 = vsel %vm798_vm1, %v18017_v37, %v18018_v8 }
 0x6fe   : > { %v18019_v28 = vrot.slane %v16977_v7, 1  ;;  %v18021_v23 = vrot.slane %v16981_v44, 1  ;;  %v5637_v10 = vrot.slane %v5605_v32, 1  ;;  %v5638_v34 = vrot.slane %v5606_v14, 1 }
 0x6ff   : > { %v18433_v1 = vrot.slane %v16919_v38, 1  ;;  %v18435_v41 = vrot.slane %v16885_v27, 1  ;;  %v18436_v53 = vrot.slane %v16902_v52, 1 }
 0x700   : > { %v5641_v5 = vsel %vm798_vm1, %v18019_v28, %v5637_v10  ;;  %v5642_v56 = vsel %vm798_vm1, %v18021_v23, %v5638_v34  ;;  %v11537_v37 = vpop.permute.xlu2 %11536  ;;  %v11527_v55 = vpop.permute.xlu0 %11526 }
 0x701   : > { %v17007_v43 = vsel %vm798_vm1, %v5607_v9, %v18433_v1  ;;  %v5669_v46 = vsel %vm798_vm1, %v5637_v10, %v18435_v41  ;;  %v5670_v1 = vsel %vm798_vm1, %v5638_v34, %v18436_v53  ;;  %v5697_v8 = vmax.f32 %v16977_v7, %v5641_v5 }
 0x702   : > { %18434 = vst [vmem:[#allocation23_spill] sm:$0xff] %v17007_v43  ;;  %v5698_v28 = vmax.f32 %v16981_v44, %v5642_v56  ;;  %v5701_v49 = vmax.f32 %v5605_v32, %v5669_v46  ;;  %v5702_v6 = vmax.f32 %v5606_v14, %v5670_v1  ;;  %v11539_v54 = vunpack.i.h.bf16 %v11537_v37 }
 0x703   : > { %v11538_v23 = vunpack.i.l.bf16 %v11537_v37  ;;  %v11529_v21 = vunpack.i.h.bf16 %v11527_v55  ;;  %v11528_v43 = vunpack.i.l.bf16 %v11527_v55  ;;  %v17027_v10 = vpack.c.bf16 %v5685_v0, %v5681_v16 }
 0x704   : > { %v5721_v38 = vpack.c.bf16 %v5701_v49, %v5697_v8  ;;  %v5722_v27 = vpack.c.bf16 %v5702_v6, %v5698_v28  ;;  %v5682_v41 = vmax.f32 %v16927_v57, %v17001_v45  ;;  %v5558_v5 = vsel %vm5542_vm0, %v11539_v54, %v11503_v25  ;;  %v18439_v6 = vld [vmem:[#allocation64_spill] sm:$0xff] }
 0x705   : > { %v5557_v34 = vsel %vm5542_vm0, %v11538_v23, %v11499_v17  ;;  %v18437_v32 = vunpack.i.h.bf16 %v16830_v40  ;;  %v18438_v14 = vunpack.i.l.bf16 %v16826_v60  ;;  %v18440_v49 = vmax.f32 %v18439_v6, 0.0 }
 0x706   : > { %v18441_v28 = vmax.f32 %v18411_v22, 0.0  ;;  %v18442_v25 = vmax.f32 %v16375_v15, 0.0  ;;  %v18443_v40 = vmax.f32 %v18410_v63, 0.0  ;;  %5782 = vmatpush.bf16.msra.mxu2 %v5721_v38  ;;  %v18444_v60 = vunpack.i.h.bf16 %v16838_v58  ;;  %5801 = vmatpush.bf16.msra.mxu3 %v5722_v27 }
 0x707   : > { %v5565_v37 = vsel %vm5542_vm0, %v18437_v32, %v11538_v23  ;;  %v5566_v8 = vsel %vm5542_vm0, %v18438_v14, %v11539_v54  ;;  %v18445_v23 = vunpack.i.h.bf16 %v16840_v59  ;;  %v18446_v22 = vunpack.i.l.bf16 %v16840_v59 }
 0x708   : > { %v17045_v55 = vmax.f32 %v18440_v49, %v5565_v37  ;;  %v17049_v17 = vmax.f32 %v18441_v28, %v5557_v34  ;;  %v5603_v16 = vmax.f32 %v18442_v25, %v5566_v8  ;;  %v5604_v0 = vmax.f32 %v18443_v40, %v5558_v5  ;;  %v11542_v6 = vpop.permute.xlu0 %11541  ;;  %v11552_v28 = vpop.permute.xlu2 %11551 }
 0x709   : > { %v5563_v54 = vsel %vm5542_vm0, %v11529_v21, %v18444_v60  ;;  %v5571_v56 = vsel %vm5542_vm0, %v18445_v23, %v11529_v21  ;;  %v5548_v15 = vsel %vm5542_vm0, %v18446_v22, %v11528_v43  ;;  %v18447_v46 = vunpack.i.l.bf16 %v16824_v11 }
 0x70a   : > { %v5631_v38 = vrot.slane %v17045_v55, 1  ;;  %v5632_v53 = vrot.slane %v17049_v17, 1  ;;  %v5635_v1 = vrot.slane %v5603_v16, 1  ;;  %v5636_v34 = vrot.slane %v5604_v0, 1 }
 0x70b   : > { %v5572_v63 = vsel %vm5542_vm0, %v11528_v43, %v18447_v46  ;;  %v18448_v5 = vmax.f32 %v18407_v48, 0.0  ;;  %v18449_v32 = vmax.f32 %v16754_v20, 0.0  ;;  %v18450_v14 = vmax.f32 %v16745_v42, 0.0 }
 0x70c   : > { %v18451_v43 = vmax.f32 %v16768_v50, 0.0  ;;  %v5639_v49 = vsel %vm798_vm1, %v5631_v38, %v5635_v1  ;;  %v5640_v20 = vsel %vm798_vm1, %v5632_v53, %v5636_v34  ;;  %v5667_v48 = vsel %vm798_vm1, %v5635_v1, %v5607_v9 }
 0x70d   : > { %v17075_v21 = vmax.f32 %v18448_v5, %v5563_v54  ;;  %v17079_v37 = vmax.f32 %v18449_v32, %v5571_v56  ;;  %v5597_v8 = vmax.f32 %v18450_v14, %v5548_v15  ;;  %v18452_v42 = vrot.slane %v16946_v26, 1 }
 0x70e   : > { %v17085_v27 = vmax.f32 %v18451_v43, %v5572_v63  ;;  %v5695_v25 = vmax.f32 %v17045_v55, %v5639_v49  ;;  %v5696_v40 = vmax.f32 %v17049_v17, %v5640_v20  ;;  %v5699_v60 = vmax.f32 %v5603_v16, %v5667_v48 }
 0x70f   : > { %v5668_v50 = vsel %vm798_vm1, %v5636_v34, %v18452_v42  ;;  %v5623_v23 = vrot.slane %v17075_v21, 1  ;;  %v5626_v56 = vrot.slane %v17079_v37, 1  ;;  %v5629_v22 = vrot.slane %v5597_v8, 1 }
 0x710   : > { %v5700_v54 = vmax.f32 %v5604_v0, %v5668_v50  ;;  %v5630_v15 = vrot.slane %v17085_v27, 1  ;;  %v11554_v9 = vunpack.i.h.bf16 %v11552_v28  ;;  %v11553_v46 = vunpack.i.l.bf16 %v11552_v28 }
 0x711   : > { %v11544_v63 = vunpack.i.h.bf16 %v11542_v6  ;;  %v11543_v1 = vunpack.i.l.bf16 %v11542_v6  ;;  %v5719_v5 = vpack.c.bf16 %v5699_v60, %v5695_v25  ;;  %v18453_v32 = vrot.slane %v16977_v7, 1 }
 0x712   : > { %v5720_v34 = vpack.c.bf16 %v5700_v54, %v5696_v40  ;;  %v18454_v16 = vrot.slane %v16906_v18, 1  ;;  %v18455_v43 = vunpack.i.h.bf16 %v16824_v11  ;;  %v18456_v20 = vunpack.i.l.bf16 %v16840_v59 }
 0x713   : > { %v5645_v14 = vsel %vm798_vm1, %v5629_v22, %v18453_v32  ;;  %v18457_v7 = vunpack.i.h.bf16 %v16863_v35  ;;  %v18458_v42 = vunpack.i.l.bf16 %v16824_v11  ;;  %v18459_v28 = vmax.f32 %v16172_v13, 0.0  ;;  %5744 = vmatpush.bf16.msra.mxu0 %v5719_v5 }
 0x714   : > { %v5649_v0 = vsel %vm798_vm1, %v18454_v16, %v5629_v22  ;;  %v5553_v49 = vsel %vm5542_vm0, %v11554_v9, %v18455_v43  ;;  %v5556_v6 = vsel %vm5542_vm0, %v11553_v46, %v18456_v20  ;;  %v18460_v40 = vmax.f32 %v18413_v33, 0.0  ;;  %5763 = vmatpush.bf16.msra.mxu1 %v5720_v34 }
 0x715   : > { %v5561_v48 = vsel %vm5542_vm0, %v18457_v7, %v11554_v9  ;;  %v5564_v50 = vsel %vm5542_vm0, %v18458_v42, %v11553_v46  ;;  %v18461_v60 = vmax.f32 %v16311_v47, 0.0  ;;  %v18462_v35 = vmax.f32 %v18412_v39, 0.0  ;;  %v5501_v46 = vpop.permute.xlu0 %5500 }
 0x716   : > { %v17132_v25 = vmax.f32 %v18459_v28, %v5561_v48  ;;  %v17136_v59 = vmax.f32 %v18460_v40, %v5553_v49  ;;  %v18463_v11 = vunpack.i.l.bf16 %v16838_v58  ;;  %v5544_v13 = vsel %vm5542_vm0, %v11543_v1, %v11544_v63 }
 0x717   : > { %v5595_v54 = vmax.f32 %v18461_v60, %v5564_v50  ;;  %v5596_v22 = vmax.f32 %v18462_v35, %v5556_v6  ;;  %v5552_v33 = vsel %vm5542_vm0, %v16861_v62, %v11543_v1  ;;  %v5689_v47 = vmax.f32 %v16906_v18, %v5649_v0 }
 0x718   : > { %v5568_v9 = vsel %vm5542_vm0, %v11544_v63, %v18463_v11  ;;  %v5615_v39 = vrot.slane %v17132_v25, 1  ;;  %v5616_v5 = vrot.slane %v17136_v59, 1  ;;  %v18464_v16 = vmax.f32 %v16775_v3, 0.0 }
 0x719   : > { %v5627_v32 = vrot.slane %v5595_v54, 1  ;;  %v5628_v58 = vrot.slane %v5596_v22, 1  ;;  %v18465_v63 = vmax.f32 %v16423_v19, 0.0  ;;  %v18466_v62 = vmax.f32 %v16784_v61, 0.0 }
 0x71a   : > { %v17156_v43 = vmax.f32 %v18464_v16, %v5568_v9  ;;  %v5693_v34 = vmax.f32 %v5597_v8, %v5645_v14  ;;  %v18467_v18 = vrot.slane %v16981_v44, 1  ;;  %v5650_v20 = vsel %vm798_vm1, %v5626_v56, %v5630_v15 }
 0x71b   : > { %v17160_v49 = vmax.f32 %v18465_v63, %v5552_v33  ;;  %v5581_v1 = vmax.f32 %v18466_v62, %v5544_v13  ;;  %v18468_v3 = vunpack.i.l.bf16 %v16834_v31  ;;  %v18469_v19 = vunpack.i.l.bf16 %v16832_v12 }
 0x71c   : > { %v5646_v0 = vsel %vm798_vm1, %v5630_v15, %v18467_v18  ;;  %v5614_v8 = vrot.slane %v17156_v43, 1  ;;  %v5717_v7 = vpack.c.bf16 %v5693_v34, %v5689_v47  ;;  %v5690_v48 = vmax.f32 %v17079_v37, %v5650_v20  ;;  %v11091_v20 = vld [vmem:[#allocation5 + $0x174] sm:$0xf0] }
 0x71d   : > { %v5554_v6 = vsel %vm5542_vm0, %v5501_v46, %v18468_v3  ;;  %v5562_v61 = vsel %vm5542_vm0, %v18469_v19, %v5501_v46  ;;  %v5612_v44 = vrot.slane %v17160_v49, 1  ;;  %v5613_v14 = vrot.slane %v5581_v1, 1  ;;  %v17248_v3 = vld [vmem:[%s17767_s8] sm:$0xff] }
 0x71e   : > { %v5694_v15 = vmax.f32 %v17085_v27, %v5646_v0  ;;  %v18470_v31 = vmax.f32 %v16224_v4, 0.0  ;;  %v18471_v50 = vmax.f32 %v18409_v24, 0.0  ;;  %5783 = vmatpush.bf16.msra.mxu2 %v5717_v7  ;;  %v5654_v12 = vsel %vm798_vm1, %v18472_v36, %v5626_v56  ;;  %v9844_v0 = vld [vmem:[#allocation5 + $0x170] sm:$0xf]  ;;  %v11107_v7 = vld [vmem:[#allocation5 + $0x1f4] sm:$0xf0] }
 0x71f   : > { %v5643_v40 = vsel %vm798_vm1, %v5627_v32, %v5631_v38  ;;  %v5647_v37 = vsel %vm798_vm1, %v5623_v23, %v5627_v32  ;;  %v5644_v4 = vsel %vm798_vm1, %v5628_v58, %v5632_v53  ;;  %v5686_v35 = vmax.f32 %v16931_v29, %v5654_v12  ;;  %v18476_v32 = vld [vmem:[#allocation44_spill] sm:$0xff] }
 0x720   : > { %v5587_v42 = vmax.f32 %v18470_v31, %v5562_v61  ;;  %v5588_v28 = vmax.f32 %v18471_v50, %v5554_v6  ;;  %v5718_v24 = vpack.c.bf16 %v5694_v15, %v5690_v48  ;;  %v5687_v56 = vmax.f32 %v17075_v21, %v5647_v37  ;;  %v9716_v50 = vld [vmem:[#allocation5 + $0x70] sm:$0xf]  ;;  %v9836_v37 = vld [vmem:[#allocation5 + $0x160] sm:$0xf] }
 0x721   : > { %v5691_v11 = vmax.f32 %v5595_v54, %v5643_v40  ;;  %v18473_v55 = vrot.slane %v16950_v30, 1  ;;  %v5692_v9 = vmax.f32 %v5596_v22, %v5644_v4  ;;  %v5714_v29 = vpack.c.bf16 %v5686_v35, %v5682_v41  ;;  %v9780_v36 = vld [vmem:[#allocation5 + $0xf0] sm:$0xf]  ;;  %v11075_v40 = vld [vmem:[#allocation5 + $0xf4] sm:$0xf0] }
 0x722   : > { %v5619_v27 = vrot.slane %v5587_v42, 1  ;;  %v5620_v60 = vrot.slane %v5588_v28, 1  ;;  %5802 = vmatpush.bf16.msra.mxu3 %v5718_v24  ;;  %5784 = vmatpush.bf16.msra.mxu2 %v17027_v10  ;;  %v18475_v47 = vrot.slane %v16875_v51, 1  ;;  %v18478_v41 = vrot.slane %v16927_v57, 1  ;;  %v11089_v4 = vld [vmem:[#allocation5 + $0x164] sm:$0xf0] }
 0x723   : > { %v5648_v38 = vsel %vm798_vm1, %v18473_v55, %v5628_v58  ;;  %v18474_v53 = vmov %v18473_v55  ;;  %v5715_v22 = vpack.c.bf16 %v5691_v11, %v5687_v56  ;;  %v18477_v58 = vrot.slane %v18476_v32, 1  ;;  %v18483_v24 = vld [vmem:[#allocation23_spill] sm:$0xff]  ;;  %v9708_v55 = vld [vmem:[#allocation5 + $0x60] sm:$0xf] }
 0x724   : > { %v5651_v17 = vsel %vm798_vm1, %v5619_v27, %v5623_v23  ;;  %v5652_v13 = vsel %vm798_vm1, %v5620_v60, %v18474_v53  ;;  %v5688_v21 = vmax.f32 %v16950_v30, %v5648_v38  ;;  %v5661_v23 = vsel %vm798_vm1, %v5613_v14, %v18475_v47  ;;  %v11105_v35 = vld [vmem:[#allocation5 + $0x1e4] sm:$0xf0] }
 0x725   : > { %v5683_v54 = vmax.f32 %v5587_v42, %v5651_v17  ;;  %v5684_v33 = vmax.f32 %v5588_v28, %v5652_v13  ;;  %v5665_v16 = vsel %vm798_vm1, %v18477_v58, %v5613_v14  ;;  %v5677_v45 = vmax.f32 %v5581_v1, %v5661_v23  ;;  %5745 = vmatpush.bf16.msra.mxu0 %v5715_v22  ;;  %v9908_v14 = vld [vmem:[#allocation5 + $0x1f0] sm:$0xf]  ;;  %v11059_v28 = vld [vmem:[#allocation5 + $0x74] sm:$0xf0]  ;;  %v11057_v38 = vld [vmem:[#allocation5 + $0x64] sm:$0xf0] }
 0x726   : > { %v5716_v46 = vpack.c.bf16 %v5692_v9, %v5688_v21  ;;  %v5662_v30 = vsel %vm798_vm1, %v5614_v8, %v18478_v41  ;;  %v5673_v10 = vmax.f32 %v18476_v32, %v5665_v16  ;;  %v18479_v51 = vrot.slane %v16902_v52, 1  ;;  %5803 = vmatpush.bf16.msra.mxu3 %v5714_v29  ;;  %v9772_v9 = vld [vmem:[#allocation5 + $0xe0] sm:$0xf]  ;;  %v11073_v13 = vld [vmem:[#allocation5 + $0xe4] sm:$0xf0] }
 0x727   : > { %v5678_v62 = vmax.f32 %v17156_v43, %v5662_v30  ;;  %v5655_v1 = vsel %vm798_vm1, %v5615_v39, %v5619_v27  ;;  %v5656_v18 = vsel %vm798_vm1, %v5616_v5, %v5620_v60  ;;  %v18482_v42 = vrot.slane %v16946_v26, 1  ;;  %v18484_v27 = vld [vmem:[#allocation45_spill] sm:$0xff]  ;;  %v9828_v29 = vld [vmem:[#allocation5 + $0x150] sm:$0xf]  ;;  %v9820_v41 = vld [vmem:[#allocation5 + $0x140] sm:$0xf] }
 0x728   : > { %v5666_v63 = vsel %vm798_vm1, %v18479_v51, %v5614_v8  ;;  %5764 = vmatpush.bf16.msra.mxu1 %v5716_v46  ;;  %v5679_v34 = vmax.f32 %v17132_v25, %v5655_v1  ;;  %v5709_v43 = vpack.c.bf16 %v5677_v45, %v5673_v10  ;;  %v5680_v6 = vmax.f32 %v17136_v59, %v5656_v18  ;;  %v11087_v21 = vld [vmem:[#allocation5 + $0x154] sm:$0xf0]  ;;  %v9700_v46 = vld [vmem:[#allocation5 + $0x50] sm:$0xf]  ;;  %v11085_v30 = vld [vmem:[#allocation5 + $0x144] sm:$0xf0] }
 0x729   : > { %v5674_v57 = vmax.f32 %v16902_v52, %v5666_v63  ;;  %v18480_v52 = vld [vmem:[#allocation29_spill] sm:$0xff]  ;;  %v5660_v8 = vsel %vm798_vm1, %v5612_v44, %v5616_v5  ;;  %v5664_v25 = vsel %vm798_vm1, %v18482_v42, %v5612_v44  ;;  %v9845_v12 = vor.u32 %v11091_v20, %v9844_v0  ;;  %v9900_v44 = vld [vmem:[#allocation5 + $0x1e0] sm:$0xf]  ;;  %v9764_v58 = vld [vmem:[#allocation5 + $0xd0] sm:$0xf] }
 0x72a   : > { %v18481_v19 = vrot.slane %v18480_v52, 1  ;;  %v5711_v15 = vpack.c.bf16 %v5683_v54, %v5679_v34  ;;  %5785 = vmatpush.bf16.msra.mxu2 %v5709_v43  ;;  %v5672_v59 = vmax.f32 %v16946_v26, %v5664_v25  ;;  %v5676_v5 = vmax.f32 %v17160_v49, %v5660_v8  ;;  %v9892_v54 = vld [vmem:[#allocation5 + $0x1d0] sm:$0xf]  ;;  %v11055_v32 = vld [vmem:[#allocation5 + $0x54] sm:$0xf0] }
 0x72b   : > { %v5710_v48 = vpack.c.bf16 %v5678_v62, %v5674_v57  ;;  %v5671_v60 = vmax.f32 %v18484_v27, %v18483_v24  ;;  %v9909_v2 = vor.u32 %v11107_v7, %v9908_v14  ;;  %v9717_v56 = vor.u32 %v11059_v28, %v9716_v50  ;;  %v11071_v45 = vld [vmem:[#allocation5 + $0xd4] sm:$0xf0]  ;;  %v9884_v10 = vld [vmem:[#allocation5 + $0x1c0] sm:$0xf]  ;;  %v11101_v51 = vld [vmem:[#allocation5 + $0x1c4] sm:$0xf0] }
 0x72c   : > { %v5659_v61 = vsel %vm798_vm1, %v18481_v19, %v5615_v39  ;;  %v5712_v39 = vpack.c.bf16 %v5684_v33, %v5680_v6  ;;  %5746 = vmatpush.bf16.msra.mxu0 %v5711_v15  ;;  %v9781_v49 = vor.u32 %v11075_v40, %v9780_v36  ;;  %v9837_v11 = vor.u32 %v11089_v4, %v9836_v37  ;;  %v11103_v33 = vld [vmem:[#allocation5 + $0x1d4] sm:$0xf0]  ;;  %v9692_v57 = vld [vmem:[#allocation5 + $0x40] sm:$0xf]  ;;  %v11053_v34 = vld [vmem:[#allocation5 + $0x44] sm:$0xf0] }
 0x72d   : > { %v5675_v31 = vmax.f32 %v18480_v52, %v5659_v61  ;;  %5804 = vmatpush.bf16.msra.mxu3 %v5710_v48  ;;  %9654 = vmatmul.msk.bf16.vlgmr.msra.gmra.mxu2 %vm5733_vm3, %v17248_v3  ;;  %v5708_v17 = vpack.c.bf16 %v5676_v5, %v5672_v59  ;;  %v9901_v53 = vor.u32 %v11105_v35, %v9900_v44  ;;  %v9756_v0 = vld [vmem:[#allocation5 + $0xc0] sm:$0xf]  ;;  %v11069_v20 = vld [vmem:[#allocation5 + $0xc4] sm:$0xf0]  ;;  %v9812_v43 = vld [vmem:[#allocation5 + $0x130] sm:$0xf] }
 0x72e   : > { %5765 = vmatpush.bf16.msra.mxu1 %v5712_v39  ;;  %6246 = vmatpush.bf16.msrb.mxu2 %v9845_v12  ;;  %v9709_v22 = vor.u32 %v11057_v38, %v9708_v55  ;;  %v9773_v47 = vor.u32 %v11073_v13, %v9772_v9  ;;  %v9829_v23 = vor.u32 %v11087_v21, %v9828_v29  ;;  %v11083_v6 = vld [vmem:[#allocation5 + $0x134] sm:$0xf0]  ;;  %v9876_v19 = vld [vmem:[#allocation5 + $0x1b0] sm:$0xf]  ;;  %v11043_v61 = vld [vmem:[%s17767_s8 + $0x8] sm:$0xff] }
 0x72f   : > { %v5707_v26 = vpack.c.bf16 %v5675_v31, %v5671_v60  ;;  %v9893_v16 = vor.u32 %v11103_v33, %v9892_v54  ;;  %v9701_v63 = vor.u32 %v11055_v32, %v9700_v46  ;;  %v9765_v62 = vor.u32 %v11071_v45, %v9764_v58  ;;  %v9684_v48 = vld [vmem:[#allocation5 + $0x30] sm:$0xf]  ;;  %v11051_v15 = vld [vmem:[#allocation5 + $0x34] sm:$0xf0]  ;;  %v9804_v50 = vld [vmem:[#allocation5 + $0x120] sm:$0xf] }
 0x730   : > { %9656 = vmatmul.msk.bf16.vlgmr.msra.gmra.mxu3 %vm5733_vm3, %v17248_v3  ;;  %v9821_v1 = vor.u32 %v11085_v30, %v9820_v41  ;;  %v9885_v18 = vor.u32 %v11101_v51, %v9884_v10  ;;  %v9693_v52 = vor.u32 %v11053_v34, %v9692_v57  ;;  %v9757_v8 = vor.u32 %v11069_v20, %v9756_v0  ;;  %v9748_v31 = vld [vmem:[#allocation5 + $0xb0] sm:$0xf]  ;;  %v11067_v25 = vld [vmem:[#allocation5 + $0xb4] sm:$0xf0]  ;;  %v11081_v28 = vld [vmem:[#allocation5 + $0x124] sm:$0xf0] }
 0x731   : > { %6265 = vmatpush.bf16.msrb.mxu3 %v9909_v2  ;;  %5747 = vmatpush.bf16.msra.mxu0 %v5707_v26  ;;  %v9813_v14 = vor.u32 %v11083_v6, %v9812_v43  ;;  %v9685_v42 = vor.u32 %v11051_v15, %v9684_v48  ;;  %v9749_v36 = vor.u32 %v11067_v25, %v9748_v31  ;;  %v9868_v59 = vld [vmem:[#allocation5 + $0x1a0] sm:$0xf]  ;;  %v11097_v5 = vld [vmem:[#allocation5 + $0x1a4] sm:$0xf0]  ;;  %v9796_v2 = vld [vmem:[#allocation5 + $0x110] sm:$0xf] }
 0x732   : > { %5766 = vmatpush.bf16.msra.mxu1 %v5708_v17  ;;  %6247 = vmatpush.bf16.msrb.mxu2 %v9837_v11  ;;  %v9805_v39 = vor.u32 %v11081_v28, %v9804_v50  ;;  %v9676_v12 = vld [vmem:[#allocation5 + $0x20] sm:$0xf]  ;;  %v9869_v40 = vor.u32 %v11097_v5, %v9868_v59  ;;  %v11049_v37 = vld [vmem:[#allocation5 + $0x24] sm:$0xf0]  ;;  %v11079_v44 = vld [vmem:[#allocation5 + $0x114] sm:$0xf0] }
 0x733   : > { %v9740_v4 = vld [vmem:[#allocation5 + $0xa0] sm:$0xf]  ;;  %v11065_v24 = vld [vmem:[#allocation5 + $0xa4] sm:$0xf0]  ;;  %v9677_v27 = vor.u32 %v11049_v37, %v9676_v12  ;;  %v9860_v35 = vld [vmem:[#allocation5 + $0x190] sm:$0xf] }
 0x734   : > { %9650 = vmatmul.msk.bf16.vlgmr.msra.gmra.mxu0 %vm5733_vm3, %v17248_v3  ;;  %v9741_v60 = vor.u32 %v11065_v24, %v9740_v4  ;;  %v11095_v26 = vld [vmem:[#allocation5 + $0x194] sm:$0xf0]  ;;  %v9668_v11 = vld [vmem:[#allocation5 + $0x10] sm:$0xf]  ;;  %v11077_v13 = vld [vmem:[#allocation5 + $0x104] sm:$0xf0] }
 0x735   : > { %6208 = vmatpush.bf16.msrb.mxu0 %v9717_v56  ;;  %6266 = vmatpush.bf16.msrb.mxu3 %v9901_v53  ;;  %v9797_v56 = vor.u32 %v11079_v44, %v9796_v2  ;;  %v11047_v55 = vld [vmem:[#allocation5 + $0x14] sm:$0xf0]  ;;  %v9732_v38 = vld [vmem:[#allocation5 + $0x90] sm:$0xf]  ;;  %v9788_v53 = vld [vmem:[#allocation5 + $0x100] sm:$0xf] }
 0x736   : > { %6227 = vmatpush.bf16.msrb.mxu1 %v9781_v49  ;;  %6248 = vmatpush.bf16.msrb.mxu2 %v9829_v23  ;;  %v9861_v49 = vor.u32 %v11095_v26, %v9860_v35  ;;  %v9669_v9 = vor.u32 %v11047_v55, %v9668_v11  ;;  %v11063_v17 = vld [vmem:[#allocation5 + $0x94] sm:$0xf0]  ;;  %v9789_v21 = vor.u32 %v11077_v13, %v9788_v53  ;;  %v9852_v54 = vld [vmem:[#allocation5 + $0x180] sm:$0xf]  ;;  %v11093_v33 = vld [vmem:[#allocation5 + $0x184] sm:$0xf0] }
 0x737   : > { %9652 = vmatmul.msk.bf16.vlgmr.msra.gmra.mxu1 %vm5733_vm3, %v17248_v3  ;;  %v11099_v3 = vld [vmem:[#allocation5 + $0x1b4] sm:$0xf0]  ;;  %v9733_v29 = vor.u32 %v11063_v17, %v9732_v38  ;;  %v11045_v23 = vld [vmem:[#allocation5 + $0x4] sm:$0xf0]  ;;  %v9724_v46 = vld [vmem:[#allocation5 + $0x80] sm:$0xf] }
 0x738   : > { %v9877_v7 = vor.u32 %v11099_v3, %v9876_v19  ;;  %v11061_v32 = vld [vmem:[#allocation5 + $0x84] sm:$0xf0]  ;;  %v11090_v45 = vld [vmem:[#allocation5 + $0x174] sm:$0xf]  ;;  %v9846_v41 = vld [vmem:[#allocation5 + $0x178] sm:$0xf0] }
 0x739   : > { %6209 = vmatpush.bf16.msrb.mxu0 %v9709_v22  ;;  %6267 = vmatpush.bf16.msrb.mxu3 %v9893_v16  ;;  %v9660_v22 = vld [vmem:[#allocation5] sm:$0xf]  ;;  %v9725_v16 = vor.u32 %v11061_v32, %v9724_v46  ;;  %v11106_v30 = vld [vmem:[#allocation5 + $0x1f4] sm:$0xf]  ;;  %v9849_v10 = vor.u32 %v11090_v45, %v9846_v41  ;;  %v9910_v51 = vld [vmem:[#allocation5 + $0x1f8] sm:$0xf0] }
 0x73a   : > { %6228 = vmatpush.bf16.msrb.mxu1 %v9773_v47  ;;  %6249 = vmatpush.bf16.msrb.mxu2 %v9821_v1  ;;  %v9853_v47 = vor.u32 %v11093_v33, %v9852_v54  ;;  %v9661_v58 = vor.u32 %v11045_v23, %v9660_v22  ;;  %v9718_v1 = vld [vmem:[#allocation5 + $0x78] sm:$0xf0]  ;;  %v11074_v57 = vld [vmem:[#allocation5 + $0xf4] sm:$0xf]  ;;  %v11088_v0 = vld [vmem:[#allocation5 + $0x164] sm:$0xf] }
 0x73b   : > { %v9838_v20 = vld [vmem:[#allocation5 + $0x168] sm:$0xf0]  ;;  %v11056_v3 = vld [vmem:[#allocation5 + $0x64] sm:$0xf]  ;;  %v11086_v31 = vld [vmem:[#allocation5 + $0x154] sm:$0xf] }
 0x73c   : > { %v9841_v6 = vor.u32 %v11088_v0, %v9838_v20  ;;  %v9902_v19 = vld [vmem:[#allocation5 + $0x1e8] sm:$0xf0]  ;;  %v11102_v25 = vld [vmem:[#allocation5 + $0x1d4] sm:$0xf]  ;;  %v9894_v28 = vld [vmem:[#allocation5 + $0x1d8] sm:$0xf0] }
 0x73d   : > { %6210 = vmatpush.bf16.msrb.mxu0 %v9701_v63  ;;  %6268 = vmatpush.bf16.msrb.mxu3 %v9885_v18  ;;  %v9913_v63 = vor.u32 %v11106_v30, %v9910_v51  ;;  %v9782_v18 = vld [vmem:[#allocation5 + $0xf8] sm:$0xf0]  ;;  %v11070_v5 = vld [vmem:[#allocation5 + $0xd4] sm:$0xf]  ;;  %v11084_v37 = vld [vmem:[#allocation5 + $0x144] sm:$0xf] }
 0x73e   : > { %6229 = vmatpush.bf16.msrb.mxu1 %v9765_v62  ;;  %9655 = vmatmul.msk.bf16.gmra.mxu2 %vm5733_vm3, %v11043_v61  ;;  %v11058_v62 = vld [vmem:[#allocation5 + $0x74] sm:$0xf]  ;;  %v9785_v43 = vor.u32 %v11074_v57, %v9782_v18  ;;  %v9702_v59 = vld [vmem:[#allocation5 + $0x58] sm:$0xf0]  ;;  %v9822_v4 = vld [vmem:[#allocation5 + $0x148] sm:$0xf0] }
 0x73f   : > { %6250 = vmatpush.bf16.msrb.mxu2 %v9813_v14  ;;  %v9721_v34 = vor.u32 %v11058_v62, %v9718_v1  ;;  %v11072_v14 = vld [vmem:[#allocation5 + $0xe4] sm:$0xf]  ;;  %v9886_v2 = vld [vmem:[#allocation5 + $0x1c8] sm:$0xf0]  ;;  %v11082_v38 = vld [vmem:[#allocation5 + $0x134] sm:$0xf] }
 0x740   : > { %9657 = vmatmul.msk.bf16.gmra.mxu3 %vm5733_vm3, %v11043_v61  ;;  %v11052_v44 = vld [vmem:[#allocation5 + $0x44] sm:$0xf]  ;;  %v11098_v17 = vld [vmem:[#allocation5 + $0x1b4] sm:$0xf]  ;;  %v9878_v13 = vld [vmem:[#allocation5 + $0x1b8] sm:$0xf0] }
 0x741   : > { %6211 = vmatpush.bf16.msrb.mxu0 %v9693_v52  ;;  %6269 = vmatpush.bf16.msrb.mxu3 %v9877_v7  ;;  %v11104_v52 = vld [vmem:[#allocation5 + $0x1e4] sm:$0xf]  ;;  %v9774_v7 = vld [vmem:[#allocation5 + $0xe8] sm:$0xf0]  ;;  %v9881_v33 = vor.u32 %v11098_v17, %v9878_v13  ;;  %v11066_v22 = vld [vmem:[#allocation5 + $0xb4] sm:$0xf] }
 0x742   : > { %6230 = vmatpush.bf16.msrb.mxu1 %v9757_v8  ;;  %v9710_v8 = vld [vmem:[#allocation5 + $0x68] sm:$0xf0]  ;;  %v9777_v15 = vor.u32 %v11072_v14, %v9774_v7  ;;  %v11068_v26 = vld [vmem:[#allocation5 + $0xc4] sm:$0xf]  ;;  %v11078_v18 = vld [vmem:[#allocation5 + $0x114] sm:$0xf] }
 0x743   : > { %6251 = vmatpush.bf16.msrb.mxu2 %v9805_v39  ;;  %v9713_v48 = vor.u32 %v11056_v3, %v9710_v8  ;;  %v11054_v39 = vld [vmem:[#allocation5 + $0x54] sm:$0xf]  ;;  %v11080_v23 = vld [vmem:[#allocation5 + $0x124] sm:$0xf]  ;;  %v9870_v41 = vld [vmem:[#allocation5 + $0x1a8] sm:$0xf0] }
 0x744   : > { %9651 = vmatmul.msk.bf16.gmra.mxu0 %vm5733_vm3, %v11043_v61  ;;  %v9705_v12 = vor.u32 %v11054_v39, %v9702_v59  ;;  %v11096_v45 = vld [vmem:[#allocation5 + $0x1a4] sm:$0xf]  ;;  %v9678_v62 = vld [vmem:[#allocation5 + $0x28] sm:$0xf0]  ;;  %v9798_v0 = vld [vmem:[#allocation5 + $0x118] sm:$0xf0] }
 0x745   : > { %6212 = vmatpush.bf16.msrb.mxu0 %v9685_v42  ;;  %6270 = vmatpush.bf16.msrb.mxu3 %v9869_v40  ;;  %v9830_v42 = vld [vmem:[#allocation5 + $0x158] sm:$0xf0]  ;;  %v11064_v1 = vld [vmem:[#allocation5 + $0xa4] sm:$0xf]  ;;  %v9873_v57 = vor.u32 %v11096_v45, %v9870_v41  ;;  %v11094_v20 = vld [vmem:[#allocation5 + $0x194] sm:$0xf]  ;;  %v9801_v3 = vor.u32 %v11078_v18, %v9798_v0 }
 0x746   : > { %6231 = vmatpush.bf16.msrb.mxu1 %v9749_v36  ;;  %v9833_v50 = vor.u32 %v11086_v31, %v9830_v42  ;;  %v9897_v36 = vor.u32 %v11102_v25, %v9894_v28  ;;  %v9766_v40 = vld [vmem:[#allocation5 + $0xd8] sm:$0xf0]  ;;  %v11062_v8 = vld [vmem:[#allocation5 + $0x94] sm:$0xf]  ;;  %v11092_v42 = vld [vmem:[#allocation5 + $0x184] sm:$0xf] }
 0x747   : > { %9653 = vmatmul.msk.bf16.gmra.mxu1 %vm5733_vm3, %v11043_v61  ;;  %6252 = vmatpush.bf16.msrb.mxu2 %v9797_v56  ;;  %v9905_v61 = vor.u32 %v11104_v52, %v9902_v19  ;;  %v9769_v24 = vor.u32 %v11070_v5, %v9766_v40  ;;  %v9694_v56 = vld [vmem:[#allocation5 + $0x48] sm:$0xf0]  ;;  %v11046_v52 = vld [vmem:[#allocation5 + $0x14] sm:$0xf]  ;;  %v9734_v14 = vld [vmem:[#allocation5 + $0x98] sm:$0xf0] }
 0x748   : > { %v9697_v11 = vor.u32 %v11052_v44, %v9694_v56  ;;  %v9854_v25 = vld [vmem:[#allocation5 + $0x188] sm:$0xf0]  ;;  %v9737_v59 = vor.u32 %v11062_v8, %v9734_v14  ;;  %v11119_v18 = vld [vmem:[%s17768_s9 + $0x58] sm:$0xff]  ;;  %v11110_v0 = vld [vmem:[%s17768_s9 + $0x10] sm:$0xff] }
 0x749   : > { %6213 = vmatpush.bf16.msrb.mxu0 %v9677_v27  ;;  %6271 = vmatpush.bf16.msrb.mxu3 %v9861_v49  ;;  %v9825_v27 = vor.u32 %v11084_v37, %v9822_v4  ;;  %v9758_v49 = vld [vmem:[#allocation5 + $0xc8] sm:$0xf0]  ;;  %v11162_v8 = vld [vmem:[%s17768_s9 + $0x1b0] sm:$0xff] }
 0x74a   : > { %6232 = vmatpush.bf16.msrb.mxu1 %v9741_v60  ;;  %v11100_v60 = vld [vmem:[#allocation5 + $0x1c4] sm:$0xf]  ;;  %v9761_v55 = vor.u32 %v11068_v26, %v9758_v49  ;;  %v11129_v45 = vld [vmem:[%s17768_s9 + $0xa8] sm:$0xff]  ;;  %v11146_v14 = vld [vmem:[%s17768_s9 + $0x130] sm:$0xff] }
 0x74b   : > { %6253 = vmatpush.bf16.msrb.mxu2 %v9789_v21  ;;  %v9889_v35 = vor.u32 %v11100_v60, %v9886_v2  ;;  %v9686_v21 = vld [vmem:[#allocation5 + $0x38] sm:$0xf0]  ;;  %v9662_v60 = vld [vmem:[#allocation5 + $0x8] sm:$0xf0]  ;;  %v11060_v2 = vld [vmem:[#allocation5 + $0x84] sm:$0xf] }
 0x74c   : > { %v11113_v41 = vld [vmem:[%s17768_s9 + $0x28] sm:$0xff] }
 0x74d   : > { %6214 = vmatpush.bf16.msrb.mxu0 %v9669_v9  ;;  %6272 = vmatpush.bf16.msrb.mxu3 %v9853_v47  ;;  %v9814_v9 = vld [vmem:[#allocation5 + $0x138] sm:$0xf0] }
 0x74e   : > { %6233 = vmatpush.bf16.msrb.mxu1 %v9733_v29  ;;  %v9817_v53 = vor.u32 %v11082_v38, %v9814_v9  ;;  %v11050_v29 = vld [vmem:[#allocation5 + $0x34] sm:$0xf]  ;;  %v9750_v47 = vld [vmem:[#allocation5 + $0xb8] sm:$0xf0] }
 0x74f   : > { %6322 = vmatpush.bf16.msra.mxu2 %v9849_v10  ;;  %v9753_v10 = vor.u32 %v11066_v22, %v9750_v47  ;;  %v11115_v22 = vld [vmem:[%s17768_s9 + $0x38] sm:$0xff]  ;;  %v11130_v47 = vld [vmem:[%s17768_s9 + $0xb0] sm:$0xff] }
 0x751   : > { %6215 = vmatpush.bf16.msrb.mxu0 %v9661_v58  ;;  %6341 = vmatpush.bf16.msra.mxu3 %v9913_v63  ;;  %v9689_v58 = vor.u32 %v11050_v29, %v9686_v21  ;;  %v11048_v63 = vld [vmem:[#allocation5 + $0x24] sm:$0xf] }
 0x752   : > { %6234 = vmatpush.bf16.msrb.mxu1 %v9725_v16  ;;  %v9806_v16 = vld [vmem:[#allocation5 + $0x128] sm:$0xf0] }
 0x753   : > { %6323 = vmatpush.bf16.msra.mxu2 %v9841_v6  ;;  %v9809_v51 = vor.u32 %v11080_v23, %v9806_v16  ;;  %v9681_v6 = vor.u32 %v11048_v63, %v9678_v62  ;;  %v11114_v23 = vld [vmem:[%s17768_s9 + $0x30] sm:$0xff]  ;;  %v11128_v63 = vld [vmem:[%s17768_s9 + $0xa0] sm:$0xff] }
 0x754   : > { %v11138_v16 = vld [vmem:[%s17768_s9 + $0xf0] sm:$0xff]  ;;  %v11120_v62 = vld [vmem:[%s17768_s9 + $0x60] sm:$0xff] }
 0x755   : > { %6284 = vmatpush.bf16.msra.mxu0 %v9721_v34  ;;  %6342 = vmatpush.bf16.msra.mxu3 %v9905_v61  ;;  %v9742_v34 = vld [vmem:[#allocation5 + $0xa8] sm:$0xf0]  ;;  %v9670_v61 = vld [vmem:[#allocation5 + $0x18] sm:$0xf0] }
 0x756   : > { %6303 = vmatpush.bf16.msra.mxu1 %v9785_v43  ;;  %v9862_v43 = vld [vmem:[#allocation5 + $0x198] sm:$0xf0]  ;;  %v9745_v19 = vor.u32 %v11064_v1, %v9742_v34  ;;  %v9673_v39 = vor.u32 %v11046_v52, %v9670_v61  ;;  %v11136_v1 = vld [vmem:[%s17768_s9 + $0xe0] sm:$0xff] }
 0x757   : > { %6324 = vmatpush.bf16.msra.mxu2 %v9833_v50  ;;  %v9865_v7 = vor.u32 %v11094_v20, %v9862_v43  ;;  %v11127_v34 = vld [vmem:[%s17768_s9 + $0x98] sm:$0xff]  ;;  %v11126_v20 = vld [vmem:[%s17768_s9 + $0x90] sm:$0xff]  ;;  %v11109_v43 = vld [vmem:[%s17768_s9 + $0x8] sm:$0xff] }
 0x758   : > { %v11108_v52 = vld [vmem:[%s17768_s9] sm:$0xff]  ;;  %v11147_v61 = vld [vmem:[%s17768_s9 + $0x138] sm:$0xff] }
 0x759   : > { %6285 = vmatpush.bf16.msra.mxu0 %v9713_v48  ;;  %6343 = vmatpush.bf16.msra.mxu3 %v9897_v36  ;;  %v11076_v48 = vld [vmem:[#allocation5 + $0x104] sm:$0xf] }
 0x75a   : > { %6304 = vmatpush.bf16.msra.mxu1 %v9777_v15  ;;  %v9790_v15 = vld [vmem:[#allocation5 + $0x108] sm:$0xf0] }
 0x75b   : > { %6325 = vmatpush.bf16.msra.mxu2 %v9825_v27  ;;  %v9793_v37 = vor.u32 %v11076_v48, %v9790_v15  ;;  %v11044_v27 = vld [vmem:[#allocation5 + $0x4] sm:$0xf]  ;;  %v11145_v48 = vld [vmem:[%s17768_s9 + $0x128] sm:$0xff] }
 0x75c   : > { %v9665_v44 = vor.u32 %v11044_v27, %v9662_v60  ;;  %v11160_v15 = vld [vmem:[%s17768_s9 + $0x1a0] sm:$0xff]  ;;  %v11171_v60 = vld [vmem:[%s17768_s9 + $0x1f8] sm:$0xff] }
 0x75d   : > { %6286 = vmatpush.bf16.msra.mxu0 %v9705_v12  ;;  %6344 = vmatpush.bf16.msra.mxu3 %v9889_v35  ;;  %v9726_v35 = vld [vmem:[#allocation5 + $0x88] sm:$0xf0]  ;;  %v11140_v27 = vld [vmem:[%s17768_s9 + $0x100] sm:$0xff] }
 0x75e   : > { %6305 = vmatpush.bf16.msra.mxu1 %v9769_v24  ;;  %v9857_v24 = vor.u32 %v11092_v42, %v9854_v25  ;;  %v9729_v56 = vor.u32 %v11060_v2, %v9726_v35  ;;  %v11135_v42 = vld [vmem:[%s17768_s9 + $0xd8] sm:$0xff]  ;;  %v11132_v2 = vld [vmem:[%s17768_s9 + $0xc0] sm:$0xff]  ;;  %v11170_v35 = vld [vmem:[%s17768_s9 + $0x1f0] sm:$0xff] }
 0x75f   : > { %6326 = vmatpush.bf16.msra.mxu2 %v9817_v53  ;;  %v11159_v25 = vld [vmem:[%s17768_s9 + $0x198] sm:$0xff] }
 0x761   : > { %6287 = vmatpush.bf16.msra.mxu0 %v9697_v11  ;;  %6345 = vmatpush.bf16.msra.mxu3 %v9881_v33  ;;  %v11131_v33 = vld [vmem:[%s17768_s9 + $0xb8] sm:$0xff] }
 0x762   : > { %6306 = vmatpush.bf16.msra.mxu1 %v9761_v55 }
 0x763   : > { %6327 = vmatpush.bf16.msra.mxu2 %v9809_v51  ;;  %v11112_v51 = vld [vmem:[%s17768_s9 + $0x20] sm:$0xff] }
 0x765   : > { %6288 = vmatpush.bf16.msra.mxu0 %v9689_v58  ;;  %6346 = vmatpush.bf16.msra.mxu3 %v9873_v57  ;;  %v11122_v58 = vld [vmem:[%s17768_s9 + $0x70] sm:$0xff]  ;;  %v11111_v57 = vld [vmem:[%s17768_s9 + $0x18] sm:$0xff] }
 0x766   : > { %6307 = vmatpush.bf16.msra.mxu1 %v9753_v10  ;;  %v11137_v10 = vld [vmem:[%s17768_s9 + $0xe8] sm:$0xff] }
 0x767   : > { %6328 = vmatpush.bf16.msra.mxu2 %v9801_v3  ;;  %v11124_v3 = vld [vmem:[%s17768_s9 + $0x80] sm:$0xff] }
 0x769   : > { %6289 = vmatpush.bf16.msra.mxu0 %v9681_v6  ;;  %6347 = vmatpush.bf16.msra.mxu3 %v9865_v7  ;;  %v11125_v6 = vld [vmem:[%s17768_s9 + $0x88] sm:$0xff] }
 0x76a   : > { %6308 = vmatpush.bf16.msra.mxu1 %v9745_v19  ;;  %v11163_v19 = vld [vmem:[%s17768_s9 + $0x1b8] sm:$0xff]  ;;  %v11161_v7 = vld [vmem:[%s17768_s9 + $0x1a8] sm:$0xff] }
 0x76b   : > { %6329 = vmatpush.bf16.msra.mxu2 %v9793_v37  ;;  %v11133_v37 = vld [vmem:[%s17768_s9 + $0xc8] sm:$0xff] }
 0x76d   : > { %6290 = vmatpush.bf16.msra.mxu0 %v9673_v39  ;;  %6348 = vmatpush.bf16.msra.mxu3 %v9857_v24  ;;  %v11142_v39 = vld [vmem:[%s17768_s9 + $0x110] sm:$0xff]  ;;  %v11116_v24 = vld [vmem:[%s17768_s9 + $0x40] sm:$0xff] }
 0x76e   : > { %6309 = vmatpush.bf16.msra.mxu1 %v9737_v59  ;;  %v11157_v59 = vld [vmem:[%s17768_s9 + $0x188] sm:$0xff] }
 0x771   : > { %6291 = vmatpush.bf16.msra.mxu0 %v9665_v44  ;;  %v11155_v44 = vld [vmem:[%s17768_s9 + $0x178] sm:$0xff] }
 0x772   : > { %6310 = vmatpush.bf16.msra.mxu1 %v9729_v56  ;;  %v11154_v56 = vld [vmem:[%s17768_s9 + $0x170] sm:$0xff] }
 0x7b0   : > { %v5787_v46 = vpop.f32.mrf.mxu2 }
 0x7b1   : > { %v5749_v54 = vpop.f32.mrf.mxu0 }
 0x7b3   : > { %v5806_v30 = vpop.f32.mrf.mxu3 }
 0x7b4   : > { %v5768_v32 = vpop.f32.mrf.mxu1 }
 0x7b8   : > { %v5789_v50 = vpop.f32.mrf.mxu2 }
 0x7b9   : > { %v5751_v31 = vpop.f32.mrf.mxu0  ;;  %v17287_v5 = vpack.c.bf16 %v5789_v50, %v5787_v46  ;;  %v11123_v46 = vld [vmem:[%s17768_s9 + $0x78] sm:$0xff] }
 0x7ba   : > { %v17285_v28 = vpack.c.bf16 %v5751_v31, %v5749_v54  ;;  %v11144_v31 = vld [vmem:[%s17768_s9 + $0x120] sm:$0xff]  ;;  %v11143_v50 = vld [vmem:[%s17768_s9 + $0x118] sm:$0xff] }
 0x7bb   : > { %v5808_v12 = vpop.f32.mrf.mxu3  ;;  %6254 = vmatmul.bf16.vlgmr.msrb.gmra.mxu2 %v17287_v5 }
 0x7bc   : > { %v5770_v36 = vpop.f32.mrf.mxu1  ;;  %v17291_v4 = vpack.c.bf16 %v5808_v12, %v5806_v30  ;;  %6216 = vmatmul.bf16.vlgmr.msrb.gmra.mxu0 %v17285_v28  ;;  %6651 = vmatpush.bf16.msrb.mxu2 %v11115_v22  ;;  %v11121_v30 = vld [vmem:[%s17768_s9 + $0x68] sm:$0xff] }
 0x7bd   : > { %v17289_v40 = vpack.c.bf16 %v5770_v36, %v5768_v32  ;;  %6529 = vmatpush.bf16.msrb.mxu0 %v11131_v33  ;;  %v11139_v32 = vld [vmem:[%s17768_s9 + $0xf8] sm:$0xff]  ;;  %v11118_v36 = vld [vmem:[%s17768_s9 + $0x50] sm:$0xff]  ;;  %v11141_v12 = vld [vmem:[%s17768_s9 + $0x108] sm:$0xff] }
 0x7be   : > { %6273 = vmatmul.bf16.vlgmr.msrb.gmra.mxu3 %v17291_v4 }
 0x7bf   : > { %6235 = vmatmul.bf16.vlgmr.msrb.gmra.mxu1 %v17289_v40  ;;  %6664 = vmatpush.bf16.msrb.mxu3 %v11123_v46 }
 0x7c0   : > { %6542 = vmatpush.bf16.msrb.mxu1 %v11139_v32  ;;  %6652 = vmatpush.bf16.msrb.mxu2 %v11114_v23  ;;  %v11195_v32 = vld [vmem:[%s17768_s9 + $0x2b8] sm:$0xff] }
 0x7c1   : > { %v5754_v26 = vpop.f32.mrf.mxu0  ;;  %v5792_v49 = vpop.f32.mrf.mxu2  ;;  %6530 = vmatpush.bf16.msrb.mxu0 %v11130_v47  ;;  %v11150_v47 = vld [vmem:[%s17768_s9 + $0x150] sm:$0xff] }
 0x7c3   : > { %v5811_v55 = vpop.f32.mrf.mxu3  ;;  %6665 = vmatpush.bf16.msrb.mxu3 %v11122_v58  ;;  %v11165_v58 = vld [vmem:[%s17768_s9 + $0x1c8] sm:$0xff] }
 0x7c4   : > { %v5773_v11 = vpop.f32.mrf.mxu1  ;;  %6543 = vmatpush.bf16.msrb.mxu1 %v11138_v16  ;;  %6653 = vmatpush.bf16.msrb.mxu2 %v11113_v41  ;;  %v11179_v41 = vld [vmem:[%s17768_s9 + $0x238] sm:$0xff] }
 0x7c5   : > { %6531 = vmatpush.bf16.msrb.mxu0 %v11129_v45 }
 0x7c7   : > { %6666 = vmatpush.bf16.msrb.mxu3 %v11121_v30  ;;  %v11149_v30 = vld [vmem:[%s17768_s9 + $0x148] sm:$0xff] }
 0x7c8   : > { %6544 = vmatpush.bf16.msrb.mxu1 %v11137_v10  ;;  %6654 = vmatpush.bf16.msrb.mxu2 %v11112_v51  ;;  %v11164_v51 = vld [vmem:[%s17768_s9 + $0x1c0] sm:$0xff] }
 0x7c9   : > { %v5756_v38 = vpop.f32.mrf.mxu0  ;;  %v5794_v9 = vpop.f32.mrf.mxu2  ;;  %6532 = vmatpush.bf16.msrb.mxu0 %v11128_v63 }
 0x7ca   : > { %v5820_v17 = vpack.c.bf16 %v5756_v38, %v5754_v26  ;;  %v5822_v13 = vpack.c.bf16 %v5794_v9, %v5792_v49  ;;  %v11169_v26 = vld [vmem:[%s17768_s9 + $0x1e8] sm:$0xff]  ;;  %v11152_v38 = vld [vmem:[%s17768_s9 + $0x160] sm:$0xff] }
 0x7cb   : > { %v5813_v29 = vpop.f32.mrf.mxu3  ;;  %6667 = vmatpush.bf16.msrb.mxu3 %v11120_v62  ;;  %v11153_v49 = vld [vmem:[%s17768_s9 + $0x168] sm:$0xff]  ;;  %v11194_v62 = vld [vmem:[%s17768_s9 + $0x2b0] sm:$0xff] }
 0x7cc   : > { %v5775_v53 = vpop.f32.mrf.mxu1  ;;  %v5823_v54 = vpack.c.bf16 %v5813_v29, %v5811_v55  ;;  %6221 = vmatmul.bf16.gmra.mxu0 %v5820_v17  ;;  %6259 = vmatmul.bf16.gmra.mxu2 %v5822_v13  ;;  %v11166_v29 = vld [vmem:[%s17768_s9 + $0x1d0] sm:$0xff] }
 0x7cd   : > { %v5821_v21 = vpack.c.bf16 %v5775_v53, %v5773_v11  ;;  %6545 = vmatpush.bf16.msrb.mxu1 %v11136_v1  ;;  %6655 = vmatpush.bf16.msrb.mxu2 %v11111_v57  ;;  %v11168_v11 = vld [vmem:[%s17768_s9 + $0x1e0] sm:$0xff] }
 0x7ce   : > { %6278 = vmatmul.bf16.gmra.mxu3 %v5823_v54  ;;  %6533 = vmatpush.bf16.msrb.mxu0 %v11127_v34  ;;  %v11148_v1 = vld [vmem:[%s17768_s9 + $0x140] sm:$0xff] }
 0x7cf   : > { %6240 = vmatmul.bf16.gmra.mxu1 %v5821_v21  ;;  %6668 = vmatpush.bf16.msrb.mxu3 %v11119_v18 }
 0x7d1   : > { %6656 = vmatpush.bf16.msrb.mxu2 %v11110_v0  ;;  %6546 = vmatpush.bf16.msrb.mxu1 %v11135_v42 }
 0x7d2   : > { %6534 = vmatpush.bf16.msrb.mxu0 %v11126_v20  ;;  %v11178_v20 = vld [vmem:[%s17768_s9 + $0x230] sm:$0xff] }
 0x7d3   : > { %6669 = vmatpush.bf16.msrb.mxu3 %v11118_v36 }
 0x7d5   : > { %6657 = vmatpush.bf16.msrb.mxu2 %v11109_v43  ;;  %v11193_v43 = vld [vmem:[%s17768_s9 + $0x2a8] sm:$0xff] }
 0x7d6   : > { %6535 = vmatpush.bf16.msrb.mxu0 %v11125_v6 }
 0x7d9   : > { %6658 = vmatpush.bf16.msrb.mxu2 %v11108_v52  ;;  %v11177_v52 = vld [vmem:[%s17768_s9 + $0x228] sm:$0xff] }
 0x7da   : > { %6536 = vmatpush.bf16.msrb.mxu0 %v11124_v3  ;;  %v11192_v3 = vld [vmem:[%s17768_s9 + $0x2a0] sm:$0xff] }
 0x7dc   : > { %6292 = vmatmul.bf16.vlgmr.msra.gmra.mxu0 %v17285_v28  ;;  %6330 = vmatmul.bf16.vlgmr.msra.gmra.mxu2 %v17287_v5  ;;  %v11158_v28 = vld [vmem:[%s17768_s9 + $0x190] sm:$0xff] }
 0x7dd   : > { %6970 = vmatpush.bf16.msra.mxu2 %v11163_v19  ;;  %v11134_v5 = vld [vmem:[%s17768_s9 + $0xd0] sm:$0xff] }
 0x7de   : > { %6349 = vmatmul.bf16.vlgmr.msra.gmra.mxu3 %v17291_v4  ;;  %6808 = vmatpush.bf16.msra.mxu0 %v11147_v61  ;;  %v11156_v4 = vld [vmem:[%s17768_s9 + $0x180] sm:$0xff] }
 0x7df   : > { %6311 = vmatmul.bf16.vlgmr.msra.gmra.mxu1 %v17289_v40  ;;  %v11117_v40 = vld [vmem:[%s17768_s9 + $0x48] sm:$0xff] }
 0x7e0   : > { %6547 = vmatpush.bf16.msrb.mxu1 %v11134_v5  ;;  %6670 = vmatpush.bf16.msrb.mxu3 %v11117_v40  ;;  %v11189_v40 = vld [vmem:[%s17768_s9 + $0x288] sm:$0xff] }
 0x7e1   : > { %6971 = vmatpush.bf16.msra.mxu2 %v11162_v8 }
 0x7e2   : > { %6809 = vmatpush.bf16.msra.mxu0 %v11146_v14 }
 0x7e4   : > { %6548 = vmatpush.bf16.msrb.mxu1 %v11133_v37  ;;  %6671 = vmatpush.bf16.msrb.mxu3 %v11116_v24  ;;  %v11173_v24 = vld [vmem:[%s17768_s9 + $0x208] sm:$0xff] }
 0x7e5   : > { %6972 = vmatpush.bf16.msra.mxu2 %v11161_v7 }
 0x7e6   : > { %6810 = vmatpush.bf16.msra.mxu0 %v11145_v48  ;;  %v11176_v48 = vld [vmem:[%s17768_s9 + $0x220] sm:$0xff] }
 0x7e8   : > { %6983 = vmatpush.bf16.msra.mxu3 %v11171_v60  ;;  %6549 = vmatpush.bf16.msrb.mxu1 %v11132_v2  ;;  %v11188_v60 = vld [vmem:[%s17768_s9 + $0x280] sm:$0xff] }
 0x7e9   : > { %6973 = vmatpush.bf16.msra.mxu2 %v11160_v15  ;;  %v11191_v15 = vld [vmem:[%s17768_s9 + $0x298] sm:$0xff] }
 0x7ea   : > { %6811 = vmatpush.bf16.msra.mxu0 %v11144_v31 }
 0x7ec   : > { %6297 = vmatmul.bf16.gmra.mxu0 %v5820_v17  ;;  %6335 = vmatmul.bf16.gmra.mxu2 %v5822_v13  ;;  %v11167_v17 = vld [vmem:[%s17768_s9 + $0x1d8] sm:$0xff] }
 0x7ed   : > { %6974 = vmatpush.bf16.msra.mxu2 %v11159_v25  ;;  %6821 = vmatpush.bf16.msra.mxu1 %v11155_v44  ;;  %v11151_v13 = vld [vmem:[%s17768_s9 + $0x158] sm:$0xff] }
 0x7ee   : > { %6354 = vmatmul.bf16.gmra.mxu3 %v5823_v54  ;;  %6812 = vmatpush.bf16.msra.mxu0 %v11143_v50  ;;  %v11175_v25 = vld [vmem:[%s17768_s9 + $0x218] sm:$0xff] }
 0x7ef   : > { %6316 = vmatmul.bf16.gmra.mxu1 %v5821_v21  ;;  %6984 = vmatpush.bf16.msra.mxu3 %v11170_v35  ;;  %v11227_v35 = vld [vmem:[%s17768_s9 + $0x3b8] sm:$0xff] }
 0x7f1   : > { %6975 = vmatpush.bf16.msra.mxu2 %v11158_v28  ;;  %6822 = vmatpush.bf16.msra.mxu1 %v11154_v56  ;;  %v11190_v28 = vld [vmem:[%s17768_s9 + $0x290] sm:$0xff] }
 0x7f2   : > { %6813 = vmatpush.bf16.msra.mxu0 %v11142_v39 }
 0x7f3   : > { %6985 = vmatpush.bf16.msra.mxu3 %v11169_v26 }
 0x7f5   : > { %6976 = vmatpush.bf16.msra.mxu2 %v11157_v59  ;;  %6823 = vmatpush.bf16.msra.mxu1 %v11153_v49 }
 0x7f6   : > { %6814 = vmatpush.bf16.msra.mxu0 %v11141_v12  ;;  %v11174_v12 = vld [vmem:[%s17768_s9 + $0x210] sm:$0xff] }
 0x7f7   : > { %6986 = vmatpush.bf16.msra.mxu3 %v11168_v11  ;;  %v11172_v11 = vld [vmem:[%s17768_s9 + $0x200] sm:$0xff] }
 0x7f9   : > { %6977 = vmatpush.bf16.msra.mxu2 %v11156_v4  ;;  %6824 = vmatpush.bf16.msra.mxu1 %v11152_v38  ;;  %v11211_v38 = vld [vmem:[%s17768_s9 + $0x338] sm:$0xff] }
 0x7fa   : > { %6815 = vmatpush.bf16.msra.mxu0 %v11140_v27 }
 0x7fb   : > { %6987 = vmatpush.bf16.msra.mxu3 %v11167_v17 }
 0x7fd   : > { %6825 = vmatpush.bf16.msra.mxu1 %v11151_v13  ;;  %v11226_v13 = vld [vmem:[%s17768_s9 + $0x3b0] sm:$0xff] }
 0x7ff   : > { %6988 = vmatpush.bf16.msra.mxu3 %v11166_v29 }
 0x801   : > { %6826 = vmatpush.bf16.msra.mxu1 %v11150_v47 }
 0x803   : > { %6989 = vmatpush.bf16.msra.mxu3 %v11165_v58  ;;  %v11209_v58 = vld [vmem:[%s17768_s9 + $0x328] sm:$0xff] }
 0x805   : > { %6827 = vmatpush.bf16.msra.mxu1 %v11149_v30  ;;  %v11224_v30 = vld [vmem:[%s17768_s9 + $0x3a0] sm:$0xff] }
 0x807   : > { %6990 = vmatpush.bf16.msra.mxu3 %v11164_v51  ;;  %v11208_v51 = vld [vmem:[%s17768_s9 + $0x320] sm:$0xff] }
 0x809   : > { %6828 = vmatpush.bf16.msra.mxu1 %v11148_v1  ;;  %v11223_v1 = vld [vmem:[%s17768_s9 + $0x398] sm:$0xff] }
 0x839   : > { %v6217_v55 = vpop.f32.mrf.mxu0 }
 0x83c   : > { %v6236_v9 = vpop.f32.mrf.mxu1 }
 0x83d   : > { %v6237_v53 = vadd.f32 %v6236_v9, %v6217_v55  ;;  %v11203_v9 = vld [vmem:[%s17768_s9 + $0x2f8] sm:$0xff] }
 0x83e   : > { %v6255_v21 = vpop.f32.mrf.mxu2 }
 0x83f   : > { %v6256_v54 = vadd.f32 %v6255_v21, %v6237_v53  ;;  %v11187_v21 = vld [vmem:[%s17768_s9 + $0x278] sm:$0xff] }
 0x841   : > { %v6274_v33 = vpop.f32.mrf.mxu3  ;;  %v6219_v22 = vpop.f32.mrf.mxu0 }
 0x842   : > { %v6275_v46 = vadd.f32 %v6274_v33, %v6256_v54  ;;  %v11210_v33 = vld [vmem:[%s17768_s9 + $0x330] sm:$0xff] }
 0x844   : > { %v6238_v23 = vpop.f32.mrf.mxu1  ;;  %v6360_v16 = vpack.c.bf16 %v6275_v46, %v6275_v46  ;;  %v11225_v46 = vld [vmem:[%s17768_s9 + $0x3a8] sm:$0xff] }
 0x845   : > { %v6239_v45 = vadd.f32 %v6238_v23, %v6219_v22  ;;  %v11202_v22 = vld [vmem:[%s17768_s9 + $0x2f0] sm:$0xff] }
 0x846   : > { %v6429_v10 = vrot.slane %v6360_v16, 2  ;;  %6659 = vmatmul.bf16.vlgmr.msrb.gmra.mxu2 %v6360_v16  ;;  %v6257_v63 = vpop.f32.mrf.mxu2  ;;  %v11201_v16 = vld [vmem:[%s17768_s9 + $0x2e8] sm:$0xff] }
 0x847   : > { %7290 = vmatpush.bf16.msrb.mxu2 %v11195_v32  ;;  %v6258_v57 = vadd.f32 %v6257_v63, %v6239_v45  ;;  %v11186_v32 = vld [vmem:[%s17768_s9 + $0x270] sm:$0xff]  ;;  %v11200_v63 = vld [vmem:[%s17768_s9 + $0x2e0] sm:$0xff] }
 0x848   : > { %6537 = vmatmul.bf16.vlgmr.msrb.gmra.mxu0 %v6429_v10  ;;  %v11185_v10 = vld [vmem:[%s17768_s9 + $0x268] sm:$0xff] }
 0x849   : > { %v6276_v34 = vpop.f32.mrf.mxu3  ;;  %v6222_v18 = vpop.f32.mrf.mxu0  ;;  %7128 = vmatpush.bf16.msrb.mxu0 %v11179_v41 }
 0x84a   : > { %v6277_v6 = vadd.f32 %v6276_v34, %v6258_v57  ;;  %v11184_v34 = vld [vmem:[%s17768_s9 + $0x260] sm:$0xff] }
 0x84b   : > { %7291 = vmatpush.bf16.msrb.mxu2 %v11194_v62 }
 0x84c   : > { %v6241_v0 = vpop.f32.mrf.mxu1  ;;  %v6677_v61 = vpack.c.bf16 %v6277_v6, %v6277_v6 }
 0x84d   : > { %7129 = vmatpush.bf16.msrb.mxu0 %v11178_v20  ;;  %v6242_v42 = vadd.f32 %v6241_v0, %v6222_v18  ;;  %v11207_v20 = vld [vmem:[%s17768_s9 + $0x318] sm:$0xff] }
 0x84e   : > { %v6870_v31 = vrot.slane %v6677_v61, 2 }
 0x84f   : > { %v6260_v19 = vpop.f32.mrf.mxu2  ;;  %7292 = vmatpush.bf16.msrb.mxu2 %v11193_v43  ;;  %v11199_v43 = vld [vmem:[%s17768_s9 + $0x2d8] sm:$0xff] }
 0x850   : > { %v6261_v59 = vadd.f32 %v6260_v19, %v6242_v42  ;;  %v11222_v19 = vld [vmem:[%s17768_s9 + $0x390] sm:$0xff] }
 0x851   : > { %v6279_v8 = vpop.f32.mrf.mxu3  ;;  %v17514_v14 = vpop.f32.mrf.mxu0  ;;  %7130 = vmatpush.bf16.msrb.mxu0 %v11177_v52  ;;  %v11182_v42 = vld [vmem:[%s17768_s9 + $0x250] sm:$0xff] }
 0x852   : > { %v6280_v4 = vadd.f32 %v6279_v8, %v6261_v59 }
 0x853   : > { %7293 = vmatpush.bf16.msrb.mxu2 %v11192_v3 }
 0x854   : > { %v17516_v7 = vpop.f32.mrf.mxu1  ;;  %v6997_v56 = vpack.c.bf16 %v6280_v4, %v6280_v4 }
 0x855   : > { %7131 = vmatpush.bf16.msrb.mxu0 %v11176_v48  ;;  %v6244_v57 = vadd.f32 %v17516_v7, %v17514_v14  ;;  %v11206_v14 = vld [vmem:[%s17768_s9 + $0x310] sm:$0xff] }
 0x856   : > { %6978 = vmatmul.bf16.vlgmr.msra.gmra.mxu2 %v6870_v31  ;;  %v7190_v29 = vrot.slane %v6997_v56, 2  ;;  %v11198_v7 = vld [vmem:[%s17768_s9 + $0x2d0] sm:$0xff] }
 0x857   : > { %v17527_v50 = vpop.f32.mrf.mxu2  ;;  %7294 = vmatpush.bf16.msrb.mxu2 %v11191_v15  ;;  %v11221_v15 = vld [vmem:[%s17768_s9 + $0x388] sm:$0xff] }
 0x858   : > { %6816 = vmatmul.bf16.vlgmr.msra.gmra.mxu0 %v6677_v61  ;;  %v6263_v3 = vadd.f32 %v17527_v50, %v6244_v57  ;;  %v11183_v61 = vld [vmem:[%s17768_s9 + $0x258] sm:$0xff]  ;;  %v11197_v50 = vld [vmem:[%s17768_s9 + $0x2c8] sm:$0xff] }
 0x859   : > { %v17532_v36 = vpop.f32.mrf.mxu3  ;;  %v6293_v39 = vpop.f32.mrf.mxu0  ;;  %7132 = vmatpush.bf16.msrb.mxu0 %v11175_v25  ;;  %v11205_v25 = vld [vmem:[%s17768_s9 + $0x308] sm:$0xff] }
 0x85a   : > { %v6282_v31 = vadd.f32 %v17532_v36, %v6263_v3  ;;  %v11220_v36 = vld [vmem:[%s17768_s9 + $0x380] sm:$0xff] }
 0x85b   : > { %7295 = vmatpush.bf16.msrb.mxu2 %v11190_v28 }
 0x85c   : > { %v6312_v5 = vpop.f32.mrf.mxu1  ;;  %v7317_v59 = vpack.c.bf16 %v6282_v31, %v6282_v31 }
 0x85d   : > { %v6313_v37 = vadd.f32 %v6312_v5, %v6293_v39  ;;  %7133 = vmatpush.bf16.msrb.mxu0 %v11174_v12  ;;  %v11181_v5 = vld [vmem:[%s17768_s9 + $0x248] sm:$0xff]  ;;  %v11204_v12 = vld [vmem:[%s17768_s9 + $0x300] sm:$0xff] }
 0x85f   : > { %v6331_v27 = vpop.f32.mrf.mxu2  ;;  %7296 = vmatpush.bf16.msrb.mxu2 %v11189_v40  ;;  %v11196_v40 = vld [vmem:[%s17768_s9 + $0x2c0] sm:$0xff] }
 0x860   : > { %v6332_v2 = vadd.f32 %v6331_v27, %v6313_v37  ;;  %v11235_v37 = vld [vmem:[%s17768_s9 + $0x3f8] sm:$0xff]  ;;  %v11180_v27 = vld [vmem:[%s17768_s9 + $0x240] sm:$0xff] }
 0x861   : > { %v6350_v44 = vpop.f32.mrf.mxu3  ;;  %7134 = vmatpush.bf16.msrb.mxu0 %v11173_v24  ;;  %v6295_v26 = vpop.f32.mrf.mxu0  ;;  %v7510_v24 = vrot.slane %v7317_v59, 2 }
 0x862   : > { %v6351_v55 = vadd.f32 %v6350_v44, %v6332_v2  ;;  %v11234_v2 = vld [vmem:[%s17768_s9 + $0x3f0] sm:$0xff] }
 0x863   : > { %7297 = vmatpush.bf16.msrb.mxu2 %v11188_v60  ;;  %v11219_v60 = vld [vmem:[%s17768_s9 + $0x378] sm:$0xff] }
 0x864   : > { %v6314_v49 = vpop.f32.mrf.mxu1  ;;  %v6361_v17 = vpack.c.bf16 %v6351_v55, %v6351_v55 }
 0x865   : > { %v6315_v53 = vadd.f32 %v6314_v49, %v6295_v26  ;;  %7135 = vmatpush.bf16.msrb.mxu0 %v11172_v11  ;;  %v11217_v26 = vld [vmem:[%s17768_s9 + $0x368] sm:$0xff]  ;;  %v11232_v49 = vld [vmem:[%s17768_s9 + $0x3e0] sm:$0xff] }
 0x866   : > { %v6430_v54 = vrot.slane %v6361_v17, 2  ;;  %6672 = vmatmul.bf16.vlgmr.msrb.gmra.mxu3 %v6361_v17  ;;  %7298 = vmatmul.bf16.vlgmr.msrb.gmra.mxu2 %v7190_v29  ;;  %v11216_v11 = vld [vmem:[%s17768_s9 + $0x360] sm:$0xff]  ;;  %v11230_v29 = vld [vmem:[%s17768_s9 + $0x3d0] sm:$0xff] }
 0x867   : > { %7610 = vmatpush.bf16.msra.mxu2 %v11227_v35  ;;  %7303 = vmatpush.bf16.msrb.mxu3 %v11203_v9  ;;  %v6333_v47 = vpop.f32.mrf.mxu2  ;;  %v11218_v35 = vld [vmem:[%s17768_s9 + $0x370] sm:$0xff]  ;;  %v11231_v9 = vld [vmem:[%s17768_s9 + $0x3d8] sm:$0xff] }
 0x868   : > { %6550 = vmatmul.bf16.vlgmr.msrb.gmra.mxu1 %v6430_v54  ;;  %v6334_v23 = vadd.f32 %v6333_v47, %v6315_v53  ;;  %7136 = vmatmul.bf16.vlgmr.msrb.gmra.mxu0 %v6997_v56  ;;  %v11233_v56 = vld [vmem:[%s17768_s9 + $0x3e8] sm:$0xff]  ;;  %v11215_v53 = vld [vmem:[%s17768_s9 + $0x358] sm:$0xff]  ;;  %v11214_v54 = vld [vmem:[%s17768_s9 + $0x350] sm:$0xff] }
 0x869   : > { %7448 = vmatpush.bf16.msra.mxu0 %v11211_v38  ;;  %7141 = vmatpush.bf16.msrb.mxu1 %v11187_v21  ;;  %v6352_v45 = vpop.f32.mrf.mxu3  ;;  %v6298_v18 = vpop.f32.mrf.mxu0 }
 0x86a   : > { %v6353_v41 = vadd.f32 %v6352_v45, %v6334_v23  ;;  %v11213_v23 = vld [vmem:[%s17768_s9 + $0x348] sm:$0xff] }
 0x86b   : > { %7611 = vmatpush.bf16.msra.mxu2 %v11226_v13  ;;  %7304 = vmatpush.bf16.msrb.mxu3 %v11202_v22  ;;  %v11229_v22 = vld [vmem:[%s17768_s9 + $0x3c8] sm:$0xff] }
 0x86c   : > { %v6678_v62 = vpack.c.bf16 %v6353_v41, %v6353_v41  ;;  %v6317_v0 = vpop.f32.mrf.mxu1 }
 0x86d   : > { %7449 = vmatpush.bf16.msra.mxu0 %v11210_v33  ;;  %7142 = vmatpush.bf16.msrb.mxu1 %v11186_v32  ;;  %v6318_v52 = vadd.f32 %v6317_v0, %v6298_v18 }
 0x86e   : > { %v6871_v6 = vrot.slane %v6678_v62, 2 }
 0x86f   : > { %7612 = vmatpush.bf16.msra.mxu2 %v11225_v46  ;;  %7305 = vmatpush.bf16.msrb.mxu3 %v11201_v16  ;;  %v6336_v8 = vpop.f32.mrf.mxu2  ;;  %v11228_v46 = vld [vmem:[%s17768_s9 + $0x3c0] sm:$0xff] }
 0x870   : > { %v6337_v48 = vadd.f32 %v6336_v8, %v6318_v52  ;;  %v11242_v52 = vld [vmem:[%s17770_s11 + $0x30] sm:$0xff] }
 0x871   : > { %7450 = vmatpush.bf16.msra.mxu0 %v11209_v58  ;;  %7143 = vmatpush.bf16.msrb.mxu1 %v11185_v10  ;;  %v6355_v28 = vpop.f32.mrf.mxu3  ;;  %v6300_v55 = vpop.f32.mrf.mxu0  ;;  %v11212_v58 = vld [vmem:[%s17768_s9 + $0x340] sm:$0xff] }
 0x872   : > { %v6356_v39 = vadd.f32 %v6355_v28, %v6337_v48 }
 0x873   : > { %7613 = vmatpush.bf16.msra.mxu2 %v11224_v30  ;;  %7306 = vmatpush.bf16.msrb.mxu3 %v11200_v63 }
 0x874   : > { %v6998_v4 = vpack.c.bf16 %v6356_v39, %v6356_v39  ;;  %v6319_v38 = vpop.f32.mrf.mxu1 }
 0x875   : > { %7451 = vmatpush.bf16.msra.mxu0 %v11208_v51  ;;  %7144 = vmatpush.bf16.msrb.mxu1 %v11184_v34  ;;  %v6320_v17 = vadd.f32 %v6319_v38, %v6300_v55 }
 0x876   : > { %6991 = vmatmul.bf16.vlgmr.msra.gmra.mxu3 %v6871_v6  ;;  %v7191_v44 = vrot.slane %v6998_v4, 2 }
 0x877   : > { %7614 = vmatpush.bf16.msra.mxu2 %v11223_v1  ;;  %7307 = vmatpush.bf16.msrb.mxu3 %v11199_v43  ;;  %v6338_v13 = vpop.f32.mrf.mxu2 }
 0x878   : > { %6829 = vmatmul.bf16.vlgmr.msra.gmra.mxu1 %v6678_v62  ;;  %v6339_v21 = vadd.f32 %v6338_v13, %v6320_v17  ;;  %v11555_v13 = vld [vmem:[%s17769_s10] ss:$0 sm:$0xff] }
 0x879   : > { %7452 = vmatpush.bf16.msra.mxu0 %v11207_v20  ;;  %7145 = vmatpush.bf16.msrb.mxu1 %v11183_v61  ;;  %v6357_v33 = vpop.f32.mrf.mxu3  ;;  %v11243_v20 = vld [vmem:[%s17770_s11 + $0x38] sm:$0xff]  ;;  %v11241_v61 = vld [vmem:[%s17770_s11 + $0x28] sm:$0xff] }
 0x87a   : > { %v6358_v47 = vadd.f32 %v6357_v33, %v6339_v21 }
 0x87b   : > { %7615 = vmatpush.bf16.msra.mxu2 %v11222_v19  ;;  %7308 = vmatpush.bf16.msrb.mxu3 %v11198_v7  ;;  %v11240_v7 = vld [vmem:[%s17770_s11 + $0x20] sm:$0xff] }
 0x87c   : > { %v7318_v32 = vpack.c.bf16 %v6358_v47, %v6358_v47 }
 0x87d   : > { %7453 = vmatpush.bf16.msra.mxu0 %v11206_v14  ;;  %7146 = vmatpush.bf16.msrb.mxu1 %v11182_v42 }
 0x87e   : > { %v7511_v16 = vrot.slane %v7318_v32, 2 }
 0x87f   : > { %7616 = vmatpush.bf16.msra.mxu2 %v11221_v15  ;;  %7309 = vmatpush.bf16.msrb.mxu3 %v11197_v50 }
 0x881   : > { %7454 = vmatpush.bf16.msra.mxu0 %v11205_v25  ;;  %7147 = vmatpush.bf16.msrb.mxu1 %v11181_v5  ;;  %v11239_v5 = vld [vmem:[%s17770_s11 + $0x18] sm:$0xff] }
 0x883   : > { %7617 = vmatpush.bf16.msra.mxu2 %v11220_v36  ;;  %7310 = vmatpush.bf16.msrb.mxu3 %v11196_v40 }
 0x885   : > { %7455 = vmatpush.bf16.msra.mxu0 %v11204_v12  ;;  %7148 = vmatpush.bf16.msrb.mxu1 %v11180_v27  ;;  %v11237_v27 = vld [vmem:[%s17770_s11 + $0x8] sm:$0xff] }
 0x886   : > { %7618 = vmatmul.bf16.vlgmr.msra.gmra.mxu2 %v7510_v24  ;;  %7311 = vmatmul.bf16.vlgmr.msrb.gmra.mxu3 %v7191_v44  ;;  %v11236_v44 = vld [vmem:[%s17770_s11] sm:$0xff] }
 0x887   : > { %7623 = vmatpush.bf16.msra.mxu3 %v11235_v37  ;;  %v11238_v37 = vld [vmem:[%s17770_s11 + $0x10] sm:$0xff] }
 0x888   : > { %7456 = vmatmul.bf16.vlgmr.msra.gmra.mxu0 %v7317_v59  ;;  %7149 = vmatmul.bf16.vlgmr.msrb.gmra.mxu1 %v6998_v4 }
 0x889   : > { %7461 = vmatpush.bf16.msra.mxu1 %v11219_v60  ;;  %7712 = vmatpush.bf16.msrb.mxu0 %v11243_v20 }
 0x88b   : > { %7624 = vmatpush.bf16.msra.mxu3 %v11234_v2 }
 0x88d   : > { %7462 = vmatpush.bf16.msra.mxu1 %v11218_v35  ;;  %7713 = vmatpush.bf16.msrb.mxu0 %v11242_v52 }
 0x88f   : > { %7625 = vmatpush.bf16.msra.mxu3 %v11233_v56 }
 0x891   : > { %7463 = vmatpush.bf16.msra.mxu1 %v11217_v26  ;;  %7714 = vmatpush.bf16.msrb.mxu0 %v11241_v61 }
 0x893   : > { %7626 = vmatpush.bf16.msra.mxu3 %v11232_v49 }
 0x895   : > { %7464 = vmatpush.bf16.msra.mxu1 %v11216_v11  ;;  %7715 = vmatpush.bf16.msrb.mxu0 %v11240_v7 }
 0x897   : > { %7627 = vmatpush.bf16.msra.mxu3 %v11231_v9 }
 0x899   : > { %7465 = vmatpush.bf16.msra.mxu1 %v11215_v53  ;;  %7716 = vmatpush.bf16.msrb.mxu0 %v11239_v5 }
 0x89b   : > { %7628 = vmatpush.bf16.msra.mxu3 %v11230_v29 }
 0x89d   : > { %7466 = vmatpush.bf16.msra.mxu1 %v11214_v54  ;;  %7717 = vmatpush.bf16.msrb.mxu0 %v11238_v37 }
 0x89f   : > { %7629 = vmatpush.bf16.msra.mxu3 %v11229_v22 }
 0x8a1   : > { %7467 = vmatpush.bf16.msra.mxu1 %v11213_v23  ;;  %7718 = vmatpush.bf16.msrb.mxu0 %v11237_v27  ;;  %v11556_v23 = vld [vmem:[%s17771_s12] ss:$0 sm:$0xff] }
 0x8a3   : > { %7630 = vmatpush.bf16.msra.mxu3 %v11228_v46 }
 0x8a5   : > { %7468 = vmatpush.bf16.msra.mxu1 %v11212_v58  ;;  %7719 = vmatpush.bf16.msrb.mxu0 %v11236_v44 }
 0x8a6   : > { %7631 = vmatmul.bf16.vlgmr.msra.gmra.mxu3 %v7511_v16 }
 0x8a8   : > { %7469 = vmatmul.bf16.vlgmr.msra.gmra.mxu1 %v7318_v32 }
 0x8c5   : > { %v6538_v45 = vpop.f32.mrf.mxu0 }
 0x8c9   : > { %v6660_v41 = vpop.f32.mrf.mxu2 }
 0x8cd   : > { %v6540_v30 = vpop.f32.mrf.mxu0 }
 0x8d1   : > { %v6662_v10 = vpop.f32.mrf.mxu2 }
 0x8d5   : > { %v6817_v51 = vpop.f32.mrf.mxu0 }
 0x8d9   : > { %v6979_v63 = vpop.f32.mrf.mxu2 }
 0x8dd   : > { %v6819_v62 = vpop.f32.mrf.mxu0 }
 0x8e1   : > { %v6981_v1 = vpop.f32.mrf.mxu2 }
 0x8e5   : > { %v6551_v57 = vpop.f32.mrf.mxu1  ;;  %v7137_v18 = vpop.f32.mrf.mxu0 }
 0x8e6   : > { %v6552_v34 = vadd.f32 %v6551_v57, %v6538_v45 }
 0x8e8   : > { %v6661_v0 = vadd.f32 %v6660_v41, %v6552_v34 }
 0x8e9   : > { %v6673_v43 = vpop.f32.mrf.mxu3  ;;  %v7299_v6 = vpop.f32.mrf.mxu2 }
 0x8ea   : > { %v6674_v15 = vadd.f32 %v6673_v43, %v6661_v0 }
 0x8ed   : > { %v6553_v19 = vpop.f32.mrf.mxu1  ;;  %v7139_v3 = vpop.f32.mrf.mxu0 }
 0x8f1   : > { %v6675_v8 = vpop.f32.mrf.mxu3  ;;  %v7301_v14 = vpop.f32.mrf.mxu2 }
 0x8f5   : > { %v6830_v48 = vpop.f32.mrf.mxu1 }
 0x8f6   : > { %v6831_v31 = vadd.f32 %v6830_v48, %v6817_v51 }
 0x8f8   : > { %v6834_v42 = vadd.f32 %v6831_v31, %v6674_v15 }
 0x8f9   : > { %v6992_v25 = vpop.f32.mrf.mxu3 }
 0x8fa   : > { %v6993_v50 = vadd.f32 %v6992_v25, %v6979_v63 }
 0x8fc   : > { %v6996_v28 = vadd.f32 %v6993_v50, %v6834_v42 }
 0x8fd   : > { %v6832_v39 = vpop.f32.mrf.mxu1 }
 0x901   : > { %v6994_v36 = vpop.f32.mrf.mxu3 }
 0x905   : > { %v7457_v59 = vpop.f32.mrf.mxu0  ;;  %v7150_v12 = vpop.f32.mrf.mxu1 }
 0x906   : > { %v7151_v56 = vadd.f32 %v7150_v12, %v7137_v18 }
 0x908   : > { %v7154_v11 = vadd.f32 %v7151_v56, %v6996_v28 }
 0x909   : > { %v7619_v40 = vpop.f32.mrf.mxu2  ;;  %v7312_v4 = vpop.f32.mrf.mxu3 }
 0x90a   : > { %v7313_v26 = vadd.f32 %v7312_v4, %v7299_v6 }
 0x90c   : > { %v7316_v38 = vadd.f32 %v7313_v26, %v7154_v11 }
 0x90d   : > { %v7459_v24 = vpop.f32.mrf.mxu0  ;;  %v7152_v60 = vpop.f32.mrf.mxu1 }
 0x911   : > { %v7621_v2 = vpop.f32.mrf.mxu2  ;;  %v7314_v35 = vpop.f32.mrf.mxu3 }
 0x925   : > { %v7470_v49 = vpop.f32.mrf.mxu1 }
 0x926   : > { %v7471_v55 = vadd.f32 %v7470_v49, %v7457_v59 }
 0x928   : > { %v7474_v17 = vadd.f32 %v7471_v55, %v7316_v38 }
 0x929   : > { %v7632_v9 = vpop.f32.mrf.mxu3 }
 0x92a   : > { %v7633_v53 = vadd.f32 %v7632_v9, %v7619_v40 }
 0x92c   : > { %v7636_v29 = vadd.f32 %v7633_v53, %v7474_v17 }
 0x92d   : > { %v7472_v21 = vpop.f32.mrf.mxu1 }
 0x92e   : > { %v7641_v54 = vadd.f32 %v11555_v13, %v7636_v29 }
 0x930   : > { %v7642_v33 = vmax.f32 %v7641_v54, 0.0 }
 0x931   : > { %v7634_v22 = vpop.f32.mrf.mxu3 }
 0x932   : > { %v7643_v47 = vpack.c.bf16 %v7642_v33, %v7642_v33 }
 0x934   : > { %7720 = vmatmul.bf16.vlgmr.msrb.gmra.mxu0 %v7643_v47 }
 0x9b1   : > { %v7721_v46 = vpop.f32.mrf.mxu0 }
 0x9b2   : > { %v7722_v32 = vadd.f32 %v11556_v23, %v7721_v46 }
 0x9b4   : > { %7725 = vst [vmem:[%s468_s14] sm:$0xf] %v7722_v32 }
 0x9b5   : > { %11645 = shalt.err (!%p11642_p8)
}
 0x9b6   : > { %11268 = dma.vmem_to_hbm [thread:$0]  (%p11805_p5), %s7740_s24, 64, %s7742_s21, %s7727_s17  }
 0x9b9   : > { %v7723_v58 = vpop.f32.mrf.mxu0 }
 0x9ba PF: > { %p11285_p9 = scmp.ge.s32.totalorder %s11688_s28, 2  ;;  %s7753_s22 = sand.u32 1, %s11676_s25  }
 0x9bb   : > { %s7754_s3 = scalar_lea.sflag [#allocation4], %s7753_s22 }
 0x9bc   : > { %p11278_p10 = pnand %p11285_p9, %p11809_p6 }
 0x9be   : > { %p11279_p11 = pneg %p11278_p10 }
 0x9c0   : > { %11671 = dma.done.wait (%p11279_p11), %s7754_s3, 64  }
 0x9c1   : > { %11673 = vsyncadd (%p11279_p11), %s7754_s3, 4294967232  ;;  %s18486_s28 = sld [smem:[#allocation12_spill]]  ;;  %s18489_s25 = smov %s11680_s26 }
 0x9c2   : > { %s18487_s14 = sld [smem:[#allocation11_spill]] }
 0x9c3   : > { %s18488_s27 = sld [smem:[#allocation13_spill]] }
 0x9c7   : > { %p25_p12 = scmp.ge.s32.totalorder %s18486_s28, 4  }
 0x9c8   : > { %s18490_s26 = smov %s18487_s14 }
 0x9c9   :  { %27 = sbr.rel (!%p25_p12) target bundleno = 7 (0x7), region = 123 }
 0x9ce   :  { %7760 = vsyncpa [#allocation3], 1 }
 0x9cf   :  { %7762 = vsyncpa [#allocation3 + $0x1], 1 }
 0x9d0   :  { %7763 = vsyncpa [#allocation6], 1 }
 0x9d1   :  { %7764 = vsyncpa [#allocation4], 1 }
 0x9d2   :  { %7766 = vsyncpa [#allocation4 + $0x1], 1 }

</bundles_post_ra>
